<compile_context>
chip_gen: v6e
topology: v6e:2x2x1
jax: 0.10.0
libtpu: 0.0.40
codegen_flags: <defaults>
</compile_context>

<pallas_src>
import jax
import jax.numpy as jnp
from jax.experimental import pallas as pl
from jax.experimental.pallas import tpu as pltpu


# ----------------------------- Pallas kernel ------------------------------ #

def _up_doubleconv_kernel(x2_ref, x1_ref,
                          w1a_ref, w1b_ref, s1_ref, b1_ref,
                          w2_ref, s2_ref, b2_ref,
                          o_ref,
                          x2p, x1p, hp):
    # x2_ref: (H, W, C2)   skip connection            (batch dim squeezed)
    # x1_ref: (H, W, C1)   upsampled decoder feature
    # w1a/w1b: (3, 3, C2/C1, Cmid) bf16   -- conv1 weights, split per stream
    # w2:      (3, 3, Cmid, Cout)  bf16
    # s*/b*:   (1, C) f32  -- folded BatchNorm scale / bias
    # o_ref:   (H, W, Cout) f32
    # x2p/x1p/hp: zero-padded VMEM scratch (H+2, W+2, C) f32
    H, W, C2 = x2_ref.shape
    C1 = x1_ref.shape[-1]
    Cmid = w1a_ref.shape[-1]
    Cout = w2_ref.shape[-1]

    # In-VMEM zero padding (3x3 SAME halo). Re-zero every grid step so borders
    # are valid no matter how the parallel batch grid is split across cores.
    x2p[...] = jnp.zeros_like(x2p)
    x1p[...] = jnp.zeros_like(x1p)
    x2p[pl.ds(1, H), pl.ds(1, W), :] = x2_ref[...]
    x1p[pl.ds(1, H), pl.ds(1, W), :] = x1_ref[...]

    w1a = w1a_ref[...]          # (3, 3, C2, Cmid) bf16
    w1b = w1b_ref[...]          # (3, 3, C1, Cmid) bf16

    # ---- conv1 over the *implicit* concat([x2, x1], channel): two weight
    # streams, so the concatenated tensor never exists in HBM.
    acc1 = jnp.zeros((H * W, Cmid), jnp.float32)
    for ky in range(3):
        for kx in range(3):
            p2 = x2p[pl.ds(ky, H), pl.ds(kx, W), :].reshape(H * W, C2)
            p1 = x1p[pl.ds(ky, H), pl.ds(kx, W), :].reshape(H * W, C1)
            acc1 += jnp.dot(p2.astype(jnp.bfloat16), w1a[ky, kx],
                            preferred_element_type=jnp.float32)
            acc1 += jnp.dot(p1.astype(jnp.bfloat16), w1b[ky, kx],
                            preferred_element_type=jnp.float32)
    h = jnp.maximum(acc1 * s1_ref[...] + b1_ref[...], 0.0)    # BN + ReLU (f32)

    # Intermediate activation stays in VMEM (zero-padded for conv2's halo).
    hp[...] = jnp.zeros_like(hp)
    hp[pl.ds(1, H), pl.ds(1, W), :] = h.reshape(H, W, Cmid)

    # ---- conv2 + BN + ReLU
    w2 = w2_ref[...]            # (3, 3, Cmid, Cout) bf16
    acc2 = jnp.zeros((H * W, Cout), jnp.float32)
    for ky in range(3):
        for kx in range(3):
            ph = hp[pl.ds(ky, H), pl.ds(kx, W), :].reshape(H * W, Cmid)
            acc2 += jnp.dot(ph.astype(jnp.bfloat16), w2[ky, kx],
                            preferred_element_type=jnp.float32)
    y = jnp.maximum(acc2 * s2_ref[...] + b2_ref[...], 0.0)

    o_ref[...] = y.reshape(H, W, Cout)


def up_doubleconv(x2_nhwc, x1_nhwc, w1, s1, b1, w2, s2, b2):
    """Fused DoubleConv over the (virtual) concat of x2 and x1. NHWC in/out."""
    N, H, W, C2 = x2_nhwc.shape
    C1 = x1_nhwc.shape[-1]
    Cmid = w1.shape[-1]
    Cout = w2.shape[-1]

    # Split conv1 weights per input stream (torch.cat puts x2's channels first)
    # and pre-cast weights to bf16 (halves weight bytes; f32 accumulation kept).
    w1a = w1[:, :, :C2, :].astype(jnp.bfloat16)
    w1b = w1[:, :, C2:, :].astype(jnp.bfloat16)
    w2b = w2.astype(jnp.bfloat16)

    return pl.pallas_call(
        _up_doubleconv_kernel,
        out_shape=jax.ShapeDtypeStruct((N, H, W, Cout), jnp.float32),
        grid_spec=pltpu.PrefetchScalarGridSpec(
            num_scalar_prefetch=0,
            grid=(N,),
            in_specs=[
                pl.BlockSpec((None, H, W, C2), lambda n: (n, 0, 0, 0)),
                pl.BlockSpec((None, H, W, C1), lambda n: (n, 0, 0, 0)),
                pl.BlockSpec((3, 3, C2, Cmid), lambda n: (0, 0, 0, 0)),
                pl.BlockSpec((3, 3, C1, Cmid), lambda n: (0, 0, 0, 0)),
                pl.BlockSpec((1, Cmid),        lambda n: (0, 0)),
                pl.BlockSpec((1, Cmid),        lambda n: (0, 0)),
                pl.BlockSpec((3, 3, Cmid, Cout), lambda n: (0, 0, 0, 0)),
                pl.BlockSpec((1, Cout),        lambda n: (0, 0)),
                pl.BlockSpec((1, Cout),        lambda n: (0, 0)),
            ],
            out_specs=pl.BlockSpec((None, H, W, Cout), lambda n: (n, 0, 0, 0)),
            scratch_shapes=[
                pltpu.VMEM((H + 2, W + 2, C2), jnp.float32),    # padded x2
                pltpu.VMEM((H + 2, W + 2, C1), jnp.float32),    # padded x1 (up)
                pltpu.VMEM((H + 2, W + 2, Cmid), jnp.float32),  # padded h
            ],
        ),
        compiler_params=pltpu.CompilerParams(
            dimension_semantics=("parallel",)),
    )(x2_nhwc, x1_nhwc, w1a, w1b, s1, b1, w2b, s2, b2)


# ------------------------------ JAX glue ---------------------------------- #

def _interp_matrix(n_in, n_out):
    """Row-stochastic matrix M s.t. M @ v does 1D bilinear upsampling
    with align_corners=True."""
    if n_in == 1:
        return jnp.ones((n_out, 1), jnp.float32)
    src = jnp.arange(n_out, dtype=jnp.float32) * (n_in - 1) / (n_out - 1)
    i0 = jnp.clip(jnp.floor(src).astype(jnp.int32), 0, n_in - 2)
    frac = src - i0.astype(jnp.float32)
    rows = jnp.arange(n_out)
    m = jnp.zeros((n_out, n_in), jnp.float32)
    m = m.at[rows, i0].add(1.0 - frac)
    m = m.at[rows, i0 + 1].add(frac)
    return m


def bilinear_upsample_2x(x_nhwc):
    """nn.Upsample(scale_factor=2, mode='bilinear', align_corners=True), NHWC."""
    N, H, W, C = x_nhwc.shape
    Ry = _interp_matrix(H, 2 * H)   # (2H, H)
    Rx = _interp_matrix(W, 2 * W)   # (2W, W)
    y = jnp.einsum('oh,nhwc->nowc', Ry, x_nhwc)
    y = jnp.einsum('pw,nhwc->nhpc', Rx, y)
    return y


def up_forward(x1_nchw, x2_nchw, params):
    """Pallas-backed forward of `Up` (bilinear=True). NCHW in / NCHW out."""
    (w1, s1, b1), (w2, s2, b2) = params
    x1 = jnp.transpose(x1_nchw, (0, 2, 3, 1))   # -> NHWC
    x2 = jnp.transpose(x2_nchw, (0, 2, 3, 1))

    # TODO(synk): bilinear 2x upsample + NCHW<->NHWC transposes stay as cheap
    # XLA glue (interp-matrix einsums); they could be folded into the kernel.
    x1 = bilinear_upsample_2x(x1)
    diffY = x2.shape[1] - x1.shape[1]
    diffX = x2.shape[2] - x1.shape[2]
    x1 = jnp.pad(x1, ((0, 0),
                      (diffY // 2, diffY - diffY // 2),
                      (diffX // 2, diffX - diffX // 2),
                      (0, 0)))                  # usually a no-op (diff == 0)

    out = up_doubleconv(x2, x1, w1, s1, b1, w2, s2, b2)
    return jnp.transpose(out, (0, 3, 1, 2))     # -> NCHW


# --------------------------- pure-JAX reference ---------------------------- #
# Matched-precision reference: bf16 operands, f32 accumulation (same rounding
# points as the kernel), BN/ReLU epilogue in f32.

def _ref_conv_bn_relu(x, w, scale, bias):
    y = jax.lax.conv_general_dilated(
        x.astype(jnp.bfloat16), w.astype(jnp.bfloat16),
        window_strides=(1, 1), padding='SAME',
        dimension_numbers=('NHWC', 'HWIO', 'NHWC'),
        preferred_element_type=jnp.float32)
    return jnp.maximum(y * scale + bias, 0.0)


def up_forward_ref(x1_nchw, x2_nchw, params):
    (w1, s1, b1), (w2, s2, b2) = params
    x1 = jnp.transpose(x1_nchw, (0, 2, 3, 1))
    x2 = jnp.transpose(x2_nchw, (0, 2, 3, 1))
    x1 = bilinear_upsample_2x(x1)
    diffY = x2.shape[1] - x1.shape[1]
    diffX = x2.shape[2] - x1.shape[2]
    x1 = jnp.pad(x1, ((0, 0),
                      (diffY // 2, diffY - diffY // 2),
                      (diffX // 2, diffX - diffX // 2),
                      (0, 0)))
    x = jnp.concatenate([x2, x1], axis=-1)      # torch.cat(dim=1) == NHWC axis=-1
    h = _ref_conv_bn_relu(x, w1, s1, b1)
    h = _ref_conv_bn_relu(h, w2, s2, b2)
    return jnp.transpose(h, (0, 3, 1, 2))


# --------------------------- parameter init -------------------------------- #

def init_up_params(key, in_channels, out_channels):
    """DoubleConv(in_channels, out_channels, mid=in_channels//2), BN eval-mode
    stats folded into per-channel (scale, bias). Deterministic, synthetic."""
    mid = in_channels // 2
    eps = 1e-5

    def conv_bn(k, cin, cout):
        k1, k2, k3, k4, k5, k6 = jax.random.split(k, 6)
        fan_in = 3 * 3 * cin
        w = jax.random.normal(k1, (3, 3, cin, cout), jnp.float32) / jnp.sqrt(fan_in)
        conv_b = 0.05 * jax.random.normal(k2, (cout,), jnp.float32)
        gamma = 1.0 + 0.1 * jax.random.normal(k3, (cout,), jnp.float32)
        beta = 0.05 * jax.random.normal(k4, (cout,), jnp.float32)
        run_mean = 0.02 * jax.random.normal(k5, (cout,), jnp.float32)
        run_var = 1.0 + 0.1 * jnp.abs(jax.random.normal(k6, (cout,), jnp.float32))
        scale = gamma / jnp.sqrt(run_var + eps)
        bias = beta + scale * (conv_b - run_mean)
        return w, scale.reshape(1, cout), bias.reshape(1, cout)

    k1, k2 = jax.random.split(key)
    return conv_bn(k1, in_channels, mid), conv_bn(k2, mid, out_channels)


# ------------------------------- main --------------------------------------- #

if __name__ == "__main__":
    key = jax.random.PRNGKey(0)
    kx1, kx2, kp = jax.random.split(key, 3)

    # Up(in_channels=8, out_channels=8, bilinear=True)
    # x1: low-res decoder feature (C1 channels, half spatial)
    # x2: skip connection         (C2 channels, full spatial); C1 + C2 == in_channels
    N, C1, C2, Cout = 2, 4, 4, 8
    H2, W2 = 16, 16
    x1 = jax.random.normal(kx1, (N, C1, H2 // 2, W2 // 2), jnp.float32)
    x2 = jax.random.normal(kx2, (N, C2, H2, W2), jnp.float32)

    params = init_up_params(kp, C1 + C2, Cout)

    out = jax.block_until_ready(up_forward(x1, x2, params))
    assert out.shape == (N, Cout, H2, W2), out.shape

    ref = jax.block_until_ready(up_forward_ref(x1, x2, params))
    err = float(jnp.max(jnp.abs(out - ref)))
    if err < 2e-3:
        print("KERNEL_OK")
    else:
        print(f"MISMATCH max_abs_err={err}")
</pallas_src>

<mosaic_0001>
module attributes {stable_mosaic.version = 11 : i64} {
  func.func @_up_doubleconv_kernel(%arg0: i32, %arg1: memref<1x16x16x4xf32, #tpu.memory_space<vmem>>, %arg2: memref<1x16x16x4xf32, #tpu.memory_space<vmem>>, %arg3: memref<3x3x4x4xbf16, #tpu.memory_space<vmem>>, %arg4: memref<3x3x4x4xbf16, #tpu.memory_space<vmem>>, %arg5: memref<1x4xf32, #tpu.memory_space<vmem>>, %arg6: memref<1x4xf32, #tpu.memory_space<vmem>>, %arg7: memref<3x3x4x8xbf16, #tpu.memory_space<vmem>>, %arg8: memref<1x8xf32, #tpu.memory_space<vmem>>, %arg9: memref<1x8xf32, #tpu.memory_space<vmem>>, %arg10: memref<1x16x16x8xf32, #tpu.memory_space<vmem>>, %arg11: memref<18x18x4xf32, #tpu.memory_space<vmem>>, %arg12: memref<18x18x4xf32, #tpu.memory_space<vmem>>, %arg13: memref<18x18x4xf32, #tpu.memory_space<vmem>>) attributes {dimension_semantics = [#tpu.dimension_semantics<parallel>], iteration_bounds = array<i64: 2>, scalar_prefetch = 0 : i64, scratch_operands = 3 : i64, tpu.core_type = #tpu.core_type<tc>, window_params = [{transform_indices = @transform_0, window_bounds = array<i64: 1, 16, 16, 4>}, {transform_indices = @transform_1, window_bounds = array<i64: 1, 16, 16, 4>}, {pipeline_mode = #tpu.pipeline_mode<synchronous>, transform_indices = @transform_2, window_bounds = array<i64: 3, 3, 4, 4>}, {pipeline_mode = #tpu.pipeline_mode<synchronous>, transform_indices = @transform_3, window_bounds = array<i64: 3, 3, 4, 4>}, {pipeline_mode = #tpu.pipeline_mode<synchronous>, transform_indices = @transform_4, window_bounds = array<i64: 1, 4>}, {pipeline_mode = #tpu.pipeline_mode<synchronous>, transform_indices = @transform_5, window_bounds = array<i64: 1, 4>}, {pipeline_mode = #tpu.pipeline_mode<synchronous>, transform_indices = @transform_6, window_bounds = array<i64: 3, 3, 4, 8>}, {pipeline_mode = #tpu.pipeline_mode<synchronous>, transform_indices = @transform_7, window_bounds = array<i64: 1, 8>}, {pipeline_mode = #tpu.pipeline_mode<synchronous>, transform_indices = @transform_8, window_bounds = array<i64: 1, 8>}, {transform_indices = @transform_9, window_bounds = array<i64: 1, 16, 16, 8>}]} {
    %cst = arith.constant 0.000000e+00 : f32
    %0 = vector.broadcast %cst : f32 to vector<18x18x4xf32>
    %c0 = arith.constant 0 : index
    %c0_0 = arith.constant 0 : index
    %c0_1 = arith.constant 0 : index
    %1 = vector.load %arg11[%c0, %c0_0, %c0_1] : memref<18x18x4xf32, #tpu.memory_space<vmem>>, vector<18x18x4xf32>
    tpu.vector_store %arg11[%c0, %c0_0, %c0_1], %0 {strides = array<i32>} : memref<18x18x4xf32, #tpu.memory_space<vmem>>, vector<18x18x4xf32>,
    %cst_2 = arith.constant 0.000000e+00 : f32
    %2 = vector.broadcast %cst_2 : f32 to vector<18x18x4xf32>
    %c0_3 = arith.constant 0 : index
    %c0_4 = arith.constant 0 : index
    %c0_5 = arith.constant 0 : index
    %3 = vector.load %arg12[%c0_3, %c0_4, %c0_5] : memref<18x18x4xf32, #tpu.memory_space<vmem>>, vector<18x18x4xf32>
    tpu.vector_store %arg12[%c0_3, %c0_4, %c0_5], %2 {strides = array<i32>} : memref<18x18x4xf32, #tpu.memory_space<vmem>>, vector<18x18x4xf32>,
    %c0_6 = arith.constant 0 : index
    %c0_7 = arith.constant 0 : index
    %c0_8 = arith.constant 0 : index
    %c0_9 = arith.constant 0 : index
    %4 = vector.load %arg1[%c0_6, %c0_7, %c0_8, %c0_9] : memref<1x16x16x4xf32, #tpu.memory_space<vmem>>, vector<1x16x16x4xf32>
    %5 = vector.shape_cast %4 : vector<1x16x16x4xf32> to vector<16x16x4xf32>
    %c1 = arith.constant 1 : index
    %c1_10 = arith.constant 1 : index
    %c0_11 = arith.constant 0 : index
    %6 = vector.load %arg11[%c1, %c1_10, %c0_11] : memref<18x18x4xf32, #tpu.memory_space<vmem>>, vector<16x16x4xf32>
    tpu.vector_store %arg11[%c1, %c1_10, %c0_11], %5 {strides = array<i32>} : memref<18x18x4xf32, #tpu.memory_space<vmem>>, vector<16x16x4xf32>,
    %c0_12 = arith.constant 0 : index
    %c0_13 = arith.constant 0 : index
    %c0_14 = arith.constant 0 : index
    %c0_15 = arith.constant 0 : index
    %7 = vector.load %arg2[%c0_12, %c0_13, %c0_14, %c0_15] : memref<1x16x16x4xf32, #tpu.memory_space<vmem>>, vector<1x16x16x4xf32>
    %8 = vector.shape_cast %7 : vector<1x16x16x4xf32> to vector<16x16x4xf32>
    %c1_16 = arith.constant 1 : index
    %c1_17 = arith.constant 1 : index
    %c0_18 = arith.constant 0 : index
    %9 = vector.load %arg12[%c1_16, %c1_17, %c0_18] : memref<18x18x4xf32, #tpu.memory_space<vmem>>, vector<16x16x4xf32>
    tpu.vector_store %arg12[%c1_16, %c1_17, %c0_18], %8 {strides = array<i32>} : memref<18x18x4xf32, #tpu.memory_space<vmem>>, vector<16x16x4xf32>,
    %c0_19 = arith.constant 0 : index
    %c0_20 = arith.constant 0 : index
    %c0_21 = arith.constant 0 : index
    %c0_22 = arith.constant 0 : index
    %10 = vector.load %arg3[%c0_19, %c0_20, %c0_21, %c0_22] : memref<3x3x4x4xbf16, #tpu.memory_space<vmem>>, vector<3x3x4x4xbf16>
    %c0_23 = arith.constant 0 : index
    %c0_24 = arith.constant 0 : index
    %c0_25 = arith.constant 0 : index
    %c0_26 = arith.constant 0 : index
    %11 = vector.load %arg4[%c0_23, %c0_24, %c0_25, %c0_26] : memref<3x3x4x4xbf16, #tpu.memory_space<vmem>>, vector<3x3x4x4xbf16>
    %cst_27 = arith.constant 0.000000e+00 : f32
    %12 = vector.broadcast %cst_27 : f32 to vector<256x4xf32>
    %c0_28 = arith.constant 0 : index
    %c0_29 = arith.constant 0 : index
    %c0_30 = arith.constant 0 : index
    %13 = vector.load %arg11[%c0_28, %c0_29, %c0_30] : memref<18x18x4xf32, #tpu.memory_space<vmem>>, vector<16x16x4xf32>
    %14 = vector.shape_cast %13 : vector<16x16x4xf32> to vector<256x4xf32>
    %c0_31 = arith.constant 0 : index
    %c0_32 = arith.constant 0 : index
    %c0_33 = arith.constant 0 : index
    %15 = vector.load %arg12[%c0_31, %c0_32, %c0_33] : memref<18x18x4xf32, #tpu.memory_space<vmem>>, vector<16x16x4xf32>
    %16 = vector.shape_cast %15 : vector<16x16x4xf32> to vector<256x4xf32>
    %17 = arith.truncf %14 : vector<256x4xf32> to vector<256x4xbf16>
    %18 = vector.extract_strided_slice %10 {offsets = [0, 0, 0, 0], sizes = [1, 1, 4, 4], strides = [1, 1, 1, 1]} : vector<3x3x4x4xbf16> to vector<1x1x4x4xbf16>
    %19 = vector.shape_cast %18 : vector<1x1x4x4xbf16> to vector<4x4xbf16>
    %cst_34 = arith.constant dense<0.000000e+00> : vector<256x4xf32>
    %20 = tpu.matmul %17, %19, %cst_34 {dimension_numbers = #tpu.dot_dimension_numbers<[1], [0], [0], [1], [0, 0, 1, 1], [], []>} : vector<256x4xbf16>, vector<4x4xbf16>, vector<256x4xf32> -> vector<256x4xf32>
    %21 = arith.addf %12, %20 : vector<256x4xf32>
    %22 = arith.truncf %16 : vector<256x4xf32> to vector<256x4xbf16>
    %23 = vector.extract_strided_slice %11 {offsets = [0, 0, 0, 0], sizes = [1, 1, 4, 4], strides = [1, 1, 1, 1]} : vector<3x3x4x4xbf16> to vector<1x1x4x4xbf16>
    %24 = vector.shape_cast %23 : vector<1x1x4x4xbf16> to vector<4x4xbf16>
    %cst_35 = arith.constant dense<0.000000e+00> : vector<256x4xf32>
    %25 = tpu.matmul %22, %24, %cst_35 {dimension_numbers = #tpu.dot_dimension_numbers<[1], [0], [0], [1], [0, 0, 1, 1], [], []>} : vector<256x4xbf16>, vector<4x4xbf16>, vector<256x4xf32> -> vector<256x4xf32>
    %26 = arith.addf %21, %25 : vector<256x4xf32>
    %c0_36 = arith.constant 0 : index
    %c1_37 = arith.constant 1 : index
    %c0_38 = arith.constant 0 : index
    %27 = vector.load %arg11[%c0_36, %c1_37, %c0_38] : memref<18x18x4xf32, #tpu.memory_space<vmem>>, vector<16x16x4xf32>
    %28 = vector.shape_cast %27 : vector<16x16x4xf32> to vector<256x4xf32>
    %c0_39 = arith.constant 0 : index
    %c1_40 = arith.constant 1 : index
    %c0_41 = arith.constant 0 : index
    %29 = vector.load %arg12[%c0_39, %c1_40, %c0_41] : memref<18x18x4xf32, #tpu.memory_space<vmem>>, vector<16x16x4xf32>
    %30 = vector.shape_cast %29 : vector<16x16x4xf32> to vector<256x4xf32>
    %31 = arith.truncf %28 : vector<256x4xf32> to vector<256x4xbf16>
    %32 = vector.extract_strided_slice %10 {offsets = [0, 1, 0, 0], sizes = [1, 1, 4, 4], strides = [1, 1, 1, 1]} : vector<3x3x4x4xbf16> to vector<1x1x4x4xbf16>
    %33 = vector.shape_cast %32 : vector<1x1x4x4xbf16> to vector<4x4xbf16>
    %cst_42 = arith.constant dense<0.000000e+00> : vector<256x4xf32>
    %34 = tpu.matmul %31, %33, %cst_42 {dimension_numbers = #tpu.dot_dimension_numbers<[1], [0], [0], [1], [0, 0, 1, 1], [], []>} : vector<256x4xbf16>, vector<4x4xbf16>, vector<256x4xf32> -> vector<256x4xf32>
    %35 = arith.addf %26, %34 : vector<256x4xf32>
    %36 = arith.truncf %30 : vector<256x4xf32> to vector<256x4xbf16>
    %37 = vector.extract_strided_slice %11 {offsets = [0, 1, 0, 0], sizes = [1, 1, 4, 4], strides = [1, 1, 1, 1]} : vector<3x3x4x4xbf16> to vector<1x1x4x4xbf16>
    %38 = vector.shape_cast %37 : vector<1x1x4x4xbf16> to vector<4x4xbf16>
    %cst_43 = arith.constant dense<0.000000e+00> : vector<256x4xf32>
    %39 = tpu.matmul %36, %38, %cst_43 {dimension_numbers = #tpu.dot_dimension_numbers<[1], [0], [0], [1], [0, 0, 1, 1], [], []>} : vector<256x4xbf16>, vector<4x4xbf16>, vector<256x4xf32> -> vector<256x4xf32>
    %40 = arith.addf %35, %39 : vector<256x4xf32>
    %c0_44 = arith.constant 0 : index
    %c2 = arith.constant 2 : index
    %c0_45 = arith.constant 0 : index
    %41 = vector.load %arg11[%c0_44, %c2, %c0_45] : memref<18x18x4xf32, #tpu.memory_space<vmem>>, vector<16x16x4xf32>
    %42 = vector.shape_cast %41 : vector<16x16x4xf32> to vector<256x4xf32>
    %c0_46 = arith.constant 0 : index
    %c2_47 = arith.constant 2 : index
    %c0_48 = arith.constant 0 : index
    %43 = vector.load %arg12[%c0_46, %c2_47, %c0_48] : memref<18x18x4xf32, #tpu.memory_space<vmem>>, vector<16x16x4xf32>
    %44 = vector.shape_cast %43 : vector<16x16x4xf32> to vector<256x4xf32>
    %45 = arith.truncf %42 : vector<256x4xf32> to vector<256x4xbf16>
    %46 = vector.extract_strided_slice %10 {offsets = [0, 2, 0, 0], sizes = [1, 1, 4, 4], strides = [1, 1, 1, 1]} : vector<3x3x4x4xbf16> to vector<1x1x4x4xbf16>
    %47 = vector.shape_cast %46 : vector<1x1x4x4xbf16> to vector<4x4xbf16>
    %cst_49 = arith.constant dense<0.000000e+00> : vector<256x4xf32>
    %48 = tpu.matmul %45, %47, %cst_49 {dimension_numbers = #tpu.dot_dimension_numbers<[1], [0], [0], [1], [0, 0, 1, 1], [], []>} : vector<256x4xbf16>, vector<4x4xbf16>, vector<256x4xf32> -> vector<256x4xf32>
    %49 = arith.addf %40, %48 : vector<256x4xf32>
    %50 = arith.truncf %44 : vector<256x4xf32> to vector<256x4xbf16>
    %51 = vector.extract_strided_slice %11 {offsets = [0, 2, 0, 0], sizes = [1, 1, 4, 4], strides = [1, 1, 1, 1]} : vector<3x3x4x4xbf16> to vector<1x1x4x4xbf16>
    %52 = vector.shape_cast %51 : vector<1x1x4x4xbf16> to vector<4x4xbf16>
    %cst_50 = arith.constant dense<0.000000e+00> : vector<256x4xf32>
    %53 = tpu.matmul %50, %52, %cst_50 {dimension_numbers = #tpu.dot_dimension_numbers<[1], [0], [0], [1], [0, 0, 1, 1], [], []>} : vector<256x4xbf16>, vector<4x4xbf16>, vector<256x4xf32> -> vector<256x4xf32>
    %54 = arith.addf %49, %53 : vector<256x4xf32>
    %c1_51 = arith.constant 1 : index
    %c0_52 = arith.constant 0 : index
    %c0_53 = arith.constant 0 : index
    %55 = vector.load %arg11[%c1_51, %c0_52, %c0_53] : memref<18x18x4xf32, #tpu.memory_space<vmem>>, vector<16x16x4xf32>
    %56 = vector.shape_cast %55 : vector<16x16x4xf32> to vector<256x4xf32>
    %c1_54 = arith.constant 1 : index
    %c0_55 = arith.constant 0 : index
    %c0_56 = arith.constant 0 : index
    %57 = vector.load %arg12[%c1_54, %c0_55, %c0_56] : memref<18x18x4xf32, #tpu.memory_space<vmem>>, vector<16x16x4xf32>
    %58 = vector.shape_cast %57 : vector<16x16x4xf32> to vector<256x4xf32>
    %59 = arith.truncf %56 : vector<256x4xf32> to vector<256x4xbf16>
    %60 = vector.extract_strided_slice %10 {offsets = [1, 0, 0, 0], sizes = [1, 1, 4, 4], strides = [1, 1, 1, 1]} : vector<3x3x4x4xbf16> to vector<1x1x4x4xbf16>
    %61 = vector.shape_cast %60 : vector<1x1x4x4xbf16> to vector<4x4xbf16>
    %cst_57 = arith.constant dense<0.000000e+00> : vector<256x4xf32>
    %62 = tpu.matmul %59, %61, %cst_57 {dimension_numbers = #tpu.dot_dimension_numbers<[1], [0], [0], [1], [0, 0, 1, 1], [], []>} : vector<256x4xbf16>, vector<4x4xbf16>, vector<256x4xf32> -> vector<256x4xf32>
    %63 = arith.addf %54, %62 : vector<256x4xf32>
    %64 = arith.truncf %58 : vector<256x4xf32> to vector<256x4xbf16>
    %65 = vector.extract_strided_slice %11 {offsets = [1, 0, 0, 0], sizes = [1, 1, 4, 4], strides = [1, 1, 1, 1]} : vector<3x3x4x4xbf16> to vector<1x1x4x4xbf16>
    %66 = vector.shape_cast %65 : vector<1x1x4x4xbf16> to vector<4x4xbf16>
    %cst_58 = arith.constant dense<0.000000e+00> : vector<256x4xf32>
    %67 = tpu.matmul %64, %66, %cst_58 {dimension_numbers = #tpu.dot_dimension_numbers<[1], [0], [0], [1], [0, 0, 1, 1], [], []>} : vector<256x4xbf16>, vector<4x4xbf16>, vector<256x4xf32> -> vector<256x4xf32>
    %68 = arith.addf %63, %67 : vector<256x4xf32>
    %c1_59 = arith.constant 1 : index
    %c1_60 = arith.constant 1 : index
    %c0_61 = arith.constant 0 : index
    %69 = vector.load %arg11[%c1_59, %c1_60, %c0_61] : memref<18x18x4xf32, #tpu.memory_space<vmem>>, vector<16x16x4xf32>
    %70 = vector.shape_cast %69 : vector<16x16x4xf32> to vector<256x4xf32>
    %c1_62 = arith.constant 1 : index
    %c1_63 = arith.constant 1 : index
    %c0_64 = arith.constant 0 : index
    %71 = vector.load %arg12[%c1_62, %c1_63, %c0_64] : memref<18x18x4xf32, #tpu.memory_space<vmem>>, vector<16x16x4xf32>
    %72 = vector.shape_cast %71 : vector<16x16x4xf32> to vector<256x4xf32>
    %73 = arith.truncf %70 : vector<256x4xf32> to vector<256x4xbf16>
    %74 = vector.extract_strided_slice %10 {offsets = [1, 1, 0, 0], sizes = [1, 1, 4, 4], strides = [1, 1, 1, 1]} : vector<3x3x4x4xbf16> to vector<1x1x4x4xbf16>
    %75 = vector.shape_cast %74 : vector<1x1x4x4xbf16> to vector<4x4xbf16>
    %cst_65 = arith.constant dense<0.000000e+00> : vector<256x4xf32>
    %76 = tpu.matmul %73, %75, %cst_65 {dimension_numbers = #tpu.dot_dimension_numbers<[1], [0], [0], [1], [0, 0, 1, 1], [], []>} : vector<256x4xbf16>, vector<4x4xbf16>, vector<256x4xf32> -> vector<256x4xf32>
    %77 = arith.addf %68, %76 : vector<256x4xf32>
    %78 = arith.truncf %72 : vector<256x4xf32> to vector<256x4xbf16>
    %79 = vector.extract_strided_slice %11 {offsets = [1, 1, 0, 0], sizes = [1, 1, 4, 4], strides = [1, 1, 1, 1]} : vector<3x3x4x4xbf16> to vector<1x1x4x4xbf16>
    %80 = vector.shape_cast %79 : vector<1x1x4x4xbf16> to vector<4x4xbf16>
    %cst_66 = arith.constant dense<0.000000e+00> : vector<256x4xf32>
    %81 = tpu.matmul %78, %80, %cst_66 {dimension_numbers = #tpu.dot_dimension_numbers<[1], [0], [0], [1], [0, 0, 1, 1], [], []>} : vector<256x4xbf16>, vector<4x4xbf16>, vector<256x4xf32> -> vector<256x4xf32>
    %82 = arith.addf %77, %81 : vector<256x4xf32>
    %c1_67 = arith.constant 1 : index
    %c2_68 = arith.constant 2 : index
    %c0_69 = arith.constant 0 : index
    %83 = vector.load %arg11[%c1_67, %c2_68, %c0_69] : memref<18x18x4xf32, #tpu.memory_space<vmem>>, vector<16x16x4xf32>
    %84 = vector.shape_cast %83 : vector<16x16x4xf32> to vector<256x4xf32>
    %c1_70 = arith.constant 1 : index
    %c2_71 = arith.constant 2 : index
    %c0_72 = arith.constant 0 : index
    %85 = vector.load %arg12[%c1_70, %c2_71, %c0_72] : memref<18x18x4xf32, #tpu.memory_space<vmem>>, vector<16x16x4xf32>
    %86 = vector.shape_cast %85 : vector<16x16x4xf32> to vector<256x4xf32>
    %87 = arith.truncf %84 : vector<256x4xf32> to vector<256x4xbf16>
    %88 = vector.extract_strided_slice %10 {offsets = [1, 2, 0, 0], sizes = [1, 1, 4, 4], strides = [1, 1, 1, 1]} : vector<3x3x4x4xbf16> to vector<1x1x4x4xbf16>
    %89 = vector.shape_cast %88 : vector<1x1x4x4xbf16> to vector<4x4xbf16>
    %cst_73 = arith.constant dense<0.000000e+00> : vector<256x4xf32>
    %90 = tpu.matmul %87, %89, %cst_73 {dimension_numbers = #tpu.dot_dimension_numbers<[1], [0], [0], [1], [0, 0, 1, 1], [], []>} : vector<256x4xbf16>, vector<4x4xbf16>, vector<256x4xf32> -> vector<256x4xf32>
    %91 = arith.addf %82, %90 : vector<256x4xf32>
    %92 = arith.truncf %86 : vector<256x4xf32> to vector<256x4xbf16>
    %93 = vector.extract_strided_slice %11 {offsets = [1, 2, 0, 0], sizes = [1, 1, 4, 4], strides = [1, 1, 1, 1]} : vector<3x3x4x4xbf16> to vector<1x1x4x4xbf16>
    %94 = vector.shape_cast %93 : vector<1x1x4x4xbf16> to vector<4x4xbf16>
    %cst_74 = arith.constant dense<0.000000e+00> : vector<256x4xf32>
    %95 = tpu.matmul %92, %94, %cst_74 {dimension_numbers = #tpu.dot_dimension_numbers<[1], [0], [0], [1], [0, 0, 1, 1], [], []>} : vector<256x4xbf16>, vector<4x4xbf16>, vector<256x4xf32> -> vector<256x4xf32>
    %96 = arith.addf %91, %95 : vector<256x4xf32>
    %c2_75 = arith.constant 2 : index
    %c0_76 = arith.constant 0 : index
    %c0_77 = arith.constant 0 : index
    %97 = vector.load %arg11[%c2_75, %c0_76, %c0_77] : memref<18x18x4xf32, #tpu.memory_space<vmem>>, vector<16x16x4xf32>
    %98 = vector.shape_cast %97 : vector<16x16x4xf32> to vector<256x4xf32>
    %c2_78 = arith.constant 2 : index
    %c0_79 = arith.constant 0 : index
    %c0_80 = arith.constant 0 : index
    %99 = vector.load %arg12[%c2_78, %c0_79, %c0_80] : memref<18x18x4xf32, #tpu.memory_space<vmem>>, vector<16x16x4xf32>
    %100 = vector.shape_cast %99 : vector<16x16x4xf32> to vector<256x4xf32>
    %101 = arith.truncf %98 : vector<256x4xf32> to vector<256x4xbf16>
    %102 = vector.extract_strided_slice %10 {offsets = [2, 0, 0, 0], sizes = [1, 1, 4, 4], strides = [1, 1, 1, 1]} : vector<3x3x4x4xbf16> to vector<1x1x4x4xbf16>
    %103 = vector.shape_cast %102 : vector<1x1x4x4xbf16> to vector<4x4xbf16>
    %cst_81 = arith.constant dense<0.000000e+00> : vector<256x4xf32>
    %104 = tpu.matmul %101, %103, %cst_81 {dimension_numbers = #tpu.dot_dimension_numbers<[1], [0], [0], [1], [0, 0, 1, 1], [], []>} : vector<256x4xbf16>, vector<4x4xbf16>, vector<256x4xf32> -> vector<256x4xf32>
    %105 = arith.addf %96, %104 : vector<256x4xf32>
    %106 = arith.truncf %100 : vector<256x4xf32> to vector<256x4xbf16>
    %107 = vector.extract_strided_slice %11 {offsets = [2, 0, 0, 0], sizes = [1, 1, 4, 4], strides = [1, 1, 1, 1]} : vector<3x3x4x4xbf16> to vector<1x1x4x4xbf16>
    %108 = vector.shape_cast %107 : vector<1x1x4x4xbf16> to vector<4x4xbf16>
    %cst_82 = arith.constant dense<0.000000e+00> : vector<256x4xf32>
    %109 = tpu.matmul %106, %108, %cst_82 {dimension_numbers = #tpu.dot_dimension_numbers<[1], [0], [0], [1], [0, 0, 1, 1], [], []>} : vector<256x4xbf16>, vector<4x4xbf16>, vector<256x4xf32> -> vector<256x4xf32>
    %110 = arith.addf %105, %109 : vector<256x4xf32>
    %c2_83 = arith.constant 2 : index
    %c1_84 = arith.constant 1 : index
    %c0_85 = arith.constant 0 : index
    %111 = vector.load %arg11[%c2_83, %c1_84, %c0_85] : memref<18x18x4xf32, #tpu.memory_space<vmem>>, vector<16x16x4xf32>
    %112 = vector.shape_cast %111 : vector<16x16x4xf32> to vector<256x4xf32>
    %c2_86 = arith.constant 2 : index
    %c1_87 = arith.constant 1 : index
    %c0_88 = arith.constant 0 : index
    %113 = vector.load %arg12[%c2_86, %c1_87, %c0_88] : memref<18x18x4xf32, #tpu.memory_space<vmem>>, vector<16x16x4xf32>
    %114 = vector.shape_cast %113 : vector<16x16x4xf32> to vector<256x4xf32>
    %115 = arith.truncf %112 : vector<256x4xf32> to vector<256x4xbf16>
    %116 = vector.extract_strided_slice %10 {offsets = [2, 1, 0, 0], sizes = [1, 1, 4, 4], strides = [1, 1, 1, 1]} : vector<3x3x4x4xbf16> to vector<1x1x4x4xbf16>
    %117 = vector.shape_cast %116 : vector<1x1x4x4xbf16> to vector<4x4xbf16>
    %cst_89 = arith.constant dense<0.000000e+00> : vector<256x4xf32>
    %118 = tpu.matmul %115, %117, %cst_89 {dimension_numbers = #tpu.dot_dimension_numbers<[1], [0], [0], [1], [0, 0, 1, 1], [], []>} : vector<256x4xbf16>, vector<4x4xbf16>, vector<256x4xf32> -> vector<256x4xf32>
    %119 = arith.addf %110, %118 : vector<256x4xf32>
    %120 = arith.truncf %114 : vector<256x4xf32> to vector<256x4xbf16>
    %121 = vector.extract_strided_slice %11 {offsets = [2, 1, 0, 0], sizes = [1, 1, 4, 4], strides = [1, 1, 1, 1]} : vector<3x3x4x4xbf16> to vector<1x1x4x4xbf16>
    %122 = vector.shape_cast %121 : vector<1x1x4x4xbf16> to vector<4x4xbf16>
    %cst_90 = arith.constant dense<0.000000e+00> : vector<256x4xf32>
    %123 = tpu.matmul %120, %122, %cst_90 {dimension_numbers = #tpu.dot_dimension_numbers<[1], [0], [0], [1], [0, 0, 1, 1], [], []>} : vector<256x4xbf16>, vector<4x4xbf16>, vector<256x4xf32> -> vector<256x4xf32>
    %124 = arith.addf %119, %123 : vector<256x4xf32>
    %c2_91 = arith.constant 2 : index
    %c2_92 = arith.constant 2 : index
    %c0_93 = arith.constant 0 : index
    %125 = vector.load %arg11[%c2_91, %c2_92, %c0_93] : memref<18x18x4xf32, #tpu.memory_space<vmem>>, vector<16x16x4xf32>
    %126 = vector.shape_cast %125 : vector<16x16x4xf32> to vector<256x4xf32>
    %c2_94 = arith.constant 2 : index
    %c2_95 = arith.constant 2 : index
    %c0_96 = arith.constant 0 : index
    %127 = vector.load %arg12[%c2_94, %c2_95, %c0_96] : memref<18x18x4xf32, #tpu.memory_space<vmem>>, vector<16x16x4xf32>
    %128 = vector.shape_cast %127 : vector<16x16x4xf32> to vector<256x4xf32>
    %129 = arith.truncf %126 : vector<256x4xf32> to vector<256x4xbf16>
    %130 = vector.extract_strided_slice %10 {offsets = [2, 2, 0, 0], sizes = [1, 1, 4, 4], strides = [1, 1, 1, 1]} : vector<3x3x4x4xbf16> to vector<1x1x4x4xbf16>
    %131 = vector.shape_cast %130 : vector<1x1x4x4xbf16> to vector<4x4xbf16>
    %cst_97 = arith.constant dense<0.000000e+00> : vector<256x4xf32>
    %132 = tpu.matmul %129, %131, %cst_97 {dimension_numbers = #tpu.dot_dimension_numbers<[1], [0], [0], [1], [0, 0, 1, 1], [], []>} : vector<256x4xbf16>, vector<4x4xbf16>, vector<256x4xf32> -> vector<256x4xf32>
    %133 = arith.addf %124, %132 : vector<256x4xf32>
    %134 = arith.truncf %128 : vector<256x4xf32> to vector<256x4xbf16>
    %135 = vector.extract_strided_slice %11 {offsets = [2, 2, 0, 0], sizes = [1, 1, 4, 4], strides = [1, 1, 1, 1]} : vector<3x3x4x4xbf16> to vector<1x1x4x4xbf16>
    %136 = vector.shape_cast %135 : vector<1x1x4x4xbf16> to vector<4x4xbf16>
    %cst_98 = arith.constant dense<0.000000e+00> : vector<256x4xf32>
    %137 = tpu.matmul %134, %136, %cst_98 {dimension_numbers = #tpu.dot_dimension_numbers<[1], [0], [0], [1], [0, 0, 1, 1], [], []>} : vector<256x4xbf16>, vector<4x4xbf16>, vector<256x4xf32> -> vector<256x4xf32>
    %138 = arith.addf %133, %137 : vector<256x4xf32>
    %c0_99 = arith.constant 0 : index
    %c0_100 = arith.constant 0 : index
    %139 = vector.load %arg5[%c0_99, %c0_100] : memref<1x4xf32, #tpu.memory_space<vmem>>, vector<1x4xf32>
    %140 = vector.broadcast %139 : vector<1x4xf32> to vector<256x4xf32>
    %141 = arith.mulf %138, %140 : vector<256x4xf32>
    %c0_101 = arith.constant 0 : index
    %c0_102 = arith.constant 0 : index
    %142 = vector.load %arg6[%c0_101, %c0_102] : memref<1x4xf32, #tpu.memory_space<vmem>>, vector<1x4xf32>
    %143 = vector.broadcast %142 : vector<1x4xf32> to vector<256x4xf32>
    %144 = arith.addf %141, %143 : vector<256x4xf32>
    %cst_103 = arith.constant 0.000000e+00 : f32
    %145 = vector.broadcast %cst_103 : f32 to vector<256x4xf32>
    %146 = arith.maximumf %144, %145 : vector<256x4xf32>
    %cst_104 = arith.constant 0.000000e+00 : f32
    %147 = vector.broadcast %cst_104 : f32 to vector<18x18x4xf32>
    %c0_105 = arith.constant 0 : index
    %c0_106 = arith.constant 0 : index
    %c0_107 = arith.constant 0 : index
    %148 = vector.load %arg13[%c0_105, %c0_106, %c0_107] : memref<18x18x4xf32, #tpu.memory_space<vmem>>, vector<18x18x4xf32>
    tpu.vector_store %arg13[%c0_105, %c0_106, %c0_107], %147 {strides = array<i32>} : memref<18x18x4xf32, #tpu.memory_space<vmem>>, vector<18x18x4xf32>,
    %149 = vector.shape_cast %146 : vector<256x4xf32> to vector<16x16x4xf32>
    %c1_108 = arith.constant 1 : index
    %c1_109 = arith.constant 1 : index
    %c0_110 = arith.constant 0 : index
    %150 = vector.load %arg13[%c1_108, %c1_109, %c0_110] : memref<18x18x4xf32, #tpu.memory_space<vmem>>, vector<16x16x4xf32>
    tpu.vector_store %arg13[%c1_108, %c1_109, %c0_110], %149 {strides = array<i32>} : memref<18x18x4xf32, #tpu.memory_space<vmem>>, vector<16x16x4xf32>,
    %c0_111 = arith.constant 0 : index
    %c0_112 = arith.constant 0 : index
    %c0_113 = arith.constant 0 : index
    %c0_114 = arith.constant 0 : index
    %151 = vector.load %arg7[%c0_111, %c0_112, %c0_113, %c0_114] : memref<3x3x4x8xbf16, #tpu.memory_space<vmem>>, vector<3x3x4x8xbf16>
    %cst_115 = arith.constant 0.000000e+00 : f32
    %152 = vector.broadcast %cst_115 : f32 to vector<256x8xf32>
    %c0_116 = arith.constant 0 : index
    %c0_117 = arith.constant 0 : index
    %c0_118 = arith.constant 0 : index
    %153 = vector.load %arg13[%c0_116, %c0_117, %c0_118] : memref<18x18x4xf32, #tpu.memory_space<vmem>>, vector<16x16x4xf32>
    %154 = vector.shape_cast %153 : vector<16x16x4xf32> to vector<256x4xf32>
    %155 = arith.truncf %154 : vector<256x4xf32> to vector<256x4xbf16>
    %156 = vector.extract_strided_slice %151 {offsets = [0, 0, 0, 0], sizes = [1, 1, 4, 8], strides = [1, 1, 1, 1]} : vector<3x3x4x8xbf16> to vector<1x1x4x8xbf16>
    %157 = vector.shape_cast %156 : vector<1x1x4x8xbf16> to vector<4x8xbf16>
    %cst_119 = arith.constant dense<0.000000e+00> : vector<256x8xf32>
    %158 = tpu.matmul %155, %157, %cst_119 {dimension_numbers = #tpu.dot_dimension_numbers<[1], [0], [0], [1], [0, 0, 1, 1], [], []>} : vector<256x4xbf16>, vector<4x8xbf16>, vector<256x8xf32> -> vector<256x8xf32>
    %159 = arith.addf %152, %158 : vector<256x8xf32>
    %c0_120 = arith.constant 0 : index
    %c1_121 = arith.constant 1 : index
    %c0_122 = arith.constant 0 : index
    %160 = vector.load %arg13[%c0_120, %c1_121, %c0_122] : memref<18x18x4xf32, #tpu.memory_space<vmem>>, vector<16x16x4xf32>
    %161 = vector.shape_cast %160 : vector<16x16x4xf32> to vector<256x4xf32>
    %162 = arith.truncf %161 : vector<256x4xf32> to vector<256x4xbf16>
    %163 = vector.extract_strided_slice %151 {offsets = [0, 1, 0, 0], sizes = [1, 1, 4, 8], strides = [1, 1, 1, 1]} : vector<3x3x4x8xbf16> to vector<1x1x4x8xbf16>
    %164 = vector.shape_cast %163 : vector<1x1x4x8xbf16> to vector<4x8xbf16>
    %cst_123 = arith.constant dense<0.000000e+00> : vector<256x8xf32>
    %165 = tpu.matmul %162, %164, %cst_123 {dimension_numbers = #tpu.dot_dimension_numbers<[1], [0], [0], [1], [0, 0, 1, 1], [], []>} : vector<256x4xbf16>, vector<4x8xbf16>, vector<256x8xf32> -> vector<256x8xf32>
    %166 = arith.addf %159, %165 : vector<256x8xf32>
    %c0_124 = arith.constant 0 : index
    %c2_125 = arith.constant 2 : index
    %c0_126 = arith.constant 0 : index
    %167 = vector.load %arg13[%c0_124, %c2_125, %c0_126] : memref<18x18x4xf32, #tpu.memory_space<vmem>>, vector<16x16x4xf32>
    %168 = vector.shape_cast %167 : vector<16x16x4xf32> to vector<256x4xf32>
    %169 = arith.truncf %168 : vector<256x4xf32> to vector<256x4xbf16>
    %170 = vector.extract_strided_slice %151 {offsets = [0, 2, 0, 0], sizes = [1, 1, 4, 8], strides = [1, 1, 1, 1]} : vector<3x3x4x8xbf16> to vector<1x1x4x8xbf16>
    %171 = vector.shape_cast %170 : vector<1x1x4x8xbf16> to vector<4x8xbf16>
    %cst_127 = arith.constant dense<0.000000e+00> : vector<256x8xf32>
    %172 = tpu.matmul %169, %171, %cst_127 {dimension_numbers = #tpu.dot_dimension_numbers<[1], [0], [0], [1], [0, 0, 1, 1], [], []>} : vector<256x4xbf16>, vector<4x8xbf16>, vector<256x8xf32> -> vector<256x8xf32>
    %173 = arith.addf %166, %172 : vector<256x8xf32>
    %c1_128 = arith.constant 1 : index
    %c0_129 = arith.constant 0 : index
    %c0_130 = arith.constant 0 : index
    %174 = vector.load %arg13[%c1_128, %c0_129, %c0_130] : memref<18x18x4xf32, #tpu.memory_space<vmem>>, vector<16x16x4xf32>
    %175 = vector.shape_cast %174 : vector<16x16x4xf32> to vector<256x4xf32>
    %176 = arith.truncf %175 : vector<256x4xf32> to vector<256x4xbf16>
    %177 = vector.extract_strided_slice %151 {offsets = [1, 0, 0, 0], sizes = [1, 1, 4, 8], strides = [1, 1, 1, 1]} : vector<3x3x4x8xbf16> to vector<1x1x4x8xbf16>
    %178 = vector.shape_cast %177 : vector<1x1x4x8xbf16> to vector<4x8xbf16>
    %cst_131 = arith.constant dense<0.000000e+00> : vector<256x8xf32>
    %179 = tpu.matmul %176, %178, %cst_131 {dimension_numbers = #tpu.dot_dimension_numbers<[1], [0], [0], [1], [0, 0, 1, 1], [], []>} : vector<256x4xbf16>, vector<4x8xbf16>, vector<256x8xf32> -> vector<256x8xf32>
    %180 = arith.addf %173, %179 : vector<256x8xf32>
    %c1_132 = arith.constant 1 : index
    %c1_133 = arith.constant 1 : index
    %c0_134 = arith.constant 0 : index
    %181 = vector.load %arg13[%c1_132, %c1_133, %c0_134] : memref<18x18x4xf32, #tpu.memory_space<vmem>>, vector<16x16x4xf32>
    %182 = vector.shape_cast %181 : vector<16x16x4xf32> to vector<256x4xf32>
    %183 = arith.truncf %182 : vector<256x4xf32> to vector<256x4xbf16>
    %184 = vector.extract_strided_slice %151 {offsets = [1, 1, 0, 0], sizes = [1, 1, 4, 8], strides = [1, 1, 1, 1]} : vector<3x3x4x8xbf16> to vector<1x1x4x8xbf16>
    %185 = vector.shape_cast %184 : vector<1x1x4x8xbf16> to vector<4x8xbf16>
    %cst_135 = arith.constant dense<0.000000e+00> : vector<256x8xf32>
    %186 = tpu.matmul %183, %185, %cst_135 {dimension_numbers = #tpu.dot_dimension_numbers<[1], [0], [0], [1], [0, 0, 1, 1], [], []>} : vector<256x4xbf16>, vector<4x8xbf16>, vector<256x8xf32> -> vector<256x8xf32>
    %187 = arith.addf %180, %186 : vector<256x8xf32>
    %c1_136 = arith.constant 1 : index
    %c2_137 = arith.constant 2 : index
    %c0_138 = arith.constant 0 : index
    %188 = vector.load %arg13[%c1_136, %c2_137, %c0_138] : memref<18x18x4xf32, #tpu.memory_space<vmem>>, vector<16x16x4xf32>
    %189 = vector.shape_cast %188 : vector<16x16x4xf32> to vector<256x4xf32>
    %190 = arith.truncf %189 : vector<256x4xf32> to vector<256x4xbf16>
    %191 = vector.extract_strided_slice %151 {offsets = [1, 2, 0, 0], sizes = [1, 1, 4, 8], strides = [1, 1, 1, 1]} : vector<3x3x4x8xbf16> to vector<1x1x4x8xbf16>
    %192 = vector.shape_cast %191 : vector<1x1x4x8xbf16> to vector<4x8xbf16>
    %cst_139 = arith.constant dense<0.000000e+00> : vector<256x8xf32>
    %193 = tpu.matmul %190, %192, %cst_139 {dimension_numbers = #tpu.dot_dimension_numbers<[1], [0], [0], [1], [0, 0, 1, 1], [], []>} : vector<256x4xbf16>, vector<4x8xbf16>, vector<256x8xf32> -> vector<256x8xf32>
    %194 = arith.addf %187, %193 : vector<256x8xf32>
    %c2_140 = arith.constant 2 : index
    %c0_141 = arith.constant 0 : index
    %c0_142 = arith.constant 0 : index
    %195 = vector.load %arg13[%c2_140, %c0_141, %c0_142] : memref<18x18x4xf32, #tpu.memory_space<vmem>>, vector<16x16x4xf32>
    %196 = vector.shape_cast %195 : vector<16x16x4xf32> to vector<256x4xf32>
    %197 = arith.truncf %196 : vector<256x4xf32> to vector<256x4xbf16>
    %198 = vector.extract_strided_slice %151 {offsets = [2, 0, 0, 0], sizes = [1, 1, 4, 8], strides = [1, 1, 1, 1]} : vector<3x3x4x8xbf16> to vector<1x1x4x8xbf16>
    %199 = vector.shape_cast %198 : vector<1x1x4x8xbf16> to vector<4x8xbf16>
    %cst_143 = arith.constant dense<0.000000e+00> : vector<256x8xf32>
    %200 = tpu.matmul %197, %199, %cst_143 {dimension_numbers = #tpu.dot_dimension_numbers<[1], [0], [0], [1], [0, 0, 1, 1], [], []>} : vector<256x4xbf16>, vector<4x8xbf16>, vector<256x8xf32> -> vector<256x8xf32>
    %201 = arith.addf %194, %200 : vector<256x8xf32>
    %c2_144 = arith.constant 2 : index
    %c1_145 = arith.constant 1 : index
    %c0_146 = arith.constant 0 : index
    %202 = vector.load %arg13[%c2_144, %c1_145, %c0_146] : memref<18x18x4xf32, #tpu.memory_space<vmem>>, vector<16x16x4xf32>
    %203 = vector.shape_cast %202 : vector<16x16x4xf32> to vector<256x4xf32>
    %204 = arith.truncf %203 : vector<256x4xf32> to vector<256x4xbf16>
    %205 = vector.extract_strided_slice %151 {offsets = [2, 1, 0, 0], sizes = [1, 1, 4, 8], strides = [1, 1, 1, 1]} : vector<3x3x4x8xbf16> to vector<1x1x4x8xbf16>
    %206 = vector.shape_cast %205 : vector<1x1x4x8xbf16> to vector<4x8xbf16>
    %cst_147 = arith.constant dense<0.000000e+00> : vector<256x8xf32>
    %207 = tpu.matmul %204, %206, %cst_147 {dimension_numbers = #tpu.dot_dimension_numbers<[1], [0], [0], [1], [0, 0, 1, 1], [], []>} : vector<256x4xbf16>, vector<4x8xbf16>, vector<256x8xf32> -> vector<256x8xf32>
    %208 = arith.addf %201, %207 : vector<256x8xf32>
    %c2_148 = arith.constant 2 : index
    %c2_149 = arith.constant 2 : index
    %c0_150 = arith.constant 0 : index
    %209 = vector.load %arg13[%c2_148, %c2_149, %c0_150] : memref<18x18x4xf32, #tpu.memory_space<vmem>>, vector<16x16x4xf32>
    %210 = vector.shape_cast %209 : vector<16x16x4xf32> to vector<256x4xf32>
    %211 = arith.truncf %210 : vector<256x4xf32> to vector<256x4xbf16>
    %212 = vector.extract_strided_slice %151 {offsets = [2, 2, 0, 0], sizes = [1, 1, 4, 8], strides = [1, 1, 1, 1]} : vector<3x3x4x8xbf16> to vector<1x1x4x8xbf16>
    %213 = vector.shape_cast %212 : vector<1x1x4x8xbf16> to vector<4x8xbf16>
    %cst_151 = arith.constant dense<0.000000e+00> : vector<256x8xf32>
    %214 = tpu.matmul %211, %213, %cst_151 {dimension_numbers = #tpu.dot_dimension_numbers<[1], [0], [0], [1], [0, 0, 1, 1], [], []>} : vector<256x4xbf16>, vector<4x8xbf16>, vector<256x8xf32> -> vector<256x8xf32>
    %215 = arith.addf %208, %214 : vector<256x8xf32>
    %c0_152 = arith.constant 0 : index
    %c0_153 = arith.constant 0 : index
    %216 = vector.load %arg8[%c0_152, %c0_153] : memref<1x8xf32, #tpu.memory_space<vmem>>, vector<1x8xf32>
    %217 = vector.broadcast %216 : vector<1x8xf32> to vector<256x8xf32>
    %218 = arith.mulf %215, %217 : vector<256x8xf32>
    %c0_154 = arith.constant 0 : index
    %c0_155 = arith.constant 0 : index
    %219 = vector.load %arg9[%c0_154, %c0_155] : memref<1x8xf32, #tpu.memory_space<vmem>>, vector<1x8xf32>
    %220 = vector.broadcast %219 : vector<1x8xf32> to vector<256x8xf32>
    %221 = arith.addf %218, %220 : vector<256x8xf32>
    %cst_156 = arith.constant 0.000000e+00 : f32
    %222 = vector.broadcast %cst_156 : f32 to vector<256x8xf32>
    %223 = arith.maximumf %221, %222 : vector<256x8xf32>
    %224 = vector.shape_cast %223 : vector<256x8xf32> to vector<16x16x8xf32>
    %c0_157 = arith.constant 0 : index
    %c0_158 = arith.constant 0 : index
    %c0_159 = arith.constant 0 : index
    %c0_160 = arith.constant 0 : index
    %225 = vector.load %arg10[%c0_157, %c0_158, %c0_159, %c0_160] : memref<1x16x16x8xf32, #tpu.memory_space<vmem>>, vector<1x16x16x8xf32>
    %226 = vector.shape_cast %225 : vector<1x16x16x8xf32> to vector<16x16x8xf32>
    %227 = vector.shape_cast %224 : vector<16x16x8xf32> to vector<1x16x16x8xf32>
    tpu.vector_store %arg10[%c0_157, %c0_158, %c0_159, %c0_160], %227 {strides = array<i32>} : memref<1x16x16x8xf32, #tpu.memory_space<vmem>>, vector<1x16x16x8xf32>,
    return
  }
  func.func @transform_0(%arg0: i32) -> (i32, i32, i32, i32) {
    %c0_i32 = arith.constant 0 : i32
    %c0_i32_0 = arith.constant 0 : i32
    %c0_i32_1 = arith.constant 0 : i32
    %c0_i32_2 = arith.constant 0 : i32
    return %arg0, %c0_i32, %c0_i32_0, %c0_i32_1 : i32, i32, i32, i32
  }
  func.func @transform_1(%arg0: i32) -> (i32, i32, i32, i32) {
    %c0_i32 = arith.constant 0 : i32
    %c0_i32_0 = arith.constant 0 : i32
    %c0_i32_1 = arith.constant 0 : i32
    %c0_i32_2 = arith.constant 0 : i32
    return %arg0, %c0_i32, %c0_i32_0, %c0_i32_1 : i32, i32, i32, i32
  }
  func.func @transform_2(%arg0: i32) -> (i32, i32, i32, i32) {
    %c0_i32 = arith.constant 0 : i32
    %c0_i32_0 = arith.constant 0 : i32
    %c0_i32_1 = arith.constant 0 : i32
    %c0_i32_2 = arith.constant 0 : i32
    %c0_i32_3 = arith.constant 0 : i32
    return %c0_i32, %c0_i32_0, %c0_i32_1, %c0_i32_2 : i32, i32, i32, i32
  }
  func.func @transform_3(%arg0: i32) -> (i32, i32, i32, i32) {
    %c0_i32 = arith.constant 0 : i32
    %c0_i32_0 = arith.constant 0 : i32
    %c0_i32_1 = arith.constant 0 : i32
    %c0_i32_2 = arith.constant 0 : i32
    %c0_i32_3 = arith.constant 0 : i32
    return %c0_i32, %c0_i32_0, %c0_i32_1, %c0_i32_2 : i32, i32, i32, i32
  }
  func.func @transform_4(%arg0: i32) -> (i32, i32) {
    %c0_i32 = arith.constant 0 : i32
    %c0_i32_0 = arith.constant 0 : i32
    %c0_i32_1 = arith.constant 0 : i32
    return %c0_i32, %c0_i32_0 : i32, i32
  }
  func.func @transform_5(%arg0: i32) -> (i32, i32) {
    %c0_i32 = arith.constant 0 : i32
    %c0_i32_0 = arith.constant 0 : i32
    %c0_i32_1 = arith.constant 0 : i32
    return %c0_i32, %c0_i32_0 : i32, i32
  }
  func.func @transform_6(%arg0: i32) -> (i32, i32, i32, i32) {
    %c0_i32 = arith.constant 0 : i32
    %c0_i32_0 = arith.constant 0 : i32
    %c0_i32_1 = arith.constant 0 : i32
    %c0_i32_2 = arith.constant 0 : i32
    %c0_i32_3 = arith.constant 0 : i32
    return %c0_i32, %c0_i32_0, %c0_i32_1, %c0_i32_2 : i32, i32, i32, i32
  }
  func.func @transform_7(%arg0: i32) -> (i32, i32) {
    %c0_i32 = arith.constant 0 : i32
    %c0_i32_0 = arith.constant 0 : i32
    %c0_i32_1 = arith.constant 0 : i32
    return %c0_i32, %c0_i32_0 : i32, i32
  }
  func.func @transform_8(%arg0: i32) -> (i32, i32) {
    %c0_i32 = arith.constant 0 : i32
    %c0_i32_0 = arith.constant 0 : i32
    %c0_i32_1 = arith.constant 0 : i32
    return %c0_i32, %c0_i32_0 : i32, i32
  }
  func.func @transform_9(%arg0: i32) -> (i32, i32, i32, i32) {
    %c0_i32 = arith.constant 0 : i32
    %c0_i32_0 = arith.constant 0 : i32
    %c0_i32_1 = arith.constant 0 : i32
    %c0_i32_2 = arith.constant 0 : i32
    return %arg0, %c0_i32, %c0_i32_0, %c0_i32_1 : i32, i32, i32, i32
  }
}

</mosaic_0001>

<bundles_post_ra>
// kernel: tpu_custom_call.1
= control target key start
LH: loop header
LB: loop body
LE: loop exit
PB: predicated region body
PF: predicated region fallthrough
CT: control target
= control target key end

     0   :  { %s10715_s30 = smov 0   ;;  %s14090_s0 = inlined_call_operand.vmem [shape: f32[2,16,16,4], index: 0, kind: input, shape index: {}]   ;;  %s14091_s1 = inlined_call_operand.vmem [shape: f32[2,16,16,4], index: 1, kind: input, shape index: {}]   ;;  %s14092_s2 = inlined_call_operand.vmem [shape: bf16[3,3,4,4], index: 2, kind: input, shape index: {}]   ;;  %s14093_s3 = inlined_call_operand.vmem [shape: bf16[3,3,4,4], index: 3, kind: input, shape index: {}]   ;;  %s14094_s4 = inlined_call_operand.vmem [shape: f32[1,4], index: 4, kind: input, shape index: {}]   ;;  %s14095_s5 = inlined_call_operand.vmem [shape: f32[1,4], index: 5, kind: input, shape index: {}]   ;;  %s14096_s6 = inlined_call_operand.vmem [shape: bf16[3,3,4,8], index: 6, kind: input, shape index: {}]   ;;  %s14097_s7 = inlined_call_operand.vmem [shape: f32[1,8], index: 7, kind: input, shape index: {}]   ;;  %s14098_s8 = inlined_call_operand.vmem [shape: f32[1,8], index: 8, kind: input, shape index: {}]   ;;  %s14099_s9 = inlined_call_operand.vmem [shape: f32[2,16,16,8], index: 9, kind: output, shape index: {}]  }
   0x1 LB: > { %s8788_s10 = sadd.s32 4294967295, %s10662_s30   ;;  %p8792_p0 = scmp.ge.s32.totalorder %s10662_s30, 1  ;;  %s10662_s30 = sphi %s10715_s30, %s19_s30  }
   0x2   : > { %p297_p1 = scmp.lt.s32.totalorder %s10662_s30, 3 }
   0x4   : > { %p298_p2 = pnand %p8792_p0, %p297_p1 }
   0x6   : > { %301 = sbr.rel (%p298_p2) target bundleno = 1387 (0x56b), region = 56 }
   0xb   : > { %v603_v0 = vld [vmem:[%s14093_s3] sm:$0x3]  ;;  %vm756_vm0 = vcmask 1041408   ;;  %p10728_p3 = scmp.lt.s32.totalorder %s8788_s10, 1  ;;  %vm354_vm1 = vcmask 31744   ;;  %vm357_vm2 = vcmask 25600  }
   0xc   : > { %10620 = vmatprep.subr.msk.bf16.mxu1 %vm756_vm0, %v603_v0  ;;  %v10734_v1 = vsel %vm756_vm0, %v603_v0, 0  ;;  %10619 = vmatprep.subr.msk.bf16.mxu0 %vm756_vm0, %v603_v0  ;;  %v10664_v2 = vmov 0.0   ;;  %v10956_v3 = vld [vmem:[%s14092_s2] sm:$0x3]  ;;  %v10961_v4 = vld [vmem:[%s14092_s2 + $0x2] sm:$0x3] }
   0xd   : > { %434 = vst.msk [vmem:[#allocation3 + $0xc0] sm:$0xff] %vm354_vm1, %v10664_v2  ;;  %435 = vst.msk [vmem:[#allocation3 + $0xc8] sm:$0xff] %vm354_vm1, %v10664_v2  ;;  %10618 = vmatpush3.bf16.msra.mxu1 %v10734_v1  ;;  %9700 = vmatpush3.bf16.msra.mxu0 %v10734_v1  ;;  %s14368_s10 = smov (!%p10728_p3, %s8788_s10), 1  ;;  %v970_v38 = vsel %vm756_vm0, %v10956_v3, 0  ;;  %v1262_v43 = vsel %vm756_vm0, %v10961_v4, 0  ;;  %vm8688_vm3 = vcmask 64512  }
   0xe   : > { %355 = vst.msk [vmem:[#allocation2] sm:$0xff] %vm354_vm1, %v10664_v2  ;;  %356 = vst.msk [vmem:[#allocation2 + $0x8] sm:$0xff] %vm354_vm1, %v10664_v2  ;;  %10621 = vmatprep.subr.msk.bf16.mxu1 %vm756_vm0, %v10956_v3  ;;  %10622 = vmatprep.subr.msk.bf16.mxu0 %vm756_vm0, %v10961_v4  ;;  %s11084_s18 = sshll.u32 %s14368_s10, 8  ;;  %v11149_v45 = vld [vmem:[%s14093_s3 + $0x2] sm:$0x3] }
   0xf   : > { %359 = vst.msk [vmem:[#allocation2 + $0x18] sm:$0xff] %vm354_vm1, %v10664_v2  ;;  %360 = vst.msk [vmem:[#allocation2 + $0x20] sm:$0xff] %vm354_vm1, %v10664_v2  ;;  %s11090_s21 = scalar_lea.vmem %s14091_s1, %s11084_s18  ;;  %v11154_v46 = vld [vmem:[%s14092_s2 + $0x4] sm:$0x3]  ;;  %s11168_s28 = scalar_lea.vmem %s14090_s0, %s11084_s18 }
  0x10   : > { %362 = vst.msk [vmem:[#allocation2 + $0x30] sm:$0xff] %vm354_vm1, %v10664_v2  ;;  %363 = vst.msk [vmem:[#allocation2 + $0x38] sm:$0xff] %vm354_vm1, %v10664_v2  ;;  %v543_v5 = vld [vmem:[%s11090_s21 + $0x70] sm:$0xff]  ;;  %v544_v6 = vld [vmem:[%s11090_s21 + $0x78] sm:$0xff]  ;;  %s13850_s26 = scalar_lea.vmem %s14099_s9, %s11084_s18 }
  0x11   : > { %365 = vst.msk [vmem:[#allocation2 + $0x48] sm:$0xff] %vm354_vm1, %v10664_v2  ;;  %366 = vst.msk [vmem:[#allocation2 + $0x50] sm:$0xff] %vm354_vm1, %v10664_v2  ;;  %v545_v7 = vld [vmem:[%s11090_s21 + $0x80] sm:$0xff]  ;;  %v546_v8 = vld [vmem:[%s11090_s21 + $0x88] sm:$0xff] }
  0x12   : > { %368 = vst.msk [vmem:[#allocation2 + $0x60] sm:$0xff] %vm354_vm1, %v10664_v2  ;;  %369 = vst.msk [vmem:[#allocation2 + $0x68] sm:$0xff] %vm354_vm1, %v10664_v2  ;;  %v529_v9 = vld [vmem:[%s11090_s21] sm:$0xff]  ;;  %v530_v10 = vld [vmem:[%s11090_s21 + $0x8] sm:$0xff] }
  0x13   : > { %371 = vst.msk [vmem:[#allocation2 + $0x78] sm:$0xff] %vm354_vm1, %v10664_v2  ;;  %372 = vst.msk [vmem:[#allocation2 + $0x80] sm:$0xff] %vm354_vm1, %v10664_v2  ;;  %v547_v13 = vld [vmem:[%s11090_s21 + $0x90] sm:$0xff]  ;;  %v548_v15 = vld [vmem:[%s11090_s21 + $0x98] sm:$0xff] }
  0x14   : > { %374 = vst.msk [vmem:[#allocation2 + $0x90] sm:$0xff] %vm354_vm1, %v10664_v2  ;;  %375 = vst.msk [vmem:[#allocation2 + $0x98] sm:$0xff] %vm354_vm1, %v10664_v2  ;;  %v549_v16 = vld [vmem:[%s11090_s21 + $0xa0] sm:$0xff]  ;;  %v550_v17 = vld [vmem:[%s11090_s21 + $0xa8] sm:$0xff] }
  0x15   : > { %377 = vst.msk [vmem:[#allocation2 + $0xa8] sm:$0xff] %vm354_vm1, %v10664_v2  ;;  %378 = vst.msk [vmem:[#allocation2 + $0xb0] sm:$0xff] %vm354_vm1, %v10664_v2  ;;  %v531_v18 = vld [vmem:[%s11090_s21 + $0x10] sm:$0xff]  ;;  %v532_v19 = vld [vmem:[%s11090_s21 + $0x18] sm:$0xff] }
  0x16   : > { %380 = vst.msk [vmem:[#allocation2 + $0xc0] sm:$0xff] %vm354_vm1, %v10664_v2  ;;  %381 = vst.msk [vmem:[#allocation2 + $0xc8] sm:$0xff] %vm354_vm1, %v10664_v2  ;;  %v533_v20 = vld [vmem:[%s11090_s21 + $0x20] sm:$0xff]  ;;  %v534_v21 = vld [vmem:[%s11090_s21 + $0x28] sm:$0xff] }
  0x17   : > { %383 = vst.msk [vmem:[#allocation2 + $0xd8] sm:$0xff] %vm354_vm1, %v10664_v2  ;;  %384 = vst.msk [vmem:[#allocation2 + $0xe0] sm:$0xff] %vm354_vm1, %v10664_v2  ;;  %v551_v22 = vld [vmem:[%s11090_s21 + $0xb0] sm:$0xff]  ;;  %v552_v23 = vld [vmem:[%s11090_s21 + $0xb8] sm:$0xff] }
  0x18   : > { %386 = vst.msk [vmem:[#allocation2 + $0xf0] sm:$0xff] %vm354_vm1, %v10664_v2  ;;  %387 = vst.msk [vmem:[#allocation2 + $0xf8] sm:$0xff] %vm354_vm1, %v10664_v2  ;;  %v553_v24 = vld [vmem:[%s11090_s21 + $0xc0] sm:$0xff]  ;;  %v554_v25 = vld [vmem:[%s11090_s21 + $0xc8] sm:$0xff] }
  0x19   : > { %389 = vst.msk [vmem:[#allocation2 + $0x108] sm:$0xff] %vm354_vm1, %v10664_v2  ;;  %390 = vst.msk [vmem:[#allocation2 + $0x110] sm:$0xff] %vm354_vm1, %v10664_v2  ;;  %v535_v26 = vld [vmem:[%s11090_s21 + $0x30] sm:$0xff]  ;;  %v536_v27 = vld [vmem:[%s11090_s21 + $0x38] sm:$0xff] }
  0x1a   : > { %392 = vst.msk [vmem:[#allocation2 + $0x120] sm:$0xff] %vm354_vm1, %v10664_v2  ;;  %393 = vst.msk [vmem:[#allocation2 + $0x128] sm:$0xff] %vm354_vm1, %v10664_v2  ;;  %v537_v28 = vld [vmem:[%s11090_s21 + $0x40] sm:$0xff]  ;;  %v538_v29 = vld [vmem:[%s11090_s21 + $0x48] sm:$0xff] }
  0x1b   : > { %395 = vst.msk [vmem:[#allocation2 + $0x138] sm:$0xff] %vm354_vm1, %v10664_v2  ;;  %396 = vst.msk [vmem:[#allocation2 + $0x140] sm:$0xff] %vm354_vm1, %v10664_v2  ;;  %v555_v41 = vld [vmem:[%s11090_s21 + $0xd0] sm:$0xff]  ;;  %v556_v42 = vld [vmem:[%s11090_s21 + $0xd8] sm:$0xff] }
  0x1c   : > { %398 = vst.msk [vmem:[#allocation2 + $0x150] sm:$0xff] %vm354_vm1, %v10664_v2  ;;  %399 = vst.msk [vmem:[#allocation2 + $0x158] sm:$0xff] %vm354_vm1, %v10664_v2  ;;  %v557_v61 = vld [vmem:[%s11090_s21 + $0xe0] sm:$0xff]  ;;  %v558_v62 = vld [vmem:[%s11090_s21 + $0xe8] sm:$0xff] }
  0x1d   : > { %401 = vst.msk [vmem:[#allocation2 + $0x168] sm:$0xff] %vm354_vm1, %v10664_v2  ;;  %402 = vst.msk [vmem:[#allocation2 + $0x170] sm:$0xff] %vm354_vm1, %v10664_v2  ;;  %v539_v63 = vld [vmem:[%s11090_s21 + $0x50] sm:$0xff]  ;;  %v541_v3 = vld [vmem:[%s11090_s21 + $0x60] sm:$0xff] }
  0x1e   : > { %404 = vst.msk [vmem:[#allocation2 + $0x180] sm:$0xff] %vm354_vm1, %v10664_v2  ;;  %405 = vst.msk [vmem:[#allocation2 + $0x188] sm:$0xff] %vm354_vm1, %v10664_v2  ;;  %v542_v4 = vld [vmem:[%s11090_s21 + $0x68] sm:$0xff] }
  0x1f   : > { %407 = vst.msk [vmem:[#allocation2 + $0x198] sm:$0xff] %vm354_vm1, %v10664_v2  ;;  %408 = vst.msk [vmem:[#allocation2 + $0x1a0] sm:$0xff] %vm354_vm1, %v10664_v2 }
  0x20   : > { %410 = vst.msk [vmem:[#allocation3] sm:$0xff] %vm354_vm1, %v10664_v2  ;;  %411 = vst.msk [vmem:[#allocation3 + $0x8] sm:$0xff] %vm354_vm1, %v10664_v2 }
  0x21   : > { %413 = vst.msk [vmem:[#allocation3 + $0x18] sm:$0xff] %vm354_vm1, %v10664_v2  ;;  %414 = vst.msk [vmem:[#allocation3 + $0x20] sm:$0xff] %vm354_vm1, %v10664_v2 }
  0x22   : > { %416 = vst.msk [vmem:[#allocation3 + $0x30] sm:$0xff] %vm354_vm1, %v10664_v2  ;;  %417 = vst.msk [vmem:[#allocation3 + $0x38] sm:$0xff] %vm354_vm1, %v10664_v2 }
  0x23   : > { %419 = vst.msk [vmem:[#allocation3 + $0x48] sm:$0xff] %vm354_vm1, %v10664_v2  ;;  %420 = vst.msk [vmem:[#allocation3 + $0x50] sm:$0xff] %vm354_vm1, %v10664_v2 }
  0x24   : > { %422 = vst.msk [vmem:[#allocation3 + $0x60] sm:$0xff] %vm354_vm1, %v10664_v2  ;;  %423 = vst.msk [vmem:[#allocation3 + $0x68] sm:$0xff] %vm354_vm1, %v10664_v2 }
  0x25   : > { %425 = vst.msk [vmem:[#allocation3 + $0x78] sm:$0xff] %vm354_vm1, %v10664_v2  ;;  %426 = vst.msk [vmem:[#allocation3 + $0x80] sm:$0xff] %vm354_vm1, %v10664_v2 }
  0x26   : > { %428 = vst.msk [vmem:[#allocation3 + $0x90] sm:$0xff] %vm354_vm1, %v10664_v2  ;;  %429 = vst.msk [vmem:[#allocation3 + $0x98] sm:$0xff] %vm354_vm1, %v10664_v2 }
  0x27   : > { %431 = vst.msk [vmem:[#allocation3 + $0xa8] sm:$0xff] %vm354_vm1, %v10664_v2  ;;  %432 = vst.msk [vmem:[#allocation3 + $0xb0] sm:$0xff] %vm354_vm1, %v10664_v2  ;;  %v644_v11 = vld [vmem:[#allocation3] sm:$0xff]  ;;  %v645_v12 = vld [vmem:[#allocation3 + $0x8] sm:$0xff] }
  0x28   : > { %437 = vst.msk [vmem:[#allocation3 + $0xd8] sm:$0xff] %vm354_vm1, %v10664_v2  ;;  %438 = vst.msk [vmem:[#allocation3 + $0xe0] sm:$0xff] %vm354_vm1, %v10664_v2  ;;  %v692_v14 = vpack.c.bf16 %v645_v12, %v644_v11 }
  0x29   : > { %440 = vst.msk [vmem:[#allocation3 + $0xf0] sm:$0xff] %vm354_vm1, %v10664_v2  ;;  %441 = vst.msk [vmem:[#allocation3 + $0xf8] sm:$0xff] %vm354_vm1, %v10664_v2 }
  0x2a   : > { %443 = vst.msk [vmem:[#allocation3 + $0x108] sm:$0xff] %vm354_vm1, %v10664_v2  ;;  %444 = vst.msk [vmem:[#allocation3 + $0x110] sm:$0xff] %vm354_vm1, %v10664_v2  ;;  %9701 = vmatprep.mubr.msk.bf16.mxu0 %vm354_vm1, %v692_v14  ;;  %v467_v14 = vld [vmem:[%s11168_s28 + $0x18] sm:$0xff] }
  0x2b   : > { %446 = vst.msk [vmem:[#allocation3 + $0x120] sm:$0xff] %vm354_vm1, %v10664_v2  ;;  %447 = vst.msk [vmem:[#allocation3 + $0x128] sm:$0xff] %vm354_vm1, %v10664_v2 }
  0x2c   : > { %449 = vst.msk [vmem:[#allocation3 + $0x138] sm:$0xff] %vm354_vm1, %v10664_v2  ;;  %450 = vst.msk [vmem:[#allocation3 + $0x140] sm:$0xff] %vm354_vm1, %v10664_v2 }
  0x2d   : > { %452 = vst.msk [vmem:[#allocation3 + $0x150] sm:$0xff] %vm354_vm1, %v10664_v2  ;;  %453 = vst.msk [vmem:[#allocation3 + $0x158] sm:$0xff] %vm354_vm1, %v10664_v2 }
  0x2e   : > { %455 = vst.msk [vmem:[#allocation3 + $0x168] sm:$0xff] %vm354_vm1, %v10664_v2  ;;  %456 = vst.msk [vmem:[#allocation3 + $0x170] sm:$0xff] %vm354_vm1, %v10664_v2 }
  0x2f   : > { %458 = vst.msk [vmem:[#allocation3 + $0x180] sm:$0xff] %vm354_vm1, %v10664_v2  ;;  %459 = vst.msk [vmem:[#allocation3 + $0x188] sm:$0xff] %vm354_vm1, %v10664_v2 }
  0x30   : > { %461 = vst.msk [vmem:[#allocation3 + $0x198] sm:$0xff] %vm354_vm1, %v10664_v2  ;;  %462 = vst.msk [vmem:[#allocation3 + $0x1a0] sm:$0xff] %vm354_vm1, %v10664_v2 }
  0x31   : > { %5917 = vst.msk [vmem:[#allocation4] sm:$0xff] %vm354_vm1, %v10664_v2  ;;  %5918 = vst.msk [vmem:[#allocation4 + $0x8] sm:$0xff] %vm354_vm1, %v10664_v2 }
  0x32   : > { %5920 = vst.msk [vmem:[#allocation4 + $0x18] sm:$0xff] %vm354_vm1, %v10664_v2  ;;  %5921 = vst.msk [vmem:[#allocation4 + $0x20] sm:$0xff] %vm354_vm1, %v10664_v2 }
  0x33   : > { %5923 = vst.msk [vmem:[#allocation4 + $0x30] sm:$0xff] %vm354_vm1, %v10664_v2  ;;  %5924 = vst.msk [vmem:[#allocation4 + $0x38] sm:$0xff] %vm354_vm1, %v10664_v2 }
  0x34   : > { %5926 = vst.msk [vmem:[#allocation4 + $0x48] sm:$0xff] %vm354_vm1, %v10664_v2  ;;  %5927 = vst.msk [vmem:[#allocation4 + $0x50] sm:$0xff] %vm354_vm1, %v10664_v2 }
  0x35   : > { %5929 = vst.msk [vmem:[#allocation4 + $0x60] sm:$0xff] %vm354_vm1, %v10664_v2  ;;  %5930 = vst.msk [vmem:[#allocation4 + $0x68] sm:$0xff] %vm354_vm1, %v10664_v2 }
  0x36   : > { %5932 = vst.msk [vmem:[#allocation4 + $0x78] sm:$0xff] %vm354_vm1, %v10664_v2  ;;  %5933 = vst.msk [vmem:[#allocation4 + $0x80] sm:$0xff] %vm354_vm1, %v10664_v2 }
  0x37   : > { %5935 = vst.msk [vmem:[#allocation4 + $0x90] sm:$0xff] %vm354_vm1, %v10664_v2  ;;  %5936 = vst.msk [vmem:[#allocation4 + $0x98] sm:$0xff] %vm354_vm1, %v10664_v2 }
  0x38   : > { %5938 = vst.msk [vmem:[#allocation4 + $0xa8] sm:$0xff] %vm354_vm1, %v10664_v2  ;;  %5939 = vst.msk [vmem:[#allocation4 + $0xb0] sm:$0xff] %vm354_vm1, %v10664_v2 }
  0x39   : > { %5941 = vst.msk [vmem:[#allocation4 + $0xc0] sm:$0xff] %vm354_vm1, %v10664_v2  ;;  %5942 = vst.msk [vmem:[#allocation4 + $0xc8] sm:$0xff] %vm354_vm1, %v10664_v2 }
  0x3a   : > { %5944 = vst.msk [vmem:[#allocation4 + $0xd8] sm:$0xff] %vm354_vm1, %v10664_v2  ;;  %5945 = vst.msk [vmem:[#allocation4 + $0xe0] sm:$0xff] %vm354_vm1, %v10664_v2 }
  0x3b   : > { %5947 = vst.msk [vmem:[#allocation4 + $0xf0] sm:$0xff] %vm354_vm1, %v10664_v2  ;;  %5948 = vst.msk [vmem:[#allocation4 + $0xf8] sm:$0xff] %vm354_vm1, %v10664_v2 }
  0x3c   : > { %5950 = vst.msk [vmem:[#allocation4 + $0x108] sm:$0xff] %vm354_vm1, %v10664_v2  ;;  %5951 = vst.msk [vmem:[#allocation4 + $0x110] sm:$0xff] %vm354_vm1, %v10664_v2 }
  0x3d   : > { %5953 = vst.msk [vmem:[#allocation4 + $0x120] sm:$0xff] %vm354_vm1, %v10664_v2  ;;  %5954 = vst.msk [vmem:[#allocation4 + $0x128] sm:$0xff] %vm354_vm1, %v10664_v2 }
  0x3e   : > { %5956 = vst.msk [vmem:[#allocation4 + $0x138] sm:$0xff] %vm354_vm1, %v10664_v2  ;;  %5957 = vst.msk [vmem:[#allocation4 + $0x140] sm:$0xff] %vm354_vm1, %v10664_v2 }
  0x3f   : > { %5959 = vst.msk [vmem:[#allocation4 + $0x150] sm:$0xff] %vm354_vm1, %v10664_v2  ;;  %5960 = vst.msk [vmem:[#allocation4 + $0x158] sm:$0xff] %vm354_vm1, %v10664_v2 }
  0x40   : > { %5962 = vst.msk [vmem:[#allocation4 + $0x168] sm:$0xff] %vm354_vm1, %v10664_v2  ;;  %5963 = vst.msk [vmem:[#allocation4 + $0x170] sm:$0xff] %vm354_vm1, %v10664_v2 }
  0x41   : > { %5965 = vst.msk [vmem:[#allocation4 + $0x180] sm:$0xff] %vm354_vm1, %v10664_v2  ;;  %5966 = vst.msk [vmem:[#allocation4 + $0x188] sm:$0xff] %vm354_vm1, %v10664_v2 }
  0x42   : > { %5968 = vst.msk [vmem:[#allocation4 + $0x198] sm:$0xff] %vm354_vm1, %v10664_v2  ;;  %5969 = vst.msk [vmem:[#allocation4 + $0x1a0] sm:$0xff] %vm354_vm1, %v10664_v2 }
  0x43   : > { %436 = vst.msk [vmem:[#allocation3 + $0xd0] sm:$0x3] %vm357_vm2, %v10664_v2  ;;  %358 = vst.msk [vmem:[#allocation2 + $0x10] sm:$0x3] %vm357_vm2, %v10664_v2 }
  0x44   : > { %361 = vst.msk [vmem:[#allocation2 + $0x28] sm:$0x3] %vm357_vm2, %v10664_v2  ;;  %364 = vst.msk [vmem:[#allocation2 + $0x40] sm:$0x3] %vm357_vm2, %v10664_v2 }
  0x45   : > { %367 = vst.msk [vmem:[#allocation2 + $0x58] sm:$0x3] %vm357_vm2, %v10664_v2  ;;  %370 = vst.msk [vmem:[#allocation2 + $0x70] sm:$0x3] %vm357_vm2, %v10664_v2 }
  0x46   : > { %373 = vst.msk [vmem:[#allocation2 + $0x88] sm:$0x3] %vm357_vm2, %v10664_v2  ;;  %376 = vst.msk [vmem:[#allocation2 + $0xa0] sm:$0x3] %vm357_vm2, %v10664_v2 }
  0x47   : > { %379 = vst.msk [vmem:[#allocation2 + $0xb8] sm:$0x3] %vm357_vm2, %v10664_v2  ;;  %382 = vst.msk [vmem:[#allocation2 + $0xd0] sm:$0x3] %vm357_vm2, %v10664_v2 }
  0x48   : > { %385 = vst.msk [vmem:[#allocation2 + $0xe8] sm:$0x3] %vm357_vm2, %v10664_v2  ;;  %388 = vst.msk [vmem:[#allocation2 + $0x100] sm:$0x3] %vm357_vm2, %v10664_v2 }
  0x49   : > { %391 = vst.msk [vmem:[#allocation2 + $0x118] sm:$0x3] %vm357_vm2, %v10664_v2  ;;  %394 = vst.msk [vmem:[#allocation2 + $0x130] sm:$0x3] %vm357_vm2, %v10664_v2 }
  0x4a   : > { %397 = vst.msk [vmem:[#allocation2 + $0x148] sm:$0x3] %vm357_vm2, %v10664_v2  ;;  %400 = vst.msk [vmem:[#allocation2 + $0x160] sm:$0x3] %vm357_vm2, %v10664_v2 }
  0x4b   : > { %403 = vst.msk [vmem:[#allocation2 + $0x178] sm:$0x3] %vm357_vm2, %v10664_v2  ;;  %406 = vst.msk [vmem:[#allocation2 + $0x190] sm:$0x3] %vm357_vm2, %v10664_v2 }
  0x4c   : > { %409 = vst.msk [vmem:[#allocation2 + $0x1a8] sm:$0x3] %vm357_vm2, %v10664_v2  ;;  %412 = vst.msk [vmem:[#allocation3 + $0x10] sm:$0x3] %vm357_vm2, %v10664_v2 }
  0x4d   : > { %415 = vst.msk [vmem:[#allocation3 + $0x28] sm:$0x3] %vm357_vm2, %v10664_v2  ;;  %418 = vst.msk [vmem:[#allocation3 + $0x40] sm:$0x3] %vm357_vm2, %v10664_v2 }
  0x4e   : > { %421 = vst.msk [vmem:[#allocation3 + $0x58] sm:$0x3] %vm357_vm2, %v10664_v2  ;;  %424 = vst.msk [vmem:[#allocation3 + $0x70] sm:$0x3] %vm357_vm2, %v10664_v2 }
  0x4f   : > { %427 = vst.msk [vmem:[#allocation3 + $0x88] sm:$0x3] %vm357_vm2, %v10664_v2  ;;  %430 = vst.msk [vmem:[#allocation3 + $0xa0] sm:$0x3] %vm357_vm2, %v10664_v2 }
  0x50   : > { %433 = vst.msk [vmem:[#allocation3 + $0xb8] sm:$0x3] %vm357_vm2, %v10664_v2  ;;  %439 = vst.msk [vmem:[#allocation3 + $0xe8] sm:$0x3] %vm357_vm2, %v10664_v2 }
  0x51   : > { %442 = vst.msk [vmem:[#allocation3 + $0x100] sm:$0x3] %vm357_vm2, %v10664_v2  ;;  %445 = vst.msk [vmem:[#allocation3 + $0x118] sm:$0x3] %vm357_vm2, %v10664_v2 }
  0x52   : > { %448 = vst.msk [vmem:[#allocation3 + $0x130] sm:$0x3] %vm357_vm2, %v10664_v2  ;;  %451 = vst.msk [vmem:[#allocation3 + $0x148] sm:$0x3] %vm357_vm2, %v10664_v2 }
  0x53   : > { %454 = vst.msk [vmem:[#allocation3 + $0x160] sm:$0x3] %vm357_vm2, %v10664_v2  ;;  %457 = vst.msk [vmem:[#allocation3 + $0x178] sm:$0x3] %vm357_vm2, %v10664_v2 }
  0x54   : > { %460 = vst.msk [vmem:[#allocation3 + $0x190] sm:$0x3] %vm357_vm2, %v10664_v2  ;;  %463 = vst.msk [vmem:[#allocation3 + $0x1a8] sm:$0x3] %vm357_vm2, %v10664_v2 }
  0x55   : > { %5919 = vst.msk [vmem:[#allocation4 + $0x10] sm:$0x3] %vm357_vm2, %v10664_v2  ;;  %5922 = vst.msk [vmem:[#allocation4 + $0x28] sm:$0x3] %vm357_vm2, %v10664_v2 }
  0x56   : > { %5925 = vst.msk [vmem:[#allocation4 + $0x40] sm:$0x3] %vm357_vm2, %v10664_v2  ;;  %5928 = vst.msk [vmem:[#allocation4 + $0x58] sm:$0x3] %vm357_vm2, %v10664_v2 }
  0x57   : > { %5931 = vst.msk [vmem:[#allocation4 + $0x70] sm:$0x3] %vm357_vm2, %v10664_v2  ;;  %5934 = vst.msk [vmem:[#allocation4 + $0x88] sm:$0x3] %vm357_vm2, %v10664_v2 }
  0x58   : > { %5937 = vst.msk [vmem:[#allocation4 + $0xa0] sm:$0x3] %vm357_vm2, %v10664_v2  ;;  %5940 = vst.msk [vmem:[#allocation4 + $0xb8] sm:$0x3] %vm357_vm2, %v10664_v2 }
  0x59   : > { %5943 = vst.msk [vmem:[#allocation4 + $0xd0] sm:$0x3] %vm357_vm2, %v10664_v2  ;;  %5946 = vst.msk [vmem:[#allocation4 + $0xe8] sm:$0x3] %vm357_vm2, %v10664_v2 }
  0x5a   : > { %5949 = vst.msk [vmem:[#allocation4 + $0x100] sm:$0x3] %vm357_vm2, %v10664_v2  ;;  %5952 = vst.msk [vmem:[#allocation4 + $0x118] sm:$0x3] %vm357_vm2, %v10664_v2 }
  0x5b   : > { %5955 = vst.msk [vmem:[#allocation4 + $0x130] sm:$0x3] %vm357_vm2, %v10664_v2  ;;  %5958 = vst.msk [vmem:[#allocation4 + $0x148] sm:$0x3] %vm357_vm2, %v10664_v2 }
  0x5c   : > { %5961 = vst.msk [vmem:[#allocation4 + $0x160] sm:$0x3] %vm357_vm2, %v10664_v2  ;;  %5964 = vst.msk [vmem:[#allocation4 + $0x178] sm:$0x3] %vm357_vm2, %v10664_v2 }
  0x5d   : > { %5967 = vst.msk [vmem:[#allocation4 + $0x190] sm:$0x3] %vm357_vm2, %v10664_v2  ;;  %5970 = vst.msk [vmem:[#allocation4 + $0x1a8] sm:$0x3] %vm357_vm2, %v10664_v2  ;;  %v540_v2 = vld [vmem:[%s11090_s21 + $0x58] sm:$0xff] }
  0x5e   : > { %576 = vst.msk [vmem:[#allocation3 + $0xc1] sm:$0xff] %vm354_vm1, %v543_v5  ;;  %577 = vst.msk [vmem:[#allocation3 + $0xc9] sm:$0xff] %vm354_vm1, %v544_v6 }
  0x5f   : > { %578 = vst.msk [vmem:[#allocation3 + $0xd9] sm:$0xff] %vm354_vm1, %v545_v7  ;;  %579 = vst.msk [vmem:[#allocation3 + $0xe1] sm:$0xff] %vm354_vm1, %v546_v8 }
  0x60   : > { %562 = vst.msk [vmem:[#allocation3 + $0x19] sm:$0xff] %vm354_vm1, %v529_v9  ;;  %563 = vst.msk [vmem:[#allocation3 + $0x21] sm:$0xff] %vm354_vm1, %v530_v10  ;;  %v464_v9 = vld [vmem:[%s11168_s28] sm:$0xff]  ;;  %v465_v10 = vld [vmem:[%s11168_s28 + $0x8] sm:$0xff] }
  0x61   : > { %580 = vst.msk [vmem:[#allocation3 + $0xf1] sm:$0xff] %vm354_vm1, %v547_v13  ;;  %581 = vst.msk [vmem:[#allocation3 + $0xf9] sm:$0xff] %vm354_vm1, %v548_v15  ;;  %v466_v13 = vld [vmem:[%s11168_s28 + $0x10] sm:$0xff]  ;;  %v468_v15 = vld [vmem:[%s11168_s28 + $0x20] sm:$0xff] }
  0x62   : > { %582 = vst.msk [vmem:[#allocation3 + $0x109] sm:$0xff] %vm354_vm1, %v549_v16  ;;  %583 = vst.msk [vmem:[#allocation3 + $0x111] sm:$0xff] %vm354_vm1, %v550_v17  ;;  %v469_v16 = vld [vmem:[%s11168_s28 + $0x28] sm:$0xff]  ;;  %v470_v17 = vld [vmem:[%s11168_s28 + $0x30] sm:$0xff] }
  0x63   : > { %564 = vst.msk [vmem:[#allocation3 + $0x31] sm:$0xff] %vm354_vm1, %v531_v18  ;;  %565 = vst.msk [vmem:[#allocation3 + $0x39] sm:$0xff] %vm354_vm1, %v532_v19  ;;  %v471_v18 = vld [vmem:[%s11168_s28 + $0x38] sm:$0xff]  ;;  %v472_v19 = vld [vmem:[%s11168_s28 + $0x40] sm:$0xff] }
  0x64   : > { %566 = vst.msk [vmem:[#allocation3 + $0x49] sm:$0xff] %vm354_vm1, %v533_v20  ;;  %567 = vst.msk [vmem:[#allocation3 + $0x51] sm:$0xff] %vm354_vm1, %v534_v21  ;;  %v473_v20 = vld [vmem:[%s11168_s28 + $0x48] sm:$0xff]  ;;  %v474_v21 = vld [vmem:[%s11168_s28 + $0x50] sm:$0xff] }
  0x65   : > { %584 = vst.msk [vmem:[#allocation3 + $0x121] sm:$0xff] %vm354_vm1, %v551_v22  ;;  %585 = vst.msk [vmem:[#allocation3 + $0x129] sm:$0xff] %vm354_vm1, %v552_v23  ;;  %v660_v30 = vld [vmem:[#allocation3 + $0xc0] sm:$0xff]  ;;  %v661_v31 = vld [vmem:[#allocation3 + $0xc8] sm:$0xff] }
  0x66   : > { %586 = vst.msk [vmem:[#allocation3 + $0x139] sm:$0xff] %vm354_vm1, %v553_v24  ;;  %587 = vst.msk [vmem:[#allocation3 + $0x141] sm:$0xff] %vm354_vm1, %v554_v25  ;;  %v662_v32 = vld [vmem:[#allocation3 + $0xd8] sm:$0xff]  ;;  %v700_v33 = vpack.c.bf16 %v661_v31, %v660_v30  ;;  %v663_v34 = vld [vmem:[#allocation3 + $0xe0] sm:$0xff] }
  0x67   : > { %568 = vst.msk [vmem:[#allocation3 + $0x61] sm:$0xff] %vm354_vm1, %v535_v26  ;;  %569 = vst.msk [vmem:[#allocation3 + $0x69] sm:$0xff] %vm354_vm1, %v536_v27  ;;  %v646_v35 = vld [vmem:[#allocation3 + $0x18] sm:$0xff]  ;;  %v647_v36 = vld [vmem:[#allocation3 + $0x20] sm:$0xff]  ;;  %v701_v37 = vpack.c.bf16 %v663_v34, %v662_v32 }
  0x68   : > { %570 = vst.msk [vmem:[#allocation3 + $0x79] sm:$0xff] %vm354_vm1, %v537_v28  ;;  %571 = vst.msk [vmem:[#allocation3 + $0x81] sm:$0xff] %vm354_vm1, %v538_v29  ;;  %v693_v39 = vpack.c.bf16 %v647_v36, %v646_v35  ;;  %v664_v40 = vld [vmem:[#allocation3 + $0xf0] sm:$0xff]  ;;  %9717 = vmatprep.mubr.msk.bf16.mxu1 %vm354_vm1, %v700_v33  ;;  %v665_v44 = vld [vmem:[#allocation3 + $0xf8] sm:$0xff] }
  0x69   : > { %588 = vst.msk [vmem:[#allocation3 + $0x151] sm:$0xff] %vm354_vm1, %v555_v41  ;;  %589 = vst.msk [vmem:[#allocation3 + $0x159] sm:$0xff] %vm354_vm1, %v556_v42  ;;  %9718 = vmatmul.mubr.msk.bf16.vlgmr.msra.gmra.mxu1 %vm354_vm1, %v701_v37  ;;  %v702_v47 = vpack.c.bf16 %v665_v44, %v664_v40  ;;  %v666_v48 = vld [vmem:[#allocation3 + $0x108] sm:$0xff]  ;;  %v667_v51 = vld [vmem:[#allocation3 + $0x110] sm:$0xff] }
  0x6a   : > { %9702 = vmatmul.mubr.msk.bf16.vlgmr.msra.gmra.mxu0 %vm354_vm1, %v693_v39  ;;  %v648_v49 = vld [vmem:[#allocation3 + $0x30] sm:$0xff]  ;;  %v649_v50 = vld [vmem:[#allocation3 + $0x38] sm:$0xff]  ;;  %9734 = vmatpush3.bf16.msra.mxu1 %v970_v38  ;;  %v703_v59 = vpack.c.bf16 %v667_v51, %v666_v48  ;;  %590 = vst.msk [vmem:[#allocation3 + $0x169] sm:$0xff] %vm354_vm1, %v557_v61  ;;  %591 = vst.msk [vmem:[#allocation3 + $0x171] sm:$0xff] %vm354_vm1, %v558_v62 }
  0x6b   : > { %v694_v52 = vpack.c.bf16 %v649_v50, %v648_v49  ;;  %v650_v53 = vld [vmem:[#allocation3 + $0x48] sm:$0xff]  ;;  %v651_v54 = vld [vmem:[#allocation3 + $0x50] sm:$0xff]  ;;  %9768 = vmatpush3.bf16.msra.mxu0 %v1262_v43  ;;  %9721 = vmatprep.mubr.msk.bf16.mxu1 %vm354_vm1, %v702_v47  ;;  %572 = vst.msk [vmem:[#allocation3 + $0x91] sm:$0xff] %vm354_vm1, %v539_v63  ;;  %573 = vst.msk [vmem:[#allocation3 + $0x99] sm:$0xff] %vm354_vm1, %v540_v2 }
  0x6c   : > { %v668_v55 = vld [vmem:[#allocation3 + $0x120] sm:$0xff]  ;;  %v669_v56 = vld [vmem:[#allocation3 + $0x128] sm:$0xff]  ;;  %10623 = vmatprep.subr.msk.bf16.mxu1 %vm756_vm0, %v11149_v45  ;;  %10624 = vmatprep.subr.msk.bf16.mxu0 %vm756_vm0, %v11154_v46  ;;  %v695_v60 = vpack.c.bf16 %v651_v54, %v650_v53  ;;  %574 = vst.msk [vmem:[#allocation3 + $0xa9] sm:$0xff] %vm354_vm1, %v541_v3  ;;  %575 = vst.msk [vmem:[#allocation3 + $0xb1] sm:$0xff] %vm354_vm1, %v542_v4 }
  0x6d   : > { %9705 = vmatprep.mubr.msk.bf16.mxu0 %vm354_vm1, %v694_v52  ;;  %v704_v0 = vpack.c.bf16 %v669_v56, %v668_v55  ;;  %v670_v5 = vld [vmem:[#allocation3 + $0x138] sm:$0xff]  ;;  %v671_v6 = vld [vmem:[#allocation3 + $0x140] sm:$0xff]  ;;  %497 = vst.msk [vmem:[#allocation2 + $0x19] sm:$0xff] %vm354_vm1, %v464_v9  ;;  %498 = vst.msk [vmem:[#allocation2 + $0x21] sm:$0xff] %vm354_vm1, %v465_v10  ;;  %v1846_v10 = vsel %vm756_vm0, %v11154_v46, 0 }
  0x6e   : > { %v652_v57 = vld [vmem:[#allocation3 + $0x60] sm:$0xff]  ;;  %v653_v58 = vld [vmem:[#allocation3 + $0x68] sm:$0xff]  ;;  %499 = vst.msk [vmem:[#allocation2 + $0x31] sm:$0xff] %vm354_vm1, %v466_v13  ;;  %500 = vst.msk [vmem:[#allocation2 + $0x39] sm:$0xff] %vm354_vm1, %v467_v14  ;;  %v705_v23 = vpack.c.bf16 %v671_v6, %v670_v5 }
  0x6f   : > { %v696_v1 = vpack.c.bf16 %v653_v58, %v652_v57  ;;  %v654_v7 = vld [vmem:[#allocation3 + $0x78] sm:$0xff]  ;;  %v655_v8 = vld [vmem:[#allocation3 + $0x80] sm:$0xff]  ;;  %501 = vst.msk [vmem:[#allocation2 + $0x49] sm:$0xff] %vm354_vm1, %v468_v15  ;;  %502 = vst.msk [vmem:[#allocation2 + $0x51] sm:$0xff] %vm354_vm1, %v469_v16 }
  0x70   : > { %v672_v11 = vld [vmem:[#allocation3 + $0x150] sm:$0xff]  ;;  %v673_v12 = vld [vmem:[#allocation3 + $0x158] sm:$0xff]  ;;  %503 = vst.msk [vmem:[#allocation2 + $0x61] sm:$0xff] %vm354_vm1, %v470_v17  ;;  %504 = vst.msk [vmem:[#allocation2 + $0x69] sm:$0xff] %vm354_vm1, %v471_v18  ;;  %v697_v24 = vpack.c.bf16 %v655_v8, %v654_v7  ;;  %v1522_v8 = vsel %vm756_vm0, %v11149_v45, 0 }
  0x71   : > { %9722 = vmatmul.mubr.msk.bf16.gmra.mxu1 %vm354_vm1, %v703_v59  ;;  %505 = vst.msk [vmem:[#allocation2 + $0x79] sm:$0xff] %vm354_vm1, %v472_v19  ;;  %v475_v22 = vld [vmem:[%s11168_s28 + $0x58] sm:$0xff]  ;;  %506 = vst.msk [vmem:[#allocation2 + $0x81] sm:$0xff] %vm354_vm1, %v473_v20  ;;  %v706_v26 = vpack.c.bf16 %v673_v12, %v672_v11  ;;  %v476_v29 = vld [vmem:[%s11168_s28 + $0x60] sm:$0xff] }
  0x72   : > { %9706 = vmatmul.mubr.msk.bf16.gmra.mxu0 %vm354_vm1, %v695_v60  ;;  %9725 = vmatprep.mubr.msk.bf16.mxu1 %vm354_vm1, %v704_v0  ;;  %v656_v25 = vld [vmem:[#allocation3 + $0x90] sm:$0xff]  ;;  %507 = vst.msk [vmem:[#allocation2 + $0x91] sm:$0xff] %vm354_vm1, %v474_v21  ;;  %508 = vst.msk [vmem:[#allocation2 + $0x99] sm:$0xff] %vm354_vm1, %v475_v22  ;;  %v657_v27 = vld [vmem:[#allocation3 + $0x98] sm:$0xff] }
  0x73   : > { %9709 = vmatprep.mubr.msk.bf16.mxu0 %vm354_vm1, %v696_v1  ;;  %v698_v28 = vpack.c.bf16 %v657_v27, %v656_v25  ;;  %v477_v30 = vld [vmem:[%s11168_s28 + $0x68] sm:$0xff]  ;;  %v478_v31 = vld [vmem:[%s11168_s28 + $0x70] sm:$0xff]  ;;  %509 = vst.msk [vmem:[#allocation2 + $0xa9] sm:$0xff] %vm354_vm1, %v476_v29  ;;  %v674_v32 = vld [vmem:[#allocation3 + $0x168] sm:$0xff] }
  0x74   : > { %510 = vst.msk [vmem:[#allocation2 + $0xb1] sm:$0xff] %vm354_vm1, %v477_v30  ;;  %511 = vst.msk [vmem:[#allocation2 + $0xc1] sm:$0xff] %vm354_vm1, %v478_v31  ;;  %v612_v33 = vld [vmem:[#allocation2] sm:$0xff]  ;;  %v658_v35 = vld [vmem:[#allocation3 + $0xa8] sm:$0xff] }
  0x75   : > { %v675_v34 = vld [vmem:[#allocation3 + $0x170] sm:$0xff]  ;;  %v613_v37 = vld [vmem:[#allocation2 + $0x8] sm:$0xff]  ;;  %v614_v44 = vld [vmem:[#allocation2 + $0x18] sm:$0xff] }
  0x76   : > { %v659_v36 = vld [vmem:[#allocation3 + $0xb0] sm:$0xff]  ;;  %v1134_v39 = vld [vmem:[#allocation2 + $0x9] sm:$0xff]  ;;  %v707_v40 = vpack.c.bf16 %v675_v34, %v674_v32  ;;  %v676_v42 = vpack.c.bf16 %v613_v37, %v612_v33  ;;  %v617_v51 = vld [vmem:[#allocation2 + $0x38] sm:$0xff] }
  0x77   : > { %v1133_v38 = vld [vmem:[#allocation2 + $0x1] sm:$0xff]  ;;  %v699_v41 = vpack.c.bf16 %v659_v36, %v658_v35  ;;  %v1135_v48 = vld [vmem:[#allocation2 + $0x19] sm:$0xff]  ;;  %v616_v50 = vld [vmem:[#allocation2 + $0x30] sm:$0xff] }
  0x78   : > { %v1197_v43 = vpack.c.bf16 %v1134_v39, %v1133_v38  ;;  %v615_v47 = vld [vmem:[#allocation2 + $0x20] sm:$0xff]  ;;  %v479_v52 = vld [vmem:[%s11168_s28 + $0x78] sm:$0xff]  ;;  %v481_v56 = vld [vmem:[%s11168_s28 + $0x88] sm:$0xff]  ;;  %v11249_v4 = vpack.c.bf16 %v617_v51, %v616_v50 }
  0x79   : > { %9726 = vmatmul.mubr.msk.bf16.gmra.mxu1 %vm354_vm1, %v705_v23  ;;  %v1136_v49 = vld [vmem:[#allocation2 + $0x21] sm:$0xff]  ;;  %v1137_v53 = vld [vmem:[#allocation2 + $0x31] sm:$0xff]  ;;  %v1138_v54 = vld [vmem:[#allocation2 + $0x39] sm:$0xff]  ;;  %512 = vst.msk [vmem:[#allocation2 + $0xc9] sm:$0xff] %vm354_vm1, %v479_v52  ;;  %v11239_v63 = vpack.c.bf16 %v615_v47, %v614_v44 }
  0x7a   : > { %9710 = vmatmul.mubr.msk.bf16.gmra.mxu0 %vm354_vm1, %v697_v24  ;;  %9729 = vmatprep.mubr.msk.bf16.mxu1 %vm354_vm1, %v706_v26  ;;  %v480_v55 = vld [vmem:[%s11168_s28 + $0x80] sm:$0xff]  ;;  %514 = vst.msk [vmem:[#allocation2 + $0xe1] sm:$0xff] %vm354_vm1, %v481_v56  ;;  %v482_v57 = vld [vmem:[%s11168_s28 + $0x90] sm:$0xff]  ;;  %v483_v58 = vld [vmem:[%s11168_s28 + $0x98] sm:$0xff]  ;;  %v11241_v0 = vpack.c.bf16 %v1136_v49, %v1135_v48  ;;  %v11259_v9 = vpack.c.bf16 %v1138_v54, %v1137_v53 }
  0x7b   : > { %9713 = vmatprep.mubr.msk.bf16.mxu0 %vm354_vm1, %v698_v28  ;;  %513 = vst.msk [vmem:[#allocation2 + $0xd9] sm:$0xff] %vm354_vm1, %v480_v55  ;;  %v484_v59 = vld [vmem:[%s11168_s28 + $0xa0] sm:$0xff]  ;;  %515 = vst.msk [vmem:[#allocation2 + $0xf1] sm:$0xff] %vm354_vm1, %v482_v57  ;;  %v485_v60 = vld [vmem:[%s11168_s28 + $0xa8] sm:$0xff] }
  0x7c   : > { %516 = vst.msk [vmem:[#allocation2 + $0xf9] sm:$0xff] %vm354_vm1, %v483_v58  ;;  %517 = vst.msk [vmem:[#allocation2 + $0x109] sm:$0xff] %vm354_vm1, %v484_v59  ;;  %v486_v61 = vld [vmem:[%s11168_s28 + $0xb0] sm:$0xff]  ;;  %v487_v62 = vld [vmem:[%s11168_s28 + $0xb8] sm:$0xff] }
  0x7d   : > { %518 = vst.msk [vmem:[#allocation2 + $0x111] sm:$0xff] %vm354_vm1, %v485_v60  ;;  %519 = vst.msk [vmem:[#allocation2 + $0x121] sm:$0xff] %vm354_vm1, %v486_v61  ;;  %v488_v1 = vld [vmem:[%s11168_s28 + $0xc0] sm:$0xff]  ;;  %v489_v2 = vld [vmem:[%s11168_s28 + $0xc8] sm:$0xff] }
  0x7e   : > { %520 = vst.msk [vmem:[#allocation2 + $0x129] sm:$0xff] %vm354_vm1, %v487_v62  ;;  %v490_v3 = vld [vmem:[%s11168_s28 + $0xd0] sm:$0xff]  ;;  %521 = vst.msk [vmem:[#allocation2 + $0x139] sm:$0xff] %vm354_vm1, %v488_v1  ;;  %v491_v5 = vld [vmem:[%s11168_s28 + $0xd8] sm:$0xff] }
  0x7f   : > { %522 = vst.msk [vmem:[#allocation2 + $0x141] sm:$0xff] %vm354_vm1, %v489_v2  ;;  %523 = vst.msk [vmem:[#allocation2 + $0x151] sm:$0xff] %vm354_vm1, %v490_v3  ;;  %v492_v6 = vld [vmem:[%s11168_s28 + $0xe0] sm:$0xff]  ;;  %v493_v7 = vld [vmem:[%s11168_s28 + $0xe8] sm:$0xff] }
  0x80   : > { %524 = vst.msk [vmem:[#allocation2 + $0x159] sm:$0xff] %vm354_vm1, %v491_v5  ;;  %525 = vst.msk [vmem:[#allocation2 + $0x169] sm:$0xff] %vm354_vm1, %v492_v6  ;;  %v618_v11 = vld [vmem:[#allocation2 + $0x48] sm:$0xff]  ;;  %v619_v12 = vld [vmem:[#allocation2 + $0x50] sm:$0xff] }
  0x81   : > { %9730 = vmatmul.mubr.msk.bf16.gmra.mxu1 %vm354_vm1, %v707_v40  ;;  %526 = vst.msk [vmem:[#allocation2 + $0x171] sm:$0xff] %vm354_vm1, %v493_v7  ;;  %v11273_v45 = vld [vmem:[%s14093_s3 + $0x4] sm:$0x3]  ;;  %v1139_v13 = vld [vmem:[#allocation2 + $0x49] sm:$0xff]  ;;  %v1140_v14 = vld [vmem:[#allocation2 + $0x51] sm:$0xff]  ;;  %v11281_v18 = vpack.c.bf16 %v619_v12, %v618_v11 }
  0x82   : > { %9714 = vmatmul.mubr.msk.bf16.gmra.mxu0 %vm354_vm1, %v699_v41  ;;  %9735 = vmatprep.mubr.msk.bf16.mxu1 %vm354_vm1, %v676_v42  ;;  %v620_v46 = vld [vmem:[#allocation2 + $0x60] sm:$0xff]  ;;  %v621_v15 = vld [vmem:[#allocation2 + $0x68] sm:$0xff]  ;;  %v11283_v19 = vpack.c.bf16 %v1140_v14, %v1139_v13  ;;  %v622_v22 = vld [vmem:[#allocation2 + $0x78] sm:$0xff] }
  0x83   : > { %9769 = vmatprep.mubr.msk.bf16.mxu0 %vm354_vm1, %v1197_v43  ;;  %v1141_v16 = vld [vmem:[#allocation2 + $0x61] sm:$0xff]  ;;  %v1142_v17 = vld [vmem:[#allocation2 + $0x69] sm:$0xff]  ;;  %v11285_v20 = vpack.c.bf16 %v621_v15, %v620_v46  ;;  %v1143_v24 = vld [vmem:[#allocation2 + $0x79] sm:$0xff] }
  0x84   : > { %v11287_v21 = vpack.c.bf16 %v1142_v17, %v1141_v16  ;;  %v623_v23 = vld [vmem:[#allocation2 + $0x80] sm:$0xff]  ;;  %v624_v26 = vld [vmem:[#allocation2 + $0x90] sm:$0xff]  ;;  %v625_v27 = vld [vmem:[#allocation2 + $0x98] sm:$0xff] }
  0x85   : > { %v1144_v25 = vld [vmem:[#allocation2 + $0x81] sm:$0xff]  ;;  %v1145_v28 = vld [vmem:[#allocation2 + $0x91] sm:$0xff]  ;;  %v1146_v29 = vld [vmem:[#allocation2 + $0x99] sm:$0xff]  ;;  %v11297_v30 = vpack.c.bf16 %v623_v23, %v622_v22  ;;  %v11299_v32 = vpack.c.bf16 %v625_v27, %v624_v26 }
  0x86   : > { %v1202_v31 = vpack.c.bf16 %v1144_v25, %v1143_v24  ;;  %v11301_v33 = vpack.c.bf16 %v1146_v29, %v1145_v28  ;;  %v626_v34 = vld [vmem:[#allocation2 + $0xa8] sm:$0xff]  ;;  %v627_v35 = vld [vmem:[#allocation2 + $0xb0] sm:$0xff]  ;;  %v628_v38 = vld [vmem:[#allocation2 + $0xc0] sm:$0xff] }
  0x87   : > { %v1147_v36 = vld [vmem:[#allocation2 + $0xa9] sm:$0xff]  ;;  %v1148_v37 = vld [vmem:[#allocation2 + $0xb1] sm:$0xff]  ;;  %v1149_v40 = vld [vmem:[#allocation2 + $0xc1] sm:$0xff]  ;;  %v11310_v42 = vpack.c.bf16 %v627_v35, %v626_v34 }
  0x88   : > { %v629_v39 = vld [vmem:[#allocation2 + $0xc8] sm:$0xff]  ;;  %v1204_v43 = vpack.c.bf16 %v1148_v37, %v1147_v36  ;;  %v630_v48 = vld [vmem:[#allocation2 + $0xd8] sm:$0xff]  ;;  %v631_v49 = vld [vmem:[#allocation2 + $0xe0] sm:$0xff] }
  0x89   : > { %9736 = vmatmul.mubr.msk.bf16.vlgmr.msra.gmra.mxu1 %vm354_vm1, %v11239_v63  ;;  %v1150_v41 = vld [vmem:[#allocation2 + $0xc9] sm:$0xff]  ;;  %v11312_v44 = vpack.c.bf16 %v629_v39, %v628_v38  ;;  %v1151_v50 = vld [vmem:[#allocation2 + $0xd9] sm:$0xff]  ;;  %v1152_v51 = vld [vmem:[#allocation2 + $0xe1] sm:$0xff]  ;;  %v11323_v56 = vpack.c.bf16 %v631_v49, %v630_v48 }
  0x8a   : > { %9770 = vmatmul.mubr.msk.bf16.vlgmr.msra.gmra.mxu0 %vm354_vm1, %v11241_v0  ;;  %9802 = vmatpush3.bf16.msra.mxu1 %v1522_v8  ;;  %v11314_v47 = vpack.c.bf16 %v1150_v41, %v1149_v40  ;;  %v632_v52 = vld [vmem:[#allocation2 + $0xf0] sm:$0xff]  ;;  %v633_v53 = vld [vmem:[#allocation2 + $0xf8] sm:$0xff]  ;;  %v1206_v57 = vpack.c.bf16 %v1152_v51, %v1151_v50  ;;  %v11330_v60 = vld [vmem:[%s14092_s2 + $0x6] sm:$0x3] }
  0x8b   : > { %9739 = vmatprep.mubr.msk.bf16.mxu1 %vm354_vm1, %v11249_v4  ;;  %9773 = vmatprep.mubr.msk.bf16.mxu0 %vm354_vm1, %v11259_v9  ;;  %v1153_v54 = vld [vmem:[#allocation2 + $0xf1] sm:$0xff]  ;;  %v1154_v55 = vld [vmem:[#allocation2 + $0xf9] sm:$0xff]  ;;  %v11325_v58 = vpack.c.bf16 %v633_v53, %v632_v52  ;;  %v634_v61 = vld [vmem:[#allocation2 + $0x108] sm:$0xff] }
  0x8c   : > { %9836 = vmatpush3.bf16.msra.mxu0 %v1846_v10  ;;  %10625 = vmatprep.subr.msk.bf16.mxu1 %vm756_vm0, %v11273_v45  ;;  %v1207_v59 = vpack.c.bf16 %v1154_v55, %v1153_v54  ;;  %v635_v62 = vld [vmem:[#allocation2 + $0x110] sm:$0xff]  ;;  %v636_v3 = vld [vmem:[#allocation2 + $0x120] sm:$0xff]  ;;  %v637_v5 = vld [vmem:[#allocation2 + $0x128] sm:$0xff] }
  0x8d   : > { %10626 = vmatprep.subr.msk.bf16.mxu0 %vm756_vm0, %v11330_v60  ;;  %v1155_v1 = vld [vmem:[#allocation2 + $0x109] sm:$0xff]  ;;  %v1156_v2 = vld [vmem:[#allocation2 + $0x111] sm:$0xff]  ;;  %v1157_v6 = vld [vmem:[#allocation2 + $0x121] sm:$0xff]  ;;  %v11340_v8 = vpack.c.bf16 %v635_v62, %v634_v61  ;;  %v11342_v11 = vpack.c.bf16 %v637_v5, %v636_v3 }
  0x8e   : > { %v1158_v7 = vld [vmem:[#allocation2 + $0x129] sm:$0xff]  ;;  %v1208_v10 = vpack.c.bf16 %v1156_v2, %v1155_v1  ;;  %v638_v13 = vld [vmem:[#allocation2 + $0x138] sm:$0xff]  ;;  %v639_v14 = vld [vmem:[#allocation2 + $0x140] sm:$0xff]  ;;  %v2106_v2 = vsel %vm756_vm0, %v11273_v45, 0 }
  0x8f   : > { %v1209_v12 = vpack.c.bf16 %v1158_v7, %v1157_v6  ;;  %v1159_v46 = vld [vmem:[#allocation2 + $0x139] sm:$0xff]  ;;  %v1160_v15 = vld [vmem:[#allocation2 + $0x141] sm:$0xff]  ;;  %v640_v16 = vld [vmem:[#allocation2 + $0x150] sm:$0xff]  ;;  %v11350_v24 = vpack.c.bf16 %v639_v14, %v638_v13  ;;  %v2430_v6 = vsel %vm756_vm0, %v11330_v60, 0 }
  0x90   : > { %v641_v17 = vld [vmem:[#allocation2 + $0x158] sm:$0xff]  ;;  %v1210_v25 = vpack.c.bf16 %v1160_v15, %v1159_v46  ;;  %v494_v28 = vld [vmem:[%s11168_s28 + $0xf0] sm:$0xff]  ;;  %v1717_v39 = vld [vmem:[#allocation2 + $0x2] sm:$0xff] }
  0x91   : > { %9740 = vmatmul.mubr.msk.bf16.gmra.mxu1 %vm354_vm1, %v11281_v18  ;;  %v1161_v22 = vld [vmem:[#allocation2 + $0x151] sm:$0xff]  ;;  %v1162_v23 = vld [vmem:[#allocation2 + $0x159] sm:$0xff]  ;;  %v11352_v26 = vpack.c.bf16 %v641_v17, %v640_v16  ;;  %527 = vst.msk [vmem:[#allocation2 + $0x181] sm:$0xff] %vm354_vm1, %v494_v28  ;;  %v1163_v36 = vld [vmem:[#allocation2 + $0x169] sm:$0xff] }
  0x92   : > { %9774 = vmatmul.mubr.msk.bf16.gmra.mxu0 %vm354_vm1, %v11283_v19  ;;  %9743 = vmatprep.mubr.msk.bf16.mxu1 %vm354_vm1, %v11285_v20  ;;  %v1211_v27 = vpack.c.bf16 %v1162_v23, %v1161_v22  ;;  %v495_v29 = vld [vmem:[%s11168_s28 + $0xf8] sm:$0xff]  ;;  %v643_v35 = vld [vmem:[#allocation2 + $0x170] sm:$0xff]  ;;  %v1720_v53 = vld [vmem:[#allocation2 + $0x22] sm:$0xff] }
  0x93   : > { %9777 = vmatprep.mubr.msk.bf16.mxu0 %vm354_vm1, %v11287_v21  ;;  %v1165_v34 = vld [vmem:[#allocation3 + $0x1] sm:$0xff]  ;;  %528 = vst.msk [vmem:[#allocation2 + $0x189] sm:$0xff] %vm354_vm1, %v495_v29  ;;  %v1166_v38 = vld [vmem:[#allocation3 + $0x9] sm:$0xff]  ;;  %v1167_v50 = vld [vmem:[#allocation3 + $0x19] sm:$0xff] }
  0x94   : > { %v1164_v37 = vld [vmem:[#allocation2 + $0x171] sm:$0xff]  ;;  %v1457_v48 = vpack.c.bf16 %v1166_v38, %v1165_v34  ;;  %v1719_v52 = vld [vmem:[#allocation2 + $0x1a] sm:$0xff]  ;;  %v1170_v55 = vld [vmem:[#allocation3 + $0x39] sm:$0xff] }
  0x95   : > { %v1718_v40 = vld [vmem:[#allocation2 + $0xa] sm:$0xff]  ;;  %v1169_v54 = vld [vmem:[#allocation3 + $0x31] sm:$0xff]  ;;  %v1782_v62 = vpack.c.bf16 %v1720_v53, %v1719_v52  ;;  %v1171_v5 = vld [vmem:[#allocation3 + $0x49] sm:$0xff] }
  0x96   : > { %v1781_v49 = vpack.c.bf16 %v1718_v40, %v1717_v39  ;;  %v1168_v51 = vld [vmem:[#allocation3 + $0x21] sm:$0xff]  ;;  %v1459_v1 = vpack.c.bf16 %v1170_v55, %v1169_v54  ;;  %v1172_v7 = vld [vmem:[#allocation3 + $0x51] sm:$0xff]  ;;  %v1174_v14 = vld [vmem:[#allocation3 + $0x69] sm:$0xff] }
  0x97   : > { %v1458_v61 = vpack.c.bf16 %v1168_v51, %v1167_v50  ;;  %v1723_v45 = vld [vmem:[#allocation2 + $0x4a] sm:$0xff]  ;;  %v1724_v60 = vld [vmem:[#allocation2 + $0x52] sm:$0xff]  ;;  %v1725_v46 = vld [vmem:[#allocation2 + $0x62] sm:$0xff]  ;;  %v1460_v16 = vpack.c.bf16 %v1172_v7, %v1171_v5 }
  0x98   : > { %v1173_v13 = vld [vmem:[#allocation3 + $0x61] sm:$0xff]  ;;  %v1784_v17 = vpack.c.bf16 %v1724_v60, %v1723_v45  ;;  %v1727_v28 = vld [vmem:[#allocation2 + $0x7a] sm:$0xff]  ;;  %v1728_v29 = vld [vmem:[#allocation2 + $0x82] sm:$0xff] }
  0x99   : > { %9744 = vmatmul.mubr.msk.bf16.gmra.mxu1 %vm354_vm1, %v11297_v30  ;;  %v1726_v15 = vld [vmem:[#allocation2 + $0x6a] sm:$0xff]  ;;  %v1461_v22 = vpack.c.bf16 %v1174_v14, %v1173_v13  ;;  %v1786_v38 = vpack.c.bf16 %v1728_v29, %v1727_v28  ;;  %v1732_v50 = vld [vmem:[#allocation2 + $0xb2] sm:$0xff]  ;;  %v1733_v53 = vld [vmem:[#allocation2 + $0xc2] sm:$0xff] }
  0x9a   : > { %9778 = vmatmul.mubr.msk.bf16.gmra.mxu0 %vm354_vm1, %v1202_v31  ;;  %9747 = vmatprep.mubr.msk.bf16.mxu1 %vm354_vm1, %v11299_v32  ;;  %v642_v31 = vld [vmem:[#allocation2 + $0x168] sm:$0xff]  ;;  %v1785_v23 = vpack.c.bf16 %v1726_v15, %v1725_v46  ;;  %v1181_v51 = vld [vmem:[#allocation3 + $0xc1] sm:$0xff]  ;;  %v1182_v52 = vld [vmem:[#allocation3 + $0xc9] sm:$0xff] }
  0x9b   : > { %9781 = vmatprep.mubr.msk.bf16.mxu0 %vm354_vm1, %v11301_v33  ;;  %v11364_v41 = vpack.c.bf16 %v643_v35, %v642_v31  ;;  %v1177_v31 = vld [vmem:[#allocation3 + $0x91] sm:$0xff]  ;;  %v1178_v34 = vld [vmem:[#allocation3 + $0x99] sm:$0xff]  ;;  %v1729_v35 = vld [vmem:[#allocation2 + $0x92] sm:$0xff] }
  0x9c   : > { %v1463_v39 = vpack.c.bf16 %v1178_v34, %v1177_v31  ;;  %v1734_v54 = vld [vmem:[#allocation2 + $0xca] sm:$0xff]  ;;  %v1185_v5 = vld [vmem:[#allocation3 + $0xf1] sm:$0xff]  ;;  %v1737_v7 = vld [vmem:[#allocation2 + $0xf2] sm:$0xff] }
  0x9d   : > { %v1738_v45 = vld [vmem:[#allocation2 + $0xfa] sm:$0xff]  ;;  %v1742_v28 = vld [vmem:[#allocation2 + $0x12a] sm:$0xff] }
  0x9e   : > { %v1791_v46 = vpack.c.bf16 %v1738_v45, %v1737_v7  ;;  %v1187_v15 = vld [vmem:[#allocation3 + $0x109] sm:$0xff]  ;;  %v1751_v7 = vld [vmem:[#allocation3 + $0x1a] sm:$0xff] }
  0x9f   : > { %v1752_v45 = vld [vmem:[#allocation3 + $0x22] sm:$0xff] }
  0xa1   : > { %9748 = vmatmul.mubr.msk.bf16.gmra.mxu1 %vm354_vm1, %v11310_v42 }
  0xa2   : > { %9782 = vmatmul.mubr.msk.bf16.gmra.mxu0 %vm354_vm1, %v1204_v43  ;;  %9751 = vmatprep.mubr.msk.bf16.mxu1 %vm354_vm1, %v11312_v44  ;;  %v1212_v43 = vpack.c.bf16 %v1164_v37, %v1163_v36  ;;  %v1730_v36 = vld [vmem:[#allocation2 + $0x9a] sm:$0xff] }
  0xa3   : > { %9785 = vmatprep.mubr.msk.bf16.mxu0 %vm354_vm1, %v11314_v47  ;;  %v1787_v40 = vpack.c.bf16 %v1730_v36, %v1729_v35  ;;  %v1191_v36 = vld [vmem:[#allocation3 + $0x139] sm:$0xff] }
  0xa9   : > { %9752 = vmatmul.mubr.msk.bf16.gmra.mxu1 %vm354_vm1, %v11323_v56 }
  0xaa   : > { %9786 = vmatmul.mubr.msk.bf16.gmra.mxu0 %vm354_vm1, %v1206_v57  ;;  %9755 = vmatprep.mubr.msk.bf16.mxu1 %vm354_vm1, %v11325_v58  ;;  %v1721_v57 = vld [vmem:[#allocation2 + $0x32] sm:$0xff] }
  0xab   : > { %9789 = vmatprep.mubr.msk.bf16.mxu0 %vm354_vm1, %v1207_v59  ;;  %v1722_v59 = vld [vmem:[#allocation2 + $0x3a] sm:$0xff] }
  0xac   : > { %v1783_v3 = vpack.c.bf16 %v1722_v59, %v1721_v57  ;;  %v1465_v59 = vpack.c.bf16 %v1182_v52, %v1181_v51 }
  0xb1   : > { %9756 = vmatmul.mubr.msk.bf16.gmra.mxu1 %vm354_vm1, %v11340_v8 }
  0xb2   : > { %9790 = vmatmul.mubr.msk.bf16.gmra.mxu0 %vm354_vm1, %v1208_v10  ;;  %9759 = vmatprep.mubr.msk.bf16.mxu1 %vm354_vm1, %v11342_v11  ;;  %v11380_v10 = vld [vmem:[%s14093_s3 + $0x6] sm:$0x3] }
  0xb3   : > { %9793 = vmatprep.mubr.msk.bf16.mxu0 %vm354_vm1, %v1209_v12  ;;  %v11385_v12 = vld [vmem:[%s14092_s2 + $0x8] sm:$0x3] }
  0xb9   : > { %9760 = vmatmul.mubr.msk.bf16.gmra.mxu1 %vm354_vm1, %v11350_v24 }
  0xba   : > { %9794 = vmatmul.mubr.msk.bf16.gmra.mxu0 %vm354_vm1, %v1210_v25  ;;  %9763 = vmatprep.mubr.msk.bf16.mxu1 %vm354_vm1, %v11352_v26  ;;  %v1175_v25 = vld [vmem:[#allocation3 + $0x79] sm:$0xff] }
  0xbb   : > { %9797 = vmatprep.mubr.msk.bf16.mxu0 %vm354_vm1, %v1211_v27  ;;  %v1176_v27 = vld [vmem:[#allocation3 + $0x81] sm:$0xff] }
  0xbc   : > { %v1462_v37 = vpack.c.bf16 %v1176_v27, %v1175_v25  ;;  %v1190_v25 = vld [vmem:[#allocation3 + $0x129] sm:$0xff]  ;;  %v1741_v27 = vld [vmem:[#allocation2 + $0x122] sm:$0xff] }
  0xbd   : > { %v1793_v35 = vpack.c.bf16 %v1742_v28, %v1741_v27  ;;  %v1759_v27 = vld [vmem:[#allocation3 + $0x7a] sm:$0xff]  ;;  %v1761_v28 = vld [vmem:[#allocation3 + $0x92] sm:$0xff] }
  0xc1   : > { %9764 = vmatmul.mubr.msk.bf16.gmra.mxu1 %vm354_vm1, %v11364_v41 }
  0xc2   : > { %9798 = vmatmul.mubr.msk.bf16.gmra.mxu0 %vm354_vm1, %v1212_v43  ;;  %9803 = vmatprep.mubr.msk.bf16.mxu1 %vm354_vm1, %v1457_v48  ;;  %v1179_v43 = vld [vmem:[#allocation3 + $0xa9] sm:$0xff]  ;;  %v1180_v48 = vld [vmem:[#allocation3 + $0xb1] sm:$0xff] }
  0xc3   : > { %9837 = vmatprep.mubr.msk.bf16.mxu0 %vm354_vm1, %v1781_v49  ;;  %v1731_v49 = vld [vmem:[#allocation2 + $0xaa] sm:$0xff]  ;;  %v1464_v55 = vpack.c.bf16 %v1180_v48, %v1179_v43  ;;  %v1745_v48 = vld [vmem:[#allocation2 + $0x152] sm:$0xff] }
  0xc4   : > { %v1788_v57 = vpack.c.bf16 %v1732_v50, %v1731_v49  ;;  %v1194_v43 = vld [vmem:[#allocation3 + $0x159] sm:$0xff]  ;;  %v1746_v49 = vld [vmem:[#allocation2 + $0x15a] sm:$0xff] }
  0xc9   : > { %9804 = vmatmul.mubr.msk.bf16.vlgmr.msra.gmra.mxu1 %vm354_vm1, %v1458_v61  ;;  %v1789_v61 = vpack.c.bf16 %v1734_v54, %v1733_v53  ;;  %v1795_v53 = vpack.c.bf16 %v1746_v49, %v1745_v48  ;;  %v559_v54 = vld [vmem:[%s11090_s21 + $0xf0] sm:$0xff] }
  0xca   : > { %9838 = vmatmul.mubr.msk.bf16.vlgmr.msra.gmra.mxu0 %vm354_vm1, %v1782_v62  ;;  %9870 = vmatpush3.bf16.msra.mxu1 %v2106_v2  ;;  %v1183_v62 = vld [vmem:[#allocation3 + $0xd9] sm:$0xff]  ;;  %v1735_v2 = vld [vmem:[#allocation2 + $0xda] sm:$0xff]  ;;  %592 = vst.msk [vmem:[#allocation3 + $0x181] sm:$0xff] %vm354_vm1, %v559_v54 }
  0xcb   : > { %9807 = vmatprep.mubr.msk.bf16.mxu1 %vm354_vm1, %v1459_v1  ;;  %9841 = vmatprep.mubr.msk.bf16.mxu0 %vm354_vm1, %v1783_v3  ;;  %v1184_v1 = vld [vmem:[#allocation3 + $0xe1] sm:$0xff]  ;;  %v1736_v3 = vld [vmem:[#allocation2 + $0xe2] sm:$0xff]  ;;  %v1774_v54 = vld [vmem:[#allocation3 + $0x12a] sm:$0xff] }
  0xcc   : > { %9904 = vmatpush3.bf16.msra.mxu0 %v2430_v6  ;;  %10627 = vmatprep.subr.msk.bf16.mxu1 %vm756_vm0, %v11380_v10  ;;  %v1186_v6 = vld [vmem:[#allocation3 + $0xf9] sm:$0xff]  ;;  %v1466_v60 = vpack.c.bf16 %v1184_v1, %v1183_v62  ;;  %v1790_v13 = vpack.c.bf16 %v1736_v3, %v1735_v2  ;;  %v1748_v62 = vld [vmem:[#allocation2 + $0x172] sm:$0xff]  ;;  %v1750_v2 = vld [vmem:[#allocation3 + $0xa] sm:$0xff] }
  0xcd   : > { %10628 = vmatprep.subr.msk.bf16.mxu0 %vm756_vm0, %v11385_v12  ;;  %v1467_v14 = vpack.c.bf16 %v1186_v6, %v1185_v5  ;;  %v1749_v1 = vld [vmem:[#allocation3 + $0x2] sm:$0xff] }
  0xce   : > { %v2041_v6 = vpack.c.bf16 %v1750_v2, %v1749_v1  ;;  %v1775_v2 = vld [vmem:[#allocation3 + $0x13a] sm:$0xff] }
  0xd1   : > { %9808 = vmatmul.mubr.msk.bf16.gmra.mxu1 %vm354_vm1, %v1460_v16  ;;  %v1188_v16 = vld [vmem:[#allocation3 + $0x111] sm:$0xff] }
  0xd2   : > { %9842 = vmatmul.mubr.msk.bf16.gmra.mxu0 %vm354_vm1, %v1784_v17  ;;  %9811 = vmatprep.mubr.msk.bf16.mxu1 %vm354_vm1, %v1461_v22  ;;  %v1739_v17 = vld [vmem:[#allocation2 + $0x10a] sm:$0xff]  ;;  %v1740_v22 = vld [vmem:[#allocation2 + $0x112] sm:$0xff]  ;;  %v1468_v29 = vpack.c.bf16 %v1188_v16, %v1187_v15  ;;  %v2690_v15 = vsel %vm756_vm0, %v11380_v10, 0  ;;  %v3014_v16 = vsel %vm756_vm0, %v11385_v12, 0  ;;  %v1755_v10 = vld [vmem:[#allocation3 + $0x4a] sm:$0xff] }
  0xd3   : > { %9845 = vmatprep.mubr.msk.bf16.mxu0 %vm354_vm1, %v1785_v23  ;;  %v1189_v23 = vld [vmem:[#allocation3 + $0x121] sm:$0xff]  ;;  %v1792_v31 = vpack.c.bf16 %v1740_v22, %v1739_v17  ;;  %v11436_v17 = vld [vmem:[%s14093_s3 + $0x8] sm:$0x3] }
  0xd4   : > { %v1469_v34 = vpack.c.bf16 %v1190_v25, %v1189_v23  ;;  %v1756_v12 = vld [vmem:[#allocation3 + $0x52] sm:$0xff]  ;;  %v1757_v22 = vld [vmem:[#allocation3 + $0x62] sm:$0xff] }
  0xd5   : > { %v2044_v23 = vpack.c.bf16 %v1756_v12, %v1755_v10  ;;  %v1779_v10 = vld [vmem:[#allocation3 + $0x16a] sm:$0xff]  ;;  %v1780_v12 = vld [vmem:[#allocation3 + $0x172] sm:$0xff] }
  0xd9   : > { %9812 = vmatmul.mubr.msk.bf16.gmra.mxu1 %vm354_vm1, %v1462_v37  ;;  %v1192_v37 = vld [vmem:[#allocation3 + $0x141] sm:$0xff] }
  0xda   : > { %9846 = vmatmul.mubr.msk.bf16.gmra.mxu0 %vm354_vm1, %v1786_v38  ;;  %9815 = vmatprep.mubr.msk.bf16.mxu1 %vm354_vm1, %v1463_v39  ;;  %v1743_v38 = vld [vmem:[#allocation2 + $0x13a] sm:$0xff]  ;;  %v1744_v39 = vld [vmem:[#allocation2 + $0x142] sm:$0xff]  ;;  %v1470_v50 = vpack.c.bf16 %v1192_v37, %v1191_v36  ;;  %v1765_v36 = vld [vmem:[#allocation3 + $0xc2] sm:$0xff] }
  0xdb   : > { %9849 = vmatprep.mubr.msk.bf16.mxu0 %vm354_vm1, %v1787_v40  ;;  %v1193_v40 = vld [vmem:[#allocation3 + $0x151] sm:$0xff]  ;;  %v1794_v51 = vpack.c.bf16 %v1744_v39, %v1743_v38  ;;  %v1767_v39 = vld [vmem:[#allocation3 + $0xda] sm:$0xff] }
  0xdc   : > { %v1471_v52 = vpack.c.bf16 %v1194_v43, %v1193_v40  ;;  %v1766_v37 = vld [vmem:[#allocation3 + $0xca] sm:$0xff]  ;;  %v1769_v40 = vld [vmem:[#allocation3 + $0xf2] sm:$0xff]  ;;  %v1770_v43 = vld [vmem:[#allocation3 + $0xfa] sm:$0xff] }
  0xe1   : > { %9816 = vmatmul.mubr.msk.bf16.gmra.mxu1 %vm354_vm1, %v1464_v55  ;;  %v560_v55 = vld [vmem:[%s11090_s21 + $0xf8] sm:$0xff] }
  0xe2   : > { %9850 = vmatmul.mubr.msk.bf16.gmra.mxu0 %vm354_vm1, %v1788_v57  ;;  %9819 = vmatprep.mubr.msk.bf16.mxu1 %vm354_vm1, %v1465_v59  ;;  %593 = vst.msk [vmem:[#allocation3 + $0x189] sm:$0xff] %vm354_vm1, %v560_v55  ;;  %v1195_v57 = vld [vmem:[#allocation3 + $0x169] sm:$0xff]  ;;  %v1196_v59 = vld [vmem:[#allocation3 + $0x171] sm:$0xff] }
  0xe3   : > { %9853 = vmatprep.mubr.msk.bf16.mxu0 %vm354_vm1, %v1789_v61  ;;  %v1747_v61 = vld [vmem:[#allocation2 + $0x16a] sm:$0xff]  ;;  %v1472_v3 = vpack.c.bf16 %v1196_v59, %v1195_v57 }
  0xe4   : > { %v1796_v5 = vpack.c.bf16 %v1748_v62, %v1747_v61 }
  0xe9   : > { %9820 = vmatmul.mubr.msk.bf16.gmra.mxu1 %vm354_vm1, %v1466_v60  ;;  %v1753_v60 = vld [vmem:[#allocation3 + $0x32] sm:$0xff] }
  0xea   : > { %9854 = vmatmul.mubr.msk.bf16.gmra.mxu0 %vm354_vm1, %v1790_v13  ;;  %9823 = vmatprep.mubr.msk.bf16.mxu1 %vm354_vm1, %v1467_v14  ;;  %v1754_v13 = vld [vmem:[#allocation3 + $0x3a] sm:$0xff]  ;;  %v2042_v14 = vpack.c.bf16 %v1752_v45, %v1751_v7  ;;  %v1777_v7 = vld [vmem:[#allocation3 + $0x152] sm:$0xff] }
  0xeb   : > { %9857 = vmatprep.mubr.msk.bf16.mxu0 %vm354_vm1, %v1791_v46  ;;  %v2043_v46 = vpack.c.bf16 %v1754_v13, %v1753_v60  ;;  %v1778_v45 = vld [vmem:[#allocation3 + $0x15a] sm:$0xff] }
  0xf1   : > { %9824 = vmatmul.mubr.msk.bf16.gmra.mxu1 %vm354_vm1, %v1468_v29  ;;  %v1762_v29 = vld [vmem:[#allocation3 + $0x9a] sm:$0xff] }
  0xf2   : > { %9858 = vmatmul.mubr.msk.bf16.gmra.mxu0 %vm354_vm1, %v1792_v31  ;;  %9827 = vmatprep.mubr.msk.bf16.mxu1 %vm354_vm1, %v1469_v34  ;;  %v2047_v34 = vpack.c.bf16 %v1762_v29, %v1761_v28 }
  0xf3   : > { %9861 = vmatprep.mubr.msk.bf16.mxu0 %vm354_vm1, %v1793_v35  ;;  %v1763_v35 = vld [vmem:[#allocation3 + $0xaa] sm:$0xff] }
  0xf9   : > { %9828 = vmatmul.mubr.msk.bf16.gmra.mxu1 %vm354_vm1, %v1470_v50 }
  0xfa   : > { %9862 = vmatmul.mubr.msk.bf16.gmra.mxu0 %vm354_vm1, %v1794_v51  ;;  %9831 = vmatprep.mubr.msk.bf16.mxu1 %vm354_vm1, %v1471_v52  ;;  %v1772_v51 = vld [vmem:[#allocation3 + $0x112] sm:$0xff] }
  0xfb   : > { %9865 = vmatprep.mubr.msk.bf16.mxu0 %vm354_vm1, %v1795_v53  ;;  %v1773_v53 = vld [vmem:[#allocation3 + $0x122] sm:$0xff] }
  0xfc   : > { %v2053_v61 = vpack.c.bf16 %v1774_v54, %v1773_v53  ;;  %v3274_v54 = vsel %vm756_vm0, %v11436_v17, 0 }
 0x101   : > { %9832 = vmatmul.mubr.msk.bf16.gmra.mxu1 %vm354_vm1, %v1472_v3  ;;  %v1776_v3 = vld [vmem:[#allocation3 + $0x142] sm:$0xff] }
 0x102   : > { %9866 = vmatmul.mubr.msk.bf16.gmra.mxu0 %vm354_vm1, %v1796_v5  ;;  %9871 = vmatprep.mubr.msk.bf16.mxu1 %vm354_vm1, %v2041_v6 }
 0x103   : > { %9905 = vmatprep.mubr.msk.bf16.mxu0 %vm354_vm1, %v11239_v63  ;;  %v11441_v63 = vld [vmem:[%s14092_s2 + $0xa] sm:$0x3] }
 0x109   : > { %9872 = vmatmul.mubr.msk.bf16.vlgmr.msra.gmra.mxu1 %vm354_vm1, %v2042_v14  ;;  %v2054_v14 = vpack.c.bf16 %v1776_v3, %v1775_v2  ;;  %v11565_v2 = vld [vmem:[%s14093_s3 + $0xa] sm:$0x3]  ;;  %v11570_v3 = vld [vmem:[%s14092_s2 + $0xc] sm:$0x3] }
 0x10a   : > { %9906 = vmatmul.mubr.msk.bf16.vlgmr.msra.gmra.mxu0 %vm354_vm1, %v11249_v4  ;;  %9938 = vmatpush3.bf16.msra.mxu1 %v2690_v15  ;;  %v1758_v4 = vld [vmem:[#allocation3 + $0x6a] sm:$0xff] }
 0x10b   : > { %9875 = vmatprep.mubr.msk.bf16.mxu1 %vm354_vm1, %v2043_v46  ;;  %9909 = vmatprep.mubr.msk.bf16.mxu0 %vm354_vm1, %v11281_v18  ;;  %v2045_v25 = vpack.c.bf16 %v1758_v4, %v1757_v22  ;;  %v1760_v18 = vld [vmem:[#allocation3 + $0x82] sm:$0xff]  ;;  %v2055_v46 = vpack.c.bf16 %v1778_v45, %v1777_v7  ;;  %v2331_v22 = vld [vmem:[#allocation2 + $0x180] sm:$0xff]  ;;  %v2332_v4 = vld [vmem:[#allocation2 + $0x188] sm:$0xff] }
 0x10c   : > { %9972 = vmatpush3.bf16.msra.mxu0 %v3014_v16  ;;  %10629 = vmatprep.subr.msk.bf16.mxu1 %vm756_vm0, %v11436_v17  ;;  %v2046_v31 = vpack.c.bf16 %v1760_v18, %v1759_v27  ;;  %v2333_v27 = vld [vmem:[#allocation3 + $0x18] sm:$0xff]  ;;  %v2334_v18 = vld [vmem:[#allocation3 + $0x20] sm:$0xff]  ;;  %v2340_v7 = vld [vmem:[#allocation3 + $0x68] sm:$0xff] }
 0x10d   : > { %10630 = vmatprep.subr.msk.bf16.mxu0 %vm756_vm0, %v11441_v63  ;;  %v2341_v45 = vld [vmem:[#allocation3 + $0x78] sm:$0xff] }
 0x111   : > { %9876 = vmatmul.mubr.msk.bf16.gmra.mxu1 %vm354_vm1, %v2044_v23 }
 0x112   : > { %9910 = vmatmul.mubr.msk.bf16.gmra.mxu0 %vm354_vm1, %v11285_v20  ;;  %9879 = vmatprep.mubr.msk.bf16.mxu1 %vm354_vm1, %v2045_v25  ;;  %v1764_v20 = vld [vmem:[#allocation3 + $0xb2] sm:$0xff] }
 0x113   : > { %9913 = vmatprep.mubr.msk.bf16.mxu0 %vm354_vm1, %v11297_v30  ;;  %v2048_v38 = vpack.c.bf16 %v1764_v20, %v1763_v35  ;;  %v2049_v30 = vpack.c.bf16 %v1766_v37, %v1765_v36  ;;  %v2335_v37 = vld [vmem:[#allocation3 + $0x30] sm:$0xff] }
 0x119   : > { %9880 = vmatmul.mubr.msk.bf16.gmra.mxu1 %vm354_vm1, %v2046_v31  ;;  %v2380_v31 = vpack.c.bf16 %v2332_v4, %v2331_v22 }
 0x11a   : > { %9914 = vmatmul.mubr.msk.bf16.gmra.mxu0 %vm354_vm1, %v11299_v32  ;;  %9883 = vmatprep.mubr.msk.bf16.mxu1 %vm354_vm1, %v2047_v34  ;;  %v1768_v32 = vld [vmem:[#allocation3 + $0xe2] sm:$0xff]  ;;  %v2625_v34 = vpack.c.bf16 %v2334_v18, %v2333_v27 }
 0x11b   : > { %9917 = vmatprep.mubr.msk.bf16.mxu0 %vm354_vm1, %v11310_v42  ;;  %v2050_v48 = vpack.c.bf16 %v1768_v32, %v1767_v39  ;;  %v2051_v42 = vpack.c.bf16 %v1770_v43, %v1769_v40  ;;  %v2337_v32 = vld [vmem:[#allocation3 + $0x48] sm:$0xff]  ;;  %v2338_v40 = vld [vmem:[#allocation3 + $0x50] sm:$0xff] }
 0x121   : > { %9884 = vmatmul.mubr.msk.bf16.gmra.mxu1 %vm354_vm1, %v2048_v38  ;;  %v2336_v38 = vld [vmem:[#allocation3 + $0x38] sm:$0xff] }
 0x122   : > { %9918 = vmatmul.mubr.msk.bf16.gmra.mxu0 %vm354_vm1, %v11312_v44  ;;  %9887 = vmatprep.mubr.msk.bf16.mxu1 %vm354_vm1, %v2049_v30  ;;  %v1771_v44 = vld [vmem:[#allocation3 + $0x10a] sm:$0xff] }
 0x123   : > { %9921 = vmatprep.mubr.msk.bf16.mxu0 %vm354_vm1, %v11323_v56  ;;  %v2052_v59 = vpack.c.bf16 %v1772_v51, %v1771_v44  ;;  %v2627_v44 = vpack.c.bf16 %v2338_v40, %v2337_v32 }
 0x129   : > { %v11468_v49 = vpop.f32.mrf.mxu1  ;;  %9888 = vmatmul.mubr.msk.bf16.gmra.mxu1 %vm354_vm1, %v2050_v48 }
 0x12a   : > { %v11471_v50 = vpop.f32.mrf.mxu0  ;;  %9922 = vmatmul.mubr.msk.bf16.gmra.mxu0 %vm354_vm1, %v11325_v58  ;;  %9891 = vmatprep.mubr.msk.bf16.mxu1 %vm354_vm1, %v2051_v42  ;;  %v2626_v42 = vpack.c.bf16 %v2336_v38, %v2335_v37 }
 0x12b   : > { %9925 = vmatprep.mubr.msk.bf16.mxu0 %vm354_vm1, %v11340_v8  ;;  %v11478_v56 = vpop.f32.mrf.mxu1 }
 0x12c   : > { %v11480_v52 = vpop.f32.mrf.mxu0 }
 0x12d   : > { %v11482_v55 = vpop.f32.mrf.mxu1 }
 0x12e   : > { %v11484_v57 = vpop.f32.mrf.mxu0 }
 0x12f   : > { %v11486_v58 = vpop.f32.mrf.mxu1 }
 0x130   : > { %v11488_v62 = vpop.f32.mrf.mxu0 }
 0x131   : > { %v11490_v1 = vpop.f32.mrf.mxu1  ;;  %9892 = vmatmul.mubr.msk.bf16.gmra.mxu1 %vm354_vm1, %v2052_v59 }
 0x132   : > { %v11493_v8 = vpop.f32.mrf.mxu0  ;;  %9926 = vmatmul.mubr.msk.bf16.gmra.mxu0 %vm354_vm1, %v11342_v11  ;;  %9895 = vmatprep.mubr.msk.bf16.mxu1 %vm354_vm1, %v2053_v61 }
 0x133   : > { %9929 = vmatprep.mubr.msk.bf16.mxu0 %vm354_vm1, %v11350_v24  ;;  %v11500_v5 = vpop.f32.mrf.mxu1 }
 0x134   : > { %v11502_v6 = vpop.f32.mrf.mxu0 }
 0x135   : > { %v11504_v60 = vpop.f32.mrf.mxu1 }
 0x136   : > { %v11506_v13 = vpop.f32.mrf.mxu0 }
 0x137   : > { %v11508_v11 = vpop.f32.mrf.mxu1 }
 0x138   : > { %v11510_v15 = vpop.f32.mrf.mxu0 }
 0x139   : > { %v11512_v16 = vpop.f32.mrf.mxu1  ;;  %9896 = vmatmul.mubr.msk.bf16.gmra.mxu1 %vm354_vm1, %v2054_v14 }
 0x13a   : > { %v11515_v24 = vpop.f32.mrf.mxu0  ;;  %9930 = vmatmul.mubr.msk.bf16.gmra.mxu0 %vm354_vm1, %v11352_v26  ;;  %9899 = vmatprep.mubr.msk.bf16.mxu1 %vm354_vm1, %v2055_v46  ;;  %v2056_v26 = vpack.c.bf16 %v1780_v12, %v1779_v10  ;;  %v2342_v46 = vld [vmem:[#allocation3 + $0x80] sm:$0xff]  ;;  %v2893_v10 = vld [vmem:[#allocation2 + $0x79] sm:$0xff]  ;;  %v2894_v12 = vld [vmem:[#allocation2 + $0x81] sm:$0xff] }
 0x13b   : > { %9933 = vmatprep.mubr.msk.bf16.mxu0 %vm354_vm1, %v11364_v41  ;;  %v11522_v23 = vpop.f32.mrf.mxu1 }
 0x13c   : > { %v11524_v25 = vpop.f32.mrf.mxu0 }
 0x13d   : > { %v11526_v28 = vpop.f32.mrf.mxu1 }
 0x13e   : > { %v11528_v29 = vpop.f32.mrf.mxu0 }
 0x13f   : > { %v11530_v35 = vpop.f32.mrf.mxu1 }
 0x140   : > { %v11532_v20 = vpop.f32.mrf.mxu0 }
 0x141   : > { %v11534_v41 = vpop.f32.mrf.mxu1  ;;  %9900 = vmatmul.mubr.msk.bf16.gmra.mxu1 %vm354_vm1, %v2056_v26 }
 0x142   : > { %v11537_v36 = vpop.f32.mrf.mxu0  ;;  %9934 = vmatmul.mubr.msk.bf16.gmra.mxu0 %vm354_vm1, %v2380_v31  ;;  %9939 = vmatprep.mubr.msk.bf16.mxu1 %vm354_vm1, %v2625_v34  ;;  %v2629_v31 = vpack.c.bf16 %v2342_v46, %v2341_v45  ;;  %v2953_v34 = vpack.c.bf16 %v2894_v12, %v2893_v10 }
 0x143   : > { %9973 = vmatprep.mubr.msk.bf16.mxu0 %vm354_vm1, %v11241_v0  ;;  %v11543_v30 = vpop.f32.mrf.mxu1  ;;  %v3598_v0 = vsel %vm756_vm0, %v11441_v63, 0  ;;  %v2339_v63 = vld [vmem:[#allocation3 + $0x60] sm:$0xff] }
 0x144   : > { %v11545_v39 = vpop.f32.mrf.mxu0  ;;  %v2628_v18 = vpack.c.bf16 %v2340_v7, %v2339_v63  ;;  %v2897_v63 = vld [vmem:[#allocation2 + $0xa9] sm:$0xff]  ;;  %v2898_v7 = vld [vmem:[#allocation2 + $0xb1] sm:$0xff] }
 0x145   : > { %v11547_v43 = vpop.f32.mrf.mxu1 }
 0x146   : > { %v11549_v48 = vpop.f32.mrf.mxu0 }
 0x147   : > { %v11551_v51 = vpop.f32.mrf.mxu1 }
 0x148   : > { %v11553_v53 = vpop.f32.mrf.mxu0 }
 0x149   : > { %v9737_v59 = vpop.f32.mrf.mxu1  ;;  %9940 = vmatmul.mubr.msk.bf16.vlgmr.msra.gmra.mxu1 %vm354_vm1, %v2626_v42 }
 0x14a   : > { %v9771_v61 = vpop.f32.mrf.mxu0  ;;  %9974 = vmatmul.mubr.msk.bf16.vlgmr.msra.gmra.mxu0 %vm354_vm1, %v11259_v9  ;;  %v1015_v17 = vadd.f32 %v9737_v59, %v11471_v50  ;;  %10006 = vmatpush3.bf16.msra.mxu1 %v3274_v54  ;;  %v2343_v54 = vld [vmem:[#allocation3 + $0x90] sm:$0xff] }
 0x14b   : > { %9943 = vmatprep.mubr.msk.bf16.mxu1 %vm354_vm1, %v2627_v44  ;;  %v1006_v14 = vpop.f32.mrf.mxu1  ;;  %9977 = vmatprep.mubr.msk.bf16.mxu0 %vm354_vm1, %v11283_v19 }
 0x14c   : > { %v1298_v9 = vpop.f32.mrf.mxu0  ;;  %10040 = vmatpush3.bf16.msra.mxu0 %v3598_v0  ;;  %v1007_v22 = vadd.f32 %v1006_v14, %v11480_v52  ;;  %v11577_v4 = vadd.f32 %v9771_v61, %v1015_v17  ;;  %10631 = vmatprep.subr.msk.bf16.mxu1 %vm756_vm0, %v11565_v2  ;;  %v2344_v0 = vld [vmem:[#allocation3 + $0x98] sm:$0xff]  ;;  %v2346_v17 = vld [vmem:[#allocation3 + $0xb0] sm:$0xff] }
 0x14d   : > { %10632 = vmatprep.subr.msk.bf16.mxu0 %vm756_vm0, %v11570_v3  ;;  %v9738_v50 = vpop.f32.mrf.mxu1 }
 0x14e   : > { %v9772_v27 = vpop.f32.mrf.mxu0  ;;  %v1018_v26 = vadd.f32 %v9738_v50, %v11484_v57  ;;  %v11584_v19 = vadd.f32 %v1298_v9, %v1007_v22  ;;  %v2630_v9 = vpack.c.bf16 %v2344_v0, %v2343_v54  ;;  %v2955_v22 = vpack.c.bf16 %v2898_v7, %v2897_v63  ;;  %v2902_v54 = vld [vmem:[#allocation2 + $0xe1] sm:$0xff] }
 0x14f   : > { %v1009_v37 = vpop.f32.mrf.mxu1 }
 0x150   : > { %v1301_v38 = vpop.f32.mrf.mxu0  ;;  %v1010_v52 = vadd.f32 %v1009_v37, %v11488_v62  ;;  %v11587_v32 = vadd.f32 %v9772_v27, %v1018_v26  ;;  %v2345_v62 = vld [vmem:[#allocation3 + $0xa8] sm:$0xff]  ;;  %v2347_v37 = vld [vmem:[#allocation3 + $0xc0] sm:$0xff] }
 0x151   : > { %v9741_v40 = vpop.f32.mrf.mxu1  ;;  %9944 = vmatmul.mubr.msk.bf16.gmra.mxu1 %vm354_vm1, %v2628_v18  ;;  %v2631_v12 = vpack.c.bf16 %v2346_v17, %v2345_v62 }
 0x152   : > { %v9775_v42 = vpop.f32.mrf.mxu0  ;;  %9978 = vmatmul.mubr.msk.bf16.gmra.mxu0 %vm354_vm1, %v11287_v21  ;;  %v1031_v44 = vadd.f32 %v9741_v40, %v11493_v8  ;;  %v11593_v57 = vadd.f32 %v1301_v38, %v1010_v52  ;;  %9947 = vmatprep.mubr.msk.bf16.mxu1 %vm354_vm1, %v2629_v31  ;;  %v2348_v38 = vld [vmem:[#allocation3 + $0xc8] sm:$0xff] }
 0x153   : > { %9981 = vmatprep.mubr.msk.bf16.mxu0 %vm354_vm1, %v2953_v34  ;;  %v1022_v59 = vpop.f32.mrf.mxu1 }
 0x154   : > { %v1314_v61 = vpop.f32.mrf.mxu0  ;;  %v1023_v45 = vadd.f32 %v1022_v59, %v11502_v6  ;;  %v11598_v14 = vadd.f32 %v9775_v42, %v1031_v44  ;;  %v2350_v42 = vld [vmem:[#allocation3 + $0xe0] sm:$0xff]  ;;  %v2901_v44 = vld [vmem:[#allocation2 + $0xd9] sm:$0xff]  ;;  %v2632_v59 = vpack.c.bf16 %v2348_v38, %v2347_v37 }
 0x155   : > { %v9742_v21 = vpop.f32.mrf.mxu1  ;;  %v2957_v7 = vpack.c.bf16 %v2902_v54, %v2901_v44  ;;  %v2905_v37 = vld [vmem:[#allocation2 + $0x109] sm:$0xff]  ;;  %v2906_v38 = vld [vmem:[#allocation2 + $0x111] sm:$0xff] }
 0x156   : > { %v9776_v8 = vpop.f32.mrf.mxu0  ;;  %v1034_v46 = vadd.f32 %v9742_v21, %v11506_v13  ;;  %v11601_v10 = vadd.f32 %v1314_v61, %v1023_v45 }
 0x157   : > { %v1025_v50 = vpop.f32.mrf.mxu1 }
 0x158   : > { %v1317_v27 = vpop.f32.mrf.mxu0  ;;  %v1026_v18 = vadd.f32 %v1025_v50, %v11510_v15  ;;  %v11604_v26 = vadd.f32 %v9776_v8, %v1034_v46  ;;  %v2349_v15 = vld [vmem:[#allocation3 + $0xd8] sm:$0xff] }
 0x159   : > { %v9745_v31 = vpop.f32.mrf.mxu1  ;;  %9948 = vmatmul.mubr.msk.bf16.gmra.mxu1 %vm354_vm1, %v2630_v9  ;;  %v2633_v63 = vpack.c.bf16 %v2350_v42, %v2349_v15 }
 0x15a   : > { %v9779_v6 = vpop.f32.mrf.mxu0  ;;  %9982 = vmatmul.mubr.msk.bf16.gmra.mxu0 %vm354_vm1, %v11301_v33  ;;  %v1047_v34 = vadd.f32 %v9745_v31, %v11515_v24  ;;  %v11610_v13 = vadd.f32 %v1317_v27, %v1026_v18  ;;  %9951 = vmatprep.mubr.msk.bf16.mxu1 %vm354_vm1, %v2631_v12  ;;  %v2351_v12 = vld [vmem:[#allocation3 + $0xf0] sm:$0xff]  ;;  %v2353_v18 = vld [vmem:[#allocation3 + $0x108] sm:$0xff] }
 0x15b   : > { %9985 = vmatprep.mubr.msk.bf16.mxu0 %vm354_vm1, %v2955_v22  ;;  %v1038_v52 = vpop.f32.mrf.mxu1  ;;  %v2352_v22 = vld [vmem:[#allocation3 + $0xf8] sm:$0xff]  ;;  %v2904_v27 = vld [vmem:[#allocation2 + $0xf9] sm:$0xff] }
 0x15c   : > { %v1330_v40 = vpop.f32.mrf.mxu0  ;;  %v1039_v0 = vadd.f32 %v1038_v52, %v11524_v25  ;;  %v11615_v62 = vadd.f32 %v9779_v6, %v1047_v34  ;;  %v2354_v34 = vld [vmem:[#allocation3 + $0x110] sm:$0xff] }
 0x15d   : > { %v9746_v33 = vpop.f32.mrf.mxu1 }
 0x15e   : > { %v9780_v24 = vpop.f32.mrf.mxu0  ;;  %v1050_v61 = vadd.f32 %v9746_v33, %v11528_v29  ;;  %v11618_v17 = vadd.f32 %v1330_v40, %v1039_v0  ;;  %v2634_v40 = vpack.c.bf16 %v2352_v22, %v2351_v12  ;;  %v2635_v0 = vpack.c.bf16 %v2354_v34, %v2353_v18 }
 0x15f   : > { %v1041_v45 = vpop.f32.mrf.mxu1  ;;  %v2959_v33 = vpack.c.bf16 %v2906_v38, %v2905_v37 }
 0x160   : > { %v1333_v21 = vpop.f32.mrf.mxu0  ;;  %v1042_v8 = vadd.f32 %v1041_v45, %v11532_v20  ;;  %v11621_v9 = vadd.f32 %v9780_v24, %v1050_v61  ;;  %v2903_v20 = vld [vmem:[#allocation2 + $0xf1] sm:$0xff] }
 0x161   : > { %v9749_v46 = vpop.f32.mrf.mxu1  ;;  %9952 = vmatmul.mubr.msk.bf16.gmra.mxu1 %vm354_vm1, %v2632_v59  ;;  %v2958_v42 = vpack.c.bf16 %v2904_v27, %v2903_v20  ;;  %v2355_v45 = vld [vmem:[#allocation3 + $0x120] sm:$0xff]  ;;  %v2909_v20 = vld [vmem:[#allocation2 + $0x139] sm:$0xff]  ;;  %v2910_v27 = vld [vmem:[#allocation2 + $0x141] sm:$0xff] }
 0x162   : > { %v9783_v25 = vpop.f32.mrf.mxu0  ;;  %9986 = vmatmul.mubr.msk.bf16.gmra.mxu0 %vm354_vm1, %v11314_v47  ;;  %v1063_v29 = vadd.f32 %v9749_v46, %v11537_v36  ;;  %v11627_v50 = vadd.f32 %v1333_v21, %v1042_v8  ;;  %9955 = vmatprep.mubr.msk.bf16.mxu1 %vm354_vm1, %v2633_v63  ;;  %v2356_v21 = vld [vmem:[#allocation3 + $0x128] sm:$0xff]  ;;  %v2907_v46 = vld [vmem:[#allocation2 + $0x121] sm:$0xff] }
 0x163   : > { %9989 = vmatprep.mubr.msk.bf16.mxu0 %vm354_vm1, %v2957_v7  ;;  %v1054_v31 = vpop.f32.mrf.mxu1  ;;  %v2636_v34 = vpack.c.bf16 %v2356_v21, %v2355_v45 }
 0x164   : > { %v1346_v6 = vpop.f32.mrf.mxu0  ;;  %v1055_v47 = vadd.f32 %v1054_v31, %v11545_v39  ;;  %v11632_v15 = vadd.f32 %v9783_v25, %v1063_v29  ;;  %v2357_v25 = vld [vmem:[#allocation3 + $0x138] sm:$0xff]  ;;  %v2358_v29 = vld [vmem:[#allocation3 + $0x140] sm:$0xff] }
 0x165   : > { %v9750_v52 = vpop.f32.mrf.mxu1 }
 0x166   : > { %v9784_v36 = vpop.f32.mrf.mxu0  ;;  %v1066_v44 = vadd.f32 %v9750_v52, %v11549_v48  ;;  %v11635_v54 = vadd.f32 %v1346_v6, %v1055_v47  ;;  %v2637_v52 = vpack.c.bf16 %v2358_v29, %v2357_v25 }
 0x167   : > { %v1057_v24 = vpop.f32.mrf.mxu1 }
 0x168   : > { %v1349_v59 = vpop.f32.mrf.mxu0  ;;  %v1058_v61 = vadd.f32 %v1057_v24, %v11553_v53  ;;  %v11638_v63 = vadd.f32 %v9784_v36, %v1066_v44  ;;  %v2908_v53 = vld [vmem:[#allocation2 + $0x129] sm:$0xff]  ;;  %v2961_v36 = vpack.c.bf16 %v2910_v27, %v2909_v20  ;;  %v2359_v24 = vld [vmem:[#allocation3 + $0x150] sm:$0xff] }
 0x169   : > { %v9753_v7 = vpop.f32.mrf.mxu1  ;;  %9956 = vmatmul.mubr.msk.bf16.gmra.mxu1 %vm354_vm1, %v2634_v40  ;;  %v2960_v37 = vpack.c.bf16 %v2908_v53, %v2907_v46  ;;  %v2913_v46 = vld [vmem:[#allocation2 + $0x169] sm:$0xff]  ;;  %v2914_v53 = vld [vmem:[#allocation2 + $0x171] sm:$0xff] }
 0x16a   : > { %v9787_v39 = vpop.f32.mrf.mxu0  ;;  %9990 = vmatmul.mubr.msk.bf16.gmra.mxu0 %vm354_vm1, %v2958_v42  ;;  %v1079_v48 = vadd.f32 %v9753_v7, %v11468_v49  ;;  %v11643_v8 = vadd.f32 %v1349_v59, %v1058_v61  ;;  %9959 = vmatprep.mubr.msk.bf16.mxu1 %vm354_vm1, %v2635_v0  ;;  %v2360_v59 = vld [vmem:[#allocation3 + $0x158] sm:$0xff]  ;;  %v2911_v7 = vld [vmem:[#allocation2 + $0x151] sm:$0xff] }
 0x16b   : > { %9993 = vmatprep.mubr.msk.bf16.mxu0 %vm354_vm1, %v2959_v33  ;;  %v1070_v12 = vpop.f32.mrf.mxu1  ;;  %v2638_v29 = vpack.c.bf16 %v2360_v59, %v2359_v24 }
 0x16c   : > { %v1362_v22 = vpop.f32.mrf.mxu0  ;;  %v1071_v18 = vadd.f32 %v1070_v12, %v11478_v56  ;;  %v11648_v31 = vadd.f32 %v9787_v39, %v1079_v48  ;;  %v2361_v39 = vld [vmem:[#allocation3 + $0x168] sm:$0xff]  ;;  %v2362_v48 = vld [vmem:[#allocation3 + $0x170] sm:$0xff] }
 0x16d   : > { %v9754_v6 = vpop.f32.mrf.mxu1 }
 0x16e   : > { %v9788_v49 = vpop.f32.mrf.mxu0  ;;  %v1082_v38 = vadd.f32 %v9754_v6, %v11482_v55  ;;  %v11651_v47 = vadd.f32 %v1362_v22, %v1071_v18  ;;  %v2639_v6 = vpack.c.bf16 %v2362_v48, %v2361_v39 }
 0x16f   : > { %v1073_v40 = vpop.f32.mrf.mxu1 }
 0x170   : > { %v1365_v42 = vpop.f32.mrf.mxu0  ;;  %v1074_v44 = vadd.f32 %v1073_v40, %v11486_v58  ;;  %v11654_v0 = vadd.f32 %v9788_v49, %v1082_v38  ;;  %v2912_v58 = vld [vmem:[#allocation2 + $0x159] sm:$0xff]  ;;  %v2963_v49 = vpack.c.bf16 %v2914_v53, %v2913_v46  ;;  %v2363_v40 = vld [vmem:[#allocation3 + $0x180] sm:$0xff] }
 0x171   : > { %v9757_v33 = vpop.f32.mrf.mxu1  ;;  %9960 = vmatmul.mubr.msk.bf16.gmra.mxu1 %vm354_vm1, %v2636_v34  ;;  %v2962_v20 = vpack.c.bf16 %v2912_v58, %v2911_v7  ;;  %v3469_v7 = vld [vmem:[#allocation2 + $0x1a] sm:$0xff]  ;;  %v3470_v58 = vld [vmem:[#allocation2 + $0x22] sm:$0xff] }
 0x172   : > { %v9791_v56 = vpop.f32.mrf.mxu0  ;;  %9994 = vmatmul.mubr.msk.bf16.gmra.mxu0 %vm354_vm1, %v2960_v37  ;;  %v1095_v55 = vadd.f32 %v9757_v33, %v11490_v1  ;;  %v11659_v61 = vadd.f32 %v1365_v42, %v1074_v44  ;;  %9963 = vmatprep.mubr.msk.bf16.mxu1 %vm354_vm1, %v2637_v52  ;;  %v2364_v42 = vld [vmem:[#allocation3 + $0x188] sm:$0xff]  ;;  %v2915_v33 = vld [vmem:[#allocation2 + $0x181] sm:$0xff] }
 0x173   : > { %9997 = vmatprep.mubr.msk.bf16.mxu0 %vm354_vm1, %v2961_v36  ;;  %v1086_v45 = vpop.f32.mrf.mxu1  ;;  %v2640_v48 = vpack.c.bf16 %v2364_v42, %v2363_v40  ;;  %v2921_v42 = vld [vmem:[#allocation3 + $0x49] sm:$0xff] }
 0x174   : > { %v1378_v21 = vpop.f32.mrf.mxu0  ;;  %v1087_v25 = vadd.f32 %v1086_v45, %v11500_v5  ;;  %v11664_v12 = vadd.f32 %v9791_v56, %v1095_v55  ;;  %v2917_v56 = vld [vmem:[#allocation3 + $0x19] sm:$0xff]  ;;  %v2918_v55 = vld [vmem:[#allocation3 + $0x21] sm:$0xff] }
 0x175   : > { %v9758_v22 = vpop.f32.mrf.mxu1 }
 0x176   : > { %v9792_v1 = vpop.f32.mrf.mxu0  ;;  %v1098_v27 = vadd.f32 %v9758_v22, %v11504_v60  ;;  %v11667_v18 = vadd.f32 %v1378_v21, %v1087_v25  ;;  %v3209_v22 = vpack.c.bf16 %v2918_v55, %v2917_v56  ;;  %v3473_v56 = vld [vmem:[#allocation2 + $0x4a] sm:$0xff] }
 0x177   : > { %v1089_v34 = vpop.f32.mrf.mxu1 }
 0x178   : > { %v1381_v37 = vpop.f32.mrf.mxu0  ;;  %v1090_v38 = vadd.f32 %v1089_v34, %v11508_v11  ;;  %v11670_v52 = vadd.f32 %v9792_v1, %v1098_v27  ;;  %v2916_v11 = vld [vmem:[#allocation2 + $0x189] sm:$0xff]  ;;  %v3533_v1 = vpack.c.bf16 %v3470_v58, %v3469_v7  ;;  %v2919_v34 = vld [vmem:[#allocation3 + $0x31] sm:$0xff] }
 0x179   : > { %v9761_v36 = vpop.f32.mrf.mxu1  ;;  %9964 = vmatmul.mubr.msk.bf16.gmra.mxu1 %vm354_vm1, %v2638_v29  ;;  %v2964_v46 = vpack.c.bf16 %v2916_v11, %v2915_v33 }
 0x17a   : > { %v9795_v5 = vpop.f32.mrf.mxu0  ;;  %9998 = vmatmul.mubr.msk.bf16.gmra.mxu0 %vm354_vm1, %v2962_v20  ;;  %v1111_v60 = vadd.f32 %v9761_v36, %v11512_v16  ;;  %v11675_v44 = vadd.f32 %v1381_v37, %v1090_v38  ;;  %9967 = vmatprep.mubr.msk.bf16.mxu1 %vm354_vm1, %v2639_v6  ;;  %v2920_v38 = vld [vmem:[#allocation3 + $0x39] sm:$0xff]  ;;  %v3471_v36 = vld [vmem:[#allocation2 + $0x32] sm:$0xff] }
 0x17b   : > { %10001 = vmatprep.mubr.msk.bf16.mxu0 %vm354_vm1, %v2963_v49  ;;  %v1102_v24 = vpop.f32.mrf.mxu1  ;;  %v3210_v55 = vpack.c.bf16 %v2920_v38, %v2919_v34  ;;  %v3476_v34 = vld [vmem:[#allocation2 + $0x6a] sm:$0xff] }
 0x17c   : > { %v1394_v59 = vpop.f32.mrf.mxu0  ;;  %v1103_v39 = vadd.f32 %v1102_v24, %v11522_v23  ;;  %v11680_v45 = vadd.f32 %v9795_v5, %v1111_v60  ;;  %v2922_v60 = vld [vmem:[#allocation3 + $0x51] sm:$0xff]  ;;  %v3474_v24 = vld [vmem:[#allocation2 + $0x52] sm:$0xff] }
 0x17d   : > { %v9762_v21 = vpop.f32.mrf.mxu1 }
 0x17e   : > { %v9796_v16 = vpop.f32.mrf.mxu0  ;;  %v1114_v53 = vadd.f32 %v9762_v21, %v11526_v28  ;;  %v11683_v25 = vadd.f32 %v1394_v59, %v1103_v39  ;;  %v3211_v21 = vpack.c.bf16 %v2922_v60, %v2921_v42 }
 0x17f   : > { %v1105_v29 = vpop.f32.mrf.mxu1 }
 0x180   : > { %v1397_v20 = vpop.f32.mrf.mxu0  ;;  %v1106_v27 = vadd.f32 %v1105_v29, %v11530_v35  ;;  %v11686_v6 = vadd.f32 %v9796_v16, %v1114_v53  ;;  %v3472_v35 = vld [vmem:[#allocation2 + $0x3a] sm:$0xff]  ;;  %v3535_v53 = vpack.c.bf16 %v3474_v24, %v3473_v56  ;;  %v4184_v29 = vsel %vm756_vm0, %v11570_v3, 0 }
 0x181   : > { %v9765_v49 = vpop.f32.mrf.mxu1  ;;  %9968 = vmatmul.mubr.msk.bf16.gmra.mxu1 %vm354_vm1, %v2640_v48  ;;  %v3534_v7 = vpack.c.bf16 %v3472_v35, %v3471_v36  ;;  %v2926_v35 = vld [vmem:[#allocation3 + $0x81] sm:$0xff] }
 0x182   : > { %v9799_v23 = vpop.f32.mrf.mxu0  ;;  %10002 = vmatmul.mubr.msk.bf16.gmra.mxu0 %vm354_vm1, %v2964_v46  ;;  %v1127_v37 = vadd.f32 %v9765_v49, %v11534_v41  ;;  %v11691_v28 = vadd.f32 %v1397_v20, %v1106_v27  ;;  %10007 = vmatprep.mubr.msk.bf16.mxu1 %vm354_vm1, %v3209_v22  ;;  %v3858_v46 = vsel %vm756_vm0, %v11565_v2, 0  ;;  %v2924_v27 = vld [vmem:[#allocation3 + $0x69] sm:$0xff]  ;;  %v11713_v2 = vld [vmem:[%s14093_s3 + $0xc] sm:$0x3] }
 0x183   : > { %10041 = vmatprep.mubr.msk.bf16.mxu0 %vm354_vm1, %v3533_v1  ;;  %v1118_v5 = vpop.f32.mrf.mxu1  ;;  %v2923_v1 = vld [vmem:[#allocation3 + $0x61] sm:$0xff] }
 0x184   : > { %v1410_v40 = vpop.f32.mrf.mxu0  ;;  %v1119_v33 = vadd.f32 %v1118_v5, %v11543_v30  ;;  %v11696_v11 = vadd.f32 %v9799_v23, %v1127_v37  ;;  %v3475_v23 = vld [vmem:[#allocation2 + $0x62] sm:$0xff]  ;;  %v3477_v5 = vld [vmem:[#allocation2 + $0x7a] sm:$0xff]  ;;  %v3212_v56 = vpack.c.bf16 %v2924_v27, %v2923_v1 }
 0x185   : > { %v9766_v41 = vpop.f32.mrf.mxu1  ;;  %v2925_v37 = vld [vmem:[#allocation3 + $0x79] sm:$0xff]  ;;  %v3536_v24 = vpack.c.bf16 %v3476_v34, %v3475_v23  ;;  %v3482_v34 = vld [vmem:[#allocation2 + $0xb2] sm:$0xff] }
 0x186   : > { %v9800_v59 = vpop.f32.mrf.mxu0  ;;  %v1130_v58 = vadd.f32 %v9766_v41, %v11547_v43  ;;  %v11699_v39 = vadd.f32 %v1410_v40, %v1119_v33  ;;  %v3478_v40 = vld [vmem:[#allocation2 + $0x82] sm:$0xff]  ;;  %v3481_v23 = vld [vmem:[#allocation2 + $0xaa] sm:$0xff] }
 0x187   : > { %v1121_v16 = vpop.f32.mrf.mxu1 }
 0x188   : > { %v1413_v48 = vpop.f32.mrf.mxu0  ;;  %v1122_v30 = vadd.f32 %v1121_v16, %v11551_v51  ;;  %v11704_v22 = vadd.f32 %v9800_v59, %v1130_v58  ;;  %v11718_v51 = vld [vmem:[%s14092_s2 + $0xe] sm:$0x3] }
 0x189   : > { %v9805_v20 = vpop.f32.mrf.mxu1  ;;  %10008 = vmatmul.mubr.msk.bf16.vlgmr.msra.gmra.mxu1 %vm354_vm1, %v3210_v55  ;;  %v3213_v55 = vpack.c.bf16 %v2926_v35, %v2925_v37 }
 0x18a   : > { %v9839_v43 = vpop.f32.mrf.mxu0  ;;  %10042 = vmatmul.mubr.msk.bf16.vlgmr.msra.gmra.mxu0 %vm354_vm1, %v3534_v7  ;;  %v11720_v49 = vadd.f32 %v1413_v48, %v1122_v30  ;;  %v1687_v3 = vadd.f32 %v9805_v20, %v11577_v4  ;;  %10074 = vmatpush3.bf16.msra.mxu1 %v3858_v46  ;;  %v3537_v7 = vpack.c.bf16 %v3478_v40, %v3477_v5  ;;  %v2928_v30 = vld [vmem:[#allocation3 + $0x99] sm:$0xff]  ;;  %v2929_v20 = vld [vmem:[#allocation3 + $0xa9] sm:$0xff] }
 0x18b   : > { %10011 = vmatprep.mubr.msk.bf16.mxu1 %vm354_vm1, %v3211_v21  ;;  %v1558_v38 = vpop.f32.mrf.mxu1  ;;  %10045 = vmatprep.mubr.msk.bf16.mxu0 %vm354_vm1, %v3535_v53  ;;  %v2927_v53 = vld [vmem:[#allocation3 + $0x91] sm:$0xff] }
 0x18c   : > { %v1882_v36 = vpop.f32.mrf.mxu0  ;;  %10108 = vmatpush3.bf16.msra.mxu0 %v4184_v29  ;;  %v1685_v42 = vadd.f32 %v1558_v38, %v11584_v19  ;;  %v11726_v60 = vadd.f32 %v9839_v43, %v1687_v3  ;;  %10633 = vmatprep.subr.msk.bf16.mxu1 %vm756_vm0, %v11713_v2  ;;  %v3479_v29 = vld [vmem:[#allocation2 + $0x92] sm:$0xff]  ;;  %v2930_v3 = vld [vmem:[#allocation3 + $0xb1] sm:$0xff]  ;;  %v3214_v35 = vpack.c.bf16 %v2928_v30, %v2927_v53 }
 0x18d   : > { %10634 = vmatprep.subr.msk.bf16.mxu0 %vm756_vm0, %v11718_v51  ;;  %v9806_v4 = vpop.f32.mrf.mxu1 }
 0x18e   : > { %v9840_v33 = vpop.f32.mrf.mxu0  ;;  %v1688_v41 = vadd.f32 %v9806_v4, %v11587_v32  ;;  %v11733_v59 = vadd.f32 %v1882_v36, %v1685_v42  ;;  %v3215_v4 = vpack.c.bf16 %v2930_v3, %v2929_v20 }
 0x18f   : > { %v1561_v58 = vpop.f32.mrf.mxu1 }
 0x190   : > { %v1885_v19 = vpop.f32.mrf.mxu0  ;;  %v1686_v21 = vadd.f32 %v1561_v58, %v11593_v57  ;;  %v11736_v16 = vadd.f32 %v9840_v33, %v1688_v41  ;;  %v3480_v57 = vld [vmem:[#allocation2 + $0x9a] sm:$0xff]  ;;  %v3539_v33 = vpack.c.bf16 %v3482_v34, %v3481_v23  ;;  %v2931_v58 = vld [vmem:[#allocation3 + $0xc1] sm:$0xff] }
 0x191   : > { %v9809_v48 = vpop.f32.mrf.mxu1  ;;  %10012 = vmatmul.mubr.msk.bf16.gmra.mxu1 %vm354_vm1, %v3212_v56  ;;  %v3538_v5 = vpack.c.bf16 %v3480_v57, %v3479_v29  ;;  %v3485_v29 = vld [vmem:[#allocation2 + $0xda] sm:$0xff]  ;;  %v3486_v57 = vld [vmem:[#allocation2 + $0xe2] sm:$0xff] }
 0x192   : > { %v9843_v46 = vpop.f32.mrf.mxu0  ;;  %10046 = vmatmul.mubr.msk.bf16.gmra.mxu0 %vm354_vm1, %v3536_v24  ;;  %v1691_v32 = vadd.f32 %v9809_v48, %v11598_v14  ;;  %v11741_v1 = vadd.f32 %v1885_v19, %v1686_v21  ;;  %10015 = vmatprep.mubr.msk.bf16.mxu1 %vm354_vm1, %v3213_v55  ;;  %v2932_v19 = vld [vmem:[#allocation3 + $0xc9] sm:$0xff]  ;;  %v3483_v48 = vld [vmem:[#allocation2 + $0xc2] sm:$0xff] }
 0x193   : > { %10049 = vmatprep.mubr.msk.bf16.mxu0 %vm354_vm1, %v3537_v7  ;;  %v1574_v43 = vpop.f32.mrf.mxu1  ;;  %v3216_v3 = vpack.c.bf16 %v2932_v19, %v2931_v58 }
 0x194   : > { %v1898_v27 = vpop.f32.mrf.mxu0  ;;  %v1689_v37 = vadd.f32 %v1574_v43, %v11601_v10  ;;  %v11746_v38 = vadd.f32 %v9843_v46, %v1691_v32  ;;  %v2933_v46 = vld [vmem:[#allocation3 + $0xd9] sm:$0xff]  ;;  %v2934_v32 = vld [vmem:[#allocation3 + $0xe1] sm:$0xff] }
 0x195   : > { %v9810_v36 = vpop.f32.mrf.mxu1 }
 0x196   : > { %v9844_v14 = vpop.f32.mrf.mxu0  ;;  %v1692_v40 = vadd.f32 %v9810_v36, %v11604_v26  ;;  %v11749_v42 = vadd.f32 %v1898_v27, %v1689_v37  ;;  %v3217_v36 = vpack.c.bf16 %v2934_v32, %v2933_v46 }
 0x197   : > { %v1577_v56 = vpop.f32.mrf.mxu1 }
 0x198   : > { %v1901_v24 = vpop.f32.mrf.mxu0  ;;  %v1690_v41 = vadd.f32 %v1577_v56, %v11610_v13  ;;  %v11752_v55 = vadd.f32 %v9844_v14, %v1692_v40  ;;  %v3484_v13 = vld [vmem:[#allocation2 + $0xca] sm:$0xff]  ;;  %v3541_v14 = vpack.c.bf16 %v3486_v57, %v3485_v29  ;;  %v2935_v56 = vld [vmem:[#allocation3 + $0xf1] sm:$0xff] }
 0x199   : > { %v9813_v7 = vpop.f32.mrf.mxu1  ;;  %10016 = vmatmul.mubr.msk.bf16.gmra.mxu1 %vm354_vm1, %v3214_v35  ;;  %v3540_v23 = vpack.c.bf16 %v3484_v13, %v3483_v48  ;;  %v3489_v48 = vld [vmem:[#allocation2 + $0x10a] sm:$0xff]  ;;  %v3490_v13 = vld [vmem:[#allocation2 + $0x112] sm:$0xff] }
 0x19a   : > { %v9847_v10 = vpop.f32.mrf.mxu0  ;;  %10050 = vmatmul.mubr.msk.bf16.gmra.mxu0 %vm354_vm1, %v3538_v5  ;;  %v1695_v26 = vadd.f32 %v9813_v7, %v11615_v62  ;;  %v11757_v21 = vadd.f32 %v1901_v24, %v1690_v41  ;;  %10019 = vmatprep.mubr.msk.bf16.mxu1 %vm354_vm1, %v3215_v4  ;;  %v2936_v24 = vld [vmem:[#allocation3 + $0xf9] sm:$0xff]  ;;  %v3487_v7 = vld [vmem:[#allocation2 + $0xf2] sm:$0xff] }
 0x19b   : > { %10053 = vmatprep.mubr.msk.bf16.mxu0 %vm354_vm1, %v3539_v33  ;;  %v1590_v53 = vpop.f32.mrf.mxu1  ;;  %v3218_v32 = vpack.c.bf16 %v2936_v24, %v2935_v56 }
 0x19c   : > { %v1914_v30 = vpop.f32.mrf.mxu0  ;;  %v1693_v20 = vadd.f32 %v1590_v53, %v11618_v17  ;;  %v11762_v43 = vadd.f32 %v9847_v10, %v1695_v26  ;;  %v2937_v10 = vld [vmem:[#allocation3 + $0x109] sm:$0xff]  ;;  %v2938_v26 = vld [vmem:[#allocation3 + $0x111] sm:$0xff] }
 0x19d   : > { %v9814_v27 = vpop.f32.mrf.mxu1 }
 0x19e   : > { %v9848_v62 = vpop.f32.mrf.mxu0  ;;  %v1696_v34 = vadd.f32 %v9814_v27, %v11621_v9  ;;  %v11765_v37 = vadd.f32 %v1914_v30, %v1693_v20  ;;  %v3219_v27 = vpack.c.bf16 %v2938_v26, %v2937_v10 }
 0x19f   : > { %v1593_v35 = vpop.f32.mrf.mxu1 }
 0x1a0   : > { %v1917_v5 = vpop.f32.mrf.mxu0  ;;  %v1694_v40 = vadd.f32 %v1593_v35, %v11627_v50  ;;  %v11768_v4 = vadd.f32 %v9848_v62, %v1696_v34  ;;  %v3488_v50 = vld [vmem:[#allocation2 + $0xfa] sm:$0xff]  ;;  %v3543_v62 = vpack.c.bf16 %v3490_v13, %v3489_v48  ;;  %v2939_v35 = vld [vmem:[#allocation3 + $0x121] sm:$0xff] }
 0x1a1   : > { %v9817_v33 = vpop.f32.mrf.mxu1  ;;  %10020 = vmatmul.mubr.msk.bf16.gmra.mxu1 %vm354_vm1, %v3216_v3  ;;  %v3542_v29 = vpack.c.bf16 %v3488_v50, %v3487_v7  ;;  %v3493_v7 = vld [vmem:[#allocation2 + $0x13a] sm:$0xff]  ;;  %v3494_v50 = vld [vmem:[#allocation2 + $0x142] sm:$0xff] }
 0x1a2   : > { %v9851_v17 = vpop.f32.mrf.mxu0  ;;  %10054 = vmatmul.mubr.msk.bf16.gmra.mxu0 %vm354_vm1, %v3540_v23  ;;  %v1699_v9 = vadd.f32 %v9817_v33, %v11632_v15  ;;  %v11773_v41 = vadd.f32 %v1917_v5, %v1694_v40  ;;  %10023 = vmatprep.mubr.msk.bf16.mxu1 %vm354_vm1, %v3217_v36  ;;  %v2940_v5 = vld [vmem:[#allocation3 + $0x129] sm:$0xff]  ;;  %v3491_v33 = vld [vmem:[#allocation2 + $0x122] sm:$0xff] }
 0x1a3   : > { %10057 = vmatprep.mubr.msk.bf16.mxu0 %vm354_vm1, %v3541_v14  ;;  %v1606_v58 = vpop.f32.mrf.mxu1  ;;  %v3220_v26 = vpack.c.bf16 %v2940_v5, %v2939_v35 }
 0x1a4   : > { %v1930_v19 = vpop.f32.mrf.mxu0  ;;  %v1697_v46 = vadd.f32 %v1606_v58, %v11635_v54  ;;  %v11778_v53 = vadd.f32 %v9851_v17, %v1699_v9  ;;  %v2941_v17 = vld [vmem:[#allocation3 + $0x139] sm:$0xff]  ;;  %v2942_v9 = vld [vmem:[#allocation3 + $0x141] sm:$0xff] }
 0x1a5   : > { %v9818_v30 = vpop.f32.mrf.mxu1 }
 0x1a6   : > { %v9852_v15 = vpop.f32.mrf.mxu0  ;;  %v1700_v57 = vadd.f32 %v9818_v30, %v11638_v63  ;;  %v11781_v20 = vadd.f32 %v1930_v19, %v1697_v46  ;;  %v3221_v30 = vpack.c.bf16 %v2942_v9, %v2941_v17 }
 0x1a7   : > { %v1609_v3 = vpop.f32.mrf.mxu1 }
 0x1a8   : > { %v1933_v23 = vpop.f32.mrf.mxu0  ;;  %v1698_v34 = vadd.f32 %v1609_v3, %v11643_v8  ;;  %v11784_v36 = vadd.f32 %v9852_v15, %v1700_v57  ;;  %v3492_v8 = vld [vmem:[#allocation2 + $0x12a] sm:$0xff]  ;;  %v3545_v15 = vpack.c.bf16 %v3494_v50, %v3493_v7  ;;  %v2943_v3 = vld [vmem:[#allocation3 + $0x151] sm:$0xff] }
 0x1a9   : > { %v9821_v14 = vpop.f32.mrf.mxu1  ;;  %10024 = vmatmul.mubr.msk.bf16.gmra.mxu1 %vm354_vm1, %v3218_v32  ;;  %v3544_v48 = vpack.c.bf16 %v3492_v8, %v3491_v33  ;;  %v3497_v33 = vld [vmem:[#allocation2 + $0x16a] sm:$0xff]  ;;  %v3498_v8 = vld [vmem:[#allocation2 + $0x172] sm:$0xff] }
 0x1aa   : > { %v9855_v54 = vpop.f32.mrf.mxu0  ;;  %10058 = vmatmul.mubr.msk.bf16.gmra.mxu0 %vm354_vm1, %v3542_v29  ;;  %v1703_v63 = vadd.f32 %v9821_v14, %v11648_v31  ;;  %v11789_v40 = vadd.f32 %v1933_v23, %v1698_v34  ;;  %10027 = vmatprep.mubr.msk.bf16.mxu1 %vm354_vm1, %v3219_v27  ;;  %v2944_v23 = vld [vmem:[#allocation3 + $0x159] sm:$0xff]  ;;  %v3495_v14 = vld [vmem:[#allocation2 + $0x152] sm:$0xff] }
 0x1ab   : > { %10061 = vmatprep.mubr.msk.bf16.mxu0 %vm354_vm1, %v3543_v62  ;;  %v1622_v56 = vpop.f32.mrf.mxu1  ;;  %v3222_v9 = vpack.c.bf16 %v2944_v23, %v2943_v3 }
 0x1ac   : > { %v1946_v24 = vpop.f32.mrf.mxu0  ;;  %v1701_v10 = vadd.f32 %v1622_v56, %v11651_v47  ;;  %v11794_v58 = vadd.f32 %v9855_v54, %v1703_v63  ;;  %v2945_v54 = vld [vmem:[#allocation3 + $0x169] sm:$0xff]  ;;  %v2946_v63 = vld [vmem:[#allocation3 + $0x171] sm:$0xff] }
 0x1ad   : > { %v9822_v19 = vpop.f32.mrf.mxu1 }
 0x1ae   : > { %v9856_v31 = vpop.f32.mrf.mxu0  ;;  %v1704_v13 = vadd.f32 %v9822_v19, %v11654_v0  ;;  %v11797_v46 = vadd.f32 %v1946_v24, %v1701_v10  ;;  %v3223_v19 = vpack.c.bf16 %v2946_v63, %v2945_v54 }
 0x1af   : > { %v1625_v32 = vpop.f32.mrf.mxu1 }
 0x1b0   : > { %v1949_v29 = vpop.f32.mrf.mxu0  ;;  %v1702_v57 = vadd.f32 %v1625_v32, %v11659_v61  ;;  %v11800_v27 = vadd.f32 %v9856_v31, %v1704_v13  ;;  %v3496_v61 = vld [vmem:[#allocation2 + $0x15a] sm:$0xff]  ;;  %v3547_v31 = vpack.c.bf16 %v3498_v8, %v3497_v33  ;;  %v2947_v32 = vld [vmem:[#allocation3 + $0x181] sm:$0xff] }
 0x1b1   : > { %v9825_v62 = vpop.f32.mrf.mxu1  ;;  %10028 = vmatmul.mubr.msk.bf16.gmra.mxu1 %vm354_vm1, %v3220_v26  ;;  %v3546_v7 = vpack.c.bf16 %v3496_v61, %v3495_v14  ;;  %v4054_v14 = vld [vmem:[#allocation2 + $0x30] sm:$0xff]  ;;  %v4055_v61 = vld [vmem:[#allocation2 + $0x38] sm:$0xff] }
 0x1b2   : > { %v9859_v47 = vpop.f32.mrf.mxu0  ;;  %10062 = vmatmul.mubr.msk.bf16.gmra.mxu0 %vm354_vm1, %v3544_v48  ;;  %v1707_v0 = vadd.f32 %v9825_v62, %v11664_v12  ;;  %v11805_v34 = vadd.f32 %v1949_v29, %v1702_v57  ;;  %10031 = vmatprep.mubr.msk.bf16.mxu1 %vm354_vm1, %v3221_v30  ;;  %v2948_v29 = vld [vmem:[#allocation3 + $0x189] sm:$0xff]  ;;  %v3499_v62 = vld [vmem:[#allocation2 + $0x182] sm:$0xff] }
 0x1b3   : > { %10065 = vmatprep.mubr.msk.bf16.mxu0 %vm354_vm1, %v3545_v15  ;;  %v1638_v35 = vpop.f32.mrf.mxu1  ;;  %v3224_v63 = vpack.c.bf16 %v2948_v29, %v2947_v32  ;;  %v3505_v29 = vld [vmem:[#allocation3 + $0x4a] sm:$0xff] }
 0x1b4   : > { %v1962_v5 = vpop.f32.mrf.mxu0  ;;  %v1705_v17 = vadd.f32 %v1638_v35, %v11667_v18  ;;  %v11810_v56 = vadd.f32 %v9859_v47, %v1707_v0  ;;  %v3501_v47 = vld [vmem:[#allocation3 + $0x1a] sm:$0xff]  ;;  %v3502_v0 = vld [vmem:[#allocation3 + $0x22] sm:$0xff] }
 0x1b5   : > { %v9826_v24 = vpop.f32.mrf.mxu1 }
 0x1b6   : > { %v9860_v12 = vpop.f32.mrf.mxu0  ;;  %v1708_v50 = vadd.f32 %v9826_v24, %v11670_v52  ;;  %v11813_v10 = vadd.f32 %v1962_v5, %v1705_v17  ;;  %v3793_v24 = vpack.c.bf16 %v3502_v0, %v3501_v47  ;;  %v4058_v47 = vld [vmem:[#allocation2 + $0x60] sm:$0xff] }
 0x1b7   : > { %v1641_v26 = vpop.f32.mrf.mxu1 }
 0x1b8   : > { %v1965_v48 = vpop.f32.mrf.mxu0  ;;  %v1706_v13 = vadd.f32 %v1641_v26, %v11675_v44  ;;  %v11816_v30 = vadd.f32 %v9860_v12, %v1708_v50  ;;  %v3500_v44 = vld [vmem:[#allocation2 + $0x18a] sm:$0xff]  ;;  %v4119_v12 = vpack.c.bf16 %v4055_v61, %v4054_v14  ;;  %v3503_v26 = vld [vmem:[#allocation3 + $0x32] sm:$0xff] }
 0x1b9   : > { %v9829_v15 = vpop.f32.mrf.mxu1  ;;  %10032 = vmatmul.mubr.msk.bf16.gmra.mxu1 %vm354_vm1, %v3222_v9  ;;  %v3548_v33 = vpack.c.bf16 %v3500_v44, %v3499_v62 }
 0x1ba   : > { %v9863_v18 = vpop.f32.mrf.mxu0  ;;  %10066 = vmatmul.mubr.msk.bf16.gmra.mxu0 %vm354_vm1, %v3546_v7  ;;  %v1711_v52 = vadd.f32 %v9829_v15, %v11680_v45  ;;  %v11821_v57 = vadd.f32 %v1965_v48, %v1706_v13  ;;  %10035 = vmatprep.mubr.msk.bf16.mxu1 %vm354_vm1, %v3223_v19  ;;  %v3504_v13 = vld [vmem:[#allocation3 + $0x3a] sm:$0xff] }
 0x1bb   : > { %10069 = vmatprep.mubr.msk.bf16.mxu0 %vm354_vm1, %v3547_v31  ;;  %v1654_v3 = vpop.f32.mrf.mxu1  ;;  %v4056_v15 = vld [vmem:[#allocation2 + $0x48] sm:$0xff]  ;;  %v3794_v0 = vpack.c.bf16 %v3504_v13, %v3503_v26  ;;  %v4061_v26 = vld [vmem:[#allocation2 + $0x80] sm:$0xff] }
 0x1bc   : > { %v1978_v23 = vpop.f32.mrf.mxu0  ;;  %v1709_v54 = vadd.f32 %v1654_v3, %v11683_v25  ;;  %v11826_v35 = vadd.f32 %v9863_v18, %v1711_v52  ;;  %v3506_v52 = vld [vmem:[#allocation3 + $0x52] sm:$0xff] }
 0x1bd   : > { %v9830_v5 = vpop.f32.mrf.mxu1  ;;  %v4059_v3 = vld [vmem:[#allocation2 + $0x68] sm:$0xff] }
 0x1be   : > { %v9864_v45 = vpop.f32.mrf.mxu0  ;;  %v1712_v8 = vadd.f32 %v9830_v5, %v11686_v6  ;;  %v11829_v17 = vadd.f32 %v1978_v23, %v1709_v54  ;;  %v3795_v5 = vpack.c.bf16 %v3506_v52, %v3505_v29 }
 0x1bf   : > { %v1657_v9 = vpop.f32.mrf.mxu1 }
 0x1c0   : > { %v1981_v7 = vpop.f32.mrf.mxu0  ;;  %v1710_v50 = vadd.f32 %v1657_v9, %v11691_v28  ;;  %v11832_v19 = vadd.f32 %v9864_v45, %v1712_v8  ;;  %v4057_v28 = vld [vmem:[#allocation2 + $0x50] sm:$0xff]  ;;  %v4121_v8 = vpack.c.bf16 %v4059_v3, %v4058_v47  ;;  %v4768_v9 = vsel %vm756_vm0, %v11718_v51, 0 }
 0x1c1   : > { %v9833_v31 = vpop.f32.mrf.mxu1  ;;  %10036 = vmatmul.mubr.msk.bf16.gmra.mxu1 %vm354_vm1, %v3224_v63  ;;  %v4120_v14 = vpack.c.bf16 %v4057_v28, %v4056_v15  ;;  %v3510_v28 = vld [vmem:[#allocation3 + $0x82] sm:$0xff] }
 0x1c2   : > { %v9867_v25 = vpop.f32.mrf.mxu0  ;;  %10070 = vmatmul.mubr.msk.bf16.gmra.mxu0 %vm354_vm1, %v3548_v33  ;;  %v1715_v48 = vadd.f32 %v9833_v31, %v11696_v11  ;;  %v11837_v6 = vadd.f32 %v1981_v7, %v1710_v50  ;;  %10075 = vmatprep.mubr.msk.bf16.mxu1 %vm354_vm1, %v3793_v24  ;;  %v4444_v33 = vsel %vm756_vm0, %v11713_v2, 0  ;;  %v3508_v50 = vld [vmem:[#allocation3 + $0x6a] sm:$0xff]  ;;  %v11859_v2 = vld [vmem:[%s14093_s3 + $0xe] sm:$0x3] }
 0x1c3   : > { %10109 = vmatprep.mubr.msk.bf16.mxu0 %vm354_vm1, %v4119_v12  ;;  %v1670_v18 = vpop.f32.mrf.mxu1  ;;  %v3507_v12 = vld [vmem:[#allocation3 + $0x62] sm:$0xff] }
 0x1c4   : > { %v1994_v32 = vpop.f32.mrf.mxu0  ;;  %v1713_v62 = vadd.f32 %v1670_v18, %v11699_v39  ;;  %v11842_v44 = vadd.f32 %v9867_v25, %v1715_v48  ;;  %v4060_v25 = vld [vmem:[#allocation2 + $0x78] sm:$0xff]  ;;  %v3509_v48 = vld [vmem:[#allocation3 + $0x7a] sm:$0xff]  ;;  %v3796_v47 = vpack.c.bf16 %v3508_v50, %v3507_v12 }
 0x1c5   : > { %v9834_v11 = vpop.f32.mrf.mxu1  ;;  %v4062_v18 = vld [vmem:[#allocation2 + $0x90] sm:$0xff]  ;;  %v4122_v3 = vpack.c.bf16 %v4061_v26, %v4060_v25  ;;  %v4066_v25 = vld [vmem:[#allocation2 + $0xc0] sm:$0xff]  ;;  %v4067_v26 = vld [vmem:[#allocation2 + $0xc8] sm:$0xff] }
 0x1c6   : > { %v9868_v23 = vpop.f32.mrf.mxu0  ;;  %v1716_v61 = vadd.f32 %v9834_v11, %v11704_v22  ;;  %v11845_v54 = vadd.f32 %v1994_v32, %v1713_v62  ;;  %v4063_v32 = vld [vmem:[#allocation2 + $0x98] sm:$0xff] }
 0x1c7   : > { %v1673_v45 = vpop.f32.mrf.mxu1 }
 0x1c8   : > { %v1997_v63 = vpop.f32.mrf.mxu0  ;;  %v1714_v39 = vadd.f32 %v1673_v45, %v11720_v49  ;;  %v11850_v24 = vadd.f32 %v9868_v23, %v1716_v61  ;;  %v11864_v49 = vld [vmem:[%s14092_s2 + $0x10] sm:$0x3] }
 0x1c9   : > { %v9873_v7 = vpop.f32.mrf.mxu1  ;;  %10076 = vmatmul.mubr.msk.bf16.vlgmr.msra.gmra.mxu1 %vm354_vm1, %v3794_v0  ;;  %v3797_v0 = vpack.c.bf16 %v3510_v28, %v3509_v48 }
 0x1ca   : > { %v9907_v22 = vpop.f32.mrf.mxu0  ;;  %10110 = vmatmul.mubr.msk.bf16.vlgmr.msra.gmra.mxu0 %vm354_vm1, %v4120_v14  ;;  %v11866_v31 = vadd.f32 %v1997_v63, %v1714_v39  ;;  %v2271_v51 = vadd.f32 %v9873_v7, %v11726_v60  ;;  %10142 = vmatpush3.bf16.msra.mxu1 %v4444_v33  ;;  %v4123_v14 = vpack.c.bf16 %v4063_v32, %v4062_v18  ;;  %v3512_v39 = vld [vmem:[#allocation3 + $0x9a] sm:$0xff]  ;;  %v3513_v7 = vld [vmem:[#allocation3 + $0xaa] sm:$0xff] }
 0x1cb   : > { %10079 = vmatprep.mubr.msk.bf16.mxu1 %vm354_vm1, %v3795_v5  ;;  %v2142_v13 = vpop.f32.mrf.mxu1  ;;  %10113 = vmatprep.mubr.msk.bf16.mxu0 %vm354_vm1, %v4121_v8  ;;  %v3511_v8 = vld [vmem:[#allocation3 + $0x92] sm:$0xff] }
 0x1cc   : > { %v2466_v15 = vpop.f32.mrf.mxu0  ;;  %10176 = vmatpush3.bf16.msra.mxu0 %v4768_v9  ;;  %v2269_v29 = vadd.f32 %v2142_v13, %v11733_v59  ;;  %v11872_v52 = vadd.f32 %v9907_v22, %v2271_v51  ;;  %10635 = vmatprep.subr.msk.bf16.mxu1 %vm756_vm0, %v11859_v2  ;;  %v4064_v9 = vld [vmem:[#allocation2 + $0xa8] sm:$0xff]  ;;  %v3798_v28 = vpack.c.bf16 %v3512_v39, %v3511_v8 }
 0x1cd   : > { %10636 = vmatprep.subr.msk.bf16.mxu0 %vm756_vm0, %v11864_v49  ;;  %v9874_v60 = vpop.f32.mrf.mxu1  ;;  %v3514_v51 = vld [vmem:[#allocation3 + $0xb2] sm:$0xff] }
 0x1ce   : > { %v9908_v62 = vpop.f32.mrf.mxu0  ;;  %v2272_v11 = vadd.f32 %v9874_v60, %v11736_v16  ;;  %v11879_v23 = vadd.f32 %v2466_v15, %v2269_v29  ;;  %v3799_v60 = vpack.c.bf16 %v3514_v51, %v3513_v7 }
 0x1cf   : > { %v2145_v61 = vpop.f32.mrf.mxu1 }
 0x1d0   : > { %v2469_v59 = vpop.f32.mrf.mxu0  ;;  %v2270_v5 = vadd.f32 %v2145_v61, %v11741_v1  ;;  %v11882_v45 = vadd.f32 %v9908_v62, %v2272_v11  ;;  %v4065_v1 = vld [vmem:[#allocation2 + $0xb0] sm:$0xff]  ;;  %v4125_v62 = vpack.c.bf16 %v4067_v26, %v4066_v25 }
 0x1d1   : > { %v9877_v63 = vpop.f32.mrf.mxu1  ;;  %10080 = vmatmul.mubr.msk.bf16.gmra.mxu1 %vm354_vm1, %v3796_v47  ;;  %v4124_v18 = vpack.c.bf16 %v4065_v1, %v4064_v9  ;;  %v3515_v61 = vld [vmem:[#allocation3 + $0xc2] sm:$0xff] }
 0x1d2   : > { %v9911_v33 = vpop.f32.mrf.mxu0  ;;  %10114 = vmatmul.mubr.msk.bf16.gmra.mxu0 %vm354_vm1, %v4122_v3  ;;  %v2275_v16 = vadd.f32 %v9877_v63, %v11746_v38  ;;  %v11887_v12 = vadd.f32 %v2469_v59, %v2270_v5  ;;  %10083 = vmatprep.mubr.msk.bf16.mxu1 %vm354_vm1, %v3797_v0  ;;  %v3516_v59 = vld [vmem:[#allocation3 + $0xca] sm:$0xff]  ;;  %v4070_v9 = vld [vmem:[#allocation2 + $0xf0] sm:$0xff] }
 0x1d3   : > { %10117 = vmatprep.mubr.msk.bf16.mxu0 %vm354_vm1, %v4123_v14  ;;  %v2158_v22 = vpop.f32.mrf.mxu1  ;;  %v4068_v63 = vld [vmem:[#allocation2 + $0xd8] sm:$0xff]  ;;  %v3800_v51 = vpack.c.bf16 %v3516_v59, %v3515_v61 }
 0x1d4   : > { %v2482_v50 = vpop.f32.mrf.mxu0  ;;  %v2273_v48 = vadd.f32 %v2158_v22, %v11749_v42  ;;  %v11892_v13 = vadd.f32 %v9911_v33, %v2275_v16  ;;  %v3517_v33 = vld [vmem:[#allocation3 + $0xda] sm:$0xff]  ;;  %v3518_v16 = vld [vmem:[#allocation3 + $0xe2] sm:$0xff] }
 0x1d5   : > { %v9878_v15 = vpop.f32.mrf.mxu1  ;;  %v4071_v1 = vld [vmem:[#allocation2 + $0xf8] sm:$0xff] }
 0x1d6   : > { %v9912_v38 = vpop.f32.mrf.mxu0  ;;  %v2276_v32 = vadd.f32 %v9878_v15, %v11752_v55  ;;  %v11895_v29 = vadd.f32 %v2482_v50, %v2273_v48  ;;  %v3801_v15 = vpack.c.bf16 %v3518_v16, %v3517_v33 }
 0x1d7   : > { %v2161_v47 = vpop.f32.mrf.mxu1 }
 0x1d8   : > { %v2485_v3 = vpop.f32.mrf.mxu0  ;;  %v2274_v11 = vadd.f32 %v2161_v47, %v11757_v21  ;;  %v11898_v0 = vadd.f32 %v9912_v38, %v2276_v32  ;;  %v4069_v21 = vld [vmem:[#allocation2 + $0xe0] sm:$0xff]  ;;  %v4127_v38 = vpack.c.bf16 %v4071_v1, %v4070_v9 }
 0x1d9   : > { %v9881_v14 = vpop.f32.mrf.mxu1  ;;  %10084 = vmatmul.mubr.msk.bf16.gmra.mxu1 %vm354_vm1, %v3798_v28  ;;  %v4126_v25 = vpack.c.bf16 %v4069_v21, %v4068_v63  ;;  %v3519_v47 = vld [vmem:[#allocation3 + $0xf2] sm:$0xff] }
 0x1da   : > { %v9915_v42 = vpop.f32.mrf.mxu0  ;;  %10118 = vmatmul.mubr.msk.bf16.gmra.mxu0 %vm354_vm1, %v4124_v18  ;;  %v2279_v55 = vadd.f32 %v9881_v14, %v11762_v43  ;;  %v11903_v5 = vadd.f32 %v2485_v3, %v2274_v11  ;;  %10087 = vmatprep.mubr.msk.bf16.mxu1 %vm354_vm1, %v3799_v60  ;;  %v3520_v3 = vld [vmem:[#allocation3 + $0xfa] sm:$0xff]  ;;  %v4074_v63 = vld [vmem:[#allocation2 + $0x120] sm:$0xff] }
 0x1db   : > { %10121 = vmatprep.mubr.msk.bf16.mxu0 %vm354_vm1, %v4125_v62  ;;  %v2174_v8 = vpop.f32.mrf.mxu1  ;;  %v4072_v14 = vld [vmem:[#allocation2 + $0x108] sm:$0xff]  ;;  %v3802_v16 = vpack.c.bf16 %v3520_v3, %v3519_v47 }
 0x1dc   : > { %v2498_v39 = vpop.f32.mrf.mxu0  ;;  %v2277_v7 = vadd.f32 %v2174_v8, %v11765_v37  ;;  %v11908_v22 = vadd.f32 %v9915_v42, %v2279_v55  ;;  %v3521_v42 = vld [vmem:[#allocation3 + $0x10a] sm:$0xff]  ;;  %v3522_v55 = vld [vmem:[#allocation3 + $0x112] sm:$0xff] }
 0x1dd   : > { %v9882_v50 = vpop.f32.mrf.mxu1  ;;  %v4075_v21 = vld [vmem:[#allocation2 + $0x128] sm:$0xff] }
 0x1de   : > { %v9916_v43 = vpop.f32.mrf.mxu0  ;;  %v2280_v26 = vadd.f32 %v9882_v50, %v11768_v4  ;;  %v11911_v48 = vadd.f32 %v2498_v39, %v2277_v7  ;;  %v3803_v50 = vpack.c.bf16 %v3522_v55, %v3521_v42 }
 0x1df   : > { %v2177_v28 = vpop.f32.mrf.mxu1 }
 0x1e0   : > { %v2501_v18 = vpop.f32.mrf.mxu0  ;;  %v2278_v32 = vadd.f32 %v2177_v28, %v11773_v41  ;;  %v11914_v60 = vadd.f32 %v9916_v43, %v2280_v26  ;;  %v4073_v41 = vld [vmem:[#allocation2 + $0x110] sm:$0xff]  ;;  %v4129_v43 = vpack.c.bf16 %v4075_v21, %v4074_v63 }
 0x1e1   : > { %v9885_v62 = vpop.f32.mrf.mxu1  ;;  %10088 = vmatmul.mubr.msk.bf16.gmra.mxu1 %vm354_vm1, %v3800_v51  ;;  %v4128_v9 = vpack.c.bf16 %v4073_v41, %v4072_v14  ;;  %v3523_v28 = vld [vmem:[#allocation3 + $0x122] sm:$0xff] }
 0x1e2   : > { %v9919_v37 = vpop.f32.mrf.mxu0  ;;  %10122 = vmatmul.mubr.msk.bf16.gmra.mxu0 %vm354_vm1, %v4126_v25  ;;  %v2283_v4 = vadd.f32 %v9885_v62, %v11778_v53  ;;  %v11919_v11 = vadd.f32 %v2501_v18, %v2278_v32  ;;  %10091 = vmatprep.mubr.msk.bf16.mxu1 %vm354_vm1, %v3801_v15  ;;  %v3524_v18 = vld [vmem:[#allocation3 + $0x12a] sm:$0xff]  ;;  %v4078_v14 = vld [vmem:[#allocation2 + $0x150] sm:$0xff] }
 0x1e3   : > { %10125 = vmatprep.mubr.msk.bf16.mxu0 %vm354_vm1, %v4127_v38  ;;  %v2190_v61 = vpop.f32.mrf.mxu1  ;;  %v4076_v62 = vld [vmem:[#allocation2 + $0x138] sm:$0xff]  ;;  %v3804_v55 = vpack.c.bf16 %v3524_v18, %v3523_v28 }
 0x1e4   : > { %v2514_v59 = vpop.f32.mrf.mxu0  ;;  %v2281_v33 = vadd.f32 %v2190_v61, %v11781_v20  ;;  %v11924_v8 = vadd.f32 %v9919_v37, %v2283_v4  ;;  %v3525_v37 = vld [vmem:[#allocation3 + $0x13a] sm:$0xff]  ;;  %v3526_v4 = vld [vmem:[#allocation3 + $0x142] sm:$0xff] }
 0x1e5   : > { %v9886_v39 = vpop.f32.mrf.mxu1  ;;  %v4079_v41 = vld [vmem:[#allocation2 + $0x158] sm:$0xff] }
 0x1e6   : > { %v9920_v53 = vpop.f32.mrf.mxu0  ;;  %v2284_v1 = vadd.f32 %v9886_v39, %v11784_v36  ;;  %v11927_v7 = vadd.f32 %v2514_v59, %v2281_v33  ;;  %v3805_v39 = vpack.c.bf16 %v3526_v4, %v3525_v37 }
 0x1e7   : > { %v2193_v51 = vpop.f32.mrf.mxu1 }
 0x1e8   : > { %v2517_v25 = vpop.f32.mrf.mxu0  ;;  %v2282_v26 = vadd.f32 %v2193_v51, %v11789_v40  ;;  %v11930_v15 = vadd.f32 %v9920_v53, %v2284_v1  ;;  %v4077_v40 = vld [vmem:[#allocation2 + $0x140] sm:$0xff]  ;;  %v4131_v53 = vpack.c.bf16 %v4079_v41, %v4078_v14 }
 0x1e9   : > { %v9889_v38 = vpop.f32.mrf.mxu1  ;;  %10092 = vmatmul.mubr.msk.bf16.gmra.mxu1 %vm354_vm1, %v3802_v16  ;;  %v4130_v63 = vpack.c.bf16 %v4077_v40, %v4076_v62  ;;  %v3527_v51 = vld [vmem:[#allocation3 + $0x152] sm:$0xff] }
 0x1ea   : > { %v9923_v20 = vpop.f32.mrf.mxu0  ;;  %10126 = vmatmul.mubr.msk.bf16.gmra.mxu0 %vm354_vm1, %v4128_v9  ;;  %v2287_v36 = vadd.f32 %v9889_v38, %v11794_v58  ;;  %v11935_v32 = vadd.f32 %v2517_v25, %v2282_v26  ;;  %10095 = vmatprep.mubr.msk.bf16.mxu1 %vm354_vm1, %v3803_v50  ;;  %v3528_v25 = vld [vmem:[#allocation3 + $0x15a] sm:$0xff]  ;;  %v4082_v62 = vld [vmem:[#allocation2 + $0x180] sm:$0xff] }
 0x1eb   : > { %10129 = vmatprep.mubr.msk.bf16.mxu0 %vm354_vm1, %v4129_v43  ;;  %v2206_v47 = vpop.f32.mrf.mxu1  ;;  %v4080_v38 = vld [vmem:[#allocation2 + $0x168] sm:$0xff]  ;;  %v3806_v4 = vpack.c.bf16 %v3528_v25, %v3527_v51 }
 0x1ec   : > { %v2530_v3 = vpop.f32.mrf.mxu0  ;;  %v2285_v42 = vadd.f32 %v2206_v47, %v11797_v46  ;;  %v11940_v61 = vadd.f32 %v9923_v20, %v2287_v36  ;;  %v3529_v20 = vld [vmem:[#allocation3 + $0x16a] sm:$0xff]  ;;  %v3530_v36 = vld [vmem:[#allocation3 + $0x172] sm:$0xff] }
 0x1ed   : > { %v9890_v59 = vpop.f32.mrf.mxu1  ;;  %v4083_v40 = vld [vmem:[#allocation2 + $0x188] sm:$0xff] }
 0x1ee   : > { %v9924_v58 = vpop.f32.mrf.mxu0  ;;  %v2288_v21 = vadd.f32 %v9890_v59, %v11800_v27  ;;  %v11943_v33 = vadd.f32 %v2530_v3, %v2285_v42  ;;  %v3807_v59 = vpack.c.bf16 %v3530_v36, %v3529_v20 }
 0x1ef   : > { %v2209_v16 = vpop.f32.mrf.mxu1 }
 0x1f0   : > { %v2533_v9 = vpop.f32.mrf.mxu0  ;;  %v2286_v1 = vadd.f32 %v2209_v16, %v11805_v34  ;;  %v11946_v50 = vadd.f32 %v9924_v58, %v2288_v21  ;;  %v4081_v34 = vld [vmem:[#allocation2 + $0x170] sm:$0xff]  ;;  %v4133_v58 = vpack.c.bf16 %v4083_v40, %v4082_v62 }
 0x1f1   : > { %v9893_v43 = vpop.f32.mrf.mxu1  ;;  %10096 = vmatmul.mubr.msk.bf16.gmra.mxu1 %vm354_vm1, %v3804_v55  ;;  %v4132_v14 = vpack.c.bf16 %v4081_v34, %v4080_v38  ;;  %v3531_v16 = vld [vmem:[#allocation3 + $0x182] sm:$0xff] }
 0x1f2   : > { %v9927_v46 = vpop.f32.mrf.mxu0  ;;  %10130 = vmatmul.mubr.msk.bf16.gmra.mxu0 %vm354_vm1, %v4130_v63  ;;  %v2291_v27 = vadd.f32 %v9893_v43, %v11810_v56  ;;  %v11951_v26 = vadd.f32 %v2533_v9, %v2286_v1  ;;  %10099 = vmatprep.mubr.msk.bf16.mxu1 %vm354_vm1, %v3805_v39  ;;  %v3532_v9 = vld [vmem:[#allocation3 + $0x18a] sm:$0xff]  ;;  %v4639_v38 = vld [vmem:[#allocation2 + $0x31] sm:$0xff] }
 0x1f3   : > { %10133 = vmatprep.mubr.msk.bf16.mxu0 %vm354_vm1, %v4131_v53  ;;  %v2222_v28 = vpop.f32.mrf.mxu1  ;;  %v4084_v43 = vld [vmem:[#allocation2 + $0x198] sm:$0xff]  ;;  %v3808_v36 = vpack.c.bf16 %v3532_v9, %v3531_v16  ;;  %v4091_v9 = vld [vmem:[#allocation3 + $0x60] sm:$0xff] }
 0x1f4   : > { %v2546_v18 = vpop.f32.mrf.mxu0  ;;  %v2289_v37 = vadd.f32 %v2222_v28, %v11813_v10  ;;  %v11956_v47 = vadd.f32 %v9927_v46, %v2291_v27  ;;  %v4087_v46 = vld [vmem:[#allocation3 + $0x30] sm:$0xff]  ;;  %v4088_v27 = vld [vmem:[#allocation3 + $0x38] sm:$0xff] }
 0x1f5   : > { %v9894_v3 = vpop.f32.mrf.mxu1  ;;  %v4640_v34 = vld [vmem:[#allocation2 + $0x39] sm:$0xff] }
 0x1f6   : > { %v9928_v56 = vpop.f32.mrf.mxu0  ;;  %v2292_v41 = vadd.f32 %v9894_v3, %v11816_v30  ;;  %v11959_v42 = vadd.f32 %v2546_v18, %v2289_v37  ;;  %v4379_v3 = vpack.c.bf16 %v4088_v27, %v4087_v46  ;;  %v4643_v46 = vld [vmem:[#allocation2 + $0x61] sm:$0xff] }
 0x1f7   : > { %v2225_v55 = vpop.f32.mrf.mxu1 }
 0x1f8   : > { %v2549_v63 = vpop.f32.mrf.mxu0  ;;  %v2290_v21 = vadd.f32 %v2225_v55, %v11821_v57  ;;  %v11962_v39 = vadd.f32 %v9928_v56, %v2292_v41  ;;  %v4085_v57 = vld [vmem:[#allocation2 + $0x1a0] sm:$0xff]  ;;  %v4703_v56 = vpack.c.bf16 %v4640_v34, %v4639_v38  ;;  %v4089_v55 = vld [vmem:[#allocation3 + $0x48] sm:$0xff] }
 0x1f9   : > { %v9897_v53 = vpop.f32.mrf.mxu1  ;;  %10100 = vmatmul.mubr.msk.bf16.gmra.mxu1 %vm354_vm1, %v3806_v4  ;;  %v4134_v62 = vpack.c.bf16 %v4085_v57, %v4084_v43 }
 0x1fa   : > { %v9931_v10 = vpop.f32.mrf.mxu0  ;;  %10134 = vmatmul.mubr.msk.bf16.gmra.mxu0 %vm354_vm1, %v4132_v14  ;;  %v2295_v30 = vadd.f32 %v9897_v53, %v11826_v35  ;;  %v11967_v1 = vadd.f32 %v2549_v63, %v2290_v21  ;;  %10103 = vmatprep.mubr.msk.bf16.mxu1 %vm354_vm1, %v3807_v59  ;;  %v4090_v21 = vld [vmem:[#allocation3 + $0x50] sm:$0xff]  ;;  %v4641_v53 = vld [vmem:[#allocation2 + $0x49] sm:$0xff] }
 0x1fb   : > { %10137 = vmatprep.mubr.msk.bf16.mxu0 %vm354_vm1, %v4133_v58  ;;  %v2238_v51 = vpop.f32.mrf.mxu1  ;;  %v4380_v27 = vpack.c.bf16 %v4090_v21, %v4089_v55  ;;  %v4095_v55 = vld [vmem:[#allocation3 + $0x90] sm:$0xff] }
 0x1fc   : > { %v2562_v25 = vpop.f32.mrf.mxu0  ;;  %v2293_v20 = vadd.f32 %v2238_v51, %v11829_v17  ;;  %v11972_v28 = vadd.f32 %v9931_v10, %v2295_v30  ;;  %v4092_v30 = vld [vmem:[#allocation3 + $0x68] sm:$0xff]  ;;  %v4644_v51 = vld [vmem:[#allocation2 + $0x69] sm:$0xff] }
 0x1fd   : > { %v9898_v18 = vpop.f32.mrf.mxu1 }
 0x1fe   : > { %v9932_v35 = vpop.f32.mrf.mxu0  ;;  %v2296_v40 = vadd.f32 %v9898_v18, %v11832_v19  ;;  %v11975_v37 = vadd.f32 %v2562_v25, %v2293_v20  ;;  %v4381_v18 = vpack.c.bf16 %v4092_v30, %v4091_v9 }
 0x1ff   : > { %v2241_v4 = vpop.f32.mrf.mxu1 }
 0x200   : > { %v2565_v14 = vpop.f32.mrf.mxu0  ;;  %v2294_v41 = vadd.f32 %v2241_v4, %v11837_v6  ;;  %v11978_v59 = vadd.f32 %v9932_v35, %v2296_v40  ;;  %v4642_v6 = vld [vmem:[#allocation2 + $0x51] sm:$0xff]  ;;  %v4705_v40 = vpack.c.bf16 %v4644_v51, %v4643_v46 }
 0x201   : > { %v9901_v58 = vpop.f32.mrf.mxu1  ;;  %10104 = vmatmul.mubr.msk.bf16.gmra.mxu1 %vm354_vm1, %v3808_v36  ;;  %v4704_v38 = vpack.c.bf16 %v4642_v6, %v4641_v53  ;;  %v4096_v53 = vld [vmem:[#allocation3 + $0x98] sm:$0xff]  ;;  %v4647_v6 = vld [vmem:[#allocation2 + $0x91] sm:$0xff] }
 0x202   : > { %v9935_v17 = vpop.f32.mrf.mxu0  ;;  %10138 = vmatmul.mubr.msk.bf16.gmra.mxu0 %vm354_vm1, %v4134_v62  ;;  %v2299_v63 = vadd.f32 %v9901_v58, %v11842_v44  ;;  %v11983_v19 = vadd.f32 %v2565_v14, %v2294_v41  ;;  %10143 = vmatprep.mubr.msk.bf16.mxu1 %vm354_vm1, %v4379_v3  ;;  %v5028_v62 = vsel %vm756_vm0, %v11859_v2, 0  ;;  %v4093_v14 = vld [vmem:[#allocation3 + $0x78] sm:$0xff]  ;;  %v4094_v41 = vld [vmem:[#allocation3 + $0x80] sm:$0xff] }
 0x203   : > { %10177 = vmatprep.mubr.msk.bf16.mxu0 %vm354_vm1, %v4703_v56  ;;  %v2254_v10 = vpop.f32.mrf.mxu1  ;;  %v5352_v56 = vsel %vm756_vm0, %v11864_v49, 0  ;;  %v12005_v2 = vld [vmem:[%s14093_s3 + $0x10] sm:$0x3]  ;;  %v4645_v49 = vld [vmem:[#allocation2 + $0x79] sm:$0xff] }
 0x204   : > { %v2578_v16 = vpop.f32.mrf.mxu0  ;;  %v2297_v43 = vadd.f32 %v2254_v10, %v11845_v54  ;;  %v11988_v57 = vadd.f32 %v9935_v17, %v2299_v63  ;;  %v4646_v17 = vld [vmem:[#allocation2 + $0x81] sm:$0xff]  ;;  %v4648_v10 = vld [vmem:[#allocation2 + $0x99] sm:$0xff] }
 0x205   : > { %v9902_v44 = vpop.f32.mrf.mxu1  ;;  %v4706_v46 = vpack.c.bf16 %v4646_v17, %v4645_v49  ;;  %v4652_v49 = vld [vmem:[#allocation2 + $0xc9] sm:$0xff] }
 0x206   : > { %v9936_v25 = vpop.f32.mrf.mxu0  ;;  %v2300_v34 = vadd.f32 %v9902_v44, %v11850_v24  ;;  %v11991_v20 = vadd.f32 %v2578_v16, %v2297_v43  ;;  %v4382_v43 = vpack.c.bf16 %v4094_v41, %v4093_v14  ;;  %v4100_v41 = vld [vmem:[#allocation3 + $0xc8] sm:$0xff] }
 0x207   : > { %v2257_v35 = vpop.f32.mrf.mxu1 }
 0x208   : > { %v2581_v36 = vpop.f32.mrf.mxu0  ;;  %v2298_v54 = vadd.f32 %v2257_v35, %v11866_v31  ;;  %v11996_v3 = vadd.f32 %v9936_v25, %v2300_v34  ;;  %v4383_v25 = vpack.c.bf16 %v4096_v53, %v4095_v55 }
 0x209   : > { %v9941_v4 = vpop.f32.mrf.mxu1  ;;  %10144 = vmatmul.mubr.msk.bf16.vlgmr.msra.gmra.mxu1 %vm354_vm1, %v4380_v27  ;;  %v4707_v27 = vpack.c.bf16 %v4648_v10, %v4647_v6 }
 0x20a   : > { %v9975_v24 = vpop.f32.mrf.mxu0  ;;  %10178 = vmatmul.mubr.msk.bf16.vlgmr.msra.gmra.mxu0 %vm354_vm1, %v4704_v38  ;;  %v12007_v58 = vadd.f32 %v2581_v36, %v2298_v54  ;;  %v2855_v31 = vadd.f32 %v9941_v4, %v11872_v52  ;;  %10210 = vmatpush3.bf16.msra.mxu1 %v5028_v62  ;;  %v4097_v62 = vld [vmem:[#allocation3 + $0xa8] sm:$0xff]  ;;  %v4099_v4 = vld [vmem:[#allocation3 + $0xc0] sm:$0xff] }
 0x20b   : > { %10147 = vmatprep.mubr.msk.bf16.mxu1 %vm354_vm1, %v4381_v18  ;;  %v2726_v63 = vpop.f32.mrf.mxu1  ;;  %10181 = vmatprep.mubr.msk.bf16.mxu0 %vm354_vm1, %v4705_v40  ;;  %v4098_v40 = vld [vmem:[#allocation3 + $0xb0] sm:$0xff] }
 0x20c   : > { %v3050_v21 = vpop.f32.mrf.mxu0  ;;  %10244 = vmatpush3.bf16.msra.mxu0 %v5352_v56  ;;  %v2853_v16 = vadd.f32 %v2726_v63, %v11879_v23  ;;  %v12013_v9 = vadd.f32 %v9975_v24, %v2855_v31  ;;  %10637 = vmatprep.subr.msk.bf16.mxu1 %vm756_vm0, %v12005_v2  ;;  %v4649_v56 = vld [vmem:[#allocation2 + $0xa9] sm:$0xff]  ;;  %v4651_v31 = vld [vmem:[#allocation2 + $0xc1] sm:$0xff] }
 0x20d   : > { %v9942_v52 = vpop.f32.mrf.mxu1 }
 0x20e   : > { %v9976_v30 = vpop.f32.mrf.mxu0  ;;  %v2856_v51 = vadd.f32 %v9942_v52, %v11882_v45  ;;  %v12018_v44 = vadd.f32 %v3050_v21, %v2853_v16  ;;  %v4384_v21 = vpack.c.bf16 %v4098_v40, %v4097_v62  ;;  %v4385_v16 = vpack.c.bf16 %v4100_v41, %v4099_v4  ;;  %v4104_v40 = vld [vmem:[#allocation3 + $0xf8] sm:$0xff] }
 0x20f   : > { %v2729_v38 = vpop.f32.mrf.mxu1  ;;  %v4709_v52 = vpack.c.bf16 %v4652_v49, %v4651_v31 }
 0x210   : > { %v3053_v34 = vpop.f32.mrf.mxu0  ;;  %v2854_v18 = vadd.f32 %v2729_v38, %v11887_v12  ;;  %v12021_v23 = vadd.f32 %v9976_v30, %v2856_v51  ;;  %v4650_v12 = vld [vmem:[#allocation2 + $0xb1] sm:$0xff] }
 0x211   : > { %v9945_v35 = vpop.f32.mrf.mxu1  ;;  %10148 = vmatmul.mubr.msk.bf16.gmra.mxu1 %vm354_vm1, %v4382_v43  ;;  %v4708_v53 = vpack.c.bf16 %v4650_v12, %v4649_v56  ;;  %v4102_v38 = vld [vmem:[#allocation3 + $0xe0] sm:$0xff]  ;;  %v4656_v56 = vld [vmem:[#allocation2 + $0xf9] sm:$0xff] }
 0x212   : > { %v9979_v36 = vpop.f32.mrf.mxu0  ;;  %10182 = vmatmul.mubr.msk.bf16.gmra.mxu0 %vm354_vm1, %v4706_v46  ;;  %v2859_v45 = vadd.f32 %v9945_v35, %v11892_v13  ;;  %v12026_v54 = vadd.f32 %v3053_v34, %v2854_v18  ;;  %10151 = vmatprep.mubr.msk.bf16.mxu1 %vm354_vm1, %v4383_v25  ;;  %v4653_v18 = vld [vmem:[#allocation2 + $0xd9] sm:$0xff] }
 0x213   : > { %10185 = vmatprep.mubr.msk.bf16.mxu0 %vm354_vm1, %v4707_v27  ;;  %v2742_v24 = vpop.f32.mrf.mxu1  ;;  %v4101_v27 = vld [vmem:[#allocation3 + $0xd8] sm:$0xff]  ;;  %v4103_v35 = vld [vmem:[#allocation3 + $0xf0] sm:$0xff] }
 0x214   : > { %v3066_v14 = vpop.f32.mrf.mxu0  ;;  %v2857_v17 = vadd.f32 %v2742_v24, %v11895_v29  ;;  %v12031_v55 = vadd.f32 %v9979_v36, %v2859_v45  ;;  %v4655_v45 = vld [vmem:[#allocation2 + $0xf1] sm:$0xff] }
 0x215   : > { %v9946_v63 = vpop.f32.mrf.mxu1 }
 0x216   : > { %v9980_v13 = vpop.f32.mrf.mxu0  ;;  %v2860_v6 = vadd.f32 %v9946_v63, %v11898_v0  ;;  %v12034_v10 = vadd.f32 %v3066_v14, %v2857_v17  ;;  %v4386_v14 = vpack.c.bf16 %v4102_v38, %v4101_v27  ;;  %v4387_v17 = vpack.c.bf16 %v4104_v40, %v4103_v35  ;;  %v4108_v38 = vld [vmem:[#allocation3 + $0x128] sm:$0xff] }
 0x217   : > { %v2745_v30 = vpop.f32.mrf.mxu1  ;;  %v4711_v63 = vpack.c.bf16 %v4656_v56, %v4655_v45 }
 0x218   : > { %v3069_v43 = vpop.f32.mrf.mxu0  ;;  %v2858_v46 = vadd.f32 %v2745_v30, %v11903_v5  ;;  %v12037_v51 = vadd.f32 %v9980_v13, %v2860_v6  ;;  %v4654_v5 = vld [vmem:[#allocation2 + $0xe1] sm:$0xff] }
 0x219   : > { %v9949_v25 = vpop.f32.mrf.mxu1  ;;  %10152 = vmatmul.mubr.msk.bf16.gmra.mxu1 %vm354_vm1, %v4384_v21  ;;  %v4710_v41 = vpack.c.bf16 %v4654_v5, %v4653_v18  ;;  %v4106_v30 = vld [vmem:[#allocation3 + $0x110] sm:$0xff]  ;;  %v4660_v18 = vld [vmem:[#allocation2 + $0x129] sm:$0xff] }
 0x21a   : > { %v9983_v29 = vpop.f32.mrf.mxu0  ;;  %10186 = vmatmul.mubr.msk.bf16.gmra.mxu0 %vm354_vm1, %v4708_v53  ;;  %v2863_v0 = vadd.f32 %v9949_v25, %v11908_v22  ;;  %v12042_v34 = vadd.f32 %v3069_v43, %v2858_v46  ;;  %10155 = vmatprep.mubr.msk.bf16.mxu1 %vm354_vm1, %v4385_v16  ;;  %v4657_v46 = vld [vmem:[#allocation2 + $0x109] sm:$0xff] }
 0x21b   : > { %10189 = vmatprep.mubr.msk.bf16.mxu0 %vm354_vm1, %v4709_v52  ;;  %v2758_v36 = vpop.f32.mrf.mxu1  ;;  %v4105_v52 = vld [vmem:[#allocation3 + $0x108] sm:$0xff]  ;;  %v4107_v25 = vld [vmem:[#allocation3 + $0x120] sm:$0xff] }
 0x21c   : > { %v3082_v62 = vpop.f32.mrf.mxu0  ;;  %v2861_v12 = vadd.f32 %v2758_v36, %v11911_v48  ;;  %v12047_v4 = vadd.f32 %v9983_v29, %v2863_v0  ;;  %v4659_v0 = vld [vmem:[#allocation2 + $0x121] sm:$0xff] }
 0x21d   : > { %v9950_v24 = vpop.f32.mrf.mxu1 }
 0x21e   : > { %v9984_v22 = vpop.f32.mrf.mxu0  ;;  %v2864_v31 = vadd.f32 %v9950_v24, %v11914_v60  ;;  %v12050_v49 = vadd.f32 %v3082_v62, %v2861_v12  ;;  %v4388_v62 = vpack.c.bf16 %v4106_v30, %v4105_v52  ;;  %v4389_v12 = vpack.c.bf16 %v4108_v38, %v4107_v25  ;;  %v4112_v30 = vld [vmem:[#allocation3 + $0x158] sm:$0xff] }
 0x21f   : > { %v2761_v13 = vpop.f32.mrf.mxu1  ;;  %v4713_v24 = vpack.c.bf16 %v4660_v18, %v4659_v0 }
 0x220   : > { %v3085_v21 = vpop.f32.mrf.mxu0  ;;  %v2862_v53 = vadd.f32 %v2761_v13, %v11919_v11  ;;  %v12053_v6 = vadd.f32 %v9984_v22, %v2864_v31  ;;  %v4658_v11 = vld [vmem:[#allocation2 + $0x111] sm:$0xff] }
 0x221   : > { %v9953_v16 = vpop.f32.mrf.mxu1  ;;  %10156 = vmatmul.mubr.msk.bf16.gmra.mxu1 %vm354_vm1, %v4386_v14  ;;  %v4712_v40 = vpack.c.bf16 %v4658_v11, %v4657_v46  ;;  %v4110_v13 = vld [vmem:[#allocation3 + $0x140] sm:$0xff]  ;;  %v4664_v46 = vld [vmem:[#allocation2 + $0x159] sm:$0xff] }
 0x222   : > { %v9987_v48 = vpop.f32.mrf.mxu0  ;;  %10190 = vmatmul.mubr.msk.bf16.gmra.mxu0 %vm354_vm1, %v4710_v41  ;;  %v2867_v60 = vadd.f32 %v9953_v16, %v11924_v8  ;;  %v12058_v43 = vadd.f32 %v3085_v21, %v2862_v53  ;;  %10159 = vmatprep.mubr.msk.bf16.mxu1 %vm354_vm1, %v4387_v17  ;;  %v4661_v53 = vld [vmem:[#allocation2 + $0x139] sm:$0xff] }
 0x223   : > { %10193 = vmatprep.mubr.msk.bf16.mxu0 %vm354_vm1, %v4711_v63  ;;  %v2774_v29 = vpop.f32.mrf.mxu1  ;;  %v4109_v63 = vld [vmem:[#allocation3 + $0x138] sm:$0xff]  ;;  %v4111_v16 = vld [vmem:[#allocation3 + $0x150] sm:$0xff] }
 0x224   : > { %v3098_v27 = vpop.f32.mrf.mxu0  ;;  %v2865_v5 = vadd.f32 %v2774_v29, %v11927_v7  ;;  %v12063_v35 = vadd.f32 %v9987_v48, %v2867_v60  ;;  %v4663_v60 = vld [vmem:[#allocation2 + $0x151] sm:$0xff] }
 0x225   : > { %v9954_v36 = vpop.f32.mrf.mxu1 }
 0x226   : > { %v9988_v8 = vpop.f32.mrf.mxu0  ;;  %v2868_v45 = vadd.f32 %v9954_v36, %v11930_v15  ;;  %v12066_v56 = vadd.f32 %v3098_v27, %v2865_v5  ;;  %v4390_v27 = vpack.c.bf16 %v4110_v13, %v4109_v63  ;;  %v4391_v5 = vpack.c.bf16 %v4112_v30, %v4111_v16  ;;  %v4116_v13 = vld [vmem:[#allocation3 + $0x188] sm:$0xff] }
 0x227   : > { %v2777_v22 = vpop.f32.mrf.mxu1  ;;  %v4715_v36 = vpack.c.bf16 %v4664_v46, %v4663_v60 }
 0x228   : > { %v3101_v14 = vpop.f32.mrf.mxu0  ;;  %v2866_v41 = vadd.f32 %v2777_v22, %v11935_v32  ;;  %v12069_v31 = vadd.f32 %v9988_v8, %v2868_v45  ;;  %v4662_v32 = vld [vmem:[#allocation2 + $0x141] sm:$0xff] }
 0x229   : > { %v9957_v17 = vpop.f32.mrf.mxu1  ;;  %10160 = vmatmul.mubr.msk.bf16.gmra.mxu1 %vm354_vm1, %v4388_v62  ;;  %v4714_v38 = vpack.c.bf16 %v4662_v32, %v4661_v53  ;;  %v4114_v22 = vld [vmem:[#allocation3 + $0x170] sm:$0xff]  ;;  %v4668_v53 = vld [vmem:[#allocation2 + $0x189] sm:$0xff] }
 0x22a   : > { %v9991_v7 = vpop.f32.mrf.mxu0  ;;  %10194 = vmatmul.mubr.msk.bf16.gmra.mxu0 %vm354_vm1, %v4712_v40  ;;  %v2871_v15 = vadd.f32 %v9957_v17, %v11940_v61  ;;  %v12074_v21 = vadd.f32 %v3101_v14, %v2866_v41  ;;  %10163 = vmatprep.mubr.msk.bf16.mxu1 %vm354_vm1, %v4389_v12  ;;  %v4665_v41 = vld [vmem:[#allocation2 + $0x169] sm:$0xff] }
 0x22b   : > { %10197 = vmatprep.mubr.msk.bf16.mxu0 %vm354_vm1, %v4713_v24  ;;  %v2790_v48 = vpop.f32.mrf.mxu1  ;;  %v4113_v24 = vld [vmem:[#allocation3 + $0x168] sm:$0xff]  ;;  %v4115_v17 = vld [vmem:[#allocation3 + $0x180] sm:$0xff] }
 0x22c   : > { %v3114_v52 = vpop.f32.mrf.mxu0  ;;  %v2869_v11 = vadd.f32 %v2790_v48, %v11943_v33  ;;  %v12079_v25 = vadd.f32 %v9991_v7, %v2871_v15  ;;  %v4667_v15 = vld [vmem:[#allocation2 + $0x181] sm:$0xff] }
 0x22d   : > { %v9958_v29 = vpop.f32.mrf.mxu1 }
 0x22e   : > { %v9992_v61 = vpop.f32.mrf.mxu0  ;;  %v2872_v0 = vadd.f32 %v9958_v29, %v11946_v50  ;;  %v12082_v18 = vadd.f32 %v3114_v52, %v2869_v11  ;;  %v4392_v52 = vpack.c.bf16 %v4114_v22, %v4113_v24  ;;  %v4393_v11 = vpack.c.bf16 %v4116_v13, %v4115_v17  ;;  %v4672_v22 = vld [vmem:[#allocation3 + $0x39] sm:$0xff] }
 0x22f   : > { %v2793_v8 = vpop.f32.mrf.mxu1  ;;  %v4717_v29 = vpack.c.bf16 %v4668_v53, %v4667_v15 }
 0x230   : > { %v3117_v62 = vpop.f32.mrf.mxu0  ;;  %v2870_v40 = vadd.f32 %v2793_v8, %v11951_v26  ;;  %v12085_v45 = vadd.f32 %v9992_v61, %v2872_v0  ;;  %v4666_v26 = vld [vmem:[#allocation2 + $0x171] sm:$0xff] }
 0x231   : > { %v9961_v12 = vpop.f32.mrf.mxu1  ;;  %10164 = vmatmul.mubr.msk.bf16.gmra.mxu1 %vm354_vm1, %v4390_v27  ;;  %v4716_v30 = vpack.c.bf16 %v4666_v26, %v4665_v41  ;;  %v4118_v8 = vld [vmem:[#allocation3 + $0x1a0] sm:$0xff]  ;;  %v5224_v41 = vld [vmem:[#allocation2 + $0x3a] sm:$0xff] }
 0x232   : > { %v9995_v33 = vpop.f32.mrf.mxu0  ;;  %10198 = vmatmul.mubr.msk.bf16.gmra.mxu0 %vm354_vm1, %v4714_v38  ;;  %v2875_v50 = vadd.f32 %v9961_v12, %v11956_v47  ;;  %v12090_v14 = vadd.f32 %v3117_v62, %v2870_v40  ;;  %10167 = vmatprep.mubr.msk.bf16.mxu1 %vm354_vm1, %v4391_v5  ;;  %v4669_v40 = vld [vmem:[#allocation2 + $0x199] sm:$0xff]  ;;  %v4671_v12 = vld [vmem:[#allocation3 + $0x31] sm:$0xff] }
 0x233   : > { %10201 = vmatprep.mubr.msk.bf16.mxu0 %vm354_vm1, %v4715_v36  ;;  %v2806_v7 = vpop.f32.mrf.mxu1  ;;  %v4117_v36 = vld [vmem:[#allocation3 + $0x198] sm:$0xff] }
 0x234   : > { %v3130_v63 = vpop.f32.mrf.mxu0  ;;  %v2873_v32 = vadd.f32 %v2806_v7, %v11959_v42  ;;  %v12095_v16 = vadd.f32 %v9995_v33, %v2875_v50  ;;  %v5223_v50 = vld [vmem:[#allocation2 + $0x32] sm:$0xff] }
 0x235   : > { %v9962_v48 = vpop.f32.mrf.mxu1 }
 0x236   : > { %v9996_v47 = vpop.f32.mrf.mxu0  ;;  %v2876_v60 = vadd.f32 %v9962_v48, %v11962_v39  ;;  %v12098_v46 = vadd.f32 %v3130_v63, %v2873_v32  ;;  %v4394_v63 = vpack.c.bf16 %v4118_v8, %v4117_v36  ;;  %v4963_v32 = vpack.c.bf16 %v4672_v22, %v4671_v12  ;;  %v4675_v36 = vld [vmem:[#allocation3 + $0x61] sm:$0xff]  ;;  %v4676_v8 = vld [vmem:[#allocation3 + $0x69] sm:$0xff] }
 0x237   : > { %v2809_v61 = vpop.f32.mrf.mxu1  ;;  %v5287_v48 = vpack.c.bf16 %v5224_v41, %v5223_v50  ;;  %v5228_v12 = vld [vmem:[#allocation2 + $0x6a] sm:$0xff] }
 0x238   : > { %v3133_v27 = vpop.f32.mrf.mxu0  ;;  %v2874_v38 = vadd.f32 %v2809_v61, %v11967_v1  ;;  %v12101_v0 = vadd.f32 %v9996_v47, %v2876_v60  ;;  %v4670_v1 = vld [vmem:[#allocation2 + $0x1a1] sm:$0xff] }
 0x239   : > { %v9965_v5 = vpop.f32.mrf.mxu1  ;;  %10168 = vmatmul.mubr.msk.bf16.gmra.mxu1 %vm354_vm1, %v4392_v52  ;;  %v4718_v13 = vpack.c.bf16 %v4670_v1, %v4669_v40  ;;  %v5227_v1 = vld [vmem:[#allocation2 + $0x62] sm:$0xff] }
 0x23a   : > { %v9999_v42 = vpop.f32.mrf.mxu0  ;;  %10202 = vmatmul.mubr.msk.bf16.gmra.mxu0 %vm354_vm1, %v4716_v30  ;;  %v2879_v39 = vadd.f32 %v9965_v5, %v11972_v28  ;;  %v12106_v62 = vadd.f32 %v3133_v27, %v2874_v38  ;;  %10171 = vmatprep.mubr.msk.bf16.mxu1 %vm354_vm1, %v4393_v11  ;;  %v4674_v27 = vld [vmem:[#allocation3 + $0x51] sm:$0xff]  ;;  %v5225_v38 = vld [vmem:[#allocation2 + $0x4a] sm:$0xff] }
 0x23b   : > { %10205 = vmatprep.mubr.msk.bf16.mxu0 %vm354_vm1, %v4717_v29  ;;  %v2822_v33 = vpop.f32.mrf.mxu1  ;;  %v4673_v29 = vld [vmem:[#allocation3 + $0x49] sm:$0xff] }
 0x23c   : > { %v3146_v24 = vpop.f32.mrf.mxu0  ;;  %v2877_v26 = vadd.f32 %v2822_v33, %v11975_v37  ;;  %v12111_v17 = vadd.f32 %v9999_v42, %v2879_v39 }
 0x23d   : > { %v9966_v7 = vpop.f32.mrf.mxu1 }
 0x23e   : > { %v10000_v28 = vpop.f32.mrf.mxu0  ;;  %v2880_v15 = vadd.f32 %v9966_v7, %v11978_v59  ;;  %v12114_v53 = vadd.f32 %v3146_v24, %v2877_v26  ;;  %v4964_v24 = vpack.c.bf16 %v4674_v27, %v4673_v29  ;;  %v4965_v26 = vpack.c.bf16 %v4676_v8, %v4675_v36  ;;  %v5231_v27 = vld [vmem:[#allocation2 + $0x92] sm:$0xff] }
 0x23f   : > { %v2825_v47 = vpop.f32.mrf.mxu1 }
 0x240   : > { %v3149_v52 = vpop.f32.mrf.mxu0  ;;  %v2878_v30 = vadd.f32 %v2825_v47, %v11983_v19  ;;  %v12117_v60 = vadd.f32 %v10000_v28, %v2880_v15  ;;  %v5226_v19 = vld [vmem:[#allocation2 + $0x52] sm:$0xff] }
 0x241   : > { %v9969_v11 = vpop.f32.mrf.mxu1  ;;  %10172 = vmatmul.mubr.msk.bf16.gmra.mxu1 %vm354_vm1, %v4394_v63  ;;  %v5288_v22 = vpack.c.bf16 %v5226_v19, %v5225_v38  ;;  %v5612_v63 = vsel %vm756_vm0, %v12005_v2, 0  ;;  %v4678_v47 = vld [vmem:[#allocation3 + $0x81] sm:$0xff]  ;;  %v5229_v2 = vld [vmem:[#allocation2 + $0x7a] sm:$0xff] }
 0x242   : > { %v10003_v37 = vpop.f32.mrf.mxu0  ;;  %10206 = vmatmul.mubr.msk.bf16.gmra.mxu0 %vm354_vm1, %v4718_v13  ;;  %v2883_v61 = vadd.f32 %v9969_v11, %v11988_v57  ;;  %v12122_v59 = vadd.f32 %v3149_v52, %v2878_v30  ;;  %10211 = vmatprep.mubr.msk.bf16.mxu1 %vm354_vm1, %v4963_v32  ;;  %v5289_v13 = vpack.c.bf16 %v5228_v12, %v5227_v1  ;;  %v5230_v11 = vld [vmem:[#allocation2 + $0x82] sm:$0xff]  ;;  %v5232_v38 = vld [vmem:[#allocation2 + $0x9a] sm:$0xff] }
 0x243   : > { %10245 = vmatprep.mubr.msk.bf16.mxu0 %vm354_vm1, %v5287_v48  ;;  %v2838_v5 = vpop.f32.mrf.mxu1  ;;  %v5290_v8 = vpack.c.bf16 %v5230_v11, %v5229_v2 }
 0x244   : > { %v3162_v42 = vpop.f32.mrf.mxu0  ;;  %v2881_v39 = vadd.f32 %v2838_v5, %v11991_v20  ;;  %v12127_v40 = vadd.f32 %v10003_v37, %v2883_v61  ;;  %v4680_v61 = vld [vmem:[#allocation3 + $0x99] sm:$0xff] }
 0x245   : > { %v9970_v57 = vpop.f32.mrf.mxu1 }
 0x246   : > { %v10004_v33 = vpop.f32.mrf.mxu0  ;;  %v2884_v50 = vadd.f32 %v9970_v57, %v11996_v3  ;;  %v12130_v41 = vadd.f32 %v3162_v42, %v2881_v39  ;;  %v4677_v3 = vld [vmem:[#allocation3 + $0x79] sm:$0xff]  ;;  %v5291_v57 = vpack.c.bf16 %v5232_v38, %v5231_v27 }
 0x247   : > { %v2841_v7 = vpop.f32.mrf.mxu1 }
 0x248   : > { %v3165_v28 = vpop.f32.mrf.mxu0  ;;  %v2882_v20 = vadd.f32 %v2841_v7, %v12007_v58  ;;  %v12135_v15 = vadd.f32 %v10004_v33, %v2884_v50  ;;  %v4679_v58 = vld [vmem:[#allocation3 + $0x91] sm:$0xff]  ;;  %v4681_v7 = vld [vmem:[#allocation3 + $0xa9] sm:$0xff] }
 0x249   : > { %v10009_v32 = vpop.f32.mrf.mxu1  ;;  %10212 = vmatmul.mubr.msk.bf16.vlgmr.msra.gmra.mxu1 %vm354_vm1, %v4964_v24  ;;  %v4967_v12 = vpack.c.bf16 %v4680_v61, %v4679_v58 }
 0x24a   : > { %v10043_v48 = vpop.f32.mrf.mxu0  ;;  %10246 = vmatmul.mubr.msk.bf16.vlgmr.msra.gmra.mxu0 %vm354_vm1, %v5288_v22  ;;  %v12139_v52 = vadd.f32 %v3165_v28, %v2882_v20  ;;  %v3439_v30 = vadd.f32 %v10009_v32, %v12013_v9  ;;  %10278 = vmatpush3.bf16.msra.mxu1 %v5612_v63  ;;  %v4966_v9 = vpack.c.bf16 %v4678_v47, %v4677_v3  ;;  %v4682_v28 = vld [vmem:[#allocation3 + $0xb1] sm:$0xff]  ;;  %v4683_v20 = vld [vmem:[#allocation3 + $0xc1] sm:$0xff]  ;;  %v4684_v3 = vld [vmem:[#allocation3 + $0xc9] sm:$0xff] }
 0x24b   : > { %10215 = vmatprep.mubr.msk.bf16.mxu1 %vm354_vm1, %v4965_v26  ;;  %v3310_v37 = vpop.f32.mrf.mxu1  ;;  %10249 = vmatprep.mubr.msk.bf16.mxu0 %vm354_vm1, %v5289_v13  ;;  %v5233_v13 = vld [vmem:[#allocation2 + $0xaa] sm:$0xff]  ;;  %v5235_v47 = vld [vmem:[#allocation2 + $0xc2] sm:$0xff]  ;;  %v4969_v38 = vpack.c.bf16 %v4684_v3, %v4683_v20 }
 0x24c   : > { %v3634_v29 = vpop.f32.mrf.mxu0  ;;  %v3437_v19 = vadd.f32 %v3310_v37, %v12018_v44  ;;  %v12145_v5 = vadd.f32 %v10043_v48, %v3439_v30  ;;  %v5236_v30 = vld [vmem:[#allocation2 + $0xca] sm:$0xff]  ;;  %v4968_v37 = vpack.c.bf16 %v4682_v28, %v4681_v7  ;;  %v5239_v28 = vld [vmem:[#allocation2 + $0xf2] sm:$0xff] }
 0x24d   : > { %v10010_v42 = vpop.f32.mrf.mxu1  ;;  %v4688_v7 = vld [vmem:[#allocation3 + $0xf9] sm:$0xff] }
 0x24e   : > { %v10044_v36 = vpop.f32.mrf.mxu0  ;;  %v3440_v39 = vadd.f32 %v10010_v42, %v12021_v23  ;;  %v12148_v1 = vadd.f32 %v3634_v29, %v3437_v19  ;;  %v5293_v19 = vpack.c.bf16 %v5236_v30, %v5235_v47 }
 0x24f   : > { %v3313_v33 = vpop.f32.mrf.mxu1 }
 0x250   : > { %v3637_v24 = vpop.f32.mrf.mxu0  ;;  %v3438_v22 = vadd.f32 %v3313_v33, %v12026_v54  ;;  %v12151_v50 = vadd.f32 %v10044_v36, %v3440_v39  ;;  %v5234_v54 = vld [vmem:[#allocation2 + $0xb2] sm:$0xff] }
 0x251   : > { %v10013_v26 = vpop.f32.mrf.mxu1  ;;  %10216 = vmatmul.mubr.msk.bf16.gmra.mxu1 %vm354_vm1, %v4966_v9  ;;  %v5292_v29 = vpack.c.bf16 %v5234_v54, %v5233_v13 }
 0x252   : > { %v10047_v44 = vpop.f32.mrf.mxu0  ;;  %10250 = vmatmul.mubr.msk.bf16.gmra.mxu0 %vm354_vm1, %v5290_v8  ;;  %v3443_v23 = vadd.f32 %v10013_v26, %v12031_v55  ;;  %v12156_v63 = vadd.f32 %v3637_v24, %v3438_v22  ;;  %10219 = vmatprep.mubr.msk.bf16.mxu1 %vm354_vm1, %v4967_v12  ;;  %v4685_v12 = vld [vmem:[#allocation3 + $0xd9] sm:$0xff]  ;;  %v5237_v24 = vld [vmem:[#allocation2 + $0xda] sm:$0xff] }
 0x253   : > { %10253 = vmatprep.mubr.msk.bf16.mxu0 %vm354_vm1, %v5291_v57  ;;  %v3326_v32 = vpop.f32.mrf.mxu1  ;;  %v4686_v57 = vld [vmem:[#allocation3 + $0xe1] sm:$0xff]  ;;  %v4687_v22 = vld [vmem:[#allocation3 + $0xf1] sm:$0xff] }
 0x254   : > { %v3650_v48 = vpop.f32.mrf.mxu0  ;;  %v3441_v2 = vadd.f32 %v3326_v32, %v12034_v10  ;;  %v12161_v11 = vadd.f32 %v10047_v44, %v3443_v23  ;;  %v5240_v23 = vld [vmem:[#allocation2 + $0xfa] sm:$0xff]  ;;  %v4970_v32 = vpack.c.bf16 %v4686_v57, %v4685_v12  ;;  %v4971_v30 = vpack.c.bf16 %v4688_v7, %v4687_v22  ;;  %v5243_v57 = vld [vmem:[#allocation2 + $0x122] sm:$0xff] }
 0x255   : > { %v10014_v58 = vpop.f32.mrf.mxu1  ;;  %v4692_v12 = vld [vmem:[#allocation3 + $0x129] sm:$0xff] }
 0x256   : > { %v10048_v55 = vpop.f32.mrf.mxu0  ;;  %v3444_v61 = vadd.f32 %v10014_v58, %v12037_v51  ;;  %v12164_v27 = vadd.f32 %v3650_v48, %v3441_v2  ;;  %v5295_v2 = vpack.c.bf16 %v5240_v23, %v5239_v28 }
 0x257   : > { %v3329_v42 = vpop.f32.mrf.mxu1 }
 0x258   : > { %v3653_v36 = vpop.f32.mrf.mxu0  ;;  %v3442_v9 = vadd.f32 %v3329_v42, %v12042_v34  ;;  %v12167_v8 = vadd.f32 %v10048_v55, %v3444_v61  ;;  %v5238_v34 = vld [vmem:[#allocation2 + $0xe2] sm:$0xff] }
 0x259   : > { %v10017_v39 = vpop.f32.mrf.mxu1  ;;  %10220 = vmatmul.mubr.msk.bf16.gmra.mxu1 %vm354_vm1, %v4968_v37  ;;  %v5294_v48 = vpack.c.bf16 %v5238_v34, %v5237_v24 }
 0x25a   : > { %v10051_v10 = vpop.f32.mrf.mxu0  ;;  %10254 = vmatmul.mubr.msk.bf16.gmra.mxu0 %vm354_vm1, %v5292_v29  ;;  %v3447_v51 = vadd.f32 %v10017_v39, %v12047_v4  ;;  %v12172_v33 = vadd.f32 %v3653_v36, %v3442_v9  ;;  %10223 = vmatprep.mubr.msk.bf16.mxu1 %vm354_vm1, %v4969_v38  ;;  %v4689_v38 = vld [vmem:[#allocation3 + $0x109] sm:$0xff]  ;;  %v5241_v36 = vld [vmem:[#allocation2 + $0x10a] sm:$0xff] }
 0x25b   : > { %10257 = vmatprep.mubr.msk.bf16.mxu0 %vm354_vm1, %v5293_v19  ;;  %v3342_v26 = vpop.f32.mrf.mxu1  ;;  %v4690_v19 = vld [vmem:[#allocation3 + $0x111] sm:$0xff]  ;;  %v4691_v9 = vld [vmem:[#allocation3 + $0x121] sm:$0xff] }
 0x25c   : > { %v3666_v44 = vpop.f32.mrf.mxu0  ;;  %v3445_v13 = vadd.f32 %v3342_v26, %v12050_v49  ;;  %v12177_v54 = vadd.f32 %v10051_v10, %v3447_v51  ;;  %v5244_v51 = vld [vmem:[#allocation2 + $0x12a] sm:$0xff]  ;;  %v4972_v26 = vpack.c.bf16 %v4690_v19, %v4689_v38  ;;  %v4973_v23 = vpack.c.bf16 %v4692_v12, %v4691_v9  ;;  %v5247_v19 = vld [vmem:[#allocation2 + $0x152] sm:$0xff] }
 0x25d   : > { %v10018_v20 = vpop.f32.mrf.mxu1  ;;  %v4696_v38 = vld [vmem:[#allocation3 + $0x159] sm:$0xff] }
 0x25e   : > { %v10052_v4 = vpop.f32.mrf.mxu0  ;;  %v3448_v3 = vadd.f32 %v10018_v20, %v12053_v6  ;;  %v12180_v47 = vadd.f32 %v3666_v44, %v3445_v13  ;;  %v5297_v13 = vpack.c.bf16 %v5244_v51, %v5243_v57 }
 0x25f   : > { %v3345_v58 = vpop.f32.mrf.mxu1 }
 0x260   : > { %v3669_v55 = vpop.f32.mrf.mxu0  ;;  %v3446_v37 = vadd.f32 %v3345_v58, %v12058_v43  ;;  %v12183_v29 = vadd.f32 %v10052_v4, %v3448_v3  ;;  %v5242_v43 = vld [vmem:[#allocation2 + $0x112] sm:$0xff] }
 0x261   : > { %v10021_v61 = vpop.f32.mrf.mxu1  ;;  %10224 = vmatmul.mubr.msk.bf16.gmra.mxu1 %vm354_vm1, %v4970_v32  ;;  %v5296_v44 = vpack.c.bf16 %v5242_v43, %v5241_v36 }
 0x262   : > { %v10055_v49 = vpop.f32.mrf.mxu0  ;;  %10258 = vmatmul.mubr.msk.bf16.gmra.mxu0 %vm354_vm1, %v5294_v48  ;;  %v3451_v6 = vadd.f32 %v10021_v61, %v12063_v35  ;;  %v12188_v42 = vadd.f32 %v3669_v55, %v3446_v37  ;;  %10227 = vmatprep.mubr.msk.bf16.mxu1 %vm354_vm1, %v4971_v30  ;;  %v4693_v30 = vld [vmem:[#allocation3 + $0x139] sm:$0xff]  ;;  %v5245_v55 = vld [vmem:[#allocation2 + $0x13a] sm:$0xff] }
 0x263   : > { %10261 = vmatprep.mubr.msk.bf16.mxu0 %vm354_vm1, %v5295_v2  ;;  %v3358_v39 = vpop.f32.mrf.mxu1  ;;  %v4694_v2 = vld [vmem:[#allocation3 + $0x141] sm:$0xff]  ;;  %v4695_v37 = vld [vmem:[#allocation3 + $0x151] sm:$0xff] }
 0x264   : > { %v3682_v10 = vpop.f32.mrf.mxu0  ;;  %v3449_v24 = vadd.f32 %v3358_v39, %v12066_v56  ;;  %v12193_v34 = vadd.f32 %v10055_v49, %v3451_v6  ;;  %v5248_v6 = vld [vmem:[#allocation2 + $0x15a] sm:$0xff]  ;;  %v4974_v39 = vpack.c.bf16 %v4694_v2, %v4693_v30  ;;  %v4975_v51 = vpack.c.bf16 %v4696_v38, %v4695_v37  ;;  %v5251_v30 = vld [vmem:[#allocation2 + $0x182] sm:$0xff]  ;;  %v5252_v2 = vld [vmem:[#allocation2 + $0x18a] sm:$0xff] }
 0x265   : > { %v10022_v22 = vpop.f32.mrf.mxu1 }
 0x266   : > { %v10056_v35 = vpop.f32.mrf.mxu0  ;;  %v3452_v7 = vadd.f32 %v10022_v22, %v12069_v31  ;;  %v12196_v28 = vadd.f32 %v3682_v10, %v3449_v24  ;;  %v5299_v24 = vpack.c.bf16 %v5248_v6, %v5247_v19  ;;  %v5301_v6 = vpack.c.bf16 %v5252_v2, %v5251_v30 }
 0x267   : > { %v3361_v20 = vpop.f32.mrf.mxu1 }
 0x268   : > { %v3685_v4 = vpop.f32.mrf.mxu0  ;;  %v3450_v32 = vadd.f32 %v3361_v20, %v12074_v21  ;;  %v12199_v48 = vadd.f32 %v10056_v35, %v3452_v7  ;;  %v5246_v21 = vld [vmem:[#allocation2 + $0x142] sm:$0xff]  ;;  %v5249_v20 = vld [vmem:[#allocation2 + $0x16a] sm:$0xff] }
 0x269   : > { %v10025_v3 = vpop.f32.mrf.mxu1  ;;  %10228 = vmatmul.mubr.msk.bf16.gmra.mxu1 %vm354_vm1, %v4972_v26  ;;  %v5298_v10 = vpack.c.bf16 %v5246_v21, %v5245_v55 }
 0x26a   : > { %v10059_v56 = vpop.f32.mrf.mxu0  ;;  %10262 = vmatmul.mubr.msk.bf16.gmra.mxu0 %vm354_vm1, %v5296_v44  ;;  %v3455_v31 = vadd.f32 %v10025_v3, %v12079_v25  ;;  %v12204_v58 = vadd.f32 %v3685_v4, %v3450_v32  ;;  %10231 = vmatprep.mubr.msk.bf16.mxu1 %vm354_vm1, %v4973_v23  ;;  %v4697_v23 = vld [vmem:[#allocation3 + $0x169] sm:$0xff] }
 0x26b   : > { %10265 = vmatprep.mubr.msk.bf16.mxu0 %vm354_vm1, %v5297_v13  ;;  %v3374_v61 = vpop.f32.mrf.mxu1  ;;  %v5250_v4 = vld [vmem:[#allocation2 + $0x172] sm:$0xff] }
 0x26c   : > { %v3698_v49 = vpop.f32.mrf.mxu0  ;;  %v3453_v36 = vadd.f32 %v3374_v61, %v12082_v18  ;;  %v12209_v43 = vadd.f32 %v10059_v56, %v3455_v31  ;;  %v4700_v56 = vld [vmem:[#allocation3 + $0x189] sm:$0xff] }
 0x26d   : > { %v10026_v9 = vpop.f32.mrf.mxu1 }
 0x26e   : > { %v10060_v25 = vpop.f32.mrf.mxu0  ;;  %v3456_v12 = vadd.f32 %v10026_v9, %v12085_v45  ;;  %v12212_v57 = vadd.f32 %v3698_v49, %v3453_v36  ;;  %v4698_v45 = vld [vmem:[#allocation3 + $0x171] sm:$0xff] }
 0x26f   : > { %v3377_v22 = vpop.f32.mrf.mxu1  ;;  %v4976_v61 = vpack.c.bf16 %v4698_v45, %v4697_v23  ;;  %v5256_v23 = vld [vmem:[#allocation3 + $0x3a] sm:$0xff] }
 0x270   : > { %v12214_v35 = vpop.f32.mrf.mxu0  ;;  %v12217_v26 = vadd.f32 %v3377_v22, %v12090_v14  ;;  %v12219_v44 = vadd.f32 %v10060_v25, %v3456_v12  ;;  %v4699_v14 = vld [vmem:[#allocation3 + $0x181] sm:$0xff]  ;;  %v4701_v12 = vld [vmem:[#allocation3 + $0x199] sm:$0xff] }
 0x271   : > { %v10029_v18 = vpop.f32.mrf.mxu1  ;;  %10232 = vmatmul.mubr.msk.bf16.gmra.mxu1 %vm354_vm1, %v4974_v39  ;;  %v4977_v19 = vpack.c.bf16 %v4700_v56, %v4699_v14  ;;  %v5254_v22 = vld [vmem:[#allocation2 + $0x1a2] sm:$0xff] }
 0x272   : > { %v10063_v7 = vpop.f32.mrf.mxu0  ;;  %10266 = vmatmul.mubr.msk.bf16.gmra.mxu0 %vm354_vm1, %v5298_v10  ;;  %v3459_v13 = vadd.f32 %v10029_v18, %v12095_v16  ;;  %10235 = vmatprep.mubr.msk.bf16.mxu1 %vm354_vm1, %v4975_v51  ;;  %v5300_v16 = vpack.c.bf16 %v5250_v4, %v5249_v20  ;;  %v4702_v51 = vld [vmem:[#allocation3 + $0x1a1] sm:$0xff] }
 0x273   : > { %10269 = vmatprep.mubr.msk.bf16.mxu0 %vm354_vm1, %v5299_v24  ;;  %v3390_v32 = vpop.f32.mrf.mxu1  ;;  %v5253_v24 = vld [vmem:[#allocation2 + $0x19a] sm:$0xff]  ;;  %v4978_v14 = vpack.c.bf16 %v4702_v51, %v4701_v12 }
 0x274   : > { %v3714_v3 = vpop.f32.mrf.mxu0  ;;  %v3457_v31 = vadd.f32 %v3390_v32, %v12098_v46  ;;  %v12227_v55 = vadd.f32 %v10063_v7, %v3459_v13  ;;  %v5255_v7 = vld [vmem:[#allocation3 + $0x32] sm:$0xff]  ;;  %v5302_v32 = vpack.c.bf16 %v5254_v22, %v5253_v24 }
 0x275   : > { %v10030_v21 = vpop.f32.mrf.mxu1  ;;  %v5547_v56 = vpack.c.bf16 %v5256_v23, %v5255_v7 }
 0x276   : > { %v10064_v37 = vpop.f32.mrf.mxu0  ;;  %v3460_v49 = vadd.f32 %v10030_v21, %v12101_v0  ;;  %v12230_v38 = vadd.f32 %v3714_v3, %v3457_v31 }
 0x277   : > { %v3393_v36 = vpop.f32.mrf.mxu1 }
 0x278   : > { %v12232_v9 = vpop.f32.mrf.mxu0  ;;  %v12235_v25 = vadd.f32 %v3393_v36, %v12106_v62  ;;  %v12237_v39 = vadd.f32 %v10064_v37, %v3460_v49  ;;  %v5260_v36 = vld [vmem:[#allocation3 + $0x6a] sm:$0xff] }
 0x279   : > { %v10033_v46 = vpop.f32.mrf.mxu1  ;;  %10236 = vmatmul.mubr.msk.bf16.gmra.mxu1 %vm354_vm1, %v4976_v61 }
 0x27a   : > { %v10067_v10 = vpop.f32.mrf.mxu0  ;;  %10270 = vmatmul.mubr.msk.bf16.gmra.mxu0 %vm354_vm1, %v5300_v16  ;;  %v3463_v0 = vadd.f32 %v10033_v46, %v12111_v17  ;;  %10239 = vmatprep.mubr.msk.bf16.mxu1 %vm354_vm1, %v4977_v19  ;;  %v5258_v16 = vld [vmem:[#allocation3 + $0x52] sm:$0xff] }
 0x27b   : > { %10273 = vmatprep.mubr.msk.bf16.mxu0 %vm354_vm1, %v5301_v6  ;;  %v3406_v62 = vpop.f32.mrf.mxu1  ;;  %v5259_v6 = vld [vmem:[#allocation3 + $0x62] sm:$0xff] }
 0x27c   : > { %v3730_v18 = vpop.f32.mrf.mxu0  ;;  %v3461_v45 = vadd.f32 %v3406_v62, %v12114_v53  ;;  %v12245_v13 = vadd.f32 %v10067_v10, %v3463_v0 }
 0x27d   : > { %v10034_v20 = vpop.f32.mrf.mxu1 }
 0x27e   : > { %v10068_v4 = vpop.f32.mrf.mxu0  ;;  %v3464_v17 = vadd.f32 %v10034_v20, %v12117_v60  ;;  %v12248_v3 = vadd.f32 %v3730_v18, %v3461_v45  ;;  %v5257_v60 = vld [vmem:[#allocation3 + $0x4a] sm:$0xff]  ;;  %v5262_v20 = vld [vmem:[#allocation3 + $0x82] sm:$0xff] }
 0x27f   : > { %v3409_v30 = vpop.f32.mrf.mxu1  ;;  %v5548_v0 = vpack.c.bf16 %v5258_v16, %v5257_v60 }
 0x280   : > { %v12250_v2 = vpop.f32.mrf.mxu0  ;;  %v12253_v31 = vadd.f32 %v3409_v30, %v12122_v59  ;;  %v12255_v21 = vadd.f32 %v10068_v4, %v3464_v17  ;;  %v5264_v17 = vld [vmem:[#allocation3 + $0x9a] sm:$0xff] }
 0x281   : > { %v10037_v53 = vpop.f32.mrf.mxu1  ;;  %10240 = vmatmul.mubr.msk.bf16.gmra.mxu1 %vm354_vm1, %v4978_v14 }
 0x282   : > { %v10071_v37 = vpop.f32.mrf.mxu0  ;;  %10274 = vmatmul.mubr.msk.bf16.gmra.mxu0 %vm354_vm1, %v5302_v32  ;;  %v3467_v61 = vadd.f32 %v10037_v53, %v12127_v40  ;;  %10279 = vmatprep.mubr.msk.bf16.mxu1 %vm354_vm1, %v5547_v56  ;;  %v5549_v40 = vpack.c.bf16 %v5260_v36, %v5259_v6  ;;  %v5263_v32 = vld [vmem:[#allocation3 + $0x92] sm:$0xff] }
 0x283   : > { %v3422_v49 = vpop.f32.mrf.mxu1 }
 0x284   : > { %v3746_v19 = vpop.f32.mrf.mxu0  ;;  %v3465_v59 = vadd.f32 %v3422_v49, %v12130_v41  ;;  %v12262_v46 = vadd.f32 %v10071_v37, %v3467_v61 }
 0x285   : > { %v10038_v10 = vpop.f32.mrf.mxu1 }
 0x286   : > { %v10072_v12 = vpop.f32.mrf.mxu0  ;;  %v3468_v51 = vadd.f32 %v10038_v10, %v12135_v15  ;;  %v12265_v24 = vadd.f32 %v3746_v19, %v3465_v59  ;;  %v5261_v15 = vld [vmem:[#allocation3 + $0x7a] sm:$0xff]  ;;  %v5266_v10 = vld [vmem:[#allocation3 + $0xb2] sm:$0xff] }
 0x287   : > { %v3425_v22 = vpop.f32.mrf.mxu1  ;;  %v5550_v37 = vpack.c.bf16 %v5262_v20, %v5261_v15 }
 0x288   : > { %v12267_v62 = vpop.f32.mrf.mxu0  ;;  %v12270_v18 = vadd.f32 %v3425_v22, %v12139_v52  ;;  %v12272_v7 = vadd.f32 %v10072_v12, %v3468_v51  ;;  %v5267_v51 = vld [vmem:[#allocation3 + $0xc2] sm:$0xff] }
 0x289   : > { %v10077_v23 = vpop.f32.mrf.mxu1  ;;  %10280 = vmatmul.mubr.msk.bf16.vlgmr.msra.gmra.mxu1 %vm354_vm1, %v5548_v0 }
 0x28a   : > { %v10111_v41 = vpop.f32.mrf.mxu0  ;;  %v4023_v45 = vadd.f32 %v10077_v23, %v12145_v5  ;;  %10283 = vmatprep.mubr.msk.bf16.mxu1 %vm354_vm1, %v5549_v40  ;;  %v5551_v5 = vpack.c.bf16 %v5264_v17, %v5263_v32  ;;  %v5268_v40 = vld [vmem:[#allocation3 + $0xca] sm:$0xff] }
 0x28b   : > { %v3894_v4 = vpop.f32.mrf.mxu1 }
 0x28c   : > { %v4220_v14 = vpop.f32.mrf.mxu0  ;;  %v4021_v56 = vadd.f32 %v3894_v4, %v12148_v1  ;;  %v12278_v52 = vadd.f32 %v10111_v41, %v4023_v45 }
 0x28d   : > { %v10078_v30 = vpop.f32.mrf.mxu1 }
 0x28e   : > { %v10112_v53 = vpop.f32.mrf.mxu0  ;;  %v4024_v61 = vadd.f32 %v10078_v30, %v12151_v50  ;;  %v12281_v60 = vadd.f32 %v4220_v14, %v4021_v56  ;;  %v5265_v50 = vld [vmem:[#allocation3 + $0xaa] sm:$0xff] }
 0x28f   : > { %v3897_v16 = vpop.f32.mrf.mxu1  ;;  %v5552_v45 = vpack.c.bf16 %v5266_v10, %v5265_v50 }
 0x290   : > { %v12283_v49 = vpop.f32.mrf.mxu0  ;;  %v12286_v19 = vadd.f32 %v3897_v16, %v12156_v63  ;;  %v12288_v6 = vadd.f32 %v10112_v53, %v4024_v61  ;;  %v5270_v53 = vld [vmem:[#allocation3 + $0xe2] sm:$0xff]  ;;  %v5272_v16 = vld [vmem:[#allocation3 + $0xfa] sm:$0xff] }
 0x291   : > { %v10081_v36 = vpop.f32.mrf.mxu1  ;;  %10284 = vmatmul.mubr.msk.bf16.gmra.mxu1 %vm354_vm1, %v5550_v37 }
 0x292   : > { %v10115_v1 = vpop.f32.mrf.mxu0  ;;  %v4027_v59 = vadd.f32 %v10081_v36, %v12161_v11  ;;  %10287 = vmatprep.mubr.msk.bf16.mxu1 %vm354_vm1, %v5551_v5  ;;  %v5553_v11 = vpack.c.bf16 %v5268_v40, %v5267_v51  ;;  %v5271_v5 = vld [vmem:[#allocation3 + $0xf2] sm:$0xff] }
 0x293   : > { %v3910_v12 = vpop.f32.mrf.mxu1 }
 0x294   : > { %v4236_v0 = vpop.f32.mrf.mxu0  ;;  %v4025_v22 = vadd.f32 %v3910_v12, %v12164_v27  ;;  %v12294_v63 = vadd.f32 %v10115_v1, %v4027_v59 }
 0x295   : > { %v10082_v23 = vpop.f32.mrf.mxu1 }
 0x296   : > { %v10116_v41 = vpop.f32.mrf.mxu0  ;;  %v4028_v15 = vadd.f32 %v10082_v23, %v12167_v8  ;;  %v12297_v20 = vadd.f32 %v4236_v0, %v4025_v22  ;;  %v5269_v8 = vld [vmem:[#allocation3 + $0xda] sm:$0xff] }
 0x297   : > { %v3913_v4 = vpop.f32.mrf.mxu1  ;;  %v5554_v50 = vpack.c.bf16 %v5270_v53, %v5269_v8 }
 0x298   : > { %v12299_v14 = vpop.f32.mrf.mxu0  ;;  %v12302_v32 = vadd.f32 %v3913_v4, %v12172_v33  ;;  %v12304_v17 = vadd.f32 %v10116_v41, %v4028_v15  ;;  %v6005_v15 = vld [vmem:[%s14096_s6 + $0x2] sm:$0x3] }
 0x299   : > { %v10085_v56 = vpop.f32.mrf.mxu1  ;;  %10288 = vmatmul.mubr.msk.bf16.gmra.mxu1 %vm354_vm1, %v5552_v45  ;;  %v5274_v45 = vld [vmem:[#allocation3 + $0x112] sm:$0xff]  ;;  %10638 = vmatprep.subr.msk.bf16.mxu0 %vm756_vm0, %v6005_v15 }
 0x29a   : > { %v10119_v27 = vpop.f32.mrf.mxu0  ;;  %v4031_v30 = vadd.f32 %v10085_v56, %v12177_v54  ;;  %10291 = vmatprep.mubr.msk.bf16.mxu1 %vm354_vm1, %v5553_v11  ;;  %v5555_v54 = vpack.c.bf16 %v5272_v16, %v5271_v5  ;;  %v5276_v56 = vld [vmem:[#allocation3 + $0x12a] sm:$0xff] }
 0x29b   : > { %v3926_v37 = vpop.f32.mrf.mxu1 }
 0x29c   : > { %v4252_v61 = vpop.f32.mrf.mxu0  ;;  %v4029_v36 = vadd.f32 %v3926_v37, %v12180_v47  ;;  %v12310_v33 = vadd.f32 %v10119_v27, %v4031_v30  ;;  %v6158_v27 = vsel %vm756_vm0, %v6005_v15, 0 }
 0x29d   : > { %v10086_v1 = vpop.f32.mrf.mxu1  ;;  %10312 = vmatpush3.bf16.msra.mxu0 %v6158_v27 }
 0x29e   : > { %v10120_v59 = vpop.f32.mrf.mxu0  ;;  %v4032_v10 = vadd.f32 %v10086_v1, %v12183_v29  ;;  %v12313_v12 = vadd.f32 %v4252_v61, %v4029_v36  ;;  %v5273_v29 = vld [vmem:[#allocation3 + $0x10a] sm:$0xff] }
 0x29f   : > { %v3929_v0 = vpop.f32.mrf.mxu1  ;;  %v5556_v37 = vpack.c.bf16 %v5274_v45, %v5273_v29  ;;  %v5280_v29 = vld [vmem:[#allocation3 + $0x15a] sm:$0xff] }
 0x2a0   : > { %v12315_v51 = vpop.f32.mrf.mxu0  ;;  %v12318_v40 = vadd.f32 %v3929_v0, %v12188_v42  ;;  %v12320_v22 = vadd.f32 %v10120_v59, %v4032_v10  ;;  %v5275_v42 = vld [vmem:[#allocation3 + $0x122] sm:$0xff] }
 0x2a1   : > { %v10089_v23 = vpop.f32.mrf.mxu1  ;;  %10292 = vmatmul.mubr.msk.bf16.gmra.mxu1 %vm354_vm1, %v5554_v50  ;;  %v5557_v16 = vpack.c.bf16 %v5276_v56, %v5275_v42  ;;  %v5278_v0 = vld [vmem:[#allocation3 + $0x142] sm:$0xff] }
 0x2a2   : > { %v10123_v47 = vpop.f32.mrf.mxu0  ;;  %v4035_v41 = vadd.f32 %v10089_v23, %v12193_v34  ;;  %10295 = vmatprep.mubr.msk.bf16.mxu1 %vm354_vm1, %v5555_v54 }
 0x2a3   : > { %v3942_v11 = vpop.f32.mrf.mxu1 }
 0x2a4   : > { %v4268_v4 = vpop.f32.mrf.mxu0  ;;  %v4033_v30 = vadd.f32 %v3942_v11, %v12196_v28  ;;  %v12331_v8 = vadd.f32 %v10123_v47, %v4035_v41  ;;  %v5279_v41 = vld [vmem:[#allocation3 + $0x152] sm:$0xff] }
 0x2a5   : > { %v10090_v34 = vpop.f32.mrf.mxu1 }
 0x2a6   : > { %v10124_v53 = vpop.f32.mrf.mxu0  ;;  %v4036_v61 = vadd.f32 %v10090_v34, %v12199_v48  ;;  %v12334_v5 = vadd.f32 %v4268_v4, %v4033_v30  ;;  %v5277_v48 = vld [vmem:[#allocation3 + $0x13a] sm:$0xff] }
 0x2a7   : > { %v3945_v36 = vpop.f32.mrf.mxu1  ;;  %v5558_v4 = vpack.c.bf16 %v5278_v0, %v5277_v48 }
 0x2a8   : > { %v12336_v1 = vpop.f32.mrf.mxu0  ;;  %v12339_v59 = vadd.f32 %v3945_v36, %v12204_v58  ;;  %v12341_v50 = vadd.f32 %v10124_v53, %v4036_v61  ;;  %v5281_v61 = vld [vmem:[#allocation3 + $0x16a] sm:$0xff] }
 0x2a9   : > { %v10093_v28 = vpop.f32.mrf.mxu1  ;;  %10296 = vmatmul.mubr.msk.bf16.gmra.mxu1 %vm354_vm1, %v5556_v37 }
 0x2aa   : > { %v10127_v10 = vpop.f32.mrf.mxu0  ;;  %v4039_v54 = vadd.f32 %v10093_v28, %v12209_v43  ;;  %10299 = vmatprep.mubr.msk.bf16.mxu1 %vm354_vm1, %v5557_v16  ;;  %v5559_v43 = vpack.c.bf16 %v5280_v29, %v5279_v41  ;;  %v5282_v16 = vld [vmem:[#allocation3 + $0x172] sm:$0xff]  ;;  %v5283_v28 = vld [vmem:[#allocation3 + $0x182] sm:$0xff] }
 0x2ab   : > { %v3958_v23 = vpop.f32.mrf.mxu1 }
 0x2ac   : > { %v4284_v47 = vpop.f32.mrf.mxu0  ;;  %v4037_v45 = vadd.f32 %v3958_v23, %v12212_v57  ;;  %v12347_v58 = vadd.f32 %v10127_v10, %v4039_v54  ;;  %v5284_v10 = vld [vmem:[#allocation3 + $0x18a] sm:$0xff] }
 0x2ad   : > { %v10094_v15 = vpop.f32.mrf.mxu1 }
 0x2ae   : > { %v10128_v11 = vpop.f32.mrf.mxu0  ;;  %v4040_v42 = vadd.f32 %v10094_v15, %v12219_v44  ;;  %v12350_v56 = vadd.f32 %v4284_v47, %v4037_v45  ;;  %v5560_v47 = vpack.c.bf16 %v5282_v16, %v5281_v61 }
 0x2af   : > { %v12352_v27 = vpop.f32.mrf.mxu1 }
 0x2b0   : > { %v12354_v30 = vpop.f32.mrf.mxu0  ;;  %v12356_v34 = vadd.f32 %v10128_v11, %v4040_v42 }
 0x2b1   : > { %v10097_v53 = vpop.f32.mrf.mxu1  ;;  %10300 = vmatmul.mubr.msk.bf16.gmra.mxu1 %vm354_vm1, %v5558_v4 }
 0x2b2   : > { %v10131_v57 = vpop.f32.mrf.mxu0  ;;  %v4043_v37 = vadd.f32 %v10097_v53, %v12227_v55  ;;  %10303 = vmatprep.mubr.msk.bf16.mxu1 %vm354_vm1, %v5559_v43  ;;  %v5561_v55 = vpack.c.bf16 %v5284_v10, %v5283_v28  ;;  %v5285_v43 = vld [vmem:[#allocation3 + $0x19a] sm:$0xff]  ;;  %v5286_v53 = vld [vmem:[#allocation3 + $0x1a2] sm:$0xff] }
 0x2b3   : > { %v3974_v44 = vpop.f32.mrf.mxu1 }
 0x2b4   : > { %v4300_v36 = vpop.f32.mrf.mxu0  ;;  %v4041_v54 = vadd.f32 %v3974_v44, %v12230_v38  ;;  %v12362_v48 = vadd.f32 %v10131_v57, %v4043_v37 }
 0x2b5   : > { %v10098_v0 = vpop.f32.mrf.mxu1 }
 0x2b6   : > { %v10132_v23 = vpop.f32.mrf.mxu0  ;;  %v4044_v41 = vadd.f32 %v10098_v0, %v12237_v39  ;;  %v12365_v29 = vadd.f32 %v4300_v36, %v4041_v54  ;;  %v5562_v36 = vpack.c.bf16 %v5286_v53, %v5285_v43 }
 0x2b7   : > { %v12367_v45 = vpop.f32.mrf.mxu1 }
 0x2b8   : > { %v12369_v15 = vpop.f32.mrf.mxu0  ;;  %v12371_v11 = vadd.f32 %v10132_v23, %v4044_v41 }
 0x2b9   : > { %v10101_v4 = vpop.f32.mrf.mxu1  ;;  %10304 = vmatmul.mubr.msk.bf16.gmra.mxu1 %vm354_vm1, %v5560_v47 }
 0x2ba   : > { %v10135_v38 = vpop.f32.mrf.mxu0  ;;  %v4047_v42 = vadd.f32 %v10101_v4, %v12245_v13  ;;  %10307 = vmatprep.mubr.msk.bf16.mxu1 %vm354_vm1, %v5561_v55 }
 0x2bb   : > { %v3990_v39 = vpop.f32.mrf.mxu1 }
 0x2bc   : > { %v4316_v57 = vpop.f32.mrf.mxu0  ;;  %v4045_v37 = vadd.f32 %v3990_v39, %v12248_v3  ;;  %v12377_v61 = vadd.f32 %v10135_v38, %v4047_v42 }
 0x2bd   : > { %v10102_v16 = vpop.f32.mrf.mxu1 }
 0x2be   : > { %v10136_v44 = vpop.f32.mrf.mxu0  ;;  %v4048_v28 = vadd.f32 %v10102_v16, %v12255_v21  ;;  %v12380_v10 = vadd.f32 %v4316_v57, %v4045_v37 }
 0x2bf   : > { %v12382_v54 = vpop.f32.mrf.mxu1 }
 0x2c0   : > { %v12384_v13 = vpop.f32.mrf.mxu0  ;;  %v12386_v0 = vadd.f32 %v10136_v44, %v4048_v28 }
 0x2c1   : > { %v10105_v23 = vpop.f32.mrf.mxu1  ;;  %10308 = vmatmul.mubr.msk.bf16.gmra.mxu1 %vm354_vm1, %v5562_v36 }
 0x2c2   : > { %v10139_v47 = vpop.f32.mrf.mxu0  ;;  %v4051_v3 = vadd.f32 %v10105_v23, %v12262_v46 }
 0x2c3   : > { %v4006_v41 = vpop.f32.mrf.mxu1 }
 0x2c4   : > { %v4332_v55 = vpop.f32.mrf.mxu0  ;;  %v4049_v4 = vadd.f32 %v4006_v41, %v12265_v24  ;;  %v12391_v38 = vadd.f32 %v10139_v47, %v4051_v3 }
 0x2c5   : > { %v10106_v21 = vpop.f32.mrf.mxu1 }
 0x2c6   : > { %v10140_v42 = vpop.f32.mrf.mxu0  ;;  %v4052_v43 = vadd.f32 %v10106_v21, %v12272_v7  ;;  %v12394_v53 = vadd.f32 %v4332_v55, %v4049_v4 }
 0x2c7   : > { %v12396_v39 = vpop.f32.mrf.mxu1 }
 0x2c8   : > { %v12398_v57 = vpop.f32.mrf.mxu0  ;;  %v12400_v37 = vadd.f32 %v10140_v42, %v4052_v43 }
 0x2c9   : > { %14103 = vst [vmem:[#allocation5_spill] sm:$0xff] %v12398_v57  ;;  %v10145_v16 = vpop.f32.mrf.mxu1 }
 0x2ca   : > { %v12402_v46 = vpop.f32.mrf.mxu0  ;;  %v12405_v44 = vadd.f32 %v10145_v16, %v12278_v52 }
 0x2cb   : > { %v4480_v24 = vpop.f32.mrf.mxu1 }
 0x2cc   : > { %v12407_v36 = vpop.f32.mrf.mxu0  ;;  %v12410_v28 = vadd.f32 %v4480_v24, %v12281_v60 }
 0x2cd   : > { %v10146_v7 = vpop.f32.mrf.mxu1 }
 0x2ce   : > { %v12412_v23 = vpop.f32.mrf.mxu0  ;;  %v12415_v47 = vadd.f32 %v10146_v7, %v12288_v6 }
 0x2cf   : > { %v12417_v3 = vpop.f32.mrf.mxu1 }
 0x2d0   : > { %v12419_v41 = vpop.f32.mrf.mxu0 }
 0x2d1   : > { %v10149_v55 = vpop.f32.mrf.mxu1 }
 0x2d2   : > { %v12421_v4 = vpop.f32.mrf.mxu0  ;;  %v12424_v52 = vadd.f32 %v10149_v55, %v12294_v63 }
 0x2d3   : > { %14104 = vst [vmem:[#allocation6_spill] sm:$0xff] %v12421_v4  ;;  %v4496_v21 = vpop.f32.mrf.mxu1 }
 0x2d4   : > { %v12426_v42 = vpop.f32.mrf.mxu0  ;;  %v12429_v60 = vadd.f32 %v4496_v21, %v12297_v20 }
 0x2d5   : > { %14105 = vst [vmem:[#allocation7_spill] sm:$0xff] %v12426_v42  ;;  %v10150_v43 = vpop.f32.mrf.mxu1 }
 0x2d6   : > { %v12431_v16 = vpop.f32.mrf.mxu0  ;;  %v12434_v6 = vadd.f32 %v10150_v43, %v12304_v17  ;;  %v6004_v17 = vld [vmem:[%s14096_s6] sm:$0x3] }
 0x2d7   : > { %14106 = vst [vmem:[#allocation8_spill] sm:$0xff] %v12431_v16  ;;  %v12436_v24 = vpop.f32.mrf.mxu1  ;;  %10639 = vmatprep.subr.msk.bf16.mxu1 %vm756_vm0, %v6004_v17 }
 0x2d8   : > { %14107 = vst [vmem:[#allocation9_spill] sm:$0xff] %v12434_v6  ;;  %v12438_v7 = vpop.f32.mrf.mxu0 }
 0x2d9   : > { %14108 = vst [vmem:[#allocation10_spill] sm:$0xff] %v12438_v7  ;;  %v10153_v4 = vpop.f32.mrf.mxu1 }
 0x2da   : > { %v12440_v57 = vpop.f32.mrf.mxu0  ;;  %v12443_v63 = vadd.f32 %v10153_v4, %v12310_v33  ;;  %v6370_v33 = vsel %vm756_vm0, %v6004_v17, 0  ;;  %v6061_v4 = vld [vmem:[#allocation4 + $0x1] sm:$0xff] }
 0x2db   : > { %14109 = vst [vmem:[#allocation11_spill] sm:$0xff] %v12440_v57  ;;  %v4512_v55 = vpop.f32.mrf.mxu1  ;;  %v6062_v57 = vld [vmem:[#allocation4 + $0x9] sm:$0xff]  ;;  %10346 = vmatpush3.bf16.msra.mxu1 %v6370_v33 }
 0x2dc   : > { %14110 = vst [vmem:[#allocation12_spill] sm:$0xff] %v12443_v63  ;;  %v12445_v42 = vpop.f32.mrf.mxu0  ;;  %v12448_v20 = vadd.f32 %v4512_v55, %v12313_v12  ;;  %v6093_v55 = vpack.c.bf16 %v6062_v57, %v6061_v4 }
 0x2dd   : > { %14111 = vst [vmem:[#allocation13_spill] sm:$0xff] %v12445_v42  ;;  %v10154_v21 = vpop.f32.mrf.mxu1  ;;  %v6013_v42 = vld [vmem:[#allocation4] sm:$0xff] }
 0x2de   : > { %14112 = vst [vmem:[#allocation14_spill] sm:$0xff] %v12448_v20  ;;  %v12450_v16 = vpop.f32.mrf.mxu0  ;;  %v12456_v43 = vadd.f32 %v10154_v21, %v12320_v22  ;;  %10313 = vmatprep.mubr.msk.bf16.mxu0 %vm354_vm1, %v6093_v55 }
 0x2df   : > { %14113 = vst [vmem:[#allocation15_spill] sm:$0xff] %v12450_v16  ;;  %v12460_v63 = vpop.f32.mrf.mxu1  ;;  %v6014_v16 = vld [vmem:[#allocation4 + $0x8] sm:$0xff] }
 0x2e0   : > { %14114 = vst [vmem:[#allocation16_spill] sm:$0xff] %v12456_v43  ;;  %v12462_v12 = vpop.f32.mrf.mxu0  ;;  %v6045_v20 = vpack.c.bf16 %v6014_v16, %v6013_v42 }
 0x2e1   : > { %v10157_v7 = vpop.f32.mrf.mxu1 }
 0x2e2   : > { %v12464_v6 = vpop.f32.mrf.mxu0  ;;  %v12468_v22 = vadd.f32 %v10157_v7, %v12331_v8  ;;  %10347 = vmatprep.mubr.msk.bf16.mxu1 %vm354_vm1, %v6045_v20 }
 0x2e3   : > { %v4528_v21 = vpop.f32.mrf.mxu1 }
 0x2e4   : > { %v12471_v17 = vpop.f32.mrf.mxu0  ;;  %v12474_v43 = vadd.f32 %v4528_v21, %v12334_v5  ;;  %v12493_v5 = vld [vmem:[%s14096_s6 + $0x4] sm:$0x3] }
 0x2e5   : > { %v10158_v33 = vpop.f32.mrf.mxu1  ;;  %14120 = vst [vmem:[#allocation22_spill] sm:$0xff] %v12493_v5  ;;  %10640 = vmatprep.subr.msk.bf16.mxu0 %vm756_vm0, %v12493_v5 }
 0x2e6   : > { %v12476_v57 = vpop.f32.mrf.mxu0  ;;  %v12479_v42 = vadd.f32 %v10158_v33, %v12341_v50 }
 0x2e7   : > { %14115 = vst [vmem:[#allocation17_spill] sm:$0xff] %v12476_v57  ;;  %v12481_v16 = vpop.f32.mrf.mxu1 }
 0x2e8   : > { %14116 = vst [vmem:[#allocation18_spill] sm:$0xff] %v12479_v42  ;;  %v12483_v4 = vpop.f32.mrf.mxu0 }
 0x2e9   : > { %14117 = vst [vmem:[#allocation19_spill] sm:$0xff] %v12483_v4  ;;  %v10161_v8 = vpop.f32.mrf.mxu1 }
 0x2ea   : > { %v12485_v7 = vpop.f32.mrf.mxu0  ;;  %v12488_v20 = vadd.f32 %v10161_v8, %v12347_v58 }
 0x2eb   : > { %14118 = vst [vmem:[#allocation20_spill] sm:$0xff] %v12485_v7  ;;  %v4544_v55 = vpop.f32.mrf.mxu1 }
 0x2ec   : > { %14119 = vst [vmem:[#allocation21_spill] sm:$0xff] %v12488_v20  ;;  %v12495_v21 = vpop.f32.mrf.mxu0  ;;  %v12500_v50 = vadd.f32 %v4544_v55, %v12350_v56 }
 0x2ed   : > { %14121 = vst [vmem:[#allocation23_spill] sm:$0xff] %v12495_v21  ;;  %v10162_v33 = vpop.f32.mrf.mxu1 }
 0x2ee   : > { %14122 = vst [vmem:[#allocation24_spill] sm:$0xff] %v12500_v50  ;;  %v12502_v4 = vpop.f32.mrf.mxu0  ;;  %v12505_v58 = vadd.f32 %v10162_v33, %v12356_v34 }
 0x2ef   : > { %14123 = vst [vmem:[#allocation25_spill] sm:$0xff] %v12502_v4  ;;  %v12507_v8 = vpop.f32.mrf.mxu1 }
 0x2f0   : > { %14124 = vst [vmem:[#allocation26_spill] sm:$0xff] %v12505_v58  ;;  %14125 = vst [vmem:[#allocation27_spill] sm:$0xff] %v12507_v8  ;;  %v12509_v7 = vpop.f32.mrf.mxu0 }
 0x2f1   : > { %14126 = vst [vmem:[#allocation28_spill] sm:$0xff] %v12509_v7  ;;  %v10165_v20 = vpop.f32.mrf.mxu1 }
 0x2f2   : > { %v12511_v57 = vpop.f32.mrf.mxu0  ;;  %v12514_v21 = vadd.f32 %v10165_v20, %v12362_v48 }
 0x2f3   : > { %14127 = vst [vmem:[#allocation29_spill] sm:$0xff] %v12511_v57  ;;  %v4560_v5 = vpop.f32.mrf.mxu1 }
 0x2f4   : > { %14128 = vst [vmem:[#allocation30_spill] sm:$0xff] %v12514_v21  ;;  %v12516_v42 = vpop.f32.mrf.mxu0  ;;  %v12519_v56 = vadd.f32 %v4560_v5, %v12365_v29 }
 0x2f5   : > { %14129 = vst [vmem:[#allocation31_spill] sm:$0xff] %v12516_v42  ;;  %v10166_v55 = vpop.f32.mrf.mxu1 }
 0x2f6   : > { %14130 = vst [vmem:[#allocation32_spill] sm:$0xff] %v12519_v56  ;;  %v12521_v4 = vpop.f32.mrf.mxu0  ;;  %v12524_v34 = vadd.f32 %v10166_v55, %v12371_v11 }
 0x2f7   : > { %14131 = vst [vmem:[#allocation33_spill] sm:$0xff] %v12521_v4  ;;  %v12526_v33 = vpop.f32.mrf.mxu1 }
 0x2f8   : > { %14132 = vst [vmem:[#allocation34_spill] sm:$0xff] %v12524_v34  ;;  %14133 = vst [vmem:[#allocation35_spill] sm:$0xff] %v12526_v33  ;;  %v12528_v7 = vpop.f32.mrf.mxu0 }
 0x2f9   : > { %14134 = vst [vmem:[#allocation36_spill] sm:$0xff] %v12528_v7  ;;  %v10169_v57 = vpop.f32.mrf.mxu1 }
 0x2fa   : > { %v12530_v58 = vpop.f32.mrf.mxu0  ;;  %v12533_v48 = vadd.f32 %v10169_v57, %v12377_v61 }
 0x2fb   : > { %14135 = vst [vmem:[#allocation37_spill] sm:$0xff] %v12530_v58  ;;  %v4576_v20 = vpop.f32.mrf.mxu1 }
 0x2fc   : > { %14136 = vst [vmem:[#allocation38_spill] sm:$0xff] %v12533_v48  ;;  %v12535_v42 = vpop.f32.mrf.mxu0  ;;  %v12538_v29 = vadd.f32 %v4576_v20, %v12380_v10 }
 0x2fd   : > { %14137 = vst [vmem:[#allocation39_spill] sm:$0xff] %v12535_v42  ;;  %v10170_v5 = vpop.f32.mrf.mxu1 }
 0x2fe   : > { %14138 = vst [vmem:[#allocation40_spill] sm:$0xff] %v12538_v29  ;;  %v12540_v4 = vpop.f32.mrf.mxu0  ;;  %v12543_v11 = vadd.f32 %v10170_v5, %v12386_v0 }
 0x2ff   : > { %14139 = vst [vmem:[#allocation41_spill] sm:$0xff] %v12540_v4  ;;  %v12545_v55 = vpop.f32.mrf.mxu1 }
 0x300   : > { %14140 = vst [vmem:[#allocation42_spill] sm:$0xff] %v12543_v11  ;;  %14141 = vst [vmem:[#allocation43_spill] sm:$0xff] %v12545_v55  ;;  %v12547_v7 = vpop.f32.mrf.mxu0  ;;  %v12599_v55 = vld [vmem:[%s14096_s6 + $0x6] sm:$0x3] }
 0x301   : > { %14142 = vst [vmem:[#allocation44_spill] sm:$0xff] %v12547_v7  ;;  %v10173_v58 = vpop.f32.mrf.mxu1  ;;  %14155 = vst [vmem:[#allocation57_spill] sm:$0xff] %v12599_v55  ;;  %10641 = vmatprep.subr.msk.bf16.mxu1 %vm756_vm0, %v12599_v55 }
 0x302   : > { %v12549_v34 = vpop.f32.mrf.mxu0  ;;  %v12552_v61 = vadd.f32 %v10173_v58, %v12391_v38 }
 0x303   : > { %14143 = vst [vmem:[#allocation45_spill] sm:$0xff] %v12549_v34  ;;  %v4592_v57 = vpop.f32.mrf.mxu1 }
 0x304   : > { %14144 = vst [vmem:[#allocation46_spill] sm:$0xff] %v12552_v61  ;;  %v12554_v42 = vpop.f32.mrf.mxu0  ;;  %v12557_v10 = vadd.f32 %v4592_v57, %v12394_v53 }
 0x305   : > { %14145 = vst [vmem:[#allocation47_spill] sm:$0xff] %v12554_v42  ;;  %v10174_v20 = vpop.f32.mrf.mxu1 }
 0x306   : > { %14146 = vst [vmem:[#allocation48_spill] sm:$0xff] %v12557_v10  ;;  %v12559_v4 = vpop.f32.mrf.mxu0  ;;  %v12562_v0 = vadd.f32 %v10174_v20, %v12400_v37 }
 0x307   : > { %14147 = vst [vmem:[#allocation49_spill] sm:$0xff] %v12559_v4  ;;  %v12564_v5 = vpop.f32.mrf.mxu1 }
 0x308   : > { %14148 = vst [vmem:[#allocation50_spill] sm:$0xff] %v12562_v0  ;;  %14149 = vst [vmem:[#allocation51_spill] sm:$0xff] %v12564_v5  ;;  %v12566_v7 = vpop.f32.mrf.mxu0 }
 0x309   : > { %14150 = vst [vmem:[#allocation52_spill] sm:$0xff] %v12566_v7  ;;  %v10213_v34 = vpop.f32.mrf.mxu1 }
 0x30a   : > { %v12568_v11 = vpop.f32.mrf.mxu0 }
 0x30b   : > { %v5064_v38 = vpop.f32.mrf.mxu1 }
 0x30c   : > { %v12570_v58 = vpop.f32.mrf.mxu0 }
 0x30d   : > { %v12572_v42 = vpop.f32.mrf.mxu1 }
 0x30e   : > { %v12574_v53 = vpop.f32.mrf.mxu0 }
 0x30f   : > { %v12576_v57 = vpop.f32.mrf.mxu1 }
 0x310   : > { %v12580_v37 = vpop.f32.mrf.mxu0 }
 0x311   : > { %v12578_v4 = vpop.f32.mrf.mxu1 }
 0x312   : > { %v12586_v7 = vpop.f32.mrf.mxu0 }
 0x313   : > { %v12582_v20 = vpop.f32.mrf.mxu1 }
 0x314   : > { %v12592_v61 = vpop.f32.mrf.mxu0 }
 0x315   : > { %v12584_v0 = vpop.f32.mrf.mxu1  ;;  %14153 = vst [vmem:[#allocation55_spill] sm:$0xff] %v12592_v61 }
 0x316   : > { %v12605_v56 = vpop.f32.mrf.mxu0 }
 0x317   : > { %v12588_v5 = vpop.f32.mrf.mxu1  ;;  %14157 = vst [vmem:[#allocation59_spill] sm:$0xff] %v12605_v56 }
 0x318   : > { %14151 = vst [vmem:[#allocation53_spill] sm:$0xff] %v12588_v5  ;;  %v12611_v50 = vpop.f32.mrf.mxu0 }
 0x319   : > { %v12590_v10 = vpop.f32.mrf.mxu1  ;;  %14160 = vst [vmem:[#allocation62_spill] sm:$0xff] %v12611_v50 }
 0x31a   : > { %14152 = vst [vmem:[#allocation54_spill] sm:$0xff] %v12590_v10  ;;  %v12617_v8 = vpop.f32.mrf.mxu0 }
 0x31b   : > { %v12594_v29 = vpop.f32.mrf.mxu1  ;;  %14163 = vst [vmem:[#allocation65_spill] sm:$0xff] %v12617_v8 }
 0x31c   : > { %14154 = vst [vmem:[#allocation56_spill] sm:$0xff] %v12594_v29  ;;  %v12623_v61 = vpop.f32.mrf.mxu0 }
 0x31d   : > { %v12601_v48 = vpop.f32.mrf.mxu1  ;;  %14166 = vst [vmem:[#allocation68_spill] sm:$0xff] %v12623_v61 }
 0x31e   : > { %14156 = vst [vmem:[#allocation58_spill] sm:$0xff] %v12601_v48 }
 0x31f   : > { %v12607_v33 = vpop.f32.mrf.mxu1 }
 0x320   : > { %14158 = vst [vmem:[#allocation60_spill] sm:$0xff] %v12607_v33  ;;  %v12629_v33 = vpop.f32.mrf.mxu0 }
 0x321   : > { %v12609_v21 = vpop.f32.mrf.mxu1  ;;  %14169 = vst [vmem:[#allocation71_spill] sm:$0xff] %v12629_v33 }
 0x322   : > { %14159 = vst [vmem:[#allocation61_spill] sm:$0xff] %v12609_v21 }
 0x323   : > { %v12613_v10 = vpop.f32.mrf.mxu1 }
 0x324   : > { %14161 = vst [vmem:[#allocation63_spill] sm:$0xff] %v12613_v10  ;;  %v12635_v10 = vpop.f32.mrf.mxu0 }
 0x325   : > { %v12615_v29 = vpop.f32.mrf.mxu1 }
 0x326   : > { %14162 = vst [vmem:[#allocation64_spill] sm:$0xff] %v12615_v29 }
 0x327   : > { %v12619_v5 = vpop.f32.mrf.mxu1 }
 0x328   : > { %14164 = vst [vmem:[#allocation66_spill] sm:$0xff] %v12619_v5  ;;  %v12641_v5 = vpop.f32.mrf.mxu0 }
 0x329   : > { %v12621_v48 = vpop.f32.mrf.mxu1 }
 0x32a   : > { %14165 = vst [vmem:[#allocation67_spill] sm:$0xff] %v12621_v48 }
 0x32b   : > { %v12625_v55 = vpop.f32.mrf.mxu1 }
 0x32c   : > { %14167 = vst [vmem:[#allocation69_spill] sm:$0xff] %v12625_v55  ;;  %v12647_v55 = vpop.f32.mrf.mxu0 }
 0x32d   : > { %v12627_v56 = vpop.f32.mrf.mxu1  ;;  %14176 = vst [vmem:[#allocation78_spill] sm:$0xff] %v12647_v55 }
 0x32e   : > { %14168 = vst [vmem:[#allocation70_spill] sm:$0xff] %v12627_v56 }
 0x32f   : > { %v12631_v21 = vpop.f32.mrf.mxu1 }
 0x330   : > { %14170 = vst [vmem:[#allocation72_spill] sm:$0xff] %v12631_v21  ;;  %v12653_v21 = vpop.f32.mrf.mxu0 }
 0x331   : > { %v12633_v50 = vpop.f32.mrf.mxu1 }
 0x332   : > { %14171 = vst [vmem:[#allocation73_spill] sm:$0xff] %v12633_v50  ;;  %v12667_v55 = vpop.f32.mrf.mxu0 }
 0x333   : > { %v12637_v29 = vpop.f32.mrf.mxu1 }
 0x334   : > { %14172 = vst [vmem:[#allocation74_spill] sm:$0xff] %v12637_v29  ;;  %v3778_v29 = vadd.f32 %v12214_v35, %v12217_v26 }
 0x335   : > { %v12639_v8 = vpop.f32.mrf.mxu1 }
 0x336   : > { %14173 = vst [vmem:[#allocation75_spill] sm:$0xff] %v12639_v8  ;;  %v4038_v35 = vadd.f32 %v12352_v27, %v3778_v29 }
 0x337   : > { %v12643_v48 = vpop.f32.mrf.mxu1 }
 0x338   : > { %14174 = vst [vmem:[#allocation76_spill] sm:$0xff] %v12643_v48  ;;  %v3782_v48 = vadd.f32 %v12232_v9, %v12235_v25  ;;  %v4931_v25 = vadd.f32 %v12407_v36, %v12410_v28  ;;  %v4360_v36 = vadd.f32 %v12336_v1, %v12339_v59  ;;  %v14181_v59 = vld [vmem:[#allocation6_spill] sm:$0xff] }
 0x339   : > { %v12645_v61 = vpop.f32.mrf.mxu1 }
 0x33a   : > { %14175 = vst [vmem:[#allocation77_spill] sm:$0xff] %v12645_v61  ;;  %v4348_v61 = vadd.f32 %v12283_v49, %v12286_v19  ;;  %v4042_v9 = vadd.f32 %v12367_v45, %v3782_v48  ;;  %v5191_v27 = vadd.f32 %v5064_v38, %v4931_v25  ;;  %v12688_v45 = vpop.f32.mrf.mxu0 }
 0x33b   : > { %v12649_v56 = vpop.f32.mrf.mxu1 }
 0x33c   : > { %14177 = vst [vmem:[#allocation79_spill] sm:$0xff] %v12649_v56  ;;  %v4933_v56 = vadd.f32 %v12402_v46, %v12405_v44  ;;  %v4608_v49 = vadd.f32 %v12417_v3, %v4348_v61  ;;  %v4352_v46 = vadd.f32 %v12299_v14, %v12302_v32  ;;  %v4356_v44 = vadd.f32 %v12315_v51, %v12318_v40  ;;  %v14180_v40 = vld [vmem:[#allocation5_spill] sm:$0xff]  ;;  %v14187_v61 = vld [vmem:[#allocation11_spill] sm:$0xff] }
 0x33d   : > { %v12651_v33 = vpop.f32.mrf.mxu1  ;;  %v4364_v14 = vadd.f32 %v12354_v30, %v4038_v35  ;;  %v4937_v30 = vadd.f32 %v14181_v59, %v12424_v52  ;;  %v14184_v52 = vld [vmem:[#allocation8_spill] sm:$0xff]  ;;  %v12753_v59 = vadd.f32 %v12464_v6, %v12468_v22  ;;  %v14194_v6 = vld [vmem:[#allocation19_spill] sm:$0xff] }
 0x33e   : > { %14178 = vst [vmem:[#allocation80_spill] sm:$0xff] %v12651_v33  ;;  %v3786_v33 = vadd.f32 %v12250_v2, %v12253_v31  ;;  %v5193_v19 = vadd.f32 %v10213_v34, %v4933_v56  ;;  %v4612_v32 = vadd.f32 %v12436_v24, %v4352_v46  ;;  %v4932_v28 = vadd.f32 %v12419_v41, %v4608_v49  ;;  %v14182_v41 = vld [vmem:[#allocation7_spill] sm:$0xff]  ;;  %v12722_v56 = vpop.f32.mrf.mxu0 }
 0x33f   : > { %v12655_v50 = vpop.f32.mrf.mxu1  ;;  %v4616_v3 = vadd.f32 %v12460_v63, %v4356_v44  ;;  %v14185_v63 = vld [vmem:[#allocation10_spill] sm:$0xff]  ;;  %v5197_v35 = vadd.f32 %v12578_v4, %v4937_v30  ;;  %v4620_v4 = vadd.f32 %v12481_v16, %v4360_v36 }
 0x340   : > { %14179 = vst [vmem:[#allocation81_spill] sm:$0xff] %v12655_v50  ;;  %v3790_v50 = vadd.f32 %v12267_v62, %v12270_v18  ;;  %v4046_v2 = vadd.f32 %v12382_v54, %v3786_v33  ;;  %v4934_v18 = vadd.f32 %v12412_v23, %v12415_v47  ;;  %v5517_v23 = vadd.f32 %v12568_v11, %v5193_v19  ;;  %v14183_v33 = vld [vmem:[#allocation9_spill] sm:$0xff]  ;;  %v14186_v11 = vld [vmem:[#allocation12_spill] sm:$0xff] }
 0x341   : > { %v12659_v8 = vpop.f32.mrf.mxu1  ;;  %v4938_v48 = vadd.f32 %v14184_v52, %v14183_v33  ;;  %v4936_v29 = vadd.f32 %v14185_v63, %v4612_v32  ;;  %v4941_v38 = vadd.f32 %v14187_v61, %v14186_v11  ;;  %v5521_v16 = vadd.f32 %v12586_v7, %v5197_v35  ;;  %v14197_v11 = vld [vmem:[#allocation27_spill] sm:$0xff] }
 0x342   : > { %v4050_v31 = vadd.f32 %v12396_v39, %v3790_v50  ;;  %v12699_v39 = vadd.f32 %v12369_v15, %v4042_v9  ;;  %v5194_v47 = vadd.f32 %v12572_v42, %v4934_v18  ;;  %v12705_v51 = vadd.f32 %v12384_v13, %v4046_v2  ;;  %v12716_v15 = vld [vmem:[%s14094_s4] ss:$0 sm:$0xff]  ;;  %v14189_v9 = vld [vmem:[#allocation13_spill] sm:$0xff]  ;;  %v14190_v2 = vld [vmem:[#allocation16_spill] sm:$0xff] }
 0x343   : > { %v12674_v26 = vpop.f32.mrf.mxu1  ;;  %v4935_v42 = vadd.f32 %v14182_v41, %v12429_v60  ;;  %v5515_v13 = vadd.f32 %v12570_v58, %v5191_v27  ;;  %v5192_v50 = vadd.f32 %v12576_v57, %v4932_v28  ;;  %v12733_v60 = vld [vmem:[%s14095_s5] ss:$0 sm:$0xff]  ;;  %v14188_v57 = vld [vmem:[#allocation14_spill] sm:$0xff]  ;;  %v12742_v27 = vadd.f32 %v12462_v12, %v4616_v3 }
 0x344   : > { %v12708_v1 = vadd.f32 %v14180_v40, %v4050_v31  ;;  %v4939_v25 = vadd.f32 %v14189_v9, %v14188_v57  ;;  %v5518_v49 = vadd.f32 %v12574_v53, %v5194_v47  ;;  %v14191_v31 = vld [vmem:[#allocation15_spill] sm:$0xff]  ;;  %v12757_v12 = vadd.f32 %v12471_v17, %v12474_v43  ;;  %v14192_v41 = vld [vmem:[#allocation18_spill] sm:$0xff] }
 0x345   : > { %v12684_v62 = vpop.f32.mrf.mxu1  ;;  %v4942_v18 = vadd.f32 %v14191_v31, %v14190_v2  ;;  %v5195_v44 = vadd.f32 %v12582_v20, %v4935_v42  ;;  %v5516_v28 = vadd.f32 %v12580_v37, %v5192_v50  ;;  %v5198_v20 = vadd.f32 %v12584_v0, %v4938_v48  ;;  %v14193_v42 = vld [vmem:[#allocation17_spill] sm:$0xff]  ;;  %v14195_v43 = vld [vmem:[#allocation55_spill] sm:$0xff]  ;;  %v14199_v57 = vld [vmem:[#allocation54_spill] sm:$0xff] }
 0x346   : > { %v12768_v22 = vadd.f32 %v14194_v6, %v4620_v4  ;;  %v14196_v50 = vld [vmem:[#allocation53_spill] sm:$0xff]  ;;  %v4624_v61 = vadd.f32 %v14197_v11, %v4364_v14  ;;  %v14198_v35 = vld [vmem:[#allocation59_spill] sm:$0xff]  ;;  %v5201_v9 = vadd.f32 %v14199_v57, %v4941_v38 }
 0x347   : > { %v12696_v54 = vpop.f32.mrf.mxu1  ;;  %v5519_v17 = vadd.f32 %v14195_v43, %v5195_v44  ;;  %v5196_v7 = vadd.f32 %v14196_v50, %v4936_v29  ;;  %v14201_v44 = vld [vmem:[#allocation21_spill] sm:$0xff] }
 0x348   : > { %v14208_v6 = vld [vmem:[#allocation25_spill] sm:$0xff] }
 0x349   : > { %v10281_v24 = vpop.f32.mrf.mxu1  ;;  %v14213_v57 = vld [vmem:[#allocation29_spill] sm:$0xff] }
 0x34a   : > { %v5777_v34 = vadd.f32 %v10281_v24, %v5517_v23  ;;  %v12747_v23 = vpop.f32.mrf.mxu0 }
 0x34b   : > { %v5648_v58 = vpop.f32.mrf.mxu1 }
 0x34c   : > { %v5816_v19 = vmul.f32 %v12716_v15, %v5777_v34  ;;  %v5775_v46 = vadd.f32 %v5648_v58, %v5515_v13  ;;  %v12765_v13 = vadd.f32 %v14193_v42, %v14192_v41  ;;  %v12772_v0 = vpop.f32.mrf.mxu0  ;;  %v5522_v58 = vadd.f32 %v14198_v35, %v5198_v20  ;;  %v14207_v42 = vld [vmem:[#allocation26_spill] sm:$0xff] }
 0x34d   : > { %v10282_v32 = vpop.f32.mrf.mxu1  ;;  %v12804_v43 = vadd.f32 %v14208_v6, %v14207_v42 }
 0x34e   : > { %v5855_v53 = vadd.f32 %v12733_v60, %v5816_v19  ;;  %v5814_v47 = vmul.f32 %v12716_v15, %v5775_v46  ;;  %v5778_v40 = vadd.f32 %v10282_v32, %v5518_v49  ;;  %v14200_v19 = vld [vmem:[#allocation22_spill] sm:$0xff]  ;;  %v14202_v32 = vld [vmem:[#allocation20_spill] sm:$0xff] }
 0x34f   : > { %v5651_v37 = vpop.f32.mrf.mxu1  ;;  %v12782_v29 = vsel %vm756_vm0, %v14200_v19, 0  ;;  %v12789_v14 = vadd.f32 %v14202_v32, %v14201_v44 }
 0x350   : > { %v5887_v36 = vmax.f32 %v5855_v53, 0.0  ;;  %v5853_v30 = vadd.f32 %v12733_v60, %v5814_v47  ;;  %v5817_v3 = vmul.f32 %v12716_v15, %v5778_v40  ;;  %v5776_v24 = vadd.f32 %v5651_v37, %v5516_v28  ;;  %v14203_v28 = vld [vmem:[#allocation24_spill] sm:$0xff]  ;;  %v14204_v53 = vld [vmem:[#allocation23_spill] sm:$0xff]  ;;  %v14205_v47 = vld [vmem:[#allocation62_spill] sm:$0xff] }
 0x351   : > { %v10285_v34 = vpop.f32.mrf.mxu1  ;;  %v12793_v38 = vadd.f32 %v14204_v53, %v14203_v28  ;;  %v5520_v40 = vadd.f32 %v14205_v47, %v5196_v7  ;;  %v14210_v7 = vld [vmem:[#allocation65_spill] sm:$0xff]  ;;  %v14217_v47 = vld [vmem:[#allocation32_spill] sm:$0xff] }
 0x352   : > { %5974 = vst.msk [vmem:[#allocation4 + $0x31] sm:$0xff] %vm354_vm1, %v5887_v36  ;;  %v5885_v33 = vmax.f32 %v5853_v30, 0.0  ;;  %v5856_v52 = vadd.f32 %v12733_v60, %v5817_v3  ;;  %v5815_v48 = vmul.f32 %v12716_v15, %v5776_v24  ;;  %v5781_v63 = vadd.f32 %v10285_v34, %v5521_v16  ;;  %v14206_v16 = vld [vmem:[#allocation56_spill] sm:$0xff]  ;;  %v12797_v36 = vpop.f32.mrf.mxu0  ;;  %v14211_v34 = vld [vmem:[#allocation58_spill] sm:$0xff] }
 0x353   : > { %v5664_v49 = vpop.f32.mrf.mxu1  ;;  %v5199_v20 = vadd.f32 %v14206_v16, %v4939_v25  ;;  %v5525_v25 = vadd.f32 %v14210_v7, %v5201_v9  ;;  %v14222_v7 = vld [vmem:[#allocation34_spill] sm:$0xff] }
 0x354   : > { %5972 = vst.msk [vmem:[#allocation4 + $0x19] sm:$0xff] %vm354_vm1, %v5885_v33  ;;  %v5888_v46 = vmax.f32 %v5856_v52, 0.0  ;;  %v5854_v2 = vadd.f32 %v12733_v60, %v5815_v48  ;;  %v5820_v31 = vmul.f32 %v12716_v15, %v5781_v63  ;;  %v5779_v4 = vadd.f32 %v5664_v49, %v5519_v17  ;;  %v14209_v17 = vld [vmem:[#allocation28_spill] sm:$0xff] }
 0x355   : > { %v10286_v37 = vpop.f32.mrf.mxu1  ;;  %v12807_v50 = vadd.f32 %v14209_v17, %v4624_v61  ;;  %v5202_v33 = vadd.f32 %v14211_v34, %v4942_v18  ;;  %v14214_v61 = vld [vmem:[#allocation35_spill] sm:$0xff]  ;;  %v14216_v18 = vld [vmem:[#allocation60_spill] sm:$0xff] }
 0x356   : > { %5975 = vst.msk [vmem:[#allocation4 + $0x39] sm:$0xff] %vm354_vm1, %v5888_v46  ;;  %v5886_v30 = vmax.f32 %v5854_v2, 0.0  ;;  %v5859_v3 = vadd.f32 %v12733_v60, %v5820_v31  ;;  %v5818_v24 = vmul.f32 %v12716_v15, %v5779_v4  ;;  %v5782_v41 = vadd.f32 %v10286_v37, %v5522_v58  ;;  %v14212_v58 = vld [vmem:[#allocation30_spill] sm:$0xff]  ;;  %v14215_v46 = vld [vmem:[#allocation68_spill] sm:$0xff]  ;;  %v12823_v4 = vpop.f32.mrf.mxu0  ;;  %v14220_v37 = vld [vmem:[#allocation61_spill] sm:$0xff] }
 0x357   : > { %v5667_v52 = vpop.f32.mrf.mxu1  ;;  %v12816_v49 = vadd.f32 %v14213_v57, %v14212_v58  ;;  %v4628_v19 = vadd.f32 %v14214_v61, %v12699_v39  ;;  %v5523_v9 = vadd.f32 %v14215_v46, %v5199_v20  ;;  %v5200_v2 = vadd.f32 %v14216_v18, %v12742_v27  ;;  %v14219_v39 = vld [vmem:[#allocation71_spill] sm:$0xff] }
 0x358   : > { %5973 = vst.msk [vmem:[#allocation4 + $0x21] sm:$0xff] %vm354_vm1, %v5886_v30  ;;  %v5891_v48 = vmax.f32 %v5859_v3, 0.0  ;;  %v5857_v63 = vadd.f32 %v12733_v60, %v5818_v24  ;;  %v5821_v11 = vmul.f32 %v12716_v15, %v5782_v41  ;;  %v5780_v35 = vadd.f32 %v5667_v52, %v5520_v40  ;;  %v14218_v40 = vld [vmem:[#allocation31_spill] sm:$0xff] }
 0x359   : > { %v10289_v31 = vpop.f32.mrf.mxu1  ;;  %v12830_v16 = vadd.f32 %v14218_v40, %v14217_v47  ;;  %v5526_v20 = vadd.f32 %v14219_v39, %v5202_v33  ;;  %v5205_v27 = vadd.f32 %v14220_v37, %v12753_v59  ;;  %v14221_v30 = vld [vmem:[#allocation63_spill] sm:$0xff]  ;;  %v14224_v33 = vld [vmem:[#allocation36_spill] sm:$0xff]  ;;  %v5524_v59 = vadd.f32 %v12635_v10, %v5200_v2  ;;  %v14227_v10 = vld [vmem:[#allocation66_spill] sm:$0xff] }
 0x35a   : > { %5978 = vst.msk [vmem:[#allocation4 + $0x61] sm:$0xff] %vm354_vm1, %v5891_v48  ;;  %v5889_v44 = vmax.f32 %v5857_v63, 0.0  ;;  %v5860_v32 = vadd.f32 %v12733_v60, %v5821_v11  ;;  %v5819_v28 = vmul.f32 %v12716_v15, %v5780_v35  ;;  %v5785_v53 = vadd.f32 %v10289_v31, %v5525_v25  ;;  %v14223_v25 = vld [vmem:[#allocation33_spill] sm:$0xff]  ;;  %v12850_v11 = vpop.f32.mrf.mxu0 }
 0x35b   : > { %v5203_v3 = vadd.f32 %v14221_v30, %v12757_v12  ;;  %v5680_v24 = vpop.f32.mrf.mxu1  ;;  %v12842_v34 = vadd.f32 %v14223_v25, %v14222_v7  ;;  %v12845_v52 = vadd.f32 %v14224_v33, %v4628_v19  ;;  %v14225_v12 = vld [vmem:[#allocation64_spill] sm:$0xff]  ;;  %v5529_v19 = vadd.f32 %v12641_v5, %v5205_v27  ;;  %v6015_v37 = vld [vmem:[#allocation4 + $0x18] sm:$0xff]  ;;  %v6017_v33 = vld [vmem:[#allocation4 + $0x30] sm:$0xff] }
 0x35c   : > { %5976 = vst.msk [vmem:[#allocation4 + $0x49] sm:$0xff] %vm354_vm1, %v5889_v44  ;;  %v5892_v41 = vmax.f32 %v5860_v32, 0.0  ;;  %v5858_v42 = vadd.f32 %v12733_v60, %v5819_v28  ;;  %v5824_v6 = vmul.f32 %v12716_v15, %v5785_v53  ;;  %v5783_v17 = vadd.f32 %v5680_v24, %v5523_v9  ;;  %v14226_v9 = vld [vmem:[#allocation78_spill] sm:$0xff]  ;;  %v14228_v28 = vld [vmem:[#allocation57_spill] sm:$0xff] }
 0x35d   : > { %v5206_v48 = vadd.f32 %v14225_v12, %v12765_v13  ;;  %v10290_v63 = vpop.f32.mrf.mxu1  ;;  %v6066_v46 = vld [vmem:[#allocation4 + $0x39] sm:$0xff]  ;;  %v5527_v18 = vadd.f32 %v14226_v9, %v5203_v3  ;;  %v5204_v2 = vadd.f32 %v14227_v10, %v12768_v22  ;;  %v6065_v32 = vld [vmem:[#allocation4 + $0x31] sm:$0xff]  ;;  %v6922_v53 = vsel %vm756_vm0, %v14228_v28, 0 }
 0x35e   : > { %5979 = vst.msk [vmem:[#allocation4 + $0x69] sm:$0xff] %vm354_vm1, %v5892_v41  ;;  %v5890_v35 = vmax.f32 %v5858_v42, 0.0  ;;  %v5863_v58 = vadd.f32 %v12733_v60, %v5824_v6  ;;  %v5822_v57 = vmul.f32 %v12716_v15, %v5783_v17  ;;  %v5786_v61 = vadd.f32 %v10290_v63, %v5526_v20  ;;  %v6063_v20 = vld [vmem:[#allocation4 + $0x19] sm:$0xff]  ;;  %v12871_v42 = vpop.f32.mrf.mxu0  ;;  %v14230_v12 = vld [vmem:[#allocation69_spill] sm:$0xff] }
 0x35f   : > { %v5683_v13 = vpop.f32.mrf.mxu1  ;;  %v6064_v31 = vld [vmem:[#allocation4 + $0x21] sm:$0xff]  ;;  %v6018_v27 = vld [vmem:[#allocation4 + $0x38] sm:$0xff]  ;;  %v5530_v22 = vadd.f32 %v12653_v21, %v5206_v48  ;;  %v12869_v41 = vpack.c.bf16 %v6066_v46, %v6065_v32  ;;  %v5207_v48 = vadd.f32 %v14230_v12, %v12793_v38  ;;  %v14232_v9 = vld [vmem:[#allocation37_spill] sm:$0xff] }
 0x360   : > { %v6016_v44 = vld [vmem:[#allocation4 + $0x20] sm:$0xff]  ;;  %5977 = vst.msk [vmem:[#allocation4 + $0x51] sm:$0xff] %vm354_vm1, %v5890_v35  ;;  %v5895_v47 = vmax.f32 %v5863_v58, 0.0  ;;  %v5861_v40 = vadd.f32 %v12733_v60, %v5822_v57  ;;  %v5825_v39 = vmul.f32 %v12716_v15, %v5786_v61  ;;  %v5784_v5 = vadd.f32 %v5683_v13, %v5524_v59  ;;  %v12889_v58 = vld [vmem:[%s14096_s6 + $0x8] sm:$0x3]  ;;  %v12911_v28 = vpop.f32.mrf.mxu0 }
 0x361   : > { %v10293_v30 = vpop.f32.mrf.mxu1  ;;  %v12865_v3 = vpack.c.bf16 %v6064_v31, %v6063_v20  ;;  %v12867_v24 = vpack.c.bf16 %v6016_v44, %v6015_v37  ;;  %v14229_v21 = vld [vmem:[#allocation67_spill] sm:$0xff]  ;;  %v12884_v35 = vpack.c.bf16 %v6018_v27, %v6017_v33  ;;  %v5528_v44 = vadd.f32 %v12667_v55, %v5204_v2  ;;  %v14235_v20 = vld [vmem:[#allocation72_spill] sm:$0xff] }
 0x362   : > { %5982 = vst.msk [vmem:[#allocation4 + $0x91] sm:$0xff] %vm354_vm1, %v5895_v47  ;;  %v5893_v6 = vmax.f32 %v5861_v40, 0.0  ;;  %v5864_v17 = vadd.f32 %v12733_v60, %v5825_v39  ;;  %v5823_v7 = vmul.f32 %v12716_v15, %v5784_v5  ;;  %v5789_v25 = vadd.f32 %v10293_v30, %v5529_v19  ;;  %v14231_v19 = vld [vmem:[#allocation38_spill] sm:$0xff]  ;;  %v14233_v13 = vld [vmem:[#allocation43_spill] sm:$0xff] }
 0x363   : > { %v5209_v59 = vadd.f32 %v14229_v21, %v12789_v14  ;;  %10314 = vmatmul.mubr.msk.bf16.vlgmr.msra.gmra.mxu0 %vm354_vm1, %v12865_v3  ;;  %10348 = vmatmul.mubr.msk.bf16.vlgmr.msra.gmra.mxu1 %vm354_vm1, %v12867_v24  ;;  %v5696_v63 = vpop.f32.mrf.mxu1  ;;  %v12894_v14 = vld [vmem:[%s14096_s6 + $0xa] sm:$0x3]  ;;  %v12904_v10 = vadd.f32 %v14232_v9, %v14231_v19  ;;  %v4632_v31 = vadd.f32 %v14233_v13, %v12705_v51  ;;  %v14234_v51 = vld [vmem:[#allocation70_spill] sm:$0xff]  ;;  %v14236_v9 = vld [vmem:[#allocation73_spill] sm:$0xff] }
 0x364   : > { %5980 = vst.msk [vmem:[#allocation4 + $0x79] sm:$0xff] %vm354_vm1, %v5893_v6  ;;  %v5896_v38 = vmax.f32 %v5864_v17, 0.0  ;;  %v5862_v57 = vadd.f32 %v12733_v60, %v5823_v7  ;;  %v5828_v61 = vmul.f32 %v12716_v15, %v5789_v25  ;;  %10380 = vmatpush3.bf16.msra.mxu0 %v12782_v29  ;;  %v5787_v46 = vadd.f32 %v5696_v63, %v5527_v18  ;;  %v6069_v6 = vld [vmem:[#allocation4 + $0x61] sm:$0xff]  ;;  %v6067_v33 = vld [vmem:[#allocation4 + $0x49] sm:$0xff]  ;;  %v12937_v63 = vpop.f32.mrf.mxu0 }
 0x365   : > { %10317 = vmatprep.mubr.msk.bf16.mxu0 %vm354_vm1, %v12869_v41  ;;  %10351 = vmatprep.mubr.msk.bf16.mxu1 %vm354_vm1, %v12884_v35  ;;  %v10294_v32 = vpop.f32.mrf.mxu1  ;;  %v6070_v39 = vld [vmem:[#allocation4 + $0x69] sm:$0xff]  ;;  %v5533_v55 = vadd.f32 %v12688_v45, %v5209_v59  ;;  %v5210_v2 = vadd.f32 %v14234_v51, %v12804_v43  ;;  %v5208_v37 = vadd.f32 %v14235_v20, %v12807_v50  ;;  %v6021_v43 = vld [vmem:[#allocation4 + $0x60] sm:$0xff] }
 0x366   : > { %10414 = vmatpush3.bf16.msra.mxu1 %v6922_v53  ;;  %5983 = vst.msk [vmem:[#allocation4 + $0x99] sm:$0xff] %vm354_vm1, %v5896_v38  ;;  %v5894_v29 = vmax.f32 %v5862_v57, 0.0  ;;  %v5867_v18 = vadd.f32 %v12733_v60, %v5828_v61  ;;  %v5826_v47 = vmul.f32 %v12716_v15, %v5787_v46  ;;  %v5790_v40 = vadd.f32 %v10294_v32, %v5530_v22  ;;  %v6022_v5 = vld [vmem:[#allocation4 + $0x68] sm:$0xff] }
 0x367   : > { %10642 = vmatprep.subr.msk.bf16.mxu0 %vm756_vm0, %v12889_v58  ;;  %10643 = vmatprep.subr.msk.bf16.mxu1 %vm756_vm0, %v12894_v14  ;;  %v5531_v53 = vadd.f32 %v12722_v56, %v5207_v48  ;;  %v5699_v27 = vpop.f32.mrf.mxu1  ;;  %v6068_v22 = vld [vmem:[#allocation4 + $0x51] sm:$0xff]  ;;  %v6019_v21 = vld [vmem:[#allocation4 + $0x48] sm:$0xff]  ;;  %v12933_v50 = vpack.c.bf16 %v6070_v39, %v6069_v6  ;;  %v12935_v48 = vpack.c.bf16 %v6022_v5, %v6021_v43 }
 0x368   : > { %v6020_v30 = vld [vmem:[#allocation4 + $0x50] sm:$0xff]  ;;  %5981 = vst.msk [vmem:[#allocation4 + $0x81] sm:$0xff] %vm354_vm1, %v5894_v29  ;;  %v5899_v17 = vmax.f32 %v5867_v18, 0.0  ;;  %v5865_v7 = vadd.f32 %v12733_v60, %v5826_v47  ;;  %v5829_v25 = vmul.f32 %v12716_v15, %v5790_v40  ;;  %v5788_v45 = vadd.f32 %v5699_v27, %v5528_v44  ;;  %v14237_v44 = vld [vmem:[#allocation74_spill] sm:$0xff] }
 0x369   : > { %v10297_v59 = vpop.f32.mrf.mxu1  ;;  %v12929_v56 = vpack.c.bf16 %v6068_v22, %v6067_v33  ;;  %v12931_v12 = vpack.c.bf16 %v6020_v30, %v6019_v21  ;;  %v5534_v19 = vadd.f32 %v12747_v23, %v5210_v2  ;;  %v5213_v13 = vadd.f32 %v14236_v9, %v12816_v49  ;;  %v14238_v49 = vld [vmem:[#allocation40_spill] sm:$0xff]  ;;  %v14240_v5 = vld [vmem:[#allocation42_spill] sm:$0xff] }
 0x36a   : > { %5986 = vst.msk [vmem:[#allocation4 + $0xc1] sm:$0xff] %vm354_vm1, %v5899_v17  ;;  %v5897_v38 = vmax.f32 %v5865_v7, 0.0  ;;  %v5868_v57 = vadd.f32 %v12733_v60, %v5829_v25  ;;  %v5827_v61 = vmul.f32 %v12716_v15, %v5788_v45  ;;  %v5793_v46 = vadd.f32 %v10297_v59, %v5533_v55  ;;  %v14241_v55 = vld [vmem:[#allocation41_spill] sm:$0xff]  ;;  %v14242_v2 = vld [vmem:[#allocation44_spill] sm:$0xff] }
 0x36b   : > { %v5211_v32 = vadd.f32 %v14237_v44, %v12830_v16  ;;  %10318 = vmatmul.mubr.msk.bf16.gmra.mxu0 %vm354_vm1, %v12929_v56  ;;  %10352 = vmatmul.mubr.msk.bf16.gmra.mxu1 %vm354_vm1, %v12931_v12  ;;  %v5712_v29 = vpop.f32.mrf.mxu1  ;;  %v14239_v16 = vld [vmem:[#allocation39_spill] sm:$0xff]  ;;  %v12962_v51 = vadd.f32 %v14241_v55, %v14240_v5  ;;  %v12965_v20 = vadd.f32 %v14242_v2, %v4632_v31  ;;  %v6023_v44 = vld [vmem:[#allocation4 + $0x78] sm:$0xff]  ;;  %v14245_v55 = vld [vmem:[#allocation77_spill] sm:$0xff] }
 0x36c   : > { %5984 = vst.msk [vmem:[#allocation4 + $0xa9] sm:$0xff] %vm354_vm1, %v5897_v38  ;;  %v5900_v18 = vmax.f32 %v5868_v57, 0.0  ;;  %v5866_v47 = vadd.f32 %v12733_v60, %v5827_v61  ;;  %v5832_v23 = vmul.f32 %v12716_v15, %v5793_v46  ;;  %v5791_v40 = vadd.f32 %v5712_v29, %v5531_v53  ;;  %10321 = vmatprep.mubr.msk.bf16.mxu0 %vm354_vm1, %v12933_v50  ;;  %v12968_v53 = vpop.f32.mrf.mxu0  ;;  %v14243_v31 = vld [vmem:[#allocation75_spill] sm:$0xff]  ;;  %v6073_v61 = vld [vmem:[#allocation4 + $0x91] sm:$0xff] }
 0x36d   : > { %10355 = vmatprep.mubr.msk.bf16.mxu1 %vm354_vm1, %v12935_v48  ;;  %v4955_v39 = vadd.f32 %v14239_v16, %v14238_v49  ;;  %v5532_v27 = vadd.f32 %v12772_v0, %v5208_v37  ;;  %v10298_v22 = vpop.f32.mrf.mxu1  ;;  %v6074_v25 = vld [vmem:[#allocation4 + $0x99] sm:$0xff]  ;;  %v5537_v33 = vadd.f32 %v12797_v36, %v5213_v13  ;;  %v5214_v21 = vadd.f32 %v14243_v31, %v12842_v34  ;;  %v14244_v37 = vld [vmem:[#allocation76_spill] sm:$0xff]  ;;  %v6025_v34 = vld [vmem:[#allocation4 + $0x90] sm:$0xff] }
 0x36e   : > { %5987 = vst.msk [vmem:[#allocation4 + $0xc9] sm:$0xff] %vm354_vm1, %v5900_v18  ;;  %v5898_v30 = vmax.f32 %v5866_v47, 0.0  ;;  %v5871_v6 = vadd.f32 %v12733_v60, %v5832_v23  ;;  %v5830_v17 = vmul.f32 %v12716_v15, %v5791_v40  ;;  %v5794_v7 = vadd.f32 %v10298_v22, %v5534_v19  ;;  %v6026_v45 = vld [vmem:[#allocation4 + $0x98] sm:$0xff]  ;;  %v12990_v47 = vpop.f32.mrf.mxu0 }
 0x36f   : > { %v5535_v0 = vadd.f32 %v12823_v4, %v5211_v32  ;;  %v5212_v43 = vadd.f32 %v14244_v37, %v12845_v52  ;;  %v5715_v59 = vpop.f32.mrf.mxu1  ;;  %v6072_v38 = vld [vmem:[#allocation4 + $0x81] sm:$0xff]  ;;  %v6071_v13 = vld [vmem:[#allocation4 + $0x79] sm:$0xff]  ;;  %v12986_v52 = vpack.c.bf16 %v6074_v25, %v6073_v61  ;;  %v12988_v18 = vpack.c.bf16 %v6026_v45, %v6025_v34 }
 0x370   : > { %v6024_v57 = vld [vmem:[#allocation4 + $0x80] sm:$0xff]  ;;  %5985 = vst.msk [vmem:[#allocation4 + $0xb1] sm:$0xff] %vm354_vm1, %v5898_v30  ;;  %v5903_v46 = vmax.f32 %v5871_v6, 0.0  ;;  %v5869_v19 = vadd.f32 %v12733_v60, %v5830_v17  ;;  %v5833_v9 = vmul.f32 %v12716_v15, %v5794_v7  ;;  %v5792_v36 = vadd.f32 %v5715_v59, %v5532_v27  ;;  %v14249_v45 = vld [vmem:[#allocation48_spill] sm:$0xff] }
 0x371   : > { %v10301_v29 = vpop.f32.mrf.mxu1  ;;  %v12982_v4 = vpack.c.bf16 %v6072_v38, %v6071_v13  ;;  %v12984_v32 = vpack.c.bf16 %v6024_v57, %v6023_v44  ;;  %v5538_v5 = vadd.f32 %v12850_v11, %v5214_v21  ;;  %v5217_v2 = vadd.f32 %v14245_v55, %v12904_v10  ;;  %v14246_v27 = vld [vmem:[#allocation79_spill] sm:$0xff]  ;;  %v14247_v10 = vld [vmem:[#allocation46_spill] sm:$0xff]  ;;  %v10275_v57 = vpop.f32.mrf.mxu0  ;;  %v14252_v44 = vld [vmem:[#allocation80_spill] sm:$0xff] }
 0x372   : > { %5990 = vst.msk [vmem:[#allocation4 + $0xf1] sm:$0xff] %vm354_vm1, %v5903_v46  ;;  %v5901_v23 = vmax.f32 %v5869_v19, 0.0  ;;  %v5872_v40 = vadd.f32 %v12733_v60, %v5833_v9  ;;  %v5831_v49 = vmul.f32 %v12716_v15, %v5792_v36  ;;  %v5797_v16 = vadd.f32 %v10301_v29, %v5537_v33  ;;  %v14250_v33 = vld [vmem:[#allocation47_spill] sm:$0xff] }
 0x373   : > { %v5215_v22 = vadd.f32 %v14246_v27, %v4955_v39  ;;  %10322 = vmatmul.mubr.msk.bf16.gmra.mxu0 %vm354_vm1, %v12982_v4  ;;  %10356 = vmatmul.mubr.msk.bf16.gmra.mxu1 %vm354_vm1, %v12984_v32  ;;  %v5728_v30 = vpop.f32.mrf.mxu1  ;;  %v14248_v39 = vld [vmem:[#allocation45_spill] sm:$0xff]  ;;  %v4959_v31 = vadd.f32 %v14250_v33, %v14249_v45  ;;  %v14251_v21 = vld [vmem:[#allocation51_spill] sm:$0xff]  ;;  %v5536_v59 = vadd.f32 %v12871_v42, %v5212_v43  ;;  %v6027_v27 = vld [vmem:[#allocation4 + $0xa8] sm:$0xff] }
 0x374   : > { %5988 = vst.msk [vmem:[#allocation4 + $0xd9] sm:$0xff] %vm354_vm1, %v5901_v23  ;;  %v5904_v6 = vmax.f32 %v5872_v40, 0.0  ;;  %v5870_v17 = vadd.f32 %v12733_v60, %v5831_v49  ;;  %v5836_v7 = vmul.f32 %v12716_v15, %v5797_v16  ;;  %v5795_v11 = vadd.f32 %v5728_v30, %v5535_v0  ;;  %10325 = vmatprep.mubr.msk.bf16.mxu0 %vm354_vm1, %v12986_v52  ;;  %v14253_v42 = vld [vmem:[#allocation81_spill] sm:$0xff]  ;;  %v6077_v49 = vld [vmem:[#allocation4 + $0xc1] sm:$0xff] }
 0x375   : > { %10359 = vmatprep.mubr.msk.bf16.mxu1 %vm354_vm1, %v12988_v18  ;;  %v4961_v25 = vadd.f32 %v14248_v39, %v14247_v10  ;;  %v4636_v37 = vadd.f32 %v14251_v21, %v12708_v1  ;;  %v10302_v38 = vpop.f32.mrf.mxu1  ;;  %v6078_v9 = vld [vmem:[#allocation4 + $0xc9] sm:$0xff]  ;;  %v5541_v13 = vadd.f32 %v12911_v28, %v5217_v2  ;;  %v5218_v34 = vadd.f32 %v14252_v44, %v12962_v51  ;;  %v6029_v51 = vld [vmem:[#allocation4 + $0xc0] sm:$0xff] }
 0x376   : > { %5991 = vst.msk [vmem:[#allocation4 + $0xf9] sm:$0xff] %vm354_vm1, %v5904_v6  ;;  %v5902_v0 = vmax.f32 %v5870_v17, 0.0  ;;  %v5875_v61 = vadd.f32 %v12733_v60, %v5836_v7  ;;  %v5834_v46 = vmul.f32 %v12716_v15, %v5795_v11  ;;  %v5798_v19 = vadd.f32 %v10302_v38, %v5538_v5  ;;  %v6030_v36 = vld [vmem:[#allocation4 + $0xc8] sm:$0xff]  ;;  %v5500_v17 = vpop.f32.mrf.mxu0 }
 0x377   : > { %v5539_v1 = vadd.f32 %v12937_v63, %v5215_v22  ;;  %v5216_v43 = vadd.f32 %v14253_v42, %v12965_v20  ;;  %v5731_v29 = vpop.f32.mrf.mxu1  ;;  %v6076_v23 = vld [vmem:[#allocation4 + $0xb1] sm:$0xff]  ;;  %v6075_v2 = vld [vmem:[#allocation4 + $0xa9] sm:$0xff]  ;;  %v13033_v20 = vpack.c.bf16 %v6078_v9, %v6077_v49  ;;  %v13035_v6 = vpack.c.bf16 %v6030_v36, %v6029_v51 }
 0x378   : > { %v6028_v40 = vld [vmem:[#allocation4 + $0xb0] sm:$0xff]  ;;  %5989 = vst.msk [vmem:[#allocation4 + $0xe1] sm:$0xff] %vm354_vm1, %v5902_v0  ;;  %v5907_v16 = vmax.f32 %v5875_v61, 0.0  ;;  %v5873_v5 = vadd.f32 %v12733_v60, %v5834_v46  ;;  %v5837_v55 = vmul.f32 %v12716_v15, %v5798_v19  ;;  %v5796_v28 = vadd.f32 %v5731_v29, %v5536_v59  ;;  %v10276_v36 = vpop.f32.mrf.mxu0 }
 0x379   : > { %v10305_v30 = vpop.f32.mrf.mxu1  ;;  %v13029_v63 = vpack.c.bf16 %v6076_v23, %v6075_v2  ;;  %v13031_v22 = vpack.c.bf16 %v6028_v40, %v6027_v27  ;;  %v5542_v45 = vadd.f32 %v12968_v53, %v5218_v34  ;;  %v5221_v33 = vadd.f32 %v12659_v8, %v4961_v25  ;;  %v14254_v8 = vld [vmem:[#allocation50_spill] sm:$0xff]  ;;  %v14256_v25 = vld [vmem:[#allocation52_spill] sm:$0xff] }
 0x37a   : > { %5994 = vst.msk [vmem:[#allocation4 + $0x121] sm:$0xff] %vm354_vm1, %v5907_v16  ;;  %v5905_v7 = vmax.f32 %v5873_v5, 0.0  ;;  %v5876_v11 = vadd.f32 %v12733_v60, %v5837_v55  ;;  %v5835_v10 = vmul.f32 %v12716_v15, %v5796_v28  ;;  %v5801_v39 = vadd.f32 %v10305_v30, %v5541_v13  ;;  %v6081_v5 = vld [vmem:[#allocation4 + $0xf1] sm:$0xff] }
 0x37b   : > { %v5219_v21 = vadd.f32 %v12674_v26, %v4959_v31  ;;  %10326 = vmatmul.mubr.msk.bf16.gmra.mxu0 %vm354_vm1, %v13029_v63  ;;  %10360 = vmatmul.mubr.msk.bf16.gmra.mxu1 %vm354_vm1, %v13031_v22  ;;  %v5744_v59 = vpop.f32.mrf.mxu1  ;;  %v14255_v26 = vld [vmem:[#allocation49_spill] sm:$0xff]  ;;  %v4960_v31 = vadd.f32 %v14256_v25, %v4636_v37  ;;  %v5540_v19 = vadd.f32 %v12990_v47, %v5216_v43  ;;  %v6079_v51 = vld [vmem:[#allocation4 + $0xd9] sm:$0xff] }
 0x37c   : > { %5992 = vst.msk [vmem:[#allocation4 + $0x109] sm:$0xff] %vm354_vm1, %v5905_v7  ;;  %v5908_v38 = vmax.f32 %v5876_v11, 0.0  ;;  %v5874_v0 = vadd.f32 %v12733_v60, %v5835_v10  ;;  %v5840_v61 = vmul.f32 %v12716_v15, %v5801_v39  ;;  %v5799_v46 = vadd.f32 %v5744_v59, %v5539_v1  ;;  %10329 = vmatprep.mubr.msk.bf16.mxu0 %vm354_vm1, %v13033_v20  ;;  %v6031_v30 = vld [vmem:[#allocation4 + $0xd8] sm:$0xff]  ;;  %v5503_v10 = vpop.f32.mrf.mxu0 }
 0x37d   : > { %10363 = vmatprep.mubr.msk.bf16.mxu1 %vm354_vm1, %v13035_v6  ;;  %v4962_v53 = vadd.f32 %v14255_v26, %v14254_v8  ;;  %v10306_v9 = vpop.f32.mrf.mxu1  ;;  %v6082_v42 = vld [vmem:[#allocation4 + $0xf9] sm:$0xff]  ;;  %v5545_v23 = vadd.f32 %v10275_v57, %v5221_v33  ;;  %v5543_v49 = vadd.f32 %v5500_v17, %v5219_v21  ;;  %v5220_v37 = vadd.f32 %v12696_v54, %v4960_v31  ;;  %v6033_v57 = vld [vmem:[#allocation4 + $0xf0] sm:$0xff] }
 0x37e   : > { %5995 = vst.msk [vmem:[#allocation4 + $0x129] sm:$0xff] %vm354_vm1, %v5908_v38  ;;  %v5906_v13 = vmax.f32 %v5874_v0, 0.0  ;;  %v5879_v44 = vadd.f32 %v12733_v60, %v5840_v61  ;;  %v5838_v34 = vmul.f32 %v12716_v15, %v5799_v46  ;;  %v5802_v1 = vadd.f32 %v10306_v9, %v5542_v45  ;;  %v6034_v29 = vld [vmem:[#allocation4 + $0xf8] sm:$0xff] }
 0x37f   : > { %v5222_v40 = vadd.f32 %v12684_v62, %v4962_v53  ;;  %v5747_v16 = vpop.f32.mrf.mxu1  ;;  %v6080_v47 = vld [vmem:[#allocation4 + $0xe1] sm:$0xff]  ;;  %v13070_v54 = vpack.c.bf16 %v6082_v42, %v6081_v5  ;;  %v13072_v11 = vpack.c.bf16 %v6034_v29, %v6033_v57  ;;  %v5544_v26 = vadd.f32 %v5503_v10, %v5220_v37 }
 0x380   : > { %v6032_v43 = vld [vmem:[#allocation4 + $0xe0] sm:$0xff]  ;;  %5993 = vst.msk [vmem:[#allocation4 + $0x111] sm:$0xff] %vm354_vm1, %v5906_v13  ;;  %v5911_v55 = vmax.f32 %v5879_v44, 0.0  ;;  %v5877_v28 = vadd.f32 %v12733_v60, %v5838_v34  ;;  %v5841_v2 = vmul.f32 %v12716_v15, %v5802_v1  ;;  %v5800_v27 = vadd.f32 %v5747_v16, %v5540_v19 }
 0x381   : > { %v10309_v7 = vpop.f32.mrf.mxu1  ;;  %v13066_v62 = vpack.c.bf16 %v6080_v47, %v6079_v51  ;;  %v13068_v17 = vpack.c.bf16 %v6032_v43, %v6031_v30  ;;  %v5546_v59 = vadd.f32 %v10276_v36, %v5222_v40  ;;  %v6085_v16 = vld [vmem:[#allocation4 + $0x121] sm:$0xff] }
 0x382   : > { %5998 = vst.msk [vmem:[#allocation4 + $0x151] sm:$0xff] %vm354_vm1, %v5911_v55  ;;  %v5909_v39 = vmax.f32 %v5877_v28, 0.0  ;;  %v5880_v45 = vadd.f32 %v12733_v60, %v5841_v2  ;;  %v5839_v33 = vmul.f32 %v12716_v15, %v5800_v27  ;;  %v5805_v21 = vadd.f32 %v10309_v7, %v5545_v23  ;;  %v6037_v55 = vld [vmem:[#allocation4 + $0x120] sm:$0xff] }
 0x383   : > { %10330 = vmatmul.mubr.msk.bf16.gmra.mxu0 %vm354_vm1, %v13066_v62  ;;  %10364 = vmatmul.mubr.msk.bf16.gmra.mxu1 %vm354_vm1, %v13068_v17  ;;  %v5760_v38 = vpop.f32.mrf.mxu1  ;;  %v6035_v37 = vld [vmem:[#allocation4 + $0x108] sm:$0xff] }
 0x384   : > { %5996 = vst.msk [vmem:[#allocation4 + $0x139] sm:$0xff] %vm354_vm1, %v5909_v39  ;;  %v5912_v0 = vmax.f32 %v5880_v45, 0.0  ;;  %v5878_v61 = vadd.f32 %v12733_v60, %v5839_v33  ;;  %v5844_v46 = vmul.f32 %v12716_v15, %v5805_v21  ;;  %v5803_v8 = vadd.f32 %v5760_v38, %v5543_v49  ;;  %10333 = vmatprep.mubr.msk.bf16.mxu0 %vm354_vm1, %v13070_v54  ;;  %v6083_v49 = vld [vmem:[#allocation4 + $0x109] sm:$0xff] }
 0x385   : > { %10367 = vmatprep.mubr.msk.bf16.mxu1 %vm354_vm1, %v13072_v11  ;;  %v10310_v53 = vpop.f32.mrf.mxu1  ;;  %v6086_v36 = vld [vmem:[#allocation4 + $0x129] sm:$0xff] }
 0x386   : > { %5999 = vst.msk [vmem:[#allocation4 + $0x159] sm:$0xff] %vm354_vm1, %v5912_v0  ;;  %v5910_v25 = vmax.f32 %v5878_v61, 0.0  ;;  %v5883_v31 = vadd.f32 %v12733_v60, %v5844_v46  ;;  %v5842_v19 = vmul.f32 %v12716_v15, %v5803_v8  ;;  %v5806_v9 = vadd.f32 %v10310_v53, %v5546_v59  ;;  %v6038_v1 = vld [vmem:[#allocation4 + $0x128] sm:$0xff] }
 0x387   : > { %v5763_v13 = vpop.f32.mrf.mxu1  ;;  %v6084_v44 = vld [vmem:[#allocation4 + $0x111] sm:$0xff]  ;;  %v13098_v5 = vpack.c.bf16 %v6086_v36, %v6085_v16  ;;  %v13103_v51 = vpack.c.bf16 %v6038_v1, %v6037_v55  ;;  %v6533_v8 = vld [vmem:[#allocation4 + $0x2] sm:$0xff] }
 0x388   : > { %v6036_v34 = vld [vmem:[#allocation4 + $0x110] sm:$0xff]  ;;  %5997 = vst.msk [vmem:[#allocation4 + $0x141] sm:$0xff] %vm354_vm1, %v5910_v25  ;;  %v5915_v42 = vmax.f32 %v5883_v31, 0.0  ;;  %v5881_v29 = vadd.f32 %v12733_v60, %v5842_v19  ;;  %v5845_v23 = vmul.f32 %v12716_v15, %v5806_v9  ;;  %v5804_v40 = vadd.f32 %v5763_v13, %v5544_v26  ;;  %v6541_v16 = vld [vmem:[#allocation4 + $0x62] sm:$0xff] }
 0x389   : > { %v13094_v47 = vpack.c.bf16 %v6084_v44, %v6083_v49  ;;  %v13096_v43 = vpack.c.bf16 %v6036_v34, %v6035_v37  ;;  %v6089_v38 = vld [vmem:[#allocation4 + $0x151] sm:$0xff]  ;;  %v6535_v44 = vld [vmem:[#allocation4 + $0x1a] sm:$0xff]  ;;  %v6536_v34 = vld [vmem:[#allocation4 + $0x22] sm:$0xff]  ;;  %v7506_v49 = vsel %vm756_vm0, %v12894_v14, 0 }
 0x38a   : > { %6002 = vst.msk [vmem:[#allocation4 + $0x181] sm:$0xff] %vm354_vm1, %v5915_v42  ;;  %v5913_v28 = vmax.f32 %v5881_v29, 0.0  ;;  %v5884_v2 = vadd.f32 %v12733_v60, %v5845_v23  ;;  %v5843_v27 = vmul.f32 %v12716_v15, %v5804_v40  ;;  %v6041_v0 = vld [vmem:[#allocation4 + $0x150] sm:$0xff]  ;;  %v6538_v42 = vld [vmem:[#allocation4 + $0x3a] sm:$0xff]  ;;  %v13144_v29 = vpack.c.bf16 %v6536_v34, %v6535_v44  ;;  %v6557_v34 = vld [vmem:[#allocation4 + $0x122] sm:$0xff] }
 0x38b   : > { %10334 = vmatmul.mubr.msk.bf16.gmra.mxu0 %vm354_vm1, %v13094_v47  ;;  %10368 = vmatmul.mubr.msk.bf16.gmra.mxu1 %vm354_vm1, %v13096_v43  ;;  %v6087_v7 = vld [vmem:[#allocation4 + $0x139] sm:$0xff]  ;;  %v6534_v26 = vld [vmem:[#allocation4 + $0xa] sm:$0xff]  ;;  %v7214_v23 = vsel %vm756_vm0, %v12889_v58, 0 }
 0x38c   : > { %6000 = vst.msk [vmem:[#allocation4 + $0x169] sm:$0xff] %vm354_vm1, %v5913_v28  ;;  %v5916_v30 = vmax.f32 %v5884_v2, 0.0  ;;  %v5882_v57 = vadd.f32 %v12733_v60, %v5843_v27  ;;  %10337 = vmatprep.mubr.msk.bf16.mxu0 %vm354_vm1, %v13098_v5  ;;  %10371 = vmatprep.mubr.msk.bf16.mxu1 %vm354_vm1, %v13103_v51  ;;  %v6039_v10 = vld [vmem:[#allocation4 + $0x138] sm:$0xff]  ;;  %v6565_v13 = vpack.c.bf16 %v6534_v26, %v6533_v8  ;;  %v13164_v58 = vld [vmem:[%s14096_s6 + $0xe] sm:$0x3]  ;;  %v6552_v26 = vld [vmem:[#allocation4 + $0xe2] sm:$0xff] }
 0x38d   : > { %v6090_v39 = vld [vmem:[#allocation4 + $0x159] sm:$0xff]  ;;  %v6539_v14 = vld [vmem:[#allocation4 + $0x4a] sm:$0xff] }
 0x38e   : > { %6003 = vst.msk [vmem:[#allocation4 + $0x189] sm:$0xff] %vm354_vm1, %v5916_v30  ;;  %v5914_v15 = vmax.f32 %v5882_v57, 0.0  ;;  %v6042_v21 = vld [vmem:[#allocation4 + $0x158] sm:$0xff]  ;;  %v13121_v61 = vpack.c.bf16 %v6090_v39, %v6089_v38  ;;  %v6542_v55 = vld [vmem:[#allocation4 + $0x6a] sm:$0xff]  ;;  %v6544_v30 = vld [vmem:[#allocation4 + $0x82] sm:$0xff] }
 0x38f   : > { %v6088_v45 = vld [vmem:[#allocation4 + $0x141] sm:$0xff]  ;;  %v13123_v46 = vpack.c.bf16 %v6042_v21, %v6041_v0  ;;  %v6537_v1 = vld [vmem:[#allocation4 + $0x32] sm:$0xff]  ;;  %v13176_v2 = vpack.c.bf16 %v6542_v55, %v6541_v16  ;;  %v6547_v39 = vld [vmem:[#allocation4 + $0xaa] sm:$0xff] }
 0x390   : > { %v6040_v33 = vld [vmem:[#allocation4 + $0x140] sm:$0xff]  ;;  %6001 = vst.msk [vmem:[#allocation4 + $0x171] sm:$0xff] %vm354_vm1, %v5914_v15  ;;  %v13117_v59 = vpack.c.bf16 %v6088_v45, %v6087_v7  ;;  %v13148_v40 = vpack.c.bf16 %v6538_v42, %v6537_v1  ;;  %v6540_v37 = vld [vmem:[#allocation4 + $0x52] sm:$0xff]  ;;  %v6550_v21 = vld [vmem:[#allocation4 + $0xca] sm:$0xff] }
 0x391   : > { %v13119_v60 = vpack.c.bf16 %v6040_v33, %v6039_v10  ;;  %v13174_v28 = vpack.c.bf16 %v6540_v37, %v6539_v14  ;;  %v6543_v27 = vld [vmem:[#allocation4 + $0x7a] sm:$0xff]  ;;  %v6545_v57 = vld [vmem:[#allocation4 + $0x92] sm:$0xff]  ;;  %v6549_v33 = vld [vmem:[#allocation4 + $0xc2] sm:$0xff] }
 0x392   : > { %v6546_v15 = vld [vmem:[#allocation4 + $0x9a] sm:$0xff]  ;;  %v13186_v7 = vpack.c.bf16 %v6544_v30, %v6543_v27  ;;  %v6548_v45 = vld [vmem:[#allocation4 + $0xb2] sm:$0xff]  ;;  %v13200_v0 = vpack.c.bf16 %v6550_v21, %v6549_v33  ;;  %v6558_v1 = vld [vmem:[#allocation4 + $0x12a] sm:$0xff] }
 0x393   : > { %10338 = vmatmul.mubr.msk.bf16.gmra.mxu0 %vm354_vm1, %v13117_v59  ;;  %10372 = vmatmul.mubr.msk.bf16.gmra.mxu1 %vm354_vm1, %v13119_v60  ;;  %v6091_v53 = vld [vmem:[#allocation4 + $0x169] sm:$0xff]  ;;  %v13188_v10 = vpack.c.bf16 %v6546_v15, %v6545_v57  ;;  %v13198_v38 = vpack.c.bf16 %v6548_v45, %v6547_v39  ;;  %v6551_v8 = vld [vmem:[#allocation4 + $0xda] sm:$0xff]  ;;  %v6556_v44 = vld [vmem:[#allocation4 + $0x112] sm:$0xff] }
 0x394   : > { %10341 = vmatprep.mubr.msk.bf16.mxu0 %vm354_vm1, %v13121_v61  ;;  %10375 = vmatprep.mubr.msk.bf16.mxu1 %vm354_vm1, %v13123_v46  ;;  %v6043_v31 = vld [vmem:[#allocation4 + $0x168] sm:$0xff]  ;;  %v6561_v37 = vld [vmem:[#allocation4 + $0x152] sm:$0xff]  ;;  %v6562_v16 = vld [vmem:[#allocation4 + $0x15a] sm:$0xff] }
 0x395   : > { %v6560_v14 = vld [vmem:[#allocation4 + $0x142] sm:$0xff]  ;;  %v6579_v27 = vpack.c.bf16 %v6562_v16, %v6561_v37 }
 0x396   : > { %v6856_v15 = vld [vmem:[#allocation4 + $0x188] sm:$0xff]  ;;  %v6855_v39 = vld [vmem:[#allocation4 + $0x180] sm:$0xff] }
 0x397   : > { %v6092_v25 = vld [vmem:[#allocation4 + $0x171] sm:$0xff]  ;;  %v13240_v33 = vpack.c.bf16 %v6856_v15, %v6855_v39 }
 0x398   : > { %v6044_v19 = vld [vmem:[#allocation4 + $0x170] sm:$0xff]  ;;  %v13133_v9 = vpack.c.bf16 %v6092_v25, %v6091_v53  ;;  %v6554_v25 = vld [vmem:[#allocation4 + $0xfa] sm:$0xff] }
 0x399   : > { %v13135_v36 = vpack.c.bf16 %v6044_v19, %v6043_v31  ;;  %v6553_v53 = vld [vmem:[#allocation4 + $0xf2] sm:$0xff]  ;;  %v13210_v31 = vpack.c.bf16 %v6552_v26, %v6551_v8  ;;  %v6563_v30 = vld [vmem:[#allocation4 + $0x16a] sm:$0xff]  ;;  %v8091_v8 = vsel %vm756_vm0, %v13164_v58, 0 }
 0x39a   : > { %v13212_v19 = vpack.c.bf16 %v6554_v25, %v6553_v53  ;;  %v6564_v57 = vld [vmem:[#allocation4 + $0x172] sm:$0xff]  ;;  %v6012_v26 = vld [vmem:[%s14096_s6 + $0x10] sm:$0x3] }
 0x39b   : > { %10342 = vmatmul.mubr.msk.bf16.gmra.mxu0 %vm354_vm1, %v13133_v9  ;;  %10376 = vmatmul.mubr.msk.bf16.gmra.mxu1 %vm354_vm1, %v13135_v36  ;;  %v6580_v45 = vpack.c.bf16 %v6564_v57, %v6563_v30 }
 0x39c   : > { %10415 = vmatprep.mubr.msk.bf16.mxu1 %vm354_vm1, %v12867_v24  ;;  %10381 = vmatprep.mubr.msk.bf16.mxu0 %vm354_vm1, %v6565_v13  ;;  %v13159_v24 = vld [vmem:[%s14096_s6 + $0xc] sm:$0x3] }
 0x39d   : > { %v6555_v13 = vld [vmem:[#allocation4 + $0x10a] sm:$0xff]  ;;  %v7799_v21 = vsel %vm756_vm0, %v13159_v24, 0 }
 0x39e   : > { %v13222_v42 = vpack.c.bf16 %v6556_v44, %v6555_v13  ;;  %v8383_v13 = vsel %vm756_vm0, %v6012_v26, 0 }
 0x3a3   : > { %10382 = vmatmul.mubr.msk.bf16.vlgmr.msra.gmra.mxu0 %vm354_vm1, %v13144_v29  ;;  %10416 = vmatmul.mubr.msk.bf16.vlgmr.msra.gmra.mxu1 %vm354_vm1, %v12884_v35 }
 0x3a4   : > { %10448 = vmatpush3.bf16.msra.mxu0 %v7214_v23  ;;  %10385 = vmatprep.mubr.msk.bf16.mxu0 %vm354_vm1, %v13148_v40  ;;  %v13224_v23 = vpack.c.bf16 %v6558_v1, %v6557_v34 }
 0x3a5   : > { %10419 = vmatprep.mubr.msk.bf16.mxu1 %vm354_vm1, %v12931_v12  ;;  %10482 = vmatpush3.bf16.msra.mxu1 %v7506_v49  ;;  %v6559_v49 = vld [vmem:[#allocation4 + $0x13a] sm:$0xff] }
 0x3a6   : > { %10644 = vmatprep.subr.msk.bf16.mxu0 %vm756_vm0, %v13159_v24  ;;  %10645 = vmatprep.subr.msk.bf16.mxu1 %vm756_vm0, %v13164_v58  ;;  %v6578_v55 = vpack.c.bf16 %v6560_v14, %v6559_v49  ;;  %v7440_v24 = vld [vmem:[#allocation4 + $0x18a] sm:$0xff]  ;;  %v7147_v58 = vld [vmem:[#allocation4 + $0x181] sm:$0xff] }
 0x3ab   : > { %10386 = vmatmul.mubr.msk.bf16.gmra.mxu0 %vm354_vm1, %v13174_v28  ;;  %10420 = vmatmul.mubr.msk.bf16.gmra.mxu1 %vm354_vm1, %v12935_v48 }
 0x3ac   : > { %10389 = vmatprep.mubr.msk.bf16.mxu0 %vm354_vm1, %v13176_v2  ;;  %10423 = vmatprep.mubr.msk.bf16.mxu1 %vm354_vm1, %v12984_v32 }
 0x3b3   : > { %10390 = vmatmul.mubr.msk.bf16.gmra.mxu0 %vm354_vm1, %v13186_v7  ;;  %10424 = vmatmul.mubr.msk.bf16.gmra.mxu1 %vm354_vm1, %v12988_v18 }
 0x3b4   : > { %10393 = vmatprep.mubr.msk.bf16.mxu0 %vm354_vm1, %v13188_v10  ;;  %10427 = vmatprep.mubr.msk.bf16.mxu1 %vm354_vm1, %v13031_v22 }
 0x3bb   : > { %10394 = vmatmul.mubr.msk.bf16.gmra.mxu0 %vm354_vm1, %v13198_v38  ;;  %10428 = vmatmul.mubr.msk.bf16.gmra.mxu1 %vm354_vm1, %v13035_v6 }
 0x3bc   : > { %10397 = vmatprep.mubr.msk.bf16.mxu0 %vm354_vm1, %v13200_v0  ;;  %10431 = vmatprep.mubr.msk.bf16.mxu1 %vm354_vm1, %v13068_v17 }
 0x3c3   : > { %10398 = vmatmul.mubr.msk.bf16.gmra.mxu0 %vm354_vm1, %v13210_v31  ;;  %10432 = vmatmul.mubr.msk.bf16.gmra.mxu1 %vm354_vm1, %v13072_v11 }
 0x3c4   : > { %10401 = vmatprep.mubr.msk.bf16.mxu0 %vm354_vm1, %v13212_v19  ;;  %10435 = vmatprep.mubr.msk.bf16.mxu1 %vm354_vm1, %v13096_v43 }
 0x3cb   : > { %10402 = vmatmul.mubr.msk.bf16.gmra.mxu0 %vm354_vm1, %v13222_v42  ;;  %10436 = vmatmul.mubr.msk.bf16.gmra.mxu1 %vm354_vm1, %v13103_v51 }
 0x3cc   : > { %10405 = vmatprep.mubr.msk.bf16.mxu0 %vm354_vm1, %v13224_v23  ;;  %10439 = vmatprep.mubr.msk.bf16.mxu1 %vm354_vm1, %v13119_v60 }
 0x3d3   : > { %10406 = vmatmul.mubr.msk.bf16.gmra.mxu0 %vm354_vm1, %v6578_v55  ;;  %10440 = vmatmul.mubr.msk.bf16.gmra.mxu1 %vm354_vm1, %v13123_v46 }
 0x3d4   : > { %10409 = vmatprep.mubr.msk.bf16.mxu0 %vm354_vm1, %v6579_v27  ;;  %10443 = vmatprep.mubr.msk.bf16.mxu1 %vm354_vm1, %v13135_v36 }
 0x3db   : > { %10410 = vmatmul.mubr.msk.bf16.gmra.mxu0 %vm354_vm1, %v6580_v45  ;;  %10444 = vmatmul.mubr.msk.bf16.gmra.mxu1 %vm354_vm1, %v13240_v33 }
 0x3dc   : > { %10449 = vmatprep.mubr.msk.bf16.mxu0 %vm354_vm1, %v12865_v3  ;;  %10483 = vmatprep.mubr.msk.bf16.mxu1 %vm354_vm1, %v13144_v29  ;;  %v7148_v3 = vld [vmem:[#allocation4 + $0x189] sm:$0xff] }
 0x3dd   : > { %v7439_v29 = vld [vmem:[#allocation4 + $0x182] sm:$0xff]  ;;  %v13310_v53 = vpack.c.bf16 %v7148_v3, %v7147_v58 }
 0x3de   : > { %v13312_v25 = vpack.c.bf16 %v7440_v24, %v7439_v29 }
 0x3e3   : > { %10450 = vmatmul.mubr.msk.bf16.vlgmr.msra.gmra.mxu0 %vm354_vm1, %v12869_v41  ;;  %10484 = vmatmul.mubr.msk.bf16.vlgmr.msra.gmra.mxu1 %vm354_vm1, %v13148_v40 }
 0x3e4   : > { %10516 = vmatpush3.bf16.msra.mxu0 %v7799_v21  ;;  %10453 = vmatprep.mubr.msk.bf16.mxu0 %vm354_vm1, %v12929_v56 }
 0x3e5   : > { %10487 = vmatprep.mubr.msk.bf16.mxu1 %vm354_vm1, %v13174_v28  ;;  %10550 = vmatpush3.bf16.msra.mxu1 %v8091_v8 }
 0x3e6   : > { %10646 = vmatprep.subr.msk.bf16.mxu0 %vm756_vm0, %v6012_v26 }
 0x3eb   : > { %10454 = vmatmul.mubr.msk.bf16.gmra.mxu0 %vm354_vm1, %v12933_v50  ;;  %10488 = vmatmul.mubr.msk.bf16.gmra.mxu1 %vm354_vm1, %v13176_v2 }
 0x3ec   : > { %10457 = vmatprep.mubr.msk.bf16.mxu0 %vm354_vm1, %v12982_v4  ;;  %10491 = vmatprep.mubr.msk.bf16.mxu1 %vm354_vm1, %v13186_v7 }
 0x3f3   : > { %10458 = vmatmul.mubr.msk.bf16.gmra.mxu0 %vm354_vm1, %v12986_v52  ;;  %10492 = vmatmul.mubr.msk.bf16.gmra.mxu1 %vm354_vm1, %v13188_v10 }
 0x3f4   : > { %10461 = vmatprep.mubr.msk.bf16.mxu0 %vm354_vm1, %v13029_v63  ;;  %10495 = vmatprep.mubr.msk.bf16.mxu1 %vm354_vm1, %v13198_v38 }
 0x3fb   : > { %10462 = vmatmul.mubr.msk.bf16.gmra.mxu0 %vm354_vm1, %v13033_v20  ;;  %10496 = vmatmul.mubr.msk.bf16.gmra.mxu1 %vm354_vm1, %v13200_v0 }
 0x3fc   : > { %10465 = vmatprep.mubr.msk.bf16.mxu0 %vm354_vm1, %v13066_v62  ;;  %10499 = vmatprep.mubr.msk.bf16.mxu1 %vm354_vm1, %v13210_v31 }
 0x403   : > { %10466 = vmatmul.mubr.msk.bf16.gmra.mxu0 %vm354_vm1, %v13070_v54  ;;  %10500 = vmatmul.mubr.msk.bf16.gmra.mxu1 %vm354_vm1, %v13212_v19 }
 0x404   : > { %10469 = vmatprep.mubr.msk.bf16.mxu0 %vm354_vm1, %v13094_v47  ;;  %10503 = vmatprep.mubr.msk.bf16.mxu1 %vm354_vm1, %v13222_v42 }
 0x40b   : > { %10470 = vmatmul.mubr.msk.bf16.gmra.mxu0 %vm354_vm1, %v13098_v5  ;;  %10504 = vmatmul.mubr.msk.bf16.gmra.mxu1 %vm354_vm1, %v13224_v23 }
 0x40c   : > { %10473 = vmatprep.mubr.msk.bf16.mxu0 %vm354_vm1, %v13117_v59  ;;  %10507 = vmatprep.mubr.msk.bf16.mxu1 %vm354_vm1, %v6578_v55 }
 0x413   : > { %10474 = vmatmul.mubr.msk.bf16.gmra.mxu0 %vm354_vm1, %v13121_v61  ;;  %10508 = vmatmul.mubr.msk.bf16.gmra.mxu1 %vm354_vm1, %v6579_v27 }
 0x414   : > { %10477 = vmatprep.mubr.msk.bf16.mxu0 %vm354_vm1, %v13133_v9  ;;  %10511 = vmatprep.mubr.msk.bf16.mxu1 %vm354_vm1, %v6580_v45 }
 0x41b   : > { %10478 = vmatmul.mubr.msk.bf16.gmra.mxu0 %vm354_vm1, %v13310_v53  ;;  %10512 = vmatmul.mubr.msk.bf16.gmra.mxu1 %vm354_vm1, %v13312_v25 }
 0x41c   : > { %10517 = vmatprep.mubr.msk.bf16.mxu0 %vm354_vm1, %v12884_v35  ;;  %10551 = vmatprep.mubr.msk.bf16.mxu1 %vm354_vm1, %v12869_v41 }
 0x423   : > { %v10315_v44 = vpop.f32.mrf.mxu0  ;;  %v10349_v34 = vpop.f32.mrf.mxu1  ;;  %10518 = vmatmul.mubr.msk.bf16.vlgmr.msra.gmra.mxu0 %vm354_vm1, %v12931_v12  ;;  %10552 = vmatmul.mubr.msk.bf16.vlgmr.msra.gmra.mxu1 %vm354_vm1, %v12929_v56 }
 0x424   : > { %v13327_v1 = vadd.f32 %v10349_v34, %v10315_v44  ;;  %10584 = vmatpush3.bf16.msra.mxu0 %v8383_v13  ;;  %10521 = vmatprep.mubr.msk.bf16.mxu0 %vm354_vm1, %v12935_v48 }
 0x425   : > { %10555 = vmatprep.mubr.msk.bf16.mxu1 %vm354_vm1, %v12933_v50  ;;  %v6194_v41 = vpop.f32.mrf.mxu0  ;;  %v6406_v35 = vpop.f32.mrf.mxu1 }
 0x426   : > { %v13333_v49 = vadd.f32 %v6406_v35, %v6194_v41 }
 0x427   : > { %v10316_v14 = vpop.f32.mrf.mxu0  ;;  %v10350_v37 = vpop.f32.mrf.mxu1 }
 0x428   : > { %v13335_v16 = vadd.f32 %v10350_v37, %v10316_v14 }
 0x429   : > { %v6197_v12 = vpop.f32.mrf.mxu0  ;;  %v6409_v55 = vpop.f32.mrf.mxu1 }
 0x42a   : > { %v13337_v56 = vadd.f32 %v6409_v55, %v6197_v12 }
 0x42b   : > { %v10319_v27 = vpop.f32.mrf.mxu0  ;;  %v10353_v30 = vpop.f32.mrf.mxu1  ;;  %10522 = vmatmul.mubr.msk.bf16.gmra.mxu0 %vm354_vm1, %v12984_v32  ;;  %10556 = vmatmul.mubr.msk.bf16.gmra.mxu1 %vm354_vm1, %v12982_v4 }
 0x42c   : > { %v13343_v50 = vadd.f32 %v10353_v30, %v10319_v27  ;;  %10525 = vmatprep.mubr.msk.bf16.mxu0 %vm354_vm1, %v12988_v18  ;;  %10559 = vmatprep.mubr.msk.bf16.mxu1 %vm354_vm1, %v12986_v52 }
 0x42d   : > { %v6210_v48 = vpop.f32.mrf.mxu0  ;;  %v6422_v57 = vpop.f32.mrf.mxu1 }
 0x42e   : > { %v13349_v15 = vadd.f32 %v6422_v57, %v6210_v48 }
 0x42f   : > { %v10320_v39 = vpop.f32.mrf.mxu0  ;;  %v10354_v45 = vpop.f32.mrf.mxu1 }
 0x430   : > { %v13351_v21 = vadd.f32 %v10354_v45, %v10320_v39 }
 0x431   : > { %v6213_v32 = vpop.f32.mrf.mxu0  ;;  %v6425_v8 = vpop.f32.mrf.mxu1 }
 0x432   : > { %v13353_v26 = vadd.f32 %v6425_v8, %v6213_v32 }
 0x433   : > { %v10323_v4 = vpop.f32.mrf.mxu0  ;;  %v10357_v3 = vpop.f32.mrf.mxu1  ;;  %10526 = vmatmul.mubr.msk.bf16.gmra.mxu0 %vm354_vm1, %v13031_v22  ;;  %10560 = vmatmul.mubr.msk.bf16.gmra.mxu1 %vm354_vm1, %v13029_v63 }
 0x434   : > { %v13359_v52 = vadd.f32 %v10357_v3, %v10323_v4  ;;  %10529 = vmatprep.mubr.msk.bf16.mxu0 %vm354_vm1, %v13035_v6  ;;  %10563 = vmatprep.mubr.msk.bf16.mxu1 %vm354_vm1, %v13033_v20 }
 0x435   : > { %v6226_v18 = vpop.f32.mrf.mxu0  ;;  %v6438_v29 = vpop.f32.mrf.mxu1 }
 0x436   : > { %v13365_v24 = vadd.f32 %v6438_v29, %v6226_v18 }
 0x437   : > { %v10324_v58 = vpop.f32.mrf.mxu0  ;;  %v10358_v13 = vpop.f32.mrf.mxu1 }
 0x438   : > { %v13367_v44 = vadd.f32 %v10358_v13, %v10324_v58 }
 0x439   : > { %v6229_v22 = vpop.f32.mrf.mxu0  ;;  %v6441_v34 = vpop.f32.mrf.mxu1 }
 0x43a   : > { %v13369_v41 = vadd.f32 %v6441_v34, %v6229_v22 }
 0x43b   : > { %v10327_v63 = vpop.f32.mrf.mxu0  ;;  %v10361_v35 = vpop.f32.mrf.mxu1  ;;  %10530 = vmatmul.mubr.msk.bf16.gmra.mxu0 %vm354_vm1, %v13068_v17  ;;  %10564 = vmatmul.mubr.msk.bf16.gmra.mxu1 %vm354_vm1, %v13066_v62 }
 0x43c   : > { %v13375_v20 = vadd.f32 %v10361_v35, %v10327_v63  ;;  %10533 = vmatprep.mubr.msk.bf16.mxu0 %vm354_vm1, %v13072_v11  ;;  %10567 = vmatprep.mubr.msk.bf16.mxu1 %vm354_vm1, %v13070_v54 }
 0x43d   : > { %v6242_v6 = vpop.f32.mrf.mxu0  ;;  %v6454_v14 = vpop.f32.mrf.mxu1 }
 0x43e   : > { %v13381_v37 = vadd.f32 %v6454_v14, %v6242_v6 }
 0x43f   : > { %v10328_v12 = vpop.f32.mrf.mxu0  ;;  %v10362_v55 = vpop.f32.mrf.mxu1 }
 0x440   : > { %v13383_v27 = vadd.f32 %v10362_v55, %v10328_v12  ;;  %v7733_v12 = vld [vmem:[#allocation4 + $0x1a0] sm:$0xff] }
 0x441   : > { %v6245_v17 = vpop.f32.mrf.mxu0  ;;  %v6457_v30 = vpop.f32.mrf.mxu1  ;;  %v8024_v55 = vld [vmem:[#allocation4 + $0x199] sm:$0xff] }
 0x442   : > { %v13385_v48 = vadd.f32 %v6457_v30, %v6245_v17  ;;  %v8025_v17 = vld [vmem:[#allocation4 + $0x1a1] sm:$0xff] }
 0x443   : > { %v10331_v62 = vpop.f32.mrf.mxu0  ;;  %v10365_v57 = vpop.f32.mrf.mxu1  ;;  %10534 = vmatmul.mubr.msk.bf16.gmra.mxu0 %vm354_vm1, %v13096_v43  ;;  %10568 = vmatmul.mubr.msk.bf16.gmra.mxu1 %vm354_vm1, %v13094_v47 }
 0x444   : > { %v13391_v54 = vadd.f32 %v10365_v57, %v10331_v62  ;;  %10537 = vmatprep.mubr.msk.bf16.mxu0 %vm354_vm1, %v13103_v51  ;;  %10571 = vmatprep.mubr.msk.bf16.mxu1 %vm354_vm1, %v13098_v5 }
 0x445   : > { %v6258_v11 = vpop.f32.mrf.mxu0  ;;  %v6470_v39 = vpop.f32.mrf.mxu1 }
 0x446   : > { %v13397_v45 = vadd.f32 %v6470_v39, %v6258_v11 }
 0x447   : > { %v10332_v32 = vpop.f32.mrf.mxu0  ;;  %v10366_v8 = vpop.f32.mrf.mxu1 }
 0x448   : > { %v13399_v4 = vadd.f32 %v10366_v8, %v10332_v32 }
 0x449   : > { %v6261_v43 = vpop.f32.mrf.mxu0  ;;  %v6473_v3 = vpop.f32.mrf.mxu1 }
 0x44a   : > { %v13401_v18 = vadd.f32 %v6473_v3, %v6261_v43 }
 0x44b   : > { %v10335_v47 = vpop.f32.mrf.mxu0  ;;  %v10369_v29 = vpop.f32.mrf.mxu1  ;;  %10538 = vmatmul.mubr.msk.bf16.gmra.mxu0 %vm354_vm1, %v13119_v60  ;;  %10572 = vmatmul.mubr.msk.bf16.gmra.mxu1 %vm354_vm1, %v13117_v59 }
 0x44c   : > { %v13407_v5 = vadd.f32 %v10369_v29, %v10335_v47  ;;  %10541 = vmatprep.mubr.msk.bf16.mxu0 %vm354_vm1, %v13123_v46  ;;  %10575 = vmatprep.mubr.msk.bf16.mxu1 %vm354_vm1, %v13121_v61  ;;  %v7732_v61 = vld [vmem:[#allocation4 + $0x198] sm:$0xff] }
 0x44d   : > { %v6274_v51 = vpop.f32.mrf.mxu0  ;;  %v6486_v58 = vpop.f32.mrf.mxu1  ;;  %v7749_v39 = vpack.c.bf16 %v7733_v12, %v7732_v61 }
 0x44e   : > { %v13413_v13 = vadd.f32 %v6486_v58, %v6274_v51 }
 0x44f   : > { %v10336_v22 = vpop.f32.mrf.mxu0  ;;  %v10370_v34 = vpop.f32.mrf.mxu1 }
 0x450   : > { %v13415_v63 = vadd.f32 %v10370_v34, %v10336_v22 }
 0x451   : > { %v6277_v60 = vpop.f32.mrf.mxu0  ;;  %v6489_v35 = vpop.f32.mrf.mxu1 }
 0x452   : > { %v13417_v6 = vadd.f32 %v6489_v35, %v6277_v60 }
 0x453   : > { %v10339_v59 = vpop.f32.mrf.mxu0  ;;  %v10373_v14 = vpop.f32.mrf.mxu1  ;;  %10542 = vmatmul.mubr.msk.bf16.gmra.mxu0 %vm354_vm1, %v13135_v36  ;;  %10576 = vmatmul.mubr.msk.bf16.gmra.mxu1 %vm354_vm1, %v13133_v9  ;;  %v8041_v9 = vpack.c.bf16 %v8025_v17, %v8024_v55 }
 0x454   : > { %v13423_v46 = vadd.f32 %v10373_v14, %v10339_v59  ;;  %10545 = vmatprep.mubr.msk.bf16.mxu0 %vm354_vm1, %v13240_v33  ;;  %10579 = vmatprep.mubr.msk.bf16.mxu1 %vm354_vm1, %v13310_v53 }
 0x455   : > { %v6290_v30 = vpop.f32.mrf.mxu0  ;;  %v6502_v62 = vpop.f32.mrf.mxu1 }
 0x456   : > { %v13429_v57 = vadd.f32 %v6502_v62, %v6290_v30 }
 0x457   : > { %v10340_v36 = vpop.f32.mrf.mxu0  ;;  %v10374_v11 = vpop.f32.mrf.mxu1 }
 0x458   : > { %v13431_v32 = vadd.f32 %v10374_v11, %v10340_v36 }
 0x459   : > { %v6293_v8 = vpop.f32.mrf.mxu0  ;;  %v6505_v43 = vpop.f32.mrf.mxu1 }
 0x45a   : > { %v13433_v3 = vadd.f32 %v6505_v43, %v6293_v8 }
 0x45b   : > { %v10343_v33 = vpop.f32.mrf.mxu0  ;;  %v10377_v47 = vpop.f32.mrf.mxu1  ;;  %10546 = vmatmul.mubr.msk.bf16.gmra.mxu0 %vm354_vm1, %v7749_v39  ;;  %10580 = vmatmul.mubr.msk.bf16.gmra.mxu1 %vm354_vm1, %v8041_v9 }
 0x45c   : > { %v13437_v53 = vadd.f32 %v10377_v47, %v10343_v33  ;;  %10585 = vmatprep.mubr.msk.bf16.mxu0 %vm354_vm1, %v13148_v40 }
 0x45d   : > { %v6306_v29 = vpop.f32.mrf.mxu0  ;;  %v6518_v51 = vpop.f32.mrf.mxu1 }
 0x45e   : > { %v13441_v58 = vadd.f32 %v6518_v51, %v6306_v29 }
 0x45f   : > { %v10344_v22 = vpop.f32.mrf.mxu0  ;;  %v10378_v34 = vpop.f32.mrf.mxu1 }
 0x460   : > { %v13443_v60 = vadd.f32 %v10378_v34, %v10344_v22 }
 0x461   : > { %v6309_v35 = vpop.f32.mrf.mxu0  ;;  %v6521_v59 = vpop.f32.mrf.mxu1 }
 0x462   : > { %v13445_v14 = vadd.f32 %v6521_v59, %v6309_v35 }
 0x463   : > { %v10383_v61 = vpop.f32.mrf.mxu0  ;;  %v10417_v12 = vpop.f32.mrf.mxu1  ;;  %10586 = vmatmul.mubr.msk.bf16.vlgmr.msra.gmra.mxu0 %vm354_vm1, %v13174_v28 }
 0x464   : > { %v6795_v55 = vadd.f32 %v10383_v61, %v13327_v1  ;;  %10589 = vmatprep.mubr.msk.bf16.mxu0 %vm354_vm1, %v13176_v2 }
 0x465   : > { %v6666_v40 = vpop.f32.mrf.mxu0  ;;  %v6958_v17 = vpop.f32.mrf.mxu1 }
 0x466   : > { %v13452_v30 = vadd.f32 %v10417_v12, %v6795_v55  ;;  %v6793_v62 = vadd.f32 %v6666_v40, %v13333_v49 }
 0x467   : > { %v10384_v36 = vpop.f32.mrf.mxu0  ;;  %v10418_v11 = vpop.f32.mrf.mxu1 }
 0x468   : > { %v13455_v39 = vadd.f32 %v6958_v17, %v6793_v62  ;;  %v6796_v9 = vadd.f32 %v10384_v36, %v13335_v16 }
 0x469   : > { %v6669_v8 = vpop.f32.mrf.mxu0  ;;  %v6961_v43 = vpop.f32.mrf.mxu1 }
 0x46a   : > { %v13458_v28 = vadd.f32 %v10418_v11, %v6796_v9  ;;  %v6794_v1 = vadd.f32 %v6669_v8, %v13337_v56 }
 0x46b   : > { %v10387_v33 = vpop.f32.mrf.mxu0  ;;  %v10421_v2 = vpop.f32.mrf.mxu1  ;;  %10590 = vmatmul.mubr.msk.bf16.gmra.mxu0 %vm354_vm1, %v13186_v7 }
 0x46c   : > { %v13463_v47 = vadd.f32 %v6961_v43, %v6794_v1  ;;  %v6799_v49 = vadd.f32 %v10387_v33, %v13343_v50  ;;  %10593 = vmatprep.mubr.msk.bf16.mxu0 %vm354_vm1, %v13188_v10 }
 0x46d   : > { %v6682_v29 = vpop.f32.mrf.mxu0  ;;  %v6974_v16 = vpop.f32.mrf.mxu1 }
 0x46e   : > { %v13468_v51 = vadd.f32 %v10421_v2, %v6799_v49  ;;  %v6797_v22 = vadd.f32 %v6682_v29, %v13349_v15 }
 0x46f   : > { %v10388_v34 = vpop.f32.mrf.mxu0  ;;  %v10422_v56 = vpop.f32.mrf.mxu1 }
 0x470   : > { %v13471_v35 = vadd.f32 %v6974_v16, %v6797_v22  ;;  %v6800_v59 = vadd.f32 %v10388_v34, %v13351_v21 }
 0x471   : > { %v6685_v7 = vpop.f32.mrf.mxu0  ;;  %v6977_v61 = vpop.f32.mrf.mxu1 }
 0x472   : > { %v13474_v12 = vadd.f32 %v10422_v56, %v6800_v59  ;;  %v6798_v50 = vadd.f32 %v6685_v7, %v13353_v26 }
 0x473   : > { %v10391_v55 = vpop.f32.mrf.mxu0  ;;  %v10425_v10 = vpop.f32.mrf.mxu1  ;;  %10594 = vmatmul.mubr.msk.bf16.gmra.mxu0 %vm354_vm1, %v13198_v38 }
 0x474   : > { %v13479_v40 = vadd.f32 %v6977_v61, %v6798_v50  ;;  %v6803_v15 = vadd.f32 %v10391_v55, %v13359_v52  ;;  %10597 = vmatprep.mubr.msk.bf16.mxu0 %vm354_vm1, %v13200_v0 }
 0x475   : > { %v6698_v17 = vpop.f32.mrf.mxu0  ;;  %v6990_v21 = vpop.f32.mrf.mxu1 }
 0x476   : > { %v13484_v62 = vadd.f32 %v10425_v10, %v6803_v15  ;;  %v6801_v36 = vadd.f32 %v6698_v17, %v13365_v24  ;;  %v8308_v17 = vld [vmem:[#allocation4 + $0x13a] sm:$0xff] }
 0x477   : > { %v10392_v11 = vpop.f32.mrf.mxu0  ;;  %v10426_v26 = vpop.f32.mrf.mxu1 }
 0x478   : > { %v13487_v9 = vadd.f32 %v6990_v21, %v6801_v36  ;;  %v6804_v8 = vadd.f32 %v10392_v11, %v13367_v44  ;;  %v8310_v11 = vld [vmem:[#allocation4 + $0x152] sm:$0xff] }
 0x479   : > { %v6701_v38 = vpop.f32.mrf.mxu0  ;;  %v6993_v43 = vpop.f32.mrf.mxu1 }
 0x47a   : > { %v13490_v1 = vadd.f32 %v10426_v26, %v6804_v8  ;;  %v6802_v52 = vadd.f32 %v6701_v38, %v13369_v41  ;;  %v8311_v26 = vld [vmem:[#allocation4 + $0x15a] sm:$0xff] }
 0x47b   : > { %v10395_v33 = vpop.f32.mrf.mxu0  ;;  %v10429_v0 = vpop.f32.mrf.mxu1  ;;  %10598 = vmatmul.mubr.msk.bf16.gmra.mxu0 %vm354_vm1, %v13210_v31 }
 0x47c   : > { %v13495_v2 = vadd.f32 %v6993_v43, %v6802_v52  ;;  %v6807_v24 = vadd.f32 %v10395_v33, %v13375_v20  ;;  %10601 = vmatprep.mubr.msk.bf16.mxu0 %vm354_vm1, %v13212_v19  ;;  %v8330_v33 = vpack.c.bf16 %v8311_v26, %v8310_v11 }
 0x47d   : > { %v6714_v49 = vpop.f32.mrf.mxu0  ;;  %v7006_v44 = vpop.f32.mrf.mxu1 }
 0x47e   : > { %v13500_v29 = vadd.f32 %v10429_v0, %v6807_v24  ;;  %v6805_v16 = vadd.f32 %v6714_v49, %v13381_v37 }
 0x47f   : > { %v10396_v22 = vpop.f32.mrf.mxu0  ;;  %v10430_v41 = vpop.f32.mrf.mxu1 }
 0x480   : > { %v13503_v34 = vadd.f32 %v7006_v44, %v6805_v16  ;;  %v6808_v56 = vadd.f32 %v10396_v22, %v13383_v27 }
 0x481   : > { %v6717_v31 = vpop.f32.mrf.mxu0  ;;  %v7009_v59 = vpop.f32.mrf.mxu1 }
 0x482   : > { %v13506_v7 = vadd.f32 %v10430_v41, %v6808_v56  ;;  %v6806_v20 = vadd.f32 %v6717_v31, %v13385_v48  ;;  %v8309_v48 = vld [vmem:[#allocation4 + $0x142] sm:$0xff]  ;;  %v8312_v41 = vld [vmem:[#allocation4 + $0x16a] sm:$0xff]  ;;  %v8313_v56 = vld [vmem:[#allocation4 + $0x172] sm:$0xff] }
 0x483   : > { %v10399_v61 = vpop.f32.mrf.mxu0  ;;  %v10433_v19 = vpop.f32.mrf.mxu1  ;;  %10602 = vmatmul.mubr.msk.bf16.gmra.mxu0 %vm354_vm1, %v13222_v42  ;;  %v8329_v43 = vpack.c.bf16 %v8309_v48, %v8308_v17  ;;  %v8316_v48 = vld [vmem:[#allocation4 + $0x19a] sm:$0xff] }
 0x484   : > { %v13511_v50 = vadd.f32 %v7009_v59, %v6806_v20  ;;  %v6811_v37 = vadd.f32 %v10399_v61, %v13391_v54  ;;  %10605 = vmatprep.mubr.msk.bf16.mxu0 %vm354_vm1, %v13224_v23 }
 0x485   : > { %v6730_v55 = vpop.f32.mrf.mxu0  ;;  %v7022_v27 = vpop.f32.mrf.mxu1 }
 0x486   : > { %v13516_v10 = vadd.f32 %v10433_v19, %v6811_v37  ;;  %v6809_v15 = vadd.f32 %v6730_v55, %v13397_v45  ;;  %v8331_v37 = vpack.c.bf16 %v8313_v56, %v8312_v41 }
 0x487   : > { %v10400_v21 = vpop.f32.mrf.mxu0  ;;  %v10434_v36 = vpop.f32.mrf.mxu1 }
 0x488   : > { %v13519_v42 = vadd.f32 %v7022_v27, %v6809_v15  ;;  %v6812_v8 = vadd.f32 %v10400_v21, %v13399_v4 }
 0x489   : > { %v6733_v54 = vpop.f32.mrf.mxu0  ;;  %v7025_v38 = vpop.f32.mrf.mxu1 }
 0x48a   : > { %v13522_v23 = vadd.f32 %v10434_v36, %v6812_v8  ;;  %v6810_v52 = vadd.f32 %v6733_v54, %v13401_v18 }
 0x48b   : > { %v10403_v0 = vpop.f32.mrf.mxu0  ;;  %v10437_v45 = vpop.f32.mrf.mxu1  ;;  %10606 = vmatmul.mubr.msk.bf16.gmra.mxu0 %vm354_vm1, %v8329_v43 }
 0x48c   : > { %v13526_v24 = vadd.f32 %v7025_v38, %v6810_v52  ;;  %v6815_v49 = vadd.f32 %v10403_v0, %v13407_v5  ;;  %10609 = vmatprep.mubr.msk.bf16.mxu0 %vm354_vm1, %v8330_v33 }
 0x48d   : > { %v6746_v44 = vpop.f32.mrf.mxu0  ;;  %v7038_v4 = vpop.f32.mrf.mxu1 }
 0x48e   : > { %v13530_v16 = vadd.f32 %v10437_v45, %v6815_v49  ;;  %v6813_v22 = vadd.f32 %v6746_v44, %v13413_v13 }
 0x48f   : > { %v10404_v18 = vpop.f32.mrf.mxu0  ;;  %v10438_v31 = vpop.f32.mrf.mxu1 }
 0x490   : > { %v13533_v59 = vadd.f32 %v7038_v4, %v6813_v22  ;;  %v6816_v20 = vadd.f32 %v10404_v18, %v13415_v63  ;;  %v8317_v63 = vld [vmem:[#allocation4 + $0x1a2] sm:$0xff] }
 0x491   : > { %v6749_v61 = vpop.f32.mrf.mxu0  ;;  %v7041_v19 = vpop.f32.mrf.mxu1  ;;  %v8333_v54 = vpack.c.bf16 %v8317_v63, %v8316_v48 }
 0x492   : > { %v13536_v5 = vadd.f32 %v10438_v31, %v6816_v20  ;;  %v6814_v55 = vadd.f32 %v6749_v61, %v13417_v6 }
 0x493   : > { %v10407_v27 = vpop.f32.mrf.mxu0  ;;  %v10441_v15 = vpop.f32.mrf.mxu1  ;;  %10610 = vmatmul.mubr.msk.bf16.gmra.mxu0 %vm354_vm1, %v8331_v37 }
 0x494   : > { %v13540_v13 = vadd.f32 %v7041_v19, %v6814_v55  ;;  %v6819_v17 = vadd.f32 %v10407_v27, %v13423_v46  ;;  %10613 = vmatprep.mubr.msk.bf16.mxu0 %vm354_vm1, %v13312_v25 }
 0x495   : > { %v6762_v21 = vpop.f32.mrf.mxu0  ;;  %v7054_v36 = vpop.f32.mrf.mxu1 }
 0x496   : > { %v13545_v11 = vadd.f32 %v10441_v15, %v6819_v17  ;;  %v6817_v26 = vadd.f32 %v6762_v21, %v13429_v57 }
 0x497   : > { %v10408_v6 = vpop.f32.mrf.mxu0  ;;  %v10442_v8 = vpop.f32.mrf.mxu1 }
 0x498   : > { %v13548_v38 = vadd.f32 %v7054_v36, %v6817_v26  ;;  %v6820_v43 = vadd.f32 %v10408_v6, %v13431_v32 }
 0x499   : > { %v6765_v52 = vpop.f32.mrf.mxu0  ;;  %v7057_v46 = vpop.f32.mrf.mxu1 }
 0x49a   : > { %v13551_v33 = vadd.f32 %v10442_v8, %v6820_v43  ;;  %v6818_v25 = vadd.f32 %v6765_v52, %v13433_v3 }
 0x49b   : > { %v10411_v0 = vpop.f32.mrf.mxu0  ;;  %v10445_v45 = vpop.f32.mrf.mxu1  ;;  %10614 = vmatmul.mubr.msk.bf16.gmra.mxu0 %vm354_vm1, %v8333_v54 }
 0x49c   : > { %v13555_v49 = vadd.f32 %v7057_v46, %v6818_v25  ;;  %v6823_v57 = vadd.f32 %v10411_v0, %v13437_v53 }
 0x49d   : > { %v6778_v44 = vpop.f32.mrf.mxu0  ;;  %v7070_v4 = vpop.f32.mrf.mxu1 }
 0x49e   : > { %v13558_v22 = vadd.f32 %v10445_v45, %v6823_v57  ;;  %v6821_v32 = vadd.f32 %v6778_v44, %v13441_v58 }
 0x49f   : > { %v10412_v41 = vpop.f32.mrf.mxu0  ;;  %v10446_v56 = vpop.f32.mrf.mxu1 }
 0x4a0   : > { %v13561_v18 = vadd.f32 %v7070_v4, %v6821_v32  ;;  %v6824_v3 = vadd.f32 %v10412_v41, %v13443_v60 }
 0x4a1   : > { %v6781_v31 = vpop.f32.mrf.mxu0  ;;  %v7073_v20 = vpop.f32.mrf.mxu1 }
 0x4a2   : > { %v13564_v61 = vadd.f32 %v10446_v56, %v6824_v3  ;;  %v6822_v19 = vadd.f32 %v6781_v31, %v13445_v14 }
 0x4a3   : > { %v10451_v37 = vpop.f32.mrf.mxu0  ;;  %v13567_v53 = vpop.f32.mrf.mxu1 }
 0x4a4   : > { %v13569_v55 = vadd.f32 %v7073_v20, %v6822_v19  ;;  %v13572_v27 = vadd.f32 %v10451_v37, %v13452_v30 }
 0x4a5   : > { %v7250_v58 = vpop.f32.mrf.mxu0  ;;  %v13574_v15 = vpop.f32.mrf.mxu1 }
 0x4a6   : > { %v13577_v17 = vadd.f32 %v7250_v58, %v13455_v39 }
 0x4a7   : > { %v10452_v60 = vpop.f32.mrf.mxu0  ;;  %v13579_v48 = vpop.f32.mrf.mxu1 }
 0x4a8   : > { %v13582_v63 = vadd.f32 %v10452_v60, %v13458_v28 }
 0x4a9   : > { %v7253_v14 = vpop.f32.mrf.mxu0  ;;  %v13584_v21 = vpop.f32.mrf.mxu1 }
 0x4aa   : > { %v13587_v36 = vadd.f32 %v7253_v14, %v13463_v47 }
 0x4ab   : > { %v10455_v30 = vpop.f32.mrf.mxu0  ;;  %v13589_v26 = vpop.f32.mrf.mxu1 }
 0x4ac   : > { %v13592_v6 = vadd.f32 %v10455_v30, %v13468_v51 }
 0x4ad   : > { %v7266_v39 = vpop.f32.mrf.mxu0  ;;  %v13594_v8 = vpop.f32.mrf.mxu1 }
 0x4ae   : > { %v13597_v54 = vadd.f32 %v7266_v39, %v13471_v35 }
 0x4af   : > { %v10456_v28 = vpop.f32.mrf.mxu0  ;;  %v13599_v43 = vpop.f32.mrf.mxu1 }
 0x4b0   : > { %v13602_v52 = vadd.f32 %v10456_v28, %v13474_v12 }
 0x4b1   : > { %v7269_v47 = vpop.f32.mrf.mxu0  ;;  %v13604_v46 = vpop.f32.mrf.mxu1 }
 0x4b2   : > { %v13607_v25 = vadd.f32 %v7269_v47, %v13479_v40 }
 0x4b3   : > { %v10459_v51 = vpop.f32.mrf.mxu0  ;;  %v13609_v0 = vpop.f32.mrf.mxu1 }
 0x4b4   : > { %v13612_v45 = vadd.f32 %v10459_v51, %v13484_v62 }
 0x4b5   : > { %v7282_v35 = vpop.f32.mrf.mxu0  ;;  %v13614_v57 = vpop.f32.mrf.mxu1 }
 0x4b6   : > { %v13617_v44 = vadd.f32 %v7282_v35, %v13487_v9 }
 0x4b7   : > { %v10460_v12 = vpop.f32.mrf.mxu0  ;;  %v13619_v4 = vpop.f32.mrf.mxu1 }
 0x4b8   : > { %v13622_v32 = vadd.f32 %v10460_v12, %v13490_v1 }
 0x4b9   : > { %v7285_v40 = vpop.f32.mrf.mxu0  ;;  %v13624_v41 = vpop.f32.mrf.mxu1 }
 0x4ba   : > { %v13627_v56 = vadd.f32 %v7285_v40, %v13495_v2 }
 0x4bb   : > { %v10463_v62 = vpop.f32.mrf.mxu0  ;;  %v13629_v3 = vpop.f32.mrf.mxu1 }
 0x4bc   : > { %v13632_v31 = vadd.f32 %v10463_v62, %v13500_v29 }
 0x4bd   : > { %v7298_v9 = vpop.f32.mrf.mxu0  ;;  %v13634_v20 = vpop.f32.mrf.mxu1 }
 0x4be   : > { %v13637_v19 = vadd.f32 %v7298_v9, %v13503_v34 }
 0x4bf   : > { %v10464_v1 = vpop.f32.mrf.mxu0  ;;  %v13639_v37 = vpop.f32.mrf.mxu1 }
 0x4c0   : > { %14257 = vst [vmem:[#allocation5_spill] sm:$0xff] %v13639_v37  ;;  %v13642_v58 = vadd.f32 %v10464_v1, %v13506_v7 }
 0x4c1   : > { %v7301_v2 = vpop.f32.mrf.mxu0  ;;  %v13644_v60 = vpop.f32.mrf.mxu1 }
 0x4c2   : > { %14258 = vst [vmem:[#allocation6_spill] sm:$0xff] %v13644_v60  ;;  %v13647_v14 = vadd.f32 %v7301_v2, %v13511_v50 }
 0x4c3   : > { %v10467_v29 = vpop.f32.mrf.mxu0  ;;  %v13649_v30 = vpop.f32.mrf.mxu1 }
 0x4c4   : > { %14259 = vst [vmem:[#allocation7_spill] sm:$0xff] %v13647_v14  ;;  %14260 = vst [vmem:[#allocation9_spill] sm:$0xff] %v13649_v30  ;;  %v13652_v39 = vadd.f32 %v10467_v29, %v13516_v10 }
 0x4c5   : > { %v7314_v34 = vpop.f32.mrf.mxu0  ;;  %v13654_v28 = vpop.f32.mrf.mxu1 }
 0x4c6   : > { %14261 = vst [vmem:[#allocation8_spill] sm:$0xff] %v13652_v39  ;;  %14262 = vst [vmem:[#allocation10_spill] sm:$0xff] %v13654_v28  ;;  %v13657_v47 = vadd.f32 %v7314_v34, %v13519_v42 }
 0x4c7   : > { %v10468_v7 = vpop.f32.mrf.mxu0  ;;  %v13659_v51 = vpop.f32.mrf.mxu1 }
 0x4c8   : > { %14263 = vst [vmem:[#allocation12_spill] sm:$0xff] %v13657_v47  ;;  %14264 = vst [vmem:[#allocation11_spill] sm:$0xff] %v13659_v51  ;;  %v13662_v35 = vadd.f32 %v10468_v7, %v13522_v23 }
 0x4c9   : > { %v7317_v50 = vpop.f32.mrf.mxu0  ;;  %v13664_v12 = vpop.f32.mrf.mxu1 }
 0x4ca   : > { %14265 = vst [vmem:[#allocation14_spill] sm:$0xff] %v13662_v35  ;;  %14266 = vst [vmem:[#allocation13_spill] sm:$0xff] %v13664_v12  ;;  %v13667_v40 = vadd.f32 %v7317_v50, %v13526_v24 }
 0x4cb   : > { %v10471_v10 = vpop.f32.mrf.mxu0  ;;  %v13669_v62 = vpop.f32.mrf.mxu1 }
 0x4cc   : > { %14267 = vst [vmem:[#allocation16_spill] sm:$0xff] %v13667_v40  ;;  %14268 = vst [vmem:[#allocation15_spill] sm:$0xff] %v13669_v62  ;;  %v13672_v9 = vadd.f32 %v10471_v10, %v13530_v16 }
 0x4cd   : > { %v7330_v42 = vpop.f32.mrf.mxu0  ;;  %v13674_v1 = vpop.f32.mrf.mxu1 }
 0x4ce   : > { %14269 = vst [vmem:[#allocation18_spill] sm:$0xff] %v13672_v9  ;;  %14270 = vst [vmem:[#allocation17_spill] sm:$0xff] %v13674_v1  ;;  %v13677_v2 = vadd.f32 %v7330_v42, %v13533_v59 }
 0x4cf   : > { %v10472_v23 = vpop.f32.mrf.mxu0  ;;  %v13679_v29 = vpop.f32.mrf.mxu1 }
 0x4d0   : > { %14271 = vst [vmem:[#allocation19_spill] sm:$0xff] %v13677_v2  ;;  %14272 = vst [vmem:[#allocation55_spill] sm:$0xff] %v13679_v29  ;;  %v13682_v34 = vadd.f32 %v10472_v23, %v13536_v5 }
 0x4d1   : > { %v7333_v24 = vpop.f32.mrf.mxu0  ;;  %v13684_v7 = vpop.f32.mrf.mxu1 }
 0x4d2   : > { %14273 = vst [vmem:[#allocation53_spill] sm:$0xff] %v13682_v34  ;;  %14274 = vst [vmem:[#allocation27_spill] sm:$0xff] %v13684_v7  ;;  %v13687_v50 = vadd.f32 %v7333_v24, %v13540_v13 }
 0x4d3   : > { %v10475_v16 = vpop.f32.mrf.mxu0  ;;  %v13689_v10 = vpop.f32.mrf.mxu1 }
 0x4d4   : > { %14275 = vst [vmem:[#allocation59_spill] sm:$0xff] %v13687_v50  ;;  %14276 = vst [vmem:[#allocation54_spill] sm:$0xff] %v13689_v10  ;;  %v13692_v1 = vadd.f32 %v10475_v16, %v13545_v11 }
 0x4d5   : > { %v7346_v59 = vpop.f32.mrf.mxu0  ;;  %v13694_v42 = vpop.f32.mrf.mxu1 }
 0x4d6   : > { %14277 = vst [vmem:[#allocation22_spill] sm:$0xff] %v13692_v1  ;;  %14278 = vst [vmem:[#allocation21_spill] sm:$0xff] %v13694_v42  ;;  %v13697_v29 = vadd.f32 %v7346_v59, %v13548_v38 }
 0x4d7   : > { %v10476_v5 = vpop.f32.mrf.mxu0  ;;  %v13699_v23 = vpop.f32.mrf.mxu1 }
 0x4d8   : > { %14279 = vst [vmem:[#allocation20_spill] sm:$0xff] %v13697_v29  ;;  %14280 = vst [vmem:[#allocation24_spill] sm:$0xff] %v13699_v23  ;;  %v13702_v7 = vadd.f32 %v10476_v5, %v13551_v33 }
 0x4d9   : > { %v7349_v13 = vpop.f32.mrf.mxu0  ;;  %v13704_v24 = vpop.f32.mrf.mxu1 }
 0x4da   : > { %14281 = vst [vmem:[#allocation23_spill] sm:$0xff] %v13702_v7  ;;  %14282 = vst [vmem:[#allocation62_spill] sm:$0xff] %v13704_v24  ;;  %v13707_v10 = vadd.f32 %v7349_v13, %v13555_v49 }
 0x4db   : > { %v10479_v11 = vpop.f32.mrf.mxu0  ;;  %v13709_v16 = vpop.f32.mrf.mxu1 }
 0x4dc   : > { %14283 = vst [vmem:[#allocation56_spill] sm:$0xff] %v13707_v10  ;;  %14284 = vst [vmem:[#allocation26_spill] sm:$0xff] %v13709_v16  ;;  %v13712_v42 = vadd.f32 %v10479_v11, %v13558_v22 }
 0x4dd   : > { %v7362_v38 = vpop.f32.mrf.mxu0  ;;  %v13714_v59 = vpop.f32.mrf.mxu1 }
 0x4de   : > { %14285 = vst [vmem:[#allocation25_spill] sm:$0xff] %v13712_v42  ;;  %14286 = vst [vmem:[#allocation28_spill] sm:$0xff] %v13714_v59  ;;  %v13717_v23 = vadd.f32 %v7362_v38, %v13561_v18 }
 0x4df   : > { %v10480_v33 = vpop.f32.mrf.mxu0  ;;  %v13719_v5 = vpop.f32.mrf.mxu1 }
 0x4e0   : > { %14287 = vst [vmem:[#allocation65_spill] sm:$0xff] %v13717_v23  ;;  %14288 = vst [vmem:[#allocation58_spill] sm:$0xff] %v13719_v5  ;;  %v13722_v24 = vadd.f32 %v10480_v33, %v13564_v61 }
 0x4e1   : > { %v7365_v49 = vpop.f32.mrf.mxu0  ;;  %v13724_v13 = vpop.f32.mrf.mxu1 }
 0x4e2   : > { %14289 = vst [vmem:[#allocation30_spill] sm:$0xff] %v13722_v24  ;;  %14290 = vst [vmem:[#allocation29_spill] sm:$0xff] %v13724_v13  ;;  %v13727_v16 = vadd.f32 %v7365_v49, %v13569_v55 }
 0x4e3   : > { %v10519_v22 = vpop.f32.mrf.mxu0  ;;  %v10553_v11 = vpop.f32.mrf.mxu1 }
 0x4e4   : > { %14291 = vst [vmem:[#allocation35_spill] sm:$0xff] %v13727_v16 }
 0x4e5   : > { %v7835_v42 = vpop.f32.mrf.mxu0  ;;  %v8127_v10 = vpop.f32.mrf.mxu1 }
 0x4e7   : > { %v10520_v59 = vpop.f32.mrf.mxu0  ;;  %v10554_v18 = vpop.f32.mrf.mxu1 }
 0x4e9   : > { %v7838_v7 = vpop.f32.mrf.mxu0  ;;  %v13731_v5 = vpop.f32.mrf.mxu1 }
 0x4eb   : > { %v10523_v38 = vpop.f32.mrf.mxu0  ;;  %v13737_v13 = vpop.f32.mrf.mxu1 }
 0x4ed   : > { %v13729_v23 = vpop.f32.mrf.mxu0  ;;  %v13743_v16 = vpop.f32.mrf.mxu1 }
 0x4ef   : > { %v13733_v61 = vpop.f32.mrf.mxu0  ;;  %v13749_v1 = vpop.f32.mrf.mxu1 }
 0x4f1   : > { %v13735_v33 = vpop.f32.mrf.mxu0  ;;  %v13755_v2 = vpop.f32.mrf.mxu1 }
 0x4f3   : > { %v13739_v55 = vpop.f32.mrf.mxu0  ;;  %v13761_v12 = vpop.f32.mrf.mxu1 }
 0x4f5   : > { %v13741_v49 = vpop.f32.mrf.mxu0  ;;  %v13767_v35 = vpop.f32.mrf.mxu1 }
 0x4f7   : > { %v13745_v24 = vpop.f32.mrf.mxu0  ;;  %v13773_v30 = vpop.f32.mrf.mxu1 }
 0x4f9   : > { %v13747_v29 = vpop.f32.mrf.mxu0 }
 0x4fb   : > { %v13751_v50 = vpop.f32.mrf.mxu0 }
 0x4fd   : > { %v13753_v34 = vpop.f32.mrf.mxu0 }
 0x4fe   : > { %14292 = vst [vmem:[#allocation68_spill] sm:$0xff] %v13753_v34 }
 0x4ff   : > { %v13757_v62 = vpop.f32.mrf.mxu0 }
 0x500   : > { %14293 = vst [vmem:[#allocation60_spill] sm:$0xff] %v13757_v62  ;;  %v13779_v62 = vpop.f32.mrf.mxu1 }
 0x501   : > { %v13759_v9 = vpop.f32.mrf.mxu0 }
 0x502   : > { %14294 = vst [vmem:[#allocation32_spill] sm:$0xff] %v13759_v9 }
 0x503   : > { %v13763_v40 = vpop.f32.mrf.mxu0 }
 0x504   : > { %14295 = vst [vmem:[#allocation31_spill] sm:$0xff] %v13763_v40  ;;  %v13785_v40 = vpop.f32.mrf.mxu1 }
 0x505   : > { %v13765_v51 = vpop.f32.mrf.mxu0  ;;  %14303 = vst [vmem:[#allocation78_spill] sm:$0xff] %v13785_v40 }
 0x506   : > { %14296 = vst [vmem:[#allocation71_spill] sm:$0xff] %v13765_v51 }
 0x507   : > { %v13769_v28 = vpop.f32.mrf.mxu0 }
 0x508   : > { %14297 = vst [vmem:[#allocation61_spill] sm:$0xff] %v13769_v28  ;;  %v13791_v28 = vpop.f32.mrf.mxu1 }
 0x509   : > { %v13771_v47 = vpop.f32.mrf.mxu0  ;;  %14306 = vst [vmem:[#allocation67_spill] sm:$0xff] %v13791_v28 }
 0x50a   : > { %14298 = vst [vmem:[#allocation63_spill] sm:$0xff] %v13771_v47 }
 0x50b   : > { %v13775_v39 = vpop.f32.mrf.mxu0 }
 0x50c   : > { %14299 = vst [vmem:[#allocation34_spill] sm:$0xff] %v13775_v39  ;;  %v13797_v39 = vpop.f32.mrf.mxu1 }
 0x50d   : > { %v13777_v60 = vpop.f32.mrf.mxu0  ;;  %14309 = vst [vmem:[#allocation37_spill] sm:$0xff] %v13797_v39 }
 0x50e   : > { %14300 = vst [vmem:[#allocation33_spill] sm:$0xff] %v13777_v60 }
 0x50f   : > { %v13781_v9 = vpop.f32.mrf.mxu0 }
 0x510   : > { %14301 = vst [vmem:[#allocation36_spill] sm:$0xff] %v13781_v9  ;;  %v7671_v9 = vadd.f32 %v13567_v53, %v13572_v27 }
 0x511   : > { %v13783_v14 = vpop.f32.mrf.mxu0 }
 0x512   : > { %14302 = vst [vmem:[#allocation64_spill] sm:$0xff] %v13783_v14  ;;  %v7964_v40 = vadd.f32 %v10519_v22, %v7671_v9  ;;  %v13824_v9 = vld [vmem:[%s14097_s7] ss:$0 sm:$0xff] }
 0x513   : > { %v13787_v51 = vpop.f32.mrf.mxu0 }
 0x514   : > { %14304 = vst [vmem:[#allocation66_spill] sm:$0xff] %v13787_v51  ;;  %v7669_v51 = vadd.f32 %v13574_v15, %v13577_v17  ;;  %v8256_v53 = vadd.f32 %v10553_v11, %v7964_v40  ;;  %v7675_v15 = vadd.f32 %v13589_v26, %v13592_v6  ;;  %v7674_v11 = vadd.f32 %v13604_v46, %v13607_v25 }
 0x515   : > { %v13789_v34 = vpop.f32.mrf.mxu0  ;;  %v7679_v25 = vadd.f32 %v13609_v0, %v13612_v45 }
 0x516   : > { %14305 = vst [vmem:[#allocation57_spill] sm:$0xff] %v13789_v34  ;;  %v13807_v34 = vpop.f32.mrf.mxu1 }
 0x517   : > { %v13793_v47 = vpop.f32.mrf.mxu0  ;;  %v7972_v0 = vadd.f32 %v13739_v55, %v7679_v25 }
 0x518   : > { %14307 = vst [vmem:[#allocation69_spill] sm:$0xff] %v13793_v47  ;;  %v7962_v47 = vadd.f32 %v7835_v42, %v7669_v51  ;;  %v7673_v42 = vadd.f32 %v13594_v8, %v13597_v54 }
 0x519   : > { %v13795_v37 = vpop.f32.mrf.mxu0 }
 0x51a   : > { %14308 = vst [vmem:[#allocation38_spill] sm:$0xff] %v13795_v37  ;;  %v7672_v37 = vadd.f32 %v13579_v48, %v13582_v63  ;;  %v8254_v48 = vadd.f32 %v8127_v10, %v7962_v47  ;;  %v7966_v47 = vadd.f32 %v13729_v23, %v7673_v42 }
 0x51b   : > { %v13799_v60 = vpop.f32.mrf.mxu0 }
 0x51c   : > { %14310 = vst [vmem:[#allocation43_spill] sm:$0xff] %v13799_v60  ;;  %v7670_v60 = vadd.f32 %v13584_v21, %v13587_v36  ;;  %v7965_v27 = vadd.f32 %v10520_v59, %v7672_v37  ;;  %v7968_v21 = vadd.f32 %v10523_v38, %v7675_v15  ;;  %v13831_v36 = vld [vmem:[%s14098_s8] ss:$0 sm:$0xff] }
 0x51d   : > { %v13803_v14 = vpop.f32.mrf.mxu0 }
 0x51e   : > { %14311 = vst [vmem:[#allocation70_spill] sm:$0xff] %v13803_v14  ;;  %v13817_v14 = vpop.f32.mrf.mxu1  ;;  %v7963_v63 = vadd.f32 %v7838_v7, %v7670_v60  ;;  %v8257_v6 = vadd.f32 %v10554_v18, %v7965_v27  ;;  %v7676_v60 = vadd.f32 %v13599_v43, %v13602_v52  ;;  %v8260_v18 = vadd.f32 %v13737_v13, %v7968_v21 }
 0x51f   : > { %v13809_v28 = vpop.f32.mrf.mxu0  ;;  %v8258_v13 = vadd.f32 %v13743_v16, %v7966_v47 }
 0x520   : > { %v13833_v37 = vpop.f32.mrf.mxu1  ;;  %v8255_v54 = vadd.f32 %v13731_v5, %v7963_v63  ;;  %v7969_v38 = vadd.f32 %v13733_v61, %v7676_v60  ;;  %v7967_v61 = vadd.f32 %v13735_v33, %v7674_v11  ;;  %v7683_v11 = vadd.f32 %v13629_v3, %v13632_v31 }
 0x521   : > { %v13813_v39 = vpop.f32.mrf.mxu0 }
 0x522   : > { %v13852_v52 = vpop.f32.mrf.mxu1  ;;  %v8261_v42 = vadd.f32 %v13749_v1, %v7969_v38  ;;  %v7976_v3 = vadd.f32 %v13751_v50, %v7683_v11 }
 0x523   : > { %v10587_v17 = vpop.f32.mrf.mxu0 }
 0x524   : > { %v8548_v51 = vadd.f32 %v10587_v17, %v8256_v53  ;;  %v13868_v16 = vpop.f32.mrf.mxu1 }
 0x525   : > { %v8419_v26 = vpop.f32.mrf.mxu0 }
 0x526   : > { %v8587_v40 = vmul.f32 %v13824_v9, %v8548_v51  ;;  %v8546_v59 = vadd.f32 %v8419_v26, %v8254_v48  ;;  %v7677_v51 = vadd.f32 %v13614_v57, %v13617_v44  ;;  %v8259_v57 = vadd.f32 %v13755_v2, %v7967_v61  ;;  %v13886_v2 = vpop.f32.mrf.mxu1 }
 0x527   : > { %v10588_v8 = vpop.f32.mrf.mxu0 }
 0x528   : > { %v8626_v7 = vadd.f32 %v13831_v36, %v8587_v40  ;;  %v8585_v10 = vmul.f32 %v13824_v9, %v8546_v59  ;;  %v8549_v22 = vadd.f32 %v10588_v8, %v8257_v6  ;;  %v7680_v40 = vadd.f32 %v13619_v4, %v13622_v32 }
 0x529   : > { %v8422_v43 = vpop.f32.mrf.mxu0  ;;  %v7970_v44 = vadd.f32 %v13741_v49, %v7677_v51  ;;  %v7678_v8 = vadd.f32 %v13624_v41, %v13627_v56  ;;  %v14315_v51 = vld [vmem:[#allocation6_spill] sm:$0xff] }
 0x52a   : > { %v8658_v23 = vmax.f32 %v8626_v7, 0.0  ;;  %v8624_v5 = vadd.f32 %v13831_v36, %v8585_v10  ;;  %v8588_v53 = vmul.f32 %v13824_v9, %v8549_v22  ;;  %v8547_v46 = vadd.f32 %v8422_v43, %v8255_v54 }
 0x52b   : > { %v10591_v27 = vpop.f32.mrf.mxu0  ;;  %v8264_v54 = vadd.f32 %v13761_v12, %v7972_v0  ;;  %v7973_v4 = vadd.f32 %v13745_v24, %v7680_v40  ;;  %v8262_v41 = vadd.f32 %v13767_v35, %v7970_v44  ;;  %v7971_v56 = vadd.f32 %v13747_v29, %v7678_v8  ;;  %v13904_v35 = vpop.f32.mrf.mxu1  ;;  %v14316_v0 = vld [vmem:[#allocation78_spill] sm:$0xff]  ;;  %v14318_v44 = vld [vmem:[#allocation8_spill] sm:$0xff] }
 0x52c   : > { %8691 = vst.msk [vmem:[%s13850_s26 + $0x10] sm:$0xff] %vm8688_vm3, %v8658_v23  ;;  %v8656_v15 = vmax.f32 %v8624_v5, 0.0  ;;  %v8627_v17 = vadd.f32 %v13831_v36, %v8588_v53  ;;  %v8586_v48 = vmul.f32 %v13824_v9, %v8547_v46  ;;  %v8552_v63 = vadd.f32 %v10591_v27, %v8260_v18 }
 0x52d   : > { %v8435_v45 = vpop.f32.mrf.mxu0  ;;  %v7681_v23 = vadd.f32 %v13634_v20, %v13637_v19  ;;  %v8265_v5 = vadd.f32 %v13773_v30, %v7973_v4  ;;  %v8263_v20 = vadd.f32 %v13779_v62, %v7971_v56  ;;  %v14313_v19 = vld [vmem:[#allocation68_spill] sm:$0xff] }
 0x52e   : > { %8689 = vst.msk [vmem:[%s13850_s26] sm:$0xff] %vm8688_vm3, %v8656_v15  ;;  %v8659_v33 = vmax.f32 %v8627_v17, 0.0  ;;  %v8625_v21 = vadd.f32 %v13831_v36, %v8586_v48  ;;  %v8591_v26 = vmul.f32 %v13824_v9, %v8552_v63  ;;  %v8550_v6 = vadd.f32 %v8435_v45, %v8258_v13  ;;  %v14312_v13 = vld [vmem:[#allocation5_spill] sm:$0xff]  ;;  %v14314_v63 = vld [vmem:[#allocation7_spill] sm:$0xff] }
 0x52f   : > { %v10592_v1 = vpop.f32.mrf.mxu0  ;;  %v7684_v61 = vadd.f32 %v14312_v13, %v13642_v58  ;;  %v7974_v30 = vadd.f32 %v14313_v19, %v7681_v23  ;;  %v8268_v45 = vadd.f32 %v14316_v0, %v7976_v3  ;;  %v14317_v58 = vld [vmem:[#allocation60_spill] sm:$0xff] }
 0x530   : > { %8692 = vst.msk [vmem:[%s13850_s26 + $0x18] sm:$0xff] %vm8688_vm3, %v8659_v33  ;;  %v8657_v55 = vmax.f32 %v8625_v21, 0.0  ;;  %v8630_v59 = vadd.f32 %v13831_v36, %v8591_v26  ;;  %v8589_v60 = vmul.f32 %v13824_v9, %v8550_v6  ;;  %v8553_v47 = vadd.f32 %v10592_v1, %v8261_v42  ;;  %v13922_v21 = vpop.f32.mrf.mxu1  ;;  %v14319_v1 = vld [vmem:[#allocation9_spill] sm:$0xff] }
 0x531   : > { %v8438_v32 = vpop.f32.mrf.mxu0  ;;  %v7682_v42 = vadd.f32 %v14315_v51, %v14314_v63  ;;  %v7977_v33 = vadd.f32 %v14317_v58, %v7684_v61  ;;  %v14331_v63 = vld [vmem:[#allocation61_spill] sm:$0xff] }
 0x532   : > { %8690 = vst.msk [vmem:[%s13850_s26 + $0x8] sm:$0xff] %vm8688_vm3, %v8657_v55  ;;  %v8662_v49 = vmax.f32 %v8630_v59, 0.0  ;;  %v8628_v7 = vadd.f32 %v13831_v36, %v8589_v60  ;;  %v8592_v10 = vmul.f32 %v13824_v9, %v8553_v47  ;;  %v8551_v22 = vadd.f32 %v8438_v32, %v8259_v57  ;;  %v14320_v59 = vld [vmem:[#allocation67_spill] sm:$0xff]  ;;  %v14321_v47 = vld [vmem:[#allocation32_spill] sm:$0xff] }
 0x533   : > { %v10595_v12 = vpop.f32.mrf.mxu0  ;;  %v7687_v55 = vadd.f32 %v14319_v1, %v14318_v44  ;;  %v8266_v60 = vadd.f32 %v14320_v59, %v7974_v30  ;;  %v7975_v8 = vadd.f32 %v14321_v47, %v7682_v42  ;;  %v14335_v47 = vld [vmem:[#allocation19_spill] sm:$0xff] }
 0x534   : > { %8695 = vst.msk [vmem:[%s13850_s26 + $0x30] sm:$0xff] %vm8688_vm3, %v8662_v49  ;;  %v8660_v24 = vmax.f32 %v8628_v7, 0.0  ;;  %v8631_v18 = vadd.f32 %v13831_v36, %v8592_v10  ;;  %v8590_v38 = vmul.f32 %v13824_v9, %v8551_v22  ;;  %v8556_v43 = vadd.f32 %v10595_v12, %v8264_v54  ;;  %v14322_v10 = vld [vmem:[#allocation12_spill] sm:$0xff]  ;;  %v14323_v22 = vld [vmem:[#allocation10_spill] sm:$0xff]  ;;  %v14325_v12 = vld [vmem:[#allocation31_spill] sm:$0xff] }
 0x535   : > { %v8451_v31 = vpop.f32.mrf.mxu0  ;;  %v7685_v11 = vadd.f32 %v14323_v22, %v14322_v10 }
 0x536   : > { %8693 = vst.msk [vmem:[%s13850_s26 + $0x20] sm:$0xff] %vm8688_vm3, %v8660_v24  ;;  %v8663_v29 = vmax.f32 %v8631_v18, 0.0  ;;  %v8629_v53 = vadd.f32 %v13831_v36, %v8590_v38  ;;  %v8595_v46 = vmul.f32 %v13824_v9, %v8556_v43  ;;  %v8554_v25 = vadd.f32 %v8451_v31, %v8262_v41  ;;  %v14324_v41 = vld [vmem:[#allocation37_spill] sm:$0xff]  ;;  %v13940_v38 = vpop.f32.mrf.mxu1  ;;  %v14326_v31 = vld [vmem:[#allocation14_spill] sm:$0xff] }
 0x537   : > { %v10596_v50 = vpop.f32.mrf.mxu0  ;;  %v8269_v56 = vadd.f32 %v14324_v41, %v7977_v33  ;;  %v7980_v24 = vadd.f32 %v14325_v12, %v7687_v55  ;;  %v14339_v12 = vld [vmem:[#allocation55_spill] sm:$0xff] }
 0x538   : > { %8696 = vst.msk [vmem:[%s13850_s26 + $0x38] sm:$0xff] %vm8688_vm3, %v8663_v29  ;;  %v8661_v27 = vmax.f32 %v8629_v53, 0.0  ;;  %v8634_v15 = vadd.f32 %v13831_v36, %v8595_v46  ;;  %v8593_v17 = vmul.f32 %v13824_v9, %v8554_v25  ;;  %v8557_v48 = vadd.f32 %v10596_v50, %v8265_v5  ;;  %v14327_v29 = vld [vmem:[#allocation11_spill] sm:$0xff]  ;;  %v13958_v42 = vpop.f32.mrf.mxu1 }
 0x539   : > { %v8454_v62 = vpop.f32.mrf.mxu0  ;;  %v7688_v53 = vadd.f32 %v14327_v29, %v14326_v31  ;;  %v8267_v46 = vadd.f32 %v13807_v34, %v7975_v8  ;;  %v14328_v25 = vld [vmem:[#allocation71_spill] sm:$0xff]  ;;  %v14336_v8 = vld [vmem:[#allocation17_spill] sm:$0xff] }
 0x53a   : > { %8694 = vst.msk [vmem:[%s13850_s26 + $0x28] sm:$0xff] %vm8688_vm3, %v8661_v27  ;;  %v8666_v26 = vmax.f32 %v8634_v15, 0.0  ;;  %v8632_v6 = vadd.f32 %v13831_v36, %v8593_v17  ;;  %v8596_v40 = vmul.f32 %v13824_v9, %v8557_v48  ;;  %v8555_v57 = vadd.f32 %v8454_v62, %v8263_v20  ;;  %v14329_v27 = vld [vmem:[#allocation16_spill] sm:$0xff]  ;;  %v14330_v15 = vld [vmem:[#allocation13_spill] sm:$0xff]  ;;  %v14332_v62 = vld [vmem:[#allocation18_spill] sm:$0xff] }
 0x53b   : > { %v10599_v54 = vpop.f32.mrf.mxu0  ;;  %v7978_v13 = vadd.f32 %v14328_v25, %v7685_v11  ;;  %v7686_v17 = vadd.f32 %v14330_v15, %v14329_v27  ;;  %v8272_v48 = vadd.f32 %v13817_v14, %v7980_v24  ;;  %v7981_v51 = vadd.f32 %v14331_v63, %v7688_v53  ;;  %v14334_v14 = vld [vmem:[#allocation63_spill] sm:$0xff] }
 0x53c   : > { %8699 = vst.msk [vmem:[%s13850_s26 + $0x50] sm:$0xff] %vm8688_vm3, %v8666_v26  ;;  %v8664_v4 = vmax.f32 %v8632_v6, 0.0  ;;  %v8635_v32 = vadd.f32 %v13831_v36, %v8596_v40  ;;  %v8594_v49 = vmul.f32 %v13824_v9, %v8555_v57  ;;  %v8560_v7 = vadd.f32 %v10599_v54, %v8268_v45  ;;  %v14333_v26 = vld [vmem:[#allocation15_spill] sm:$0xff] }
 0x53d   : > { %v8467_v18 = vpop.f32.mrf.mxu0  ;;  %v7691_v6 = vadd.f32 %v14333_v26, %v14332_v62  ;;  %v8270_v40 = vadd.f32 %v13833_v37, %v7978_v13  ;;  %v7979_v57 = vadd.f32 %v14334_v14, %v7686_v17  ;;  %v7689_v54 = vadd.f32 %v14336_v8, %v14335_v47  ;;  %v14341_v53 = vld [vmem:[#allocation59_spill] sm:$0xff]  ;;  %v14344_v17 = vld [vmem:[#allocation22_spill] sm:$0xff]  ;;  %v14347_v26 = vld [vmem:[#allocation20_spill] sm:$0xff] }
 0x53e   : > { %8697 = vst.msk [vmem:[%s13850_s26 + $0x40] sm:$0xff] %vm8688_vm3, %v8664_v4  ;;  %v8667_v43 = vmax.f32 %v8635_v32, 0.0  ;;  %v8633_v23 = vadd.f32 %v13831_v36, %v8594_v49  ;;  %v8599_v5 = vmul.f32 %v13824_v9, %v8560_v7  ;;  %v8558_v3 = vadd.f32 %v8467_v18, %v8266_v60  ;;  %v14337_v32 = vld [vmem:[#allocation34_spill] sm:$0xff]  ;;  %v13976_v7 = vpop.f32.mrf.mxu1  ;;  %v14350_v8 = vld [vmem:[#allocation23_spill] sm:$0xff] }
 0x53f   : > { %v10600_v61 = vpop.f32.mrf.mxu0  ;;  %v8273_v4 = vadd.f32 %v13852_v52, %v7981_v51  ;;  %v7984_v49 = vadd.f32 %v14337_v32, %v7691_v6  ;;  %v8271_v18 = vadd.f32 %v13868_v16, %v7979_v57  ;;  %v14340_v52 = vld [vmem:[#allocation33_spill] sm:$0xff]  ;;  %v14349_v57 = vld [vmem:[#allocation66_spill] sm:$0xff] }
 0x540   : > { %8700 = vst.msk [vmem:[%s13850_s26 + $0x58] sm:$0xff] %vm8688_vm3, %v8667_v43  ;;  %v8665_v20 = vmax.f32 %v8633_v23, 0.0  ;;  %v8638_v19 = vadd.f32 %v13831_v36, %v8599_v5  ;;  %v8597_v30 = vmul.f32 %v13824_v9, %v8558_v3  ;;  %v8561_v50 = vadd.f32 %v10600_v61, %v8269_v56  ;;  %v14338_v56 = vld [vmem:[#allocation53_spill] sm:$0xff]  ;;  %v14343_v61 = vld [vmem:[#allocation36_spill] sm:$0xff] }
 0x541   : > { %v8470_v34 = vpop.f32.mrf.mxu0  ;;  %v7692_v24 = vadd.f32 %v14339_v12, %v14338_v56  ;;  %v7982_v43 = vadd.f32 %v14340_v52, %v7689_v54  ;;  %v8276_v13 = vadd.f32 %v13886_v2, %v7984_v49  ;;  %v14348_v6 = vld [vmem:[#allocation21_spill] sm:$0xff]  ;;  %v14351_v54 = vld [vmem:[#allocation24_spill] sm:$0xff] }
 0x542   : > { %8698 = vst.msk [vmem:[%s13850_s26 + $0x48] sm:$0xff] %vm8688_vm3, %v8665_v20  ;;  %v8670_v0 = vmax.f32 %v8638_v19, 0.0  ;;  %v8636_v45 = vadd.f32 %v13831_v36, %v8597_v30  ;;  %v8600_v58 = vmul.f32 %v13824_v9, %v8561_v50  ;;  %v8559_v33 = vadd.f32 %v8470_v34, %v8267_v46  ;;  %v14342_v46 = vld [vmem:[#allocation27_spill] sm:$0xff]  ;;  %v10578_v19 = vpop.f32.mrf.mxu1  ;;  %v14346_v34 = vld [vmem:[#allocation64_spill] sm:$0xff]  ;;  %v14352_v49 = vld [vmem:[#allocation57_spill] sm:$0xff] }
 0x543   : > { %v10603_v44 = vpop.f32.mrf.mxu0  ;;  %v7690_v25 = vadd.f32 %v14342_v46, %v14341_v53  ;;  %v7985_v20 = vadd.f32 %v14343_v61, %v7692_v24  ;;  %v8274_v51 = vadd.f32 %v13904_v35, %v7982_v43  ;;  %v14353_v12 = vld [vmem:[#allocation56_spill] sm:$0xff]  ;;  %v14354_v24 = vld [vmem:[#allocation62_spill] sm:$0xff]  ;;  %v14355_v43 = vld [vmem:[#allocation69_spill] sm:$0xff] }
 0x544   : > { %8703 = vst.msk [vmem:[%s13850_s26 + $0x70] sm:$0xff] %vm8688_vm3, %v8670_v0  ;;  %v8668_v1 = vmax.f32 %v8636_v45, 0.0  ;;  %v8639_v55 = vadd.f32 %v13831_v36, %v8600_v58  ;;  %v8598_v59 = vmul.f32 %v13824_v9, %v8559_v33  ;;  %v8564_v60 = vadd.f32 %v10603_v44, %v8272_v48  ;;  %v14345_v48 = vld [vmem:[#allocation54_spill] sm:$0xff]  ;;  %v14356_v53 = vld [vmem:[#allocation25_spill] sm:$0xff] }
 0x545   : > { %v8483_v37 = vpop.f32.mrf.mxu0  ;;  %v7695_v63 = vadd.f32 %v14345_v48, %v14344_v17  ;;  %v7983_v2 = vadd.f32 %v14346_v34, %v7690_v25  ;;  %v8277_v14 = vadd.f32 %v13922_v21, %v7985_v20  ;;  %v14357_v46 = vld [vmem:[#allocation26_spill] sm:$0xff]  ;;  %v14359_v17 = vld [vmem:[#allocation65_spill] sm:$0xff]  ;;  %v14360_v48 = vld [vmem:[#allocation28_spill] sm:$0xff] }
 0x546   : > { %8701 = vst.msk [vmem:[%s13850_s26 + $0x60] sm:$0xff] %vm8688_vm3, %v8668_v1  ;;  %v8671_v10 = vmax.f32 %v8639_v55, 0.0  ;;  %v8637_v22 = vadd.f32 %v13831_v36, %v8598_v59  ;;  %v8603_v11 = vmul.f32 %v13824_v9, %v8564_v60  ;;  %v8562_v41 = vadd.f32 %v8483_v37, %v8270_v40  ;;  %v8226_v1 = vpop.f32.mrf.mxu1  ;;  %v14358_v61 = vld [vmem:[#allocation38_spill] sm:$0xff]  ;;  %v14361_v34 = vld [vmem:[#allocation43_spill] sm:$0xff] }
 0x547   : > { %v10604_v23 = vpop.f32.mrf.mxu0  ;;  %v7693_v40 = vadd.f32 %v14348_v6, %v14347_v26  ;;  %v7988_v44 = vadd.f32 %v14349_v57, %v7695_v63  ;;  %v8275_v32 = vadd.f32 %v13940_v38, %v7983_v2  ;;  %v7699_v25 = vadd.f32 %v14357_v46, %v14356_v53  ;;  %v14363_v26 = vld [vmem:[#allocation58_spill] sm:$0xff] }
 0x548   : > { %8704 = vst.msk [vmem:[%s13850_s26 + $0x78] sm:$0xff] %vm8688_vm3, %v8671_v10  ;;  %v8669_v5 = vmax.f32 %v8637_v22, 0.0  ;;  %v8642_v3 = vadd.f32 %v13831_v36, %v8603_v11  ;;  %v8601_v31 = vmul.f32 %v13824_v9, %v8562_v41  ;;  %v8565_v29 = vadd.f32 %v10604_v23, %v8273_v4  ;;  %v10581_v10 = vpop.f32.mrf.mxu1 }
 0x549   : > { %v8486_v16 = vpop.f32.mrf.mxu0  ;;  %v7696_v4 = vadd.f32 %v14351_v54, %v14350_v8  ;;  %v7986_v21 = vadd.f32 %v14352_v49, %v7693_v40  ;;  %v8280_v52 = vadd.f32 %v13958_v42, %v7988_v44  ;;  %v7697_v63 = vadd.f32 %v14360_v48, %v14359_v17  ;;  %v14366_v8 = vld [vmem:[#allocation29_spill] sm:$0xff] }
 0x54a   : > { %8702 = vst.msk [vmem:[%s13850_s26 + $0x68] sm:$0xff] %vm8688_vm3, %v8669_v5  ;;  %v8674_v30 = vmax.f32 %v8642_v3, 0.0  ;;  %v8640_v50 = vadd.f32 %v13831_v36, %v8601_v31  ;;  %v8604_v27 = vmul.f32 %v13824_v9, %v8565_v29  ;;  %v8563_v15 = vadd.f32 %v8486_v16, %v8271_v18  ;;  %v8239_v16 = vpop.f32.mrf.mxu1 }
 0x54b   : > { %v10607_v0 = vpop.f32.mrf.mxu0  ;;  %v7694_v18 = vadd.f32 %v14354_v24, %v14353_v12  ;;  %v7989_v38 = vadd.f32 %v14355_v43, %v7696_v4  ;;  %v7992_v2 = vadd.f32 %v14361_v34, %v7699_v25 }
 0x54c   : > { %8707 = vst.msk [vmem:[%s13850_s26 + $0x90] sm:$0xff] %vm8688_vm3, %v8674_v30  ;;  %v8672_v45 = vmax.f32 %v8640_v50, 0.0  ;;  %v8643_v58 = vadd.f32 %v13831_v36, %v8604_v27  ;;  %v8602_v33 = vmul.f32 %v13824_v9, %v8563_v15  ;;  %v8568_v62 = vadd.f32 %v10607_v0, %v8276_v13 }
 0x54d   : > { %v8499_v35 = vpop.f32.mrf.mxu0  ;;  %v8278_v13 = vadd.f32 %v13976_v7, %v7986_v21  ;;  %v7987_v20 = vadd.f32 %v14358_v61, %v7694_v18  ;;  %v8284_v4 = vadd.f32 %v10581_v10, %v7992_v2 }
 0x54e   : > { %8705 = vst.msk [vmem:[%s13850_s26 + $0x80] sm:$0xff] %vm8688_vm3, %v8672_v45  ;;  %v8675_v55 = vmax.f32 %v8643_v58, 0.0  ;;  %v8641_v59 = vadd.f32 %v13831_v36, %v8602_v33  ;;  %v8607_v60 = vmul.f32 %v13824_v9, %v8568_v62  ;;  %v8566_v47 = vadd.f32 %v8499_v35, %v8274_v51  ;;  %v14362_v62 = vld [vmem:[#allocation30_spill] sm:$0xff] }
 0x54f   : > { %v10608_v37 = vpop.f32.mrf.mxu0  ;;  %v8281_v51 = vadd.f32 %v10578_v19, %v7989_v38  ;;  %v7700_v6 = vadd.f32 %v14363_v26, %v14362_v62  ;;  %v8279_v40 = vadd.f32 %v8226_v1, %v7987_v20  ;;  %v10582_v19 = vpop.f32.mrf.mxu1 }
 0x550   : > { %8708 = vst.msk [vmem:[%s13850_s26 + $0x98] sm:$0xff] %vm8688_vm3, %v8675_v55  ;;  %v8673_v22 = vmax.f32 %v8641_v59, 0.0  ;;  %v8646_v11 = vadd.f32 %v13831_v36, %v8607_v60  ;;  %v8605_v41 = vmul.f32 %v13824_v9, %v8566_v47  ;;  %v8569_v56 = vadd.f32 %v10608_v37, %v8277_v14  ;;  %v14364_v14 = vld [vmem:[#allocation70_spill] sm:$0xff]  ;;  %v14365_v47 = vld [vmem:[#allocation35_spill] sm:$0xff] }
 0x551   : > { %v8502_v23 = vpop.f32.mrf.mxu0  ;;  %v7990_v57 = vadd.f32 %v14364_v14, %v7697_v63  ;;  %v7698_v54 = vadd.f32 %v14366_v8, %v14365_v47  ;;  %v8242_v12 = vpop.f32.mrf.mxu1 }
 0x552   : > { %8706 = vst.msk [vmem:[%s13850_s26 + $0x88] sm:$0xff] %vm8688_vm3, %v8673_v22  ;;  %v8678_v5 = vmax.f32 %v8646_v11, 0.0  ;;  %v8644_v3 = vadd.f32 %v13831_v36, %v8605_v41  ;;  %v8608_v31 = vmul.f32 %v13824_v9, %v8569_v56  ;;  %v8567_v29 = vadd.f32 %v8502_v23, %v8275_v32 }
 0x553   : > { %v10611_v42 = vpop.f32.mrf.mxu0  ;;  %v7993_v32 = vadd.f32 %v13809_v28, %v7700_v6  ;;  %v8282_v11 = vadd.f32 %v8239_v16, %v7990_v57  ;;  %v7991_v41 = vadd.f32 %v13813_v39, %v7698_v54 }
 0x554   : > { %8711 = vst.msk [vmem:[%s13850_s26 + $0xb0] sm:$0xff] %vm8688_vm3, %v8678_v5  ;;  %v8676_v30 = vmax.f32 %v8644_v3, 0.0  ;;  %v8647_v50 = vadd.f32 %v13831_v36, %v8608_v31  ;;  %v8606_v27 = vmul.f32 %v13824_v9, %v8567_v29  ;;  %v8572_v15 = vadd.f32 %v10611_v42, %v8280_v52 }
 0x555   : > { %v8515_v7 = vpop.f32.mrf.mxu0  ;;  %v8285_v52 = vadd.f32 %v10582_v19, %v7993_v32  ;;  %v8283_v3 = vadd.f32 %v8242_v12, %v7991_v41 }
 0x556   : > { %8709 = vst.msk [vmem:[%s13850_s26 + $0xa0] sm:$0xff] %vm8688_vm3, %v8676_v30  ;;  %v8679_v0 = vmax.f32 %v8647_v50, 0.0  ;;  %v8645_v45 = vadd.f32 %v13831_v36, %v8606_v27  ;;  %v8611_v58 = vmul.f32 %v13824_v9, %v8572_v15  ;;  %v8570_v33 = vadd.f32 %v8515_v7, %v8278_v13 }
 0x557   : > { %v10612_v44 = vpop.f32.mrf.mxu0 }
 0x558   : > { %8712 = vst.msk [vmem:[%s13850_s26 + $0xb8] sm:$0xff] %vm8688_vm3, %v8679_v0  ;;  %v8677_v35 = vmax.f32 %v8645_v45, 0.0  ;;  %v8650_v55 = vadd.f32 %v13831_v36, %v8611_v58  ;;  %v8609_v59 = vmul.f32 %v13824_v9, %v8570_v33  ;;  %v8573_v60 = vadd.f32 %v10612_v44, %v8281_v51 }
 0x559   : > { %v8518_v1 = vpop.f32.mrf.mxu0 }
 0x55a   : > { %8710 = vst.msk [vmem:[%s13850_s26 + $0xa8] sm:$0xff] %vm8688_vm3, %v8677_v35  ;;  %v8682_v49 = vmax.f32 %v8650_v55, 0.0  ;;  %v8648_v21 = vadd.f32 %v13831_v36, %v8609_v59  ;;  %v8612_v37 = vmul.f32 %v13824_v9, %v8573_v60  ;;  %v8571_v22 = vadd.f32 %v8518_v1, %v8279_v40 }
 0x55b   : > { %v10615_v56 = vpop.f32.mrf.mxu0 }
 0x55c   : > { %8715 = vst.msk [vmem:[%s13850_s26 + $0xd0] sm:$0xff] %vm8688_vm3, %v8682_v49  ;;  %v8680_v10 = vmax.f32 %v8648_v21, 0.0  ;;  %v8651_v28 = vadd.f32 %v13831_v36, %v8612_v37  ;;  %v8610_v24 = vmul.f32 %v13824_v9, %v8571_v22  ;;  %v8576_v18 = vadd.f32 %v10615_v56, %v8284_v4 }
 0x55d   : > { %v8531_v43 = vpop.f32.mrf.mxu0 }
 0x55e   : > { %8713 = vst.msk [vmem:[%s13850_s26 + $0xc0] sm:$0xff] %vm8688_vm3, %v8680_v10  ;;  %v8683_v38 = vmax.f32 %v8651_v28, 0.0  ;;  %v8649_v23 = vadd.f32 %v13831_v36, %v8610_v24  ;;  %v8615_v39 = vmul.f32 %v13824_v9, %v8576_v18  ;;  %v8574_v5 = vadd.f32 %v8531_v43, %v8282_v11 }
 0x55f   : > { %v10616_v31 = vpop.f32.mrf.mxu0 }
 0x560   : > { %8716 = vst.msk [vmem:[%s13850_s26 + $0xd8] sm:$0xff] %vm8688_vm3, %v8683_v38  ;;  %v8681_v29 = vmax.f32 %v8649_v23, 0.0  ;;  %v8654_v53 = vadd.f32 %v13831_v36, %v8615_v39  ;;  %v8613_v46 = vmul.f32 %v13824_v9, %v8574_v5  ;;  %v8577_v25 = vadd.f32 %v10616_v31, %v8285_v52 }
 0x561   : > { %v8534_v13 = vpop.f32.mrf.mxu0 }
 0x562   : > { %8714 = vst.msk [vmem:[%s13850_s26 + $0xc8] sm:$0xff] %vm8688_vm3, %v8681_v29  ;;  %v8686_v61 = vmax.f32 %v8654_v53, 0.0  ;;  %v8652_v20 = vadd.f32 %v13831_v36, %v8613_v46  ;;  %v8616_v42 = vmul.f32 %v13824_v9, %v8577_v25  ;;  %v8575_v16 = vadd.f32 %v8534_v13, %v8283_v3 }
 0x564   : > { %8719 = vst.msk [vmem:[%s13850_s26 + $0xf0] sm:$0xff] %vm8688_vm3, %v8686_v61  ;;  %v8684_v30 = vmax.f32 %v8652_v20, 0.0  ;;  %v8655_v50 = vadd.f32 %v13831_v36, %v8616_v42  ;;  %v8614_v27 = vmul.f32 %v13824_v9, %v8575_v16 }
 0x566   : > { %8717 = vst.msk [vmem:[%s13850_s26 + $0xe0] sm:$0xff] %vm8688_vm3, %v8684_v30  ;;  %v8687_v15 = vmax.f32 %v8655_v50, 0.0  ;;  %v8653_v17 = vadd.f32 %v13831_v36, %v8614_v27 }
 0x568   : > { %8720 = vst.msk [vmem:[%s13850_s26 + $0xf8] sm:$0xff] %vm8688_vm3, %v8687_v15  ;;  %v8685_v48 = vmax.f32 %v8653_v17, 0.0 }
 0x56a   : > { %8718 = vst.msk [vmem:[%s13850_s26 + $0xe8] sm:$0xff] %vm8688_vm3, %v8685_v48 }
 0x56b PF: > { %s19_s30 = sadd.s32 1, %s10662_s30  }
 0x56c   : > { %p16_p4 = scmp.ge.s32.totalorder %s19_s30, 4  }
 0x56e   :  { %18 = sbr.rel (!%p16_p4) target bundleno = 1 (0x1), region = 95 }

</bundles_post_ra>
